<compile_context>
chip_gen: v5e
topology: v5e:2x2
jax: 0.10.0
libtpu: 0.0.40
codegen_flags: <defaults>
</compile_context>

<pallas_src>
import functools

import jax
import jax.numpy as jnp
from jax.experimental import pallas as pl
from jax.experimental.pallas import tpu as pltpu


def lstm_kernel(x_ref, wx_ref, wh_ref, b_ref, h0_ref, c0_ref,
                out_ref, hT_ref, cT_ref,
                h_sc, c_sc, gates_sc, *, num_hiddens, chunk, batch):
    nh = num_hiddens
    ts = chunk
    B = batch
    t = pl.program_id(0)

    # Initialize the recurrent carry on the first chunk only.
    @pl.when(t == 0)
    def _():
        h_sc[...] = h0_ref[...].astype(jnp.float32)
        c_sc[...] = c0_ref[...].astype(jnp.float32)

    # ---- Non-recurrent part: input projection for the whole chunk as ONE
    # (ts*B, D) x (D, 4H) MXU matmul (bf16 operands, f32 accumulation); bias
    # folded in here, once per chunk. x_ref is already a flat (ts*B, D) slab,
    # so no in-kernel reshape is needed. ----
    gates_sc[...] = (
        jnp.dot(x_ref[...], wx_ref[...], preferred_element_type=jnp.float32)
        + b_ref[...])

    wh = wh_ref[...]   # bf16, resident, single-buffered

    # ---- Recurrent part: only h @ W_h + elementwise per step. ----
    def step(s, carry):
        h, c = carry
        row = pl.multiple_of(s * B, B)
        g = gates_sc[pl.ds(row, B), :] + jnp.dot(
            h.astype(jnp.bfloat16), wh, preferred_element_type=jnp.float32)
        sig = jax.nn.sigmoid(g[:, :3 * nh])           # fused i/f/o sigmoid
        i_gate = sig[:, 0 * nh:1 * nh]
        f_gate = sig[:, 1 * nh:2 * nh]
        o_gate = sig[:, 2 * nh:3 * nh]
        c_tilde = jnp.tanh(g[:, 3 * nh:4 * nh])
        c = f_gate * c + i_gate * c_tilde
        h = o_gate * jnp.tanh(c)
        out_ref[s] = h.astype(out_ref.dtype)          # outputs[chunk_base + s]
        return (h, c)

    h, c = jax.lax.fori_loop(0, ts, step, (h_sc[...], c_sc[...]), unroll=True)
    h_sc[...] = h
    c_sc[...] = c

    # Final states: write once, on the last chunk only.
    @pl.when(t == pl.num_programs(0) - 1)
    def _():
        hT_ref[...] = h.astype(hT_ref.dtype)
        cT_ref[...] = c.astype(cT_ref.dtype)


def lstm_forward(inputs, w_x, w_h, b, h0, c0, *, time_chunk=32):
    """inputs: (T, B, D_in); w_x: (D_in, 4H); w_h: (H, 4H); b: (1, 4H);
    h0, c0: (B, H).  Returns (outputs (T, B, H), (H, C))."""
    T, B, D = inputs.shape
    H = w_h.shape[0]
    dtype = inputs.dtype

    # Largest chunk that divides T evenly (no fall-through to ts=1 cliff).
    ts = max(c for c in range(1, min(time_chunk, T) + 1) if T % c == 0)

    # bf16 MXU operands; bias / gate math / accumulation stay f32.
    x_flat = inputs.reshape(T * B, D).astype(jnp.bfloat16)   # time-major, free
    wx_bf = w_x.astype(jnp.bfloat16)
    wh_bf = w_h.astype(jnp.bfloat16)

    # Explicit VMEM budget: single-buffered weights + pipelined X/out chunks
    # + gate scratch + carries, with 2x headroom (floor at the 32 MiB default).
    out_isz = jnp.dtype(dtype).itemsize
    footprint = (
        D * 4 * H * 2                # W_x (bf16, single-buffered)
        + H * 4 * H * 2              # W_h (bf16, single-buffered)
        + 4 * H * 4                  # bias (f32)
        + 2 * B * H * 4              # H0 / C0
        + 2 * ts * B * D * 2         # X chunk (double-buffered)
        + 2 * ts * B * H * out_isz   # out chunk (double-buffered)
        + 2 * 2 * B * H * out_isz    # final H / C outputs
        + ts * B * 4 * H * 4         # gate pre-activation scratch
        + 2 * B * H * 4)             # f32 carries
    vmem_limit = int(min(128 * 1024 * 1024,
                         max(32 * 1024 * 1024, 2 * footprint)))

    kernel = functools.partial(lstm_kernel, num_hiddens=H, chunk=ts, batch=B)

    resident = pl.Buffered(1)   # grid-invariant inputs: no double-buffering

    outputs, h_final, c_final = pl.pallas_call(
        kernel,
        out_shape=(
            jax.ShapeDtypeStruct((T, B, H), dtype),
            jax.ShapeDtypeStruct((B, H), dtype),
            jax.ShapeDtypeStruct((B, H), dtype),
        ),
        grid_spec=pltpu.PrefetchScalarGridSpec(
            num_scalar_prefetch=0,
            grid=(T // ts,),
            in_specs=[
                pl.BlockSpec((ts * B, D), lambda t: (t, 0)),             # X chunk (flat)
                pl.BlockSpec((D, 4 * H), lambda t: (0, 0),
                             pipeline_mode=resident),                    # W_x
                pl.BlockSpec((H, 4 * H), lambda t: (0, 0),
                             pipeline_mode=resident),                    # W_h
                pl.BlockSpec((1, 4 * H), lambda t: (0, 0),
                             pipeline_mode=resident),                    # b
                pl.BlockSpec((B, H), lambda t: (0, 0),
                             pipeline_mode=resident),                    # H0
                pl.BlockSpec((B, H), lambda t: (0, 0),
                             pipeline_mode=resident),                    # C0
            ],
            out_specs=[
                pl.BlockSpec((ts, B, H), lambda t: (t, 0, 0)),           # outputs chunk
                pl.BlockSpec((B, H), lambda t: (0, 0)),                  # final H
                pl.BlockSpec((B, H), lambda t: (0, 0)),                  # final C
            ],
            scratch_shapes=[
                pltpu.VMEM((B, H), jnp.float32),              # H carry
                pltpu.VMEM((B, H), jnp.float32),              # C carry
                pltpu.VMEM((ts * B, 4 * H), jnp.float32),     # chunk gate pre-acts
            ],
        ),
        compiler_params=pltpu.CompilerParams(
            dimension_semantics=("arbitrary",),   # time recurrence is serial
            vmem_limit_bytes=vmem_limit),
    )(x_flat, wx_bf, wh_bf, b, h0, c0)

    return outputs, (h_final, c_final)


def lstm_reference(inputs, w_x, w_h, b, h0, c0):
    """Pure-JAX reference mirroring the PyTorch loop."""
    nh = h0.shape[1]

    def step(carry, x):
        h, c = carry
        gates = x @ w_x + h @ w_h + b
        i = jax.nn.sigmoid(gates[:, 0 * nh:1 * nh])
        f = jax.nn.sigmoid(gates[:, 1 * nh:2 * nh])
        o = jax.nn.sigmoid(gates[:, 2 * nh:3 * nh])
        c_tilde = jnp.tanh(gates[:, 3 * nh:4 * nh])
        c = f * c + i * c_tilde
        h = o * jnp.tanh(c)
        return (h, c), h

    (hT, cT), outs = jax.lax.scan(step, (h0, c0), inputs)
    return outs, (hT, cT)


if __name__ == "__main__":
    # Small shapes consistent with the module's forward. H chosen lane-aligned
    # (128) so gate slices and output stores are full-lane.
    T, B, num_inputs, num_hiddens = 32, 8, 16, 128
    sigma = 0.01
    key = jax.random.PRNGKey(0)
    keys = jax.random.split(key, 13)

    # Deterministic parameter init matching nn.Parameter(randn(...) * sigma).
    # Gate order: i, f, o, c.  (Biases given small random values to exercise
    # the bias-add path; forward semantics are identical for any params.)
    W_xi = jax.random.normal(keys[0], (num_inputs, num_hiddens), jnp.float32) * sigma
    W_hi = jax.random.normal(keys[1], (num_hiddens, num_hiddens), jnp.float32) * sigma
    W_xf = jax.random.normal(keys[2], (num_inputs, num_hiddens), jnp.float32) * sigma
    W_hf = jax.random.normal(keys[3], (num_hiddens, num_hiddens), jnp.float32) * sigma
    W_xo = jax.random.normal(keys[4], (num_inputs, num_hiddens), jnp.float32) * sigma
    W_ho = jax.random.normal(keys[5], (num_hiddens, num_hiddens), jnp.float32) * sigma
    W_xc = jax.random.normal(keys[6], (num_inputs, num_hiddens), jnp.float32) * sigma
    W_hc = jax.random.normal(keys[7], (num_hiddens, num_hiddens), jnp.float32) * sigma
    b_i = jax.random.normal(keys[8], (num_hiddens,), jnp.float32) * sigma
    b_f = jax.random.normal(keys[9], (num_hiddens,), jnp.float32) * sigma
    b_o = jax.random.normal(keys[10], (num_hiddens,), jnp.float32) * sigma
    b_c = jax.random.normal(keys[11], (num_hiddens,), jnp.float32) * sigma

    w_x = jnp.concatenate([W_xi, W_xf, W_xo, W_xc], axis=1)          # (D, 4H)
    w_h = jnp.concatenate([W_hi, W_hf, W_ho, W_hc], axis=1)          # (H, 4H)
    b = jnp.concatenate([b_i, b_f, b_o, b_c])[None, :]               # (1, 4H)

    inputs = jax.random.normal(keys[12], (T, B, num_inputs), jnp.float32)
    # H_C is None in the reference call -> zero initial states.
    h0 = jnp.zeros((B, num_hiddens), jnp.float32)
    c0 = jnp.zeros((B, num_hiddens), jnp.float32)

    outs, (hT, cT) = lstm_forward(inputs, w_x, w_h, b, h0, c0)
    jax.block_until_ready((outs, hT, cT))

    # Correctness check against pure-JAX f32 reference (bf16 MXU operands in
    # the kernel -> 1e-2 tolerance per the review).
    ref_outs, (ref_hT, ref_cT) = lstm_reference(inputs, w_x, w_h, b, h0, c0)
    assert jnp.allclose(outs, ref_outs, atol=1e-2, rtol=1e-2)
    assert jnp.allclose(hT, ref_hT, atol=1e-2, rtol=1e-2)
    assert jnp.allclose(cT, ref_cT, atol=1e-2, rtol=1e-2)

    print("KERNEL_OK")
</pallas_src>

<mosaic_0001>
module attributes {stable_mosaic.version = 11 : i64} {
  func.func @lstm_kernel(%arg0: i32, %arg1: memref<256x16xbf16, #tpu.memory_space<vmem>>, %arg2: memref<16x512xbf16, #tpu.memory_space<vmem>>, %arg3: memref<128x512xbf16, #tpu.memory_space<vmem>>, %arg4: memref<1x512xf32, #tpu.memory_space<vmem>>, %arg5: memref<8x128xf32, #tpu.memory_space<vmem>>, %arg6: memref<8x128xf32, #tpu.memory_space<vmem>>, %arg7: memref<32x8x128xf32, #tpu.memory_space<vmem>>, %arg8: memref<8x128xf32, #tpu.memory_space<vmem>>, %arg9: memref<8x128xf32, #tpu.memory_space<vmem>>, %arg10: memref<8x128xf32, #tpu.memory_space<vmem>>, %arg11: memref<8x128xf32, #tpu.memory_space<vmem>>, %arg12: memref<256x512xf32, #tpu.memory_space<vmem>>) attributes {dimension_semantics = [#tpu.dimension_semantics<arbitrary>], iteration_bounds = array<i64: 1>, scalar_prefetch = 0 : i64, scratch_operands = 3 : i64, tpu.core_type = #tpu.core_type<tc>, window_params = [{transform_indices = @transform_0, window_bounds = array<i64: 256, 16>}, {pipeline_mode = #tpu.pipeline_mode<synchronous>, transform_indices = @transform_1, window_bounds = array<i64: 16, 512>}, {pipeline_mode = #tpu.pipeline_mode<synchronous>, transform_indices = @transform_2, window_bounds = array<i64: 128, 512>}, {pipeline_mode = #tpu.pipeline_mode<synchronous>, transform_indices = @transform_3, window_bounds = array<i64: 1, 512>}, {pipeline_mode = #tpu.pipeline_mode<synchronous>, transform_indices = @transform_4, window_bounds = array<i64: 8, 128>}, {pipeline_mode = #tpu.pipeline_mode<synchronous>, transform_indices = @transform_5, window_bounds = array<i64: 8, 128>}, {transform_indices = @transform_6, window_bounds = array<i64: 32, 8, 128>}, {pipeline_mode = #tpu.pipeline_mode<synchronous>, transform_indices = @transform_7, window_bounds = array<i64: 8, 128>}, {pipeline_mode = #tpu.pipeline_mode<synchronous>, transform_indices = @transform_8, window_bounds = array<i64: 8, 128>}]} {
    %c0_i32 = arith.constant 0 : i32
    %0 = arith.cmpi eq, %arg0, %c0_i32 : i32
    %1 = arith.extui %0 : i1 to i32
    %c0_i32_0 = arith.constant 0 : i32
    %2 = arith.cmpi ne, %1, %c0_i32_0 : i32
    scf.if %2 {
      %c0_213 = arith.constant 0 : index
      %c0_214 = arith.constant 0 : index
      %882 = vector.load %arg5[%c0_213, %c0_214] : memref<8x128xf32, #tpu.memory_space<vmem>>, vector<8x128xf32>
      %c0_215 = arith.constant 0 : index
      %c0_216 = arith.constant 0 : index
      %883 = vector.load %arg10[%c0_215, %c0_216] : memref<8x128xf32, #tpu.memory_space<vmem>>, vector<8x128xf32>
      tpu.vector_store %arg10[%c0_215, %c0_216], %882 {strides = array<i32>} : memref<8x128xf32, #tpu.memory_space<vmem>>, vector<8x128xf32>,
      %c0_217 = arith.constant 0 : index
      %c0_218 = arith.constant 0 : index
      %884 = vector.load %arg6[%c0_217, %c0_218] : memref<8x128xf32, #tpu.memory_space<vmem>>, vector<8x128xf32>
      %c0_219 = arith.constant 0 : index
      %c0_220 = arith.constant 0 : index
      %885 = vector.load %arg11[%c0_219, %c0_220] : memref<8x128xf32, #tpu.memory_space<vmem>>, vector<8x128xf32>
      tpu.vector_store %arg11[%c0_219, %c0_220], %884 {strides = array<i32>} : memref<8x128xf32, #tpu.memory_space<vmem>>, vector<8x128xf32>,
    } else {
    }
    %c0 = arith.constant 0 : index
    %c0_1 = arith.constant 0 : index
    %3 = vector.load %arg1[%c0, %c0_1] : memref<256x16xbf16, #tpu.memory_space<vmem>>, vector<256x16xbf16>
    %c0_2 = arith.constant 0 : index
    %c0_3 = arith.constant 0 : index
    %4 = vector.load %arg2[%c0_2, %c0_3] : memref<16x512xbf16, #tpu.memory_space<vmem>>, vector<16x512xbf16>
    %cst = arith.constant dense<0.000000e+00> : vector<256x512xf32>
    %5 = tpu.matmul %3, %4, %cst {dimension_numbers = #tpu.dot_dimension_numbers<[1], [0], [0], [1], [0, 0, 1, 1], [], []>} : vector<256x16xbf16>, vector<16x512xbf16>, vector<256x512xf32> -> vector<256x512xf32>
    %c0_4 = arith.constant 0 : index
    %c0_5 = arith.constant 0 : index
    %6 = vector.load %arg4[%c0_4, %c0_5] : memref<1x512xf32, #tpu.memory_space<vmem>>, vector<1x512xf32>
    %7 = vector.broadcast %6 : vector<1x512xf32> to vector<256x512xf32>
    %8 = arith.addf %5, %7 : vector<256x512xf32>
    %c0_6 = arith.constant 0 : index
    %c0_7 = arith.constant 0 : index
    %9 = vector.load %arg12[%c0_6, %c0_7] : memref<256x512xf32, #tpu.memory_space<vmem>>, vector<256x512xf32>
    tpu.vector_store %arg12[%c0_6, %c0_7], %8 {strides = array<i32>} : memref<256x512xf32, #tpu.memory_space<vmem>>, vector<256x512xf32>,
    %c0_8 = arith.constant 0 : index
    %c0_9 = arith.constant 0 : index
    %10 = vector.load %arg3[%c0_8, %c0_9] : memref<128x512xbf16, #tpu.memory_space<vmem>>, vector<128x512xbf16>
    %c0_10 = arith.constant 0 : index
    %c0_11 = arith.constant 0 : index
    %11 = vector.load %arg10[%c0_10, %c0_11] : memref<8x128xf32, #tpu.memory_space<vmem>>, vector<8x128xf32>
    %c0_12 = arith.constant 0 : index
    %c0_13 = arith.constant 0 : index
    %12 = vector.load %arg11[%c0_12, %c0_13] : memref<8x128xf32, #tpu.memory_space<vmem>>, vector<8x128xf32>
    %c0_i32_14 = arith.constant 0 : i32
    %c8_i32 = arith.constant 8 : i32
    %13 = arith.muli %c0_i32_14, %c8_i32 : i32
    %14 = tpu.assume_multiple %13, 8 : i32
    %15 = arith.index_cast %14 : i32 to index
    %c0_15 = arith.constant 0 : index
    %16 = vector.load %arg12[%15, %c0_15] : memref<256x512xf32, #tpu.memory_space<vmem>>, vector<8x512xf32>
    %17 = arith.truncf %11 : vector<8x128xf32> to vector<8x128xbf16>
    %cst_16 = arith.constant dense<0.000000e+00> : vector<8x512xf32>
    %18 = tpu.matmul %17, %10, %cst_16 {dimension_numbers = #tpu.dot_dimension_numbers<[1], [0], [0], [1], [0, 0, 1, 1], [], []>} : vector<8x128xbf16>, vector<128x512xbf16>, vector<8x512xf32> -> vector<8x512xf32>
    %19 = arith.addf %16, %18 : vector<8x512xf32>
    %20 = vector.extract_strided_slice %19 {offsets = [0, 0], sizes = [8, 384], strides = [1, 1]} : vector<8x512xf32> to vector<8x384xf32>
    %21 = arith.negf %20 : vector<8x384xf32>
    %22 = math.exp %21 : vector<8x384xf32>
    %cst_17 = arith.constant 1.000000e+00 : f32
    %23 = vector.broadcast %cst_17 : f32 to vector<8x384xf32>
    %24 = arith.addf %23, %22 : vector<8x384xf32>
    %25 = arith.divf %23, %24 : vector<8x384xf32>
    %26 = vector.extract_strided_slice %25 {offsets = [0, 0], sizes = [8, 128], strides = [1, 1]} : vector<8x384xf32> to vector<8x128xf32>
    %27 = vector.extract_strided_slice %25 {offsets = [0, 128], sizes = [8, 128], strides = [1, 1]} : vector<8x384xf32> to vector<8x128xf32>
    %28 = vector.extract_strided_slice %25 {offsets = [0, 256], sizes = [8, 128], strides = [1, 1]} : vector<8x384xf32> to vector<8x128xf32>
    %29 = vector.extract_strided_slice %19 {offsets = [0, 384], sizes = [8, 128], strides = [1, 1]} : vector<8x512xf32> to vector<8x128xf32>
    %30 = math.tanh %29 : vector<8x128xf32>
    %31 = arith.mulf %27, %12 : vector<8x128xf32>
    %32 = arith.mulf %26, %30 : vector<8x128xf32>
    %33 = arith.addf %31, %32 : vector<8x128xf32>
    %34 = math.tanh %33 : vector<8x128xf32>
    %35 = arith.mulf %28, %34 : vector<8x128xf32>
    %36 = arith.index_cast %c0_i32_14 : i32 to index
    %c0_18 = arith.constant 0 : index
    %c0_19 = arith.constant 0 : index
    %37 = vector.load %arg7[%36, %c0_18, %c0_19] : memref<32x8x128xf32, #tpu.memory_space<vmem>>, vector<1x8x128xf32>
    %38 = vector.shape_cast %37 : vector<1x8x128xf32> to vector<8x128xf32>
    %39 = vector.shape_cast %35 : vector<8x128xf32> to vector<1x8x128xf32>
    tpu.vector_store %arg7[%36, %c0_18, %c0_19], %39 {strides = array<i32>} : memref<32x8x128xf32, #tpu.memory_space<vmem>>, vector<1x8x128xf32>,
    %c1_i32 = arith.constant 1 : i32
    %c8_i32_20 = arith.constant 8 : i32
    %40 = arith.muli %c1_i32, %c8_i32_20 : i32
    %41 = tpu.assume_multiple %40, 8 : i32
    %42 = arith.index_cast %41 : i32 to index
    %c0_21 = arith.constant 0 : index
    %43 = vector.load %arg12[%42, %c0_21] : memref<256x512xf32, #tpu.memory_space<vmem>>, vector<8x512xf32>
    %44 = arith.truncf %35 : vector<8x128xf32> to vector<8x128xbf16>
    %cst_22 = arith.constant dense<0.000000e+00> : vector<8x512xf32>
    %45 = tpu.matmul %44, %10, %cst_22 {dimension_numbers = #tpu.dot_dimension_numbers<[1], [0], [0], [1], [0, 0, 1, 1], [], []>} : vector<8x128xbf16>, vector<128x512xbf16>, vector<8x512xf32> -> vector<8x512xf32>
    %46 = arith.addf %43, %45 : vector<8x512xf32>
    %47 = vector.extract_strided_slice %46 {offsets = [0, 0], sizes = [8, 384], strides = [1, 1]} : vector<8x512xf32> to vector<8x384xf32>
    %48 = arith.negf %47 : vector<8x384xf32>
    %49 = math.exp %48 : vector<8x384xf32>
    %cst_23 = arith.constant 1.000000e+00 : f32
    %50 = vector.broadcast %cst_23 : f32 to vector<8x384xf32>
    %51 = arith.addf %50, %49 : vector<8x384xf32>
    %52 = arith.divf %50, %51 : vector<8x384xf32>
    %53 = vector.extract_strided_slice %52 {offsets = [0, 0], sizes = [8, 128], strides = [1, 1]} : vector<8x384xf32> to vector<8x128xf32>
    %54 = vector.extract_strided_slice %52 {offsets = [0, 128], sizes = [8, 128], strides = [1, 1]} : vector<8x384xf32> to vector<8x128xf32>
    %55 = vector.extract_strided_slice %52 {offsets = [0, 256], sizes = [8, 128], strides = [1, 1]} : vector<8x384xf32> to vector<8x128xf32>
    %56 = vector.extract_strided_slice %46 {offsets = [0, 384], sizes = [8, 128], strides = [1, 1]} : vector<8x512xf32> to vector<8x128xf32>
    %57 = math.tanh %56 : vector<8x128xf32>
    %58 = arith.mulf %54, %33 : vector<8x128xf32>
    %59 = arith.mulf %53, %57 : vector<8x128xf32>
    %60 = arith.addf %58, %59 : vector<8x128xf32>
    %61 = math.tanh %60 : vector<8x128xf32>
    %62 = arith.mulf %55, %61 : vector<8x128xf32>
    %63 = arith.index_cast %c1_i32 : i32 to index
    %c0_24 = arith.constant 0 : index
    %c0_25 = arith.constant 0 : index
    %64 = vector.load %arg7[%63, %c0_24, %c0_25] : memref<32x8x128xf32, #tpu.memory_space<vmem>>, vector<1x8x128xf32>
    %65 = vector.shape_cast %64 : vector<1x8x128xf32> to vector<8x128xf32>
    %66 = vector.shape_cast %62 : vector<8x128xf32> to vector<1x8x128xf32>
    tpu.vector_store %arg7[%63, %c0_24, %c0_25], %66 {strides = array<i32>} : memref<32x8x128xf32, #tpu.memory_space<vmem>>, vector<1x8x128xf32>,
    %c2_i32 = arith.constant 2 : i32
    %c8_i32_26 = arith.constant 8 : i32
    %67 = arith.muli %c2_i32, %c8_i32_26 : i32
    %68 = tpu.assume_multiple %67, 8 : i32
    %69 = arith.index_cast %68 : i32 to index
    %c0_27 = arith.constant 0 : index
    %70 = vector.load %arg12[%69, %c0_27] : memref<256x512xf32, #tpu.memory_space<vmem>>, vector<8x512xf32>
    %71 = arith.truncf %62 : vector<8x128xf32> to vector<8x128xbf16>
    %cst_28 = arith.constant dense<0.000000e+00> : vector<8x512xf32>
    %72 = tpu.matmul %71, %10, %cst_28 {dimension_numbers = #tpu.dot_dimension_numbers<[1], [0], [0], [1], [0, 0, 1, 1], [], []>} : vector<8x128xbf16>, vector<128x512xbf16>, vector<8x512xf32> -> vector<8x512xf32>
    %73 = arith.addf %70, %72 : vector<8x512xf32>
    %74 = vector.extract_strided_slice %73 {offsets = [0, 0], sizes = [8, 384], strides = [1, 1]} : vector<8x512xf32> to vector<8x384xf32>
    %75 = arith.negf %74 : vector<8x384xf32>
    %76 = math.exp %75 : vector<8x384xf32>
    %cst_29 = arith.constant 1.000000e+00 : f32
    %77 = vector.broadcast %cst_29 : f32 to vector<8x384xf32>
    %78 = arith.addf %77, %76 : vector<8x384xf32>
    %79 = arith.divf %77, %78 : vector<8x384xf32>
    %80 = vector.extract_strided_slice %79 {offsets = [0, 0], sizes = [8, 128], strides = [1, 1]} : vector<8x384xf32> to vector<8x128xf32>
    %81 = vector.extract_strided_slice %79 {offsets = [0, 128], sizes = [8, 128], strides = [1, 1]} : vector<8x384xf32> to vector<8x128xf32>
    %82 = vector.extract_strided_slice %79 {offsets = [0, 256], sizes = [8, 128], strides = [1, 1]} : vector<8x384xf32> to vector<8x128xf32>
    %83 = vector.extract_strided_slice %73 {offsets = [0, 384], sizes = [8, 128], strides = [1, 1]} : vector<8x512xf32> to vector<8x128xf32>
    %84 = math.tanh %83 : vector<8x128xf32>
    %85 = arith.mulf %81, %60 : vector<8x128xf32>
    %86 = arith.mulf %80, %84 : vector<8x128xf32>
    %87 = arith.addf %85, %86 : vector<8x128xf32>
    %88 = math.tanh %87 : vector<8x128xf32>
    %89 = arith.mulf %82, %88 : vector<8x128xf32>
    %90 = arith.index_cast %c2_i32 : i32 to index
    %c0_30 = arith.constant 0 : index
    %c0_31 = arith.constant 0 : index
    %91 = vector.load %arg7[%90, %c0_30, %c0_31] : memref<32x8x128xf32, #tpu.memory_space<vmem>>, vector<1x8x128xf32>
    %92 = vector.shape_cast %91 : vector<1x8x128xf32> to vector<8x128xf32>
    %93 = vector.shape_cast %89 : vector<8x128xf32> to vector<1x8x128xf32>
    tpu.vector_store %arg7[%90, %c0_30, %c0_31], %93 {strides = array<i32>} : memref<32x8x128xf32, #tpu.memory_space<vmem>>, vector<1x8x128xf32>,
    %c3_i32 = arith.constant 3 : i32
    %c8_i32_32 = arith.constant 8 : i32
    %94 = arith.muli %c3_i32, %c8_i32_32 : i32
    %95 = tpu.assume_multiple %94, 8 : i32
    %96 = arith.index_cast %95 : i32 to index
    %c0_33 = arith.constant 0 : index
    %97 = vector.load %arg12[%96, %c0_33] : memref<256x512xf32, #tpu.memory_space<vmem>>, vector<8x512xf32>
    %98 = arith.truncf %89 : vector<8x128xf32> to vector<8x128xbf16>
    %cst_34 = arith.constant dense<0.000000e+00> : vector<8x512xf32>
    %99 = tpu.matmul %98, %10, %cst_34 {dimension_numbers = #tpu.dot_dimension_numbers<[1], [0], [0], [1], [0, 0, 1, 1], [], []>} : vector<8x128xbf16>, vector<128x512xbf16>, vector<8x512xf32> -> vector<8x512xf32>
    %100 = arith.addf %97, %99 : vector<8x512xf32>
    %101 = vector.extract_strided_slice %100 {offsets = [0, 0], sizes = [8, 384], strides = [1, 1]} : vector<8x512xf32> to vector<8x384xf32>
    %102 = arith.negf %101 : vector<8x384xf32>
    %103 = math.exp %102 : vector<8x384xf32>
    %cst_35 = arith.constant 1.000000e+00 : f32
    %104 = vector.broadcast %cst_35 : f32 to vector<8x384xf32>
    %105 = arith.addf %104, %103 : vector<8x384xf32>
    %106 = arith.divf %104, %105 : vector<8x384xf32>
    %107 = vector.extract_strided_slice %106 {offsets = [0, 0], sizes = [8, 128], strides = [1, 1]} : vector<8x384xf32> to vector<8x128xf32>
    %108 = vector.extract_strided_slice %106 {offsets = [0, 128], sizes = [8, 128], strides = [1, 1]} : vector<8x384xf32> to vector<8x128xf32>
    %109 = vector.extract_strided_slice %106 {offsets = [0, 256], sizes = [8, 128], strides = [1, 1]} : vector<8x384xf32> to vector<8x128xf32>
    %110 = vector.extract_strided_slice %100 {offsets = [0, 384], sizes = [8, 128], strides = [1, 1]} : vector<8x512xf32> to vector<8x128xf32>
    %111 = math.tanh %110 : vector<8x128xf32>
    %112 = arith.mulf %108, %87 : vector<8x128xf32>
    %113 = arith.mulf %107, %111 : vector<8x128xf32>
    %114 = arith.addf %112, %113 : vector<8x128xf32>
    %115 = math.tanh %114 : vector<8x128xf32>
    %116 = arith.mulf %109, %115 : vector<8x128xf32>
    %117 = arith.index_cast %c3_i32 : i32 to index
    %c0_36 = arith.constant 0 : index
    %c0_37 = arith.constant 0 : index
    %118 = vector.load %arg7[%117, %c0_36, %c0_37] : memref<32x8x128xf32, #tpu.memory_space<vmem>>, vector<1x8x128xf32>
    %119 = vector.shape_cast %118 : vector<1x8x128xf32> to vector<8x128xf32>
    %120 = vector.shape_cast %116 : vector<8x128xf32> to vector<1x8x128xf32>
    tpu.vector_store %arg7[%117, %c0_36, %c0_37], %120 {strides = array<i32>} : memref<32x8x128xf32, #tpu.memory_space<vmem>>, vector<1x8x128xf32>,
    %c4_i32 = arith.constant 4 : i32
    %c8_i32_38 = arith.constant 8 : i32
    %121 = arith.muli %c4_i32, %c8_i32_38 : i32
    %122 = tpu.assume_multiple %121, 8 : i32
    %123 = arith.index_cast %122 : i32 to index
    %c0_39 = arith.constant 0 : index
    %124 = vector.load %arg12[%123, %c0_39] : memref<256x512xf32, #tpu.memory_space<vmem>>, vector<8x512xf32>
    %125 = arith.truncf %116 : vector<8x128xf32> to vector<8x128xbf16>
    %cst_40 = arith.constant dense<0.000000e+00> : vector<8x512xf32>
    %126 = tpu.matmul %125, %10, %cst_40 {dimension_numbers = #tpu.dot_dimension_numbers<[1], [0], [0], [1], [0, 0, 1, 1], [], []>} : vector<8x128xbf16>, vector<128x512xbf16>, vector<8x512xf32> -> vector<8x512xf32>
    %127 = arith.addf %124, %126 : vector<8x512xf32>
    %128 = vector.extract_strided_slice %127 {offsets = [0, 0], sizes = [8, 384], strides = [1, 1]} : vector<8x512xf32> to vector<8x384xf32>
    %129 = arith.negf %128 : vector<8x384xf32>
    %130 = math.exp %129 : vector<8x384xf32>
    %cst_41 = arith.constant 1.000000e+00 : f32
    %131 = vector.broadcast %cst_41 : f32 to vector<8x384xf32>
    %132 = arith.addf %131, %130 : vector<8x384xf32>
    %133 = arith.divf %131, %132 : vector<8x384xf32>
    %134 = vector.extract_strided_slice %133 {offsets = [0, 0], sizes = [8, 128], strides = [1, 1]} : vector<8x384xf32> to vector<8x128xf32>
    %135 = vector.extract_strided_slice %133 {offsets = [0, 128], sizes = [8, 128], strides = [1, 1]} : vector<8x384xf32> to vector<8x128xf32>
    %136 = vector.extract_strided_slice %133 {offsets = [0, 256], sizes = [8, 128], strides = [1, 1]} : vector<8x384xf32> to vector<8x128xf32>
    %137 = vector.extract_strided_slice %127 {offsets = [0, 384], sizes = [8, 128], strides = [1, 1]} : vector<8x512xf32> to vector<8x128xf32>
    %138 = math.tanh %137 : vector<8x128xf32>
    %139 = arith.mulf %135, %114 : vector<8x128xf32>
    %140 = arith.mulf %134, %138 : vector<8x128xf32>
    %141 = arith.addf %139, %140 : vector<8x128xf32>
    %142 = math.tanh %141 : vector<8x128xf32>
    %143 = arith.mulf %136, %142 : vector<8x128xf32>
    %144 = arith.index_cast %c4_i32 : i32 to index
    %c0_42 = arith.constant 0 : index
    %c0_43 = arith.constant 0 : index
    %145 = vector.load %arg7[%144, %c0_42, %c0_43] : memref<32x8x128xf32, #tpu.memory_space<vmem>>, vector<1x8x128xf32>
    %146 = vector.shape_cast %145 : vector<1x8x128xf32> to vector<8x128xf32>
    %147 = vector.shape_cast %143 : vector<8x128xf32> to vector<1x8x128xf32>
    tpu.vector_store %arg7[%144, %c0_42, %c0_43], %147 {strides = array<i32>} : memref<32x8x128xf32, #tpu.memory_space<vmem>>, vector<1x8x128xf32>,
    %c5_i32 = arith.constant 5 : i32
    %c8_i32_44 = arith.constant 8 : i32
    %148 = arith.muli %c5_i32, %c8_i32_44 : i32
    %149 = tpu.assume_multiple %148, 8 : i32
    %150 = arith.index_cast %149 : i32 to index
    %c0_45 = arith.constant 0 : index
    %151 = vector.load %arg12[%150, %c0_45] : memref<256x512xf32, #tpu.memory_space<vmem>>, vector<8x512xf32>
    %152 = arith.truncf %143 : vector<8x128xf32> to vector<8x128xbf16>
    %cst_46 = arith.constant dense<0.000000e+00> : vector<8x512xf32>
    %153 = tpu.matmul %152, %10, %cst_46 {dimension_numbers = #tpu.dot_dimension_numbers<[1], [0], [0], [1], [0, 0, 1, 1], [], []>} : vector<8x128xbf16>, vector<128x512xbf16>, vector<8x512xf32> -> vector<8x512xf32>
    %154 = arith.addf %151, %153 : vector<8x512xf32>
    %155 = vector.extract_strided_slice %154 {offsets = [0, 0], sizes = [8, 384], strides = [1, 1]} : vector<8x512xf32> to vector<8x384xf32>
    %156 = arith.negf %155 : vector<8x384xf32>
    %157 = math.exp %156 : vector<8x384xf32>
    %cst_47 = arith.constant 1.000000e+00 : f32
    %158 = vector.broadcast %cst_47 : f32 to vector<8x384xf32>
    %159 = arith.addf %158, %157 : vector<8x384xf32>
    %160 = arith.divf %158, %159 : vector<8x384xf32>
    %161 = vector.extract_strided_slice %160 {offsets = [0, 0], sizes = [8, 128], strides = [1, 1]} : vector<8x384xf32> to vector<8x128xf32>
    %162 = vector.extract_strided_slice %160 {offsets = [0, 128], sizes = [8, 128], strides = [1, 1]} : vector<8x384xf32> to vector<8x128xf32>
    %163 = vector.extract_strided_slice %160 {offsets = [0, 256], sizes = [8, 128], strides = [1, 1]} : vector<8x384xf32> to vector<8x128xf32>
    %164 = vector.extract_strided_slice %154 {offsets = [0, 384], sizes = [8, 128], strides = [1, 1]} : vector<8x512xf32> to vector<8x128xf32>
    %165 = math.tanh %164 : vector<8x128xf32>
    %166 = arith.mulf %162, %141 : vector<8x128xf32>
    %167 = arith.mulf %161, %165 : vector<8x128xf32>
    %168 = arith.addf %166, %167 : vector<8x128xf32>
    %169 = math.tanh %168 : vector<8x128xf32>
    %170 = arith.mulf %163, %169 : vector<8x128xf32>
    %171 = arith.index_cast %c5_i32 : i32 to index
    %c0_48 = arith.constant 0 : index
    %c0_49 = arith.constant 0 : index
    %172 = vector.load %arg7[%171, %c0_48, %c0_49] : memref<32x8x128xf32, #tpu.memory_space<vmem>>, vector<1x8x128xf32>
    %173 = vector.shape_cast %172 : vector<1x8x128xf32> to vector<8x128xf32>
    %174 = vector.shape_cast %170 : vector<8x128xf32> to vector<1x8x128xf32>
    tpu.vector_store %arg7[%171, %c0_48, %c0_49], %174 {strides = array<i32>} : memref<32x8x128xf32, #tpu.memory_space<vmem>>, vector<1x8x128xf32>,
    %c6_i32 = arith.constant 6 : i32
    %c8_i32_50 = arith.constant 8 : i32
    %175 = arith.muli %c6_i32, %c8_i32_50 : i32
    %176 = tpu.assume_multiple %175, 8 : i32
    %177 = arith.index_cast %176 : i32 to index
    %c0_51 = arith.constant 0 : index
    %178 = vector.load %arg12[%177, %c0_51] : memref<256x512xf32, #tpu.memory_space<vmem>>, vector<8x512xf32>
    %179 = arith.truncf %170 : vector<8x128xf32> to vector<8x128xbf16>
    %cst_52 = arith.constant dense<0.000000e+00> : vector<8x512xf32>
    %180 = tpu.matmul %179, %10, %cst_52 {dimension_numbers = #tpu.dot_dimension_numbers<[1], [0], [0], [1], [0, 0, 1, 1], [], []>} : vector<8x128xbf16>, vector<128x512xbf16>, vector<8x512xf32> -> vector<8x512xf32>
    %181 = arith.addf %178, %180 : vector<8x512xf32>
    %182 = vector.extract_strided_slice %181 {offsets = [0, 0], sizes = [8, 384], strides = [1, 1]} : vector<8x512xf32> to vector<8x384xf32>
    %183 = arith.negf %182 : vector<8x384xf32>
    %184 = math.exp %183 : vector<8x384xf32>
    %cst_53 = arith.constant 1.000000e+00 : f32
    %185 = vector.broadcast %cst_53 : f32 to vector<8x384xf32>
    %186 = arith.addf %185, %184 : vector<8x384xf32>
    %187 = arith.divf %185, %186 : vector<8x384xf32>
    %188 = vector.extract_strided_slice %187 {offsets = [0, 0], sizes = [8, 128], strides = [1, 1]} : vector<8x384xf32> to vector<8x128xf32>
    %189 = vector.extract_strided_slice %187 {offsets = [0, 128], sizes = [8, 128], strides = [1, 1]} : vector<8x384xf32> to vector<8x128xf32>
    %190 = vector.extract_strided_slice %187 {offsets = [0, 256], sizes = [8, 128], strides = [1, 1]} : vector<8x384xf32> to vector<8x128xf32>
    %191 = vector.extract_strided_slice %181 {offsets = [0, 384], sizes = [8, 128], strides = [1, 1]} : vector<8x512xf32> to vector<8x128xf32>
    %192 = math.tanh %191 : vector<8x128xf32>
    %193 = arith.mulf %189, %168 : vector<8x128xf32>
    %194 = arith.mulf %188, %192 : vector<8x128xf32>
    %195 = arith.addf %193, %194 : vector<8x128xf32>
    %196 = math.tanh %195 : vector<8x128xf32>
    %197 = arith.mulf %190, %196 : vector<8x128xf32>
    %198 = arith.index_cast %c6_i32 : i32 to index
    %c0_54 = arith.constant 0 : index
    %c0_55 = arith.constant 0 : index
    %199 = vector.load %arg7[%198, %c0_54, %c0_55] : memref<32x8x128xf32, #tpu.memory_space<vmem>>, vector<1x8x128xf32>
    %200 = vector.shape_cast %199 : vector<1x8x128xf32> to vector<8x128xf32>
    %201 = vector.shape_cast %197 : vector<8x128xf32> to vector<1x8x128xf32>
    tpu.vector_store %arg7[%198, %c0_54, %c0_55], %201 {strides = array<i32>} : memref<32x8x128xf32, #tpu.memory_space<vmem>>, vector<1x8x128xf32>,
    %c7_i32 = arith.constant 7 : i32
    %c8_i32_56 = arith.constant 8 : i32
    %202 = arith.muli %c7_i32, %c8_i32_56 : i32
    %203 = tpu.assume_multiple %202, 8 : i32
    %204 = arith.index_cast %203 : i32 to index
    %c0_57 = arith.constant 0 : index
    %205 = vector.load %arg12[%204, %c0_57] : memref<256x512xf32, #tpu.memory_space<vmem>>, vector<8x512xf32>
    %206 = arith.truncf %197 : vector<8x128xf32> to vector<8x128xbf16>
    %cst_58 = arith.constant dense<0.000000e+00> : vector<8x512xf32>
    %207 = tpu.matmul %206, %10, %cst_58 {dimension_numbers = #tpu.dot_dimension_numbers<[1], [0], [0], [1], [0, 0, 1, 1], [], []>} : vector<8x128xbf16>, vector<128x512xbf16>, vector<8x512xf32> -> vector<8x512xf32>
    %208 = arith.addf %205, %207 : vector<8x512xf32>
    %209 = vector.extract_strided_slice %208 {offsets = [0, 0], sizes = [8, 384], strides = [1, 1]} : vector<8x512xf32> to vector<8x384xf32>
    %210 = arith.negf %209 : vector<8x384xf32>
    %211 = math.exp %210 : vector<8x384xf32>
    %cst_59 = arith.constant 1.000000e+00 : f32
    %212 = vector.broadcast %cst_59 : f32 to vector<8x384xf32>
    %213 = arith.addf %212, %211 : vector<8x384xf32>
    %214 = arith.divf %212, %213 : vector<8x384xf32>
    %215 = vector.extract_strided_slice %214 {offsets = [0, 0], sizes = [8, 128], strides = [1, 1]} : vector<8x384xf32> to vector<8x128xf32>
    %216 = vector.extract_strided_slice %214 {offsets = [0, 128], sizes = [8, 128], strides = [1, 1]} : vector<8x384xf32> to vector<8x128xf32>
    %217 = vector.extract_strided_slice %214 {offsets = [0, 256], sizes = [8, 128], strides = [1, 1]} : vector<8x384xf32> to vector<8x128xf32>
    %218 = vector.extract_strided_slice %208 {offsets = [0, 384], sizes = [8, 128], strides = [1, 1]} : vector<8x512xf32> to vector<8x128xf32>
    %219 = math.tanh %218 : vector<8x128xf32>
    %220 = arith.mulf %216, %195 : vector<8x128xf32>
    %221 = arith.mulf %215, %219 : vector<8x128xf32>
    %222 = arith.addf %220, %221 : vector<8x128xf32>
    %223 = math.tanh %222 : vector<8x128xf32>
    %224 = arith.mulf %217, %223 : vector<8x128xf32>
    %225 = arith.index_cast %c7_i32 : i32 to index
    %c0_60 = arith.constant 0 : index
    %c0_61 = arith.constant 0 : index
    %226 = vector.load %arg7[%225, %c0_60, %c0_61] : memref<32x8x128xf32, #tpu.memory_space<vmem>>, vector<1x8x128xf32>
    %227 = vector.shape_cast %226 : vector<1x8x128xf32> to vector<8x128xf32>
    %228 = vector.shape_cast %224 : vector<8x128xf32> to vector<1x8x128xf32>
    tpu.vector_store %arg7[%225, %c0_60, %c0_61], %228 {strides = array<i32>} : memref<32x8x128xf32, #tpu.memory_space<vmem>>, vector<1x8x128xf32>,
    %c8_i32_62 = arith.constant 8 : i32
    %c8_i32_63 = arith.constant 8 : i32
    %229 = arith.muli %c8_i32_62, %c8_i32_63 : i32
    %230 = tpu.assume_multiple %229, 8 : i32
    %231 = arith.index_cast %230 : i32 to index
    %c0_64 = arith.constant 0 : index
    %232 = vector.load %arg12[%231, %c0_64] : memref<256x512xf32, #tpu.memory_space<vmem>>, vector<8x512xf32>
    %233 = arith.truncf %224 : vector<8x128xf32> to vector<8x128xbf16>
    %cst_65 = arith.constant dense<0.000000e+00> : vector<8x512xf32>
    %234 = tpu.matmul %233, %10, %cst_65 {dimension_numbers = #tpu.dot_dimension_numbers<[1], [0], [0], [1], [0, 0, 1, 1], [], []>} : vector<8x128xbf16>, vector<128x512xbf16>, vector<8x512xf32> -> vector<8x512xf32>
    %235 = arith.addf %232, %234 : vector<8x512xf32>
    %236 = vector.extract_strided_slice %235 {offsets = [0, 0], sizes = [8, 384], strides = [1, 1]} : vector<8x512xf32> to vector<8x384xf32>
    %237 = arith.negf %236 : vector<8x384xf32>
    %238 = math.exp %237 : vector<8x384xf32>
    %cst_66 = arith.constant 1.000000e+00 : f32
    %239 = vector.broadcast %cst_66 : f32 to vector<8x384xf32>
    %240 = arith.addf %239, %238 : vector<8x384xf32>
    %241 = arith.divf %239, %240 : vector<8x384xf32>
    %242 = vector.extract_strided_slice %241 {offsets = [0, 0], sizes = [8, 128], strides = [1, 1]} : vector<8x384xf32> to vector<8x128xf32>
    %243 = vector.extract_strided_slice %241 {offsets = [0, 128], sizes = [8, 128], strides = [1, 1]} : vector<8x384xf32> to vector<8x128xf32>
    %244 = vector.extract_strided_slice %241 {offsets = [0, 256], sizes = [8, 128], strides = [1, 1]} : vector<8x384xf32> to vector<8x128xf32>
    %245 = vector.extract_strided_slice %235 {offsets = [0, 384], sizes = [8, 128], strides = [1, 1]} : vector<8x512xf32> to vector<8x128xf32>
    %246 = math.tanh %245 : vector<8x128xf32>
    %247 = arith.mulf %243, %222 : vector<8x128xf32>
    %248 = arith.mulf %242, %246 : vector<8x128xf32>
    %249 = arith.addf %247, %248 : vector<8x128xf32>
    %250 = math.tanh %249 : vector<8x128xf32>
    %251 = arith.mulf %244, %250 : vector<8x128xf32>
    %252 = arith.index_cast %c8_i32_62 : i32 to index
    %c0_67 = arith.constant 0 : index
    %c0_68 = arith.constant 0 : index
    %253 = vector.load %arg7[%252, %c0_67, %c0_68] : memref<32x8x128xf32, #tpu.memory_space<vmem>>, vector<1x8x128xf32>
    %254 = vector.shape_cast %253 : vector<1x8x128xf32> to vector<8x128xf32>
    %255 = vector.shape_cast %251 : vector<8x128xf32> to vector<1x8x128xf32>
    tpu.vector_store %arg7[%252, %c0_67, %c0_68], %255 {strides = array<i32>} : memref<32x8x128xf32, #tpu.memory_space<vmem>>, vector<1x8x128xf32>,
    %c9_i32 = arith.constant 9 : i32
    %c8_i32_69 = arith.constant 8 : i32
    %256 = arith.muli %c9_i32, %c8_i32_69 : i32
    %257 = tpu.assume_multiple %256, 8 : i32
    %258 = arith.index_cast %257 : i32 to index
    %c0_70 = arith.constant 0 : index
    %259 = vector.load %arg12[%258, %c0_70] : memref<256x512xf32, #tpu.memory_space<vmem>>, vector<8x512xf32>
    %260 = arith.truncf %251 : vector<8x128xf32> to vector<8x128xbf16>
    %cst_71 = arith.constant dense<0.000000e+00> : vector<8x512xf32>
    %261 = tpu.matmul %260, %10, %cst_71 {dimension_numbers = #tpu.dot_dimension_numbers<[1], [0], [0], [1], [0, 0, 1, 1], [], []>} : vector<8x128xbf16>, vector<128x512xbf16>, vector<8x512xf32> -> vector<8x512xf32>
    %262 = arith.addf %259, %261 : vector<8x512xf32>
    %263 = vector.extract_strided_slice %262 {offsets = [0, 0], sizes = [8, 384], strides = [1, 1]} : vector<8x512xf32> to vector<8x384xf32>
    %264 = arith.negf %263 : vector<8x384xf32>
    %265 = math.exp %264 : vector<8x384xf32>
    %cst_72 = arith.constant 1.000000e+00 : f32
    %266 = vector.broadcast %cst_72 : f32 to vector<8x384xf32>
    %267 = arith.addf %266, %265 : vector<8x384xf32>
    %268 = arith.divf %266, %267 : vector<8x384xf32>
    %269 = vector.extract_strided_slice %268 {offsets = [0, 0], sizes = [8, 128], strides = [1, 1]} : vector<8x384xf32> to vector<8x128xf32>
    %270 = vector.extract_strided_slice %268 {offsets = [0, 128], sizes = [8, 128], strides = [1, 1]} : vector<8x384xf32> to vector<8x128xf32>
    %271 = vector.extract_strided_slice %268 {offsets = [0, 256], sizes = [8, 128], strides = [1, 1]} : vector<8x384xf32> to vector<8x128xf32>
    %272 = vector.extract_strided_slice %262 {offsets = [0, 384], sizes = [8, 128], strides = [1, 1]} : vector<8x512xf32> to vector<8x128xf32>
    %273 = math.tanh %272 : vector<8x128xf32>
    %274 = arith.mulf %270, %249 : vector<8x128xf32>
    %275 = arith.mulf %269, %273 : vector<8x128xf32>
    %276 = arith.addf %274, %275 : vector<8x128xf32>
    %277 = math.tanh %276 : vector<8x128xf32>
    %278 = arith.mulf %271, %277 : vector<8x128xf32>
    %279 = arith.index_cast %c9_i32 : i32 to index
    %c0_73 = arith.constant 0 : index
    %c0_74 = arith.constant 0 : index
    %280 = vector.load %arg7[%279, %c0_73, %c0_74] : memref<32x8x128xf32, #tpu.memory_space<vmem>>, vector<1x8x128xf32>
    %281 = vector.shape_cast %280 : vector<1x8x128xf32> to vector<8x128xf32>
    %282 = vector.shape_cast %278 : vector<8x128xf32> to vector<1x8x128xf32>
    tpu.vector_store %arg7[%279, %c0_73, %c0_74], %282 {strides = array<i32>} : memref<32x8x128xf32, #tpu.memory_space<vmem>>, vector<1x8x128xf32>,
    %c10_i32 = arith.constant 10 : i32
    %c8_i32_75 = arith.constant 8 : i32
    %283 = arith.muli %c10_i32, %c8_i32_75 : i32
    %284 = tpu.assume_multiple %283, 8 : i32
    %285 = arith.index_cast %284 : i32 to index
    %c0_76 = arith.constant 0 : index
    %286 = vector.load %arg12[%285, %c0_76] : memref<256x512xf32, #tpu.memory_space<vmem>>, vector<8x512xf32>
    %287 = arith.truncf %278 : vector<8x128xf32> to vector<8x128xbf16>
    %cst_77 = arith.constant dense<0.000000e+00> : vector<8x512xf32>
    %288 = tpu.matmul %287, %10, %cst_77 {dimension_numbers = #tpu.dot_dimension_numbers<[1], [0], [0], [1], [0, 0, 1, 1], [], []>} : vector<8x128xbf16>, vector<128x512xbf16>, vector<8x512xf32> -> vector<8x512xf32>
    %289 = arith.addf %286, %288 : vector<8x512xf32>
    %290 = vector.extract_strided_slice %289 {offsets = [0, 0], sizes = [8, 384], strides = [1, 1]} : vector<8x512xf32> to vector<8x384xf32>
    %291 = arith.negf %290 : vector<8x384xf32>
    %292 = math.exp %291 : vector<8x384xf32>
    %cst_78 = arith.constant 1.000000e+00 : f32
    %293 = vector.broadcast %cst_78 : f32 to vector<8x384xf32>
    %294 = arith.addf %293, %292 : vector<8x384xf32>
    %295 = arith.divf %293, %294 : vector<8x384xf32>
    %296 = vector.extract_strided_slice %295 {offsets = [0, 0], sizes = [8, 128], strides = [1, 1]} : vector<8x384xf32> to vector<8x128xf32>
    %297 = vector.extract_strided_slice %295 {offsets = [0, 128], sizes = [8, 128], strides = [1, 1]} : vector<8x384xf32> to vector<8x128xf32>
    %298 = vector.extract_strided_slice %295 {offsets = [0, 256], sizes = [8, 128], strides = [1, 1]} : vector<8x384xf32> to vector<8x128xf32>
    %299 = vector.extract_strided_slice %289 {offsets = [0, 384], sizes = [8, 128], strides = [1, 1]} : vector<8x512xf32> to vector<8x128xf32>
    %300 = math.tanh %299 : vector<8x128xf32>
    %301 = arith.mulf %297, %276 : vector<8x128xf32>
    %302 = arith.mulf %296, %300 : vector<8x128xf32>
    %303 = arith.addf %301, %302 : vector<8x128xf32>
    %304 = math.tanh %303 : vector<8x128xf32>
    %305 = arith.mulf %298, %304 : vector<8x128xf32>
    %306 = arith.index_cast %c10_i32 : i32 to index
    %c0_79 = arith.constant 0 : index
    %c0_80 = arith.constant 0 : index
    %307 = vector.load %arg7[%306, %c0_79, %c0_80] : memref<32x8x128xf32, #tpu.memory_space<vmem>>, vector<1x8x128xf32>
    %308 = vector.shape_cast %307 : vector<1x8x128xf32> to vector<8x128xf32>
    %309 = vector.shape_cast %305 : vector<8x128xf32> to vector<1x8x128xf32>
    tpu.vector_store %arg7[%306, %c0_79, %c0_80], %309 {strides = array<i32>} : memref<32x8x128xf32, #tpu.memory_space<vmem>>, vector<1x8x128xf32>,
    %c11_i32 = arith.constant 11 : i32
    %c8_i32_81 = arith.constant 8 : i32
    %310 = arith.muli %c11_i32, %c8_i32_81 : i32
    %311 = tpu.assume_multiple %310, 8 : i32
    %312 = arith.index_cast %311 : i32 to index
    %c0_82 = arith.constant 0 : index
    %313 = vector.load %arg12[%312, %c0_82] : memref<256x512xf32, #tpu.memory_space<vmem>>, vector<8x512xf32>
    %314 = arith.truncf %305 : vector<8x128xf32> to vector<8x128xbf16>
    %cst_83 = arith.constant dense<0.000000e+00> : vector<8x512xf32>
    %315 = tpu.matmul %314, %10, %cst_83 {dimension_numbers = #tpu.dot_dimension_numbers<[1], [0], [0], [1], [0, 0, 1, 1], [], []>} : vector<8x128xbf16>, vector<128x512xbf16>, vector<8x512xf32> -> vector<8x512xf32>
    %316 = arith.addf %313, %315 : vector<8x512xf32>
    %317 = vector.extract_strided_slice %316 {offsets = [0, 0], sizes = [8, 384], strides = [1, 1]} : vector<8x512xf32> to vector<8x384xf32>
    %318 = arith.negf %317 : vector<8x384xf32>
    %319 = math.exp %318 : vector<8x384xf32>
    %cst_84 = arith.constant 1.000000e+00 : f32
    %320 = vector.broadcast %cst_84 : f32 to vector<8x384xf32>
    %321 = arith.addf %320, %319 : vector<8x384xf32>
    %322 = arith.divf %320, %321 : vector<8x384xf32>
    %323 = vector.extract_strided_slice %322 {offsets = [0, 0], sizes = [8, 128], strides = [1, 1]} : vector<8x384xf32> to vector<8x128xf32>
    %324 = vector.extract_strided_slice %322 {offsets = [0, 128], sizes = [8, 128], strides = [1, 1]} : vector<8x384xf32> to vector<8x128xf32>
    %325 = vector.extract_strided_slice %322 {offsets = [0, 256], sizes = [8, 128], strides = [1, 1]} : vector<8x384xf32> to vector<8x128xf32>
    %326 = vector.extract_strided_slice %316 {offsets = [0, 384], sizes = [8, 128], strides = [1, 1]} : vector<8x512xf32> to vector<8x128xf32>
    %327 = math.tanh %326 : vector<8x128xf32>
    %328 = arith.mulf %324, %303 : vector<8x128xf32>
    %329 = arith.mulf %323, %327 : vector<8x128xf32>
    %330 = arith.addf %328, %329 : vector<8x128xf32>
    %331 = math.tanh %330 : vector<8x128xf32>
    %332 = arith.mulf %325, %331 : vector<8x128xf32>
    %333 = arith.index_cast %c11_i32 : i32 to index
    %c0_85 = arith.constant 0 : index
    %c0_86 = arith.constant 0 : index
    %334 = vector.load %arg7[%333, %c0_85, %c0_86] : memref<32x8x128xf32, #tpu.memory_space<vmem>>, vector<1x8x128xf32>
    %335 = vector.shape_cast %334 : vector<1x8x128xf32> to vector<8x128xf32>
    %336 = vector.shape_cast %332 : vector<8x128xf32> to vector<1x8x128xf32>
    tpu.vector_store %arg7[%333, %c0_85, %c0_86], %336 {strides = array<i32>} : memref<32x8x128xf32, #tpu.memory_space<vmem>>, vector<1x8x128xf32>,
    %c12_i32 = arith.constant 12 : i32
    %c8_i32_87 = arith.constant 8 : i32
    %337 = arith.muli %c12_i32, %c8_i32_87 : i32
    %338 = tpu.assume_multiple %337, 8 : i32
    %339 = arith.index_cast %338 : i32 to index
    %c0_88 = arith.constant 0 : index
    %340 = vector.load %arg12[%339, %c0_88] : memref<256x512xf32, #tpu.memory_space<vmem>>, vector<8x512xf32>
    %341 = arith.truncf %332 : vector<8x128xf32> to vector<8x128xbf16>
    %cst_89 = arith.constant dense<0.000000e+00> : vector<8x512xf32>
    %342 = tpu.matmul %341, %10, %cst_89 {dimension_numbers = #tpu.dot_dimension_numbers<[1], [0], [0], [1], [0, 0, 1, 1], [], []>} : vector<8x128xbf16>, vector<128x512xbf16>, vector<8x512xf32> -> vector<8x512xf32>
    %343 = arith.addf %340, %342 : vector<8x512xf32>
    %344 = vector.extract_strided_slice %343 {offsets = [0, 0], sizes = [8, 384], strides = [1, 1]} : vector<8x512xf32> to vector<8x384xf32>
    %345 = arith.negf %344 : vector<8x384xf32>
    %346 = math.exp %345 : vector<8x384xf32>
    %cst_90 = arith.constant 1.000000e+00 : f32
    %347 = vector.broadcast %cst_90 : f32 to vector<8x384xf32>
    %348 = arith.addf %347, %346 : vector<8x384xf32>
    %349 = arith.divf %347, %348 : vector<8x384xf32>
    %350 = vector.extract_strided_slice %349 {offsets = [0, 0], sizes = [8, 128], strides = [1, 1]} : vector<8x384xf32> to vector<8x128xf32>
    %351 = vector.extract_strided_slice %349 {offsets = [0, 128], sizes = [8, 128], strides = [1, 1]} : vector<8x384xf32> to vector<8x128xf32>
    %352 = vector.extract_strided_slice %349 {offsets = [0, 256], sizes = [8, 128], strides = [1, 1]} : vector<8x384xf32> to vector<8x128xf32>
    %353 = vector.extract_strided_slice %343 {offsets = [0, 384], sizes = [8, 128], strides = [1, 1]} : vector<8x512xf32> to vector<8x128xf32>
    %354 = math.tanh %353 : vector<8x128xf32>
    %355 = arith.mulf %351, %330 : vector<8x128xf32>
    %356 = arith.mulf %350, %354 : vector<8x128xf32>
    %357 = arith.addf %355, %356 : vector<8x128xf32>
    %358 = math.tanh %357 : vector<8x128xf32>
    %359 = arith.mulf %352, %358 : vector<8x128xf32>
    %360 = arith.index_cast %c12_i32 : i32 to index
    %c0_91 = arith.constant 0 : index
    %c0_92 = arith.constant 0 : index
    %361 = vector.load %arg7[%360, %c0_91, %c0_92] : memref<32x8x128xf32, #tpu.memory_space<vmem>>, vector<1x8x128xf32>
    %362 = vector.shape_cast %361 : vector<1x8x128xf32> to vector<8x128xf32>
    %363 = vector.shape_cast %359 : vector<8x128xf32> to vector<1x8x128xf32>
    tpu.vector_store %arg7[%360, %c0_91, %c0_92], %363 {strides = array<i32>} : memref<32x8x128xf32, #tpu.memory_space<vmem>>, vector<1x8x128xf32>,
    %c13_i32 = arith.constant 13 : i32
    %c8_i32_93 = arith.constant 8 : i32
    %364 = arith.muli %c13_i32, %c8_i32_93 : i32
    %365 = tpu.assume_multiple %364, 8 : i32
    %366 = arith.index_cast %365 : i32 to index
    %c0_94 = arith.constant 0 : index
    %367 = vector.load %arg12[%366, %c0_94] : memref<256x512xf32, #tpu.memory_space<vmem>>, vector<8x512xf32>
    %368 = arith.truncf %359 : vector<8x128xf32> to vector<8x128xbf16>
    %cst_95 = arith.constant dense<0.000000e+00> : vector<8x512xf32>
    %369 = tpu.matmul %368, %10, %cst_95 {dimension_numbers = #tpu.dot_dimension_numbers<[1], [0], [0], [1], [0, 0, 1, 1], [], []>} : vector<8x128xbf16>, vector<128x512xbf16>, vector<8x512xf32> -> vector<8x512xf32>
    %370 = arith.addf %367, %369 : vector<8x512xf32>
    %371 = vector.extract_strided_slice %370 {offsets = [0, 0], sizes = [8, 384], strides = [1, 1]} : vector<8x512xf32> to vector<8x384xf32>
    %372 = arith.negf %371 : vector<8x384xf32>
    %373 = math.exp %372 : vector<8x384xf32>
    %cst_96 = arith.constant 1.000000e+00 : f32
    %374 = vector.broadcast %cst_96 : f32 to vector<8x384xf32>
    %375 = arith.addf %374, %373 : vector<8x384xf32>
    %376 = arith.divf %374, %375 : vector<8x384xf32>
    %377 = vector.extract_strided_slice %376 {offsets = [0, 0], sizes = [8, 128], strides = [1, 1]} : vector<8x384xf32> to vector<8x128xf32>
    %378 = vector.extract_strided_slice %376 {offsets = [0, 128], sizes = [8, 128], strides = [1, 1]} : vector<8x384xf32> to vector<8x128xf32>
    %379 = vector.extract_strided_slice %376 {offsets = [0, 256], sizes = [8, 128], strides = [1, 1]} : vector<8x384xf32> to vector<8x128xf32>
    %380 = vector.extract_strided_slice %370 {offsets = [0, 384], sizes = [8, 128], strides = [1, 1]} : vector<8x512xf32> to vector<8x128xf32>
    %381 = math.tanh %380 : vector<8x128xf32>
    %382 = arith.mulf %378, %357 : vector<8x128xf32>
    %383 = arith.mulf %377, %381 : vector<8x128xf32>
    %384 = arith.addf %382, %383 : vector<8x128xf32>
    %385 = math.tanh %384 : vector<8x128xf32>
    %386 = arith.mulf %379, %385 : vector<8x128xf32>
    %387 = arith.index_cast %c13_i32 : i32 to index
    %c0_97 = arith.constant 0 : index
    %c0_98 = arith.constant 0 : index
    %388 = vector.load %arg7[%387, %c0_97, %c0_98] : memref<32x8x128xf32, #tpu.memory_space<vmem>>, vector<1x8x128xf32>
    %389 = vector.shape_cast %388 : vector<1x8x128xf32> to vector<8x128xf32>
    %390 = vector.shape_cast %386 : vector<8x128xf32> to vector<1x8x128xf32>
    tpu.vector_store %arg7[%387, %c0_97, %c0_98], %390 {strides = array<i32>} : memref<32x8x128xf32, #tpu.memory_space<vmem>>, vector<1x8x128xf32>,
    %c14_i32 = arith.constant 14 : i32
    %c8_i32_99 = arith.constant 8 : i32
    %391 = arith.muli %c14_i32, %c8_i32_99 : i32
    %392 = tpu.assume_multiple %391, 8 : i32
    %393 = arith.index_cast %392 : i32 to index
    %c0_100 = arith.constant 0 : index
    %394 = vector.load %arg12[%393, %c0_100] : memref<256x512xf32, #tpu.memory_space<vmem>>, vector<8x512xf32>
    %395 = arith.truncf %386 : vector<8x128xf32> to vector<8x128xbf16>
    %cst_101 = arith.constant dense<0.000000e+00> : vector<8x512xf32>
    %396 = tpu.matmul %395, %10, %cst_101 {dimension_numbers = #tpu.dot_dimension_numbers<[1], [0], [0], [1], [0, 0, 1, 1], [], []>} : vector<8x128xbf16>, vector<128x512xbf16>, vector<8x512xf32> -> vector<8x512xf32>
    %397 = arith.addf %394, %396 : vector<8x512xf32>
    %398 = vector.extract_strided_slice %397 {offsets = [0, 0], sizes = [8, 384], strides = [1, 1]} : vector<8x512xf32> to vector<8x384xf32>
    %399 = arith.negf %398 : vector<8x384xf32>
    %400 = math.exp %399 : vector<8x384xf32>
    %cst_102 = arith.constant 1.000000e+00 : f32
    %401 = vector.broadcast %cst_102 : f32 to vector<8x384xf32>
    %402 = arith.addf %401, %400 : vector<8x384xf32>
    %403 = arith.divf %401, %402 : vector<8x384xf32>
    %404 = vector.extract_strided_slice %403 {offsets = [0, 0], sizes = [8, 128], strides = [1, 1]} : vector<8x384xf32> to vector<8x128xf32>
    %405 = vector.extract_strided_slice %403 {offsets = [0, 128], sizes = [8, 128], strides = [1, 1]} : vector<8x384xf32> to vector<8x128xf32>
    %406 = vector.extract_strided_slice %403 {offsets = [0, 256], sizes = [8, 128], strides = [1, 1]} : vector<8x384xf32> to vector<8x128xf32>
    %407 = vector.extract_strided_slice %397 {offsets = [0, 384], sizes = [8, 128], strides = [1, 1]} : vector<8x512xf32> to vector<8x128xf32>
    %408 = math.tanh %407 : vector<8x128xf32>
    %409 = arith.mulf %405, %384 : vector<8x128xf32>
    %410 = arith.mulf %404, %408 : vector<8x128xf32>
    %411 = arith.addf %409, %410 : vector<8x128xf32>
    %412 = math.tanh %411 : vector<8x128xf32>
    %413 = arith.mulf %406, %412 : vector<8x128xf32>
    %414 = arith.index_cast %c14_i32 : i32 to index
    %c0_103 = arith.constant 0 : index
    %c0_104 = arith.constant 0 : index
    %415 = vector.load %arg7[%414, %c0_103, %c0_104] : memref<32x8x128xf32, #tpu.memory_space<vmem>>, vector<1x8x128xf32>
    %416 = vector.shape_cast %415 : vector<1x8x128xf32> to vector<8x128xf32>
    %417 = vector.shape_cast %413 : vector<8x128xf32> to vector<1x8x128xf32>
    tpu.vector_store %arg7[%414, %c0_103, %c0_104], %417 {strides = array<i32>} : memref<32x8x128xf32, #tpu.memory_space<vmem>>, vector<1x8x128xf32>,
    %c15_i32 = arith.constant 15 : i32
    %c8_i32_105 = arith.constant 8 : i32
    %418 = arith.muli %c15_i32, %c8_i32_105 : i32
    %419 = tpu.assume_multiple %418, 8 : i32
    %420 = arith.index_cast %419 : i32 to index
    %c0_106 = arith.constant 0 : index
    %421 = vector.load %arg12[%420, %c0_106] : memref<256x512xf32, #tpu.memory_space<vmem>>, vector<8x512xf32>
    %422 = arith.truncf %413 : vector<8x128xf32> to vector<8x128xbf16>
    %cst_107 = arith.constant dense<0.000000e+00> : vector<8x512xf32>
    %423 = tpu.matmul %422, %10, %cst_107 {dimension_numbers = #tpu.dot_dimension_numbers<[1], [0], [0], [1], [0, 0, 1, 1], [], []>} : vector<8x128xbf16>, vector<128x512xbf16>, vector<8x512xf32> -> vector<8x512xf32>
    %424 = arith.addf %421, %423 : vector<8x512xf32>
    %425 = vector.extract_strided_slice %424 {offsets = [0, 0], sizes = [8, 384], strides = [1, 1]} : vector<8x512xf32> to vector<8x384xf32>
    %426 = arith.negf %425 : vector<8x384xf32>
    %427 = math.exp %426 : vector<8x384xf32>
    %cst_108 = arith.constant 1.000000e+00 : f32
    %428 = vector.broadcast %cst_108 : f32 to vector<8x384xf32>
    %429 = arith.addf %428, %427 : vector<8x384xf32>
    %430 = arith.divf %428, %429 : vector<8x384xf32>
    %431 = vector.extract_strided_slice %430 {offsets = [0, 0], sizes = [8, 128], strides = [1, 1]} : vector<8x384xf32> to vector<8x128xf32>
    %432 = vector.extract_strided_slice %430 {offsets = [0, 128], sizes = [8, 128], strides = [1, 1]} : vector<8x384xf32> to vector<8x128xf32>
    %433 = vector.extract_strided_slice %430 {offsets = [0, 256], sizes = [8, 128], strides = [1, 1]} : vector<8x384xf32> to vector<8x128xf32>
    %434 = vector.extract_strided_slice %424 {offsets = [0, 384], sizes = [8, 128], strides = [1, 1]} : vector<8x512xf32> to vector<8x128xf32>
    %435 = math.tanh %434 : vector<8x128xf32>
    %436 = arith.mulf %432, %411 : vector<8x128xf32>
    %437 = arith.mulf %431, %435 : vector<8x128xf32>
    %438 = arith.addf %436, %437 : vector<8x128xf32>
    %439 = math.tanh %438 : vector<8x128xf32>
    %440 = arith.mulf %433, %439 : vector<8x128xf32>
    %441 = arith.index_cast %c15_i32 : i32 to index
    %c0_109 = arith.constant 0 : index
    %c0_110 = arith.constant 0 : index
    %442 = vector.load %arg7[%441, %c0_109, %c0_110] : memref<32x8x128xf32, #tpu.memory_space<vmem>>, vector<1x8x128xf32>
    %443 = vector.shape_cast %442 : vector<1x8x128xf32> to vector<8x128xf32>
    %444 = vector.shape_cast %440 : vector<8x128xf32> to vector<1x8x128xf32>
    tpu.vector_store %arg7[%441, %c0_109, %c0_110], %444 {strides = array<i32>} : memref<32x8x128xf32, #tpu.memory_space<vmem>>, vector<1x8x128xf32>,
    %c16_i32 = arith.constant 16 : i32
    %c8_i32_111 = arith.constant 8 : i32
    %445 = arith.muli %c16_i32, %c8_i32_111 : i32
    %446 = tpu.assume_multiple %445, 8 : i32
    %447 = arith.index_cast %446 : i32 to index
    %c0_112 = arith.constant 0 : index
    %448 = vector.load %arg12[%447, %c0_112] : memref<256x512xf32, #tpu.memory_space<vmem>>, vector<8x512xf32>
    %449 = arith.truncf %440 : vector<8x128xf32> to vector<8x128xbf16>
    %cst_113 = arith.constant dense<0.000000e+00> : vector<8x512xf32>
    %450 = tpu.matmul %449, %10, %cst_113 {dimension_numbers = #tpu.dot_dimension_numbers<[1], [0], [0], [1], [0, 0, 1, 1], [], []>} : vector<8x128xbf16>, vector<128x512xbf16>, vector<8x512xf32> -> vector<8x512xf32>
    %451 = arith.addf %448, %450 : vector<8x512xf32>
    %452 = vector.extract_strided_slice %451 {offsets = [0, 0], sizes = [8, 384], strides = [1, 1]} : vector<8x512xf32> to vector<8x384xf32>
    %453 = arith.negf %452 : vector<8x384xf32>
    %454 = math.exp %453 : vector<8x384xf32>
    %cst_114 = arith.constant 1.000000e+00 : f32
    %455 = vector.broadcast %cst_114 : f32 to vector<8x384xf32>
    %456 = arith.addf %455, %454 : vector<8x384xf32>
    %457 = arith.divf %455, %456 : vector<8x384xf32>
    %458 = vector.extract_strided_slice %457 {offsets = [0, 0], sizes = [8, 128], strides = [1, 1]} : vector<8x384xf32> to vector<8x128xf32>
    %459 = vector.extract_strided_slice %457 {offsets = [0, 128], sizes = [8, 128], strides = [1, 1]} : vector<8x384xf32> to vector<8x128xf32>
    %460 = vector.extract_strided_slice %457 {offsets = [0, 256], sizes = [8, 128], strides = [1, 1]} : vector<8x384xf32> to vector<8x128xf32>
    %461 = vector.extract_strided_slice %451 {offsets = [0, 384], sizes = [8, 128], strides = [1, 1]} : vector<8x512xf32> to vector<8x128xf32>
    %462 = math.tanh %461 : vector<8x128xf32>
    %463 = arith.mulf %459, %438 : vector<8x128xf32>
    %464 = arith.mulf %458, %462 : vector<8x128xf32>
    %465 = arith.addf %463, %464 : vector<8x128xf32>
    %466 = math.tanh %465 : vector<8x128xf32>
    %467 = arith.mulf %460, %466 : vector<8x128xf32>
    %468 = arith.index_cast %c16_i32 : i32 to index
    %c0_115 = arith.constant 0 : index
    %c0_116 = arith.constant 0 : index
    %469 = vector.load %arg7[%468, %c0_115, %c0_116] : memref<32x8x128xf32, #tpu.memory_space<vmem>>, vector<1x8x128xf32>
    %470 = vector.shape_cast %469 : vector<1x8x128xf32> to vector<8x128xf32>
    %471 = vector.shape_cast %467 : vector<8x128xf32> to vector<1x8x128xf32>
    tpu.vector_store %arg7[%468, %c0_115, %c0_116], %471 {strides = array<i32>} : memref<32x8x128xf32, #tpu.memory_space<vmem>>, vector<1x8x128xf32>,
    %c17_i32 = arith.constant 17 : i32
    %c8_i32_117 = arith.constant 8 : i32
    %472 = arith.muli %c17_i32, %c8_i32_117 : i32
    %473 = tpu.assume_multiple %472, 8 : i32
    %474 = arith.index_cast %473 : i32 to index
    %c0_118 = arith.constant 0 : index
    %475 = vector.load %arg12[%474, %c0_118] : memref<256x512xf32, #tpu.memory_space<vmem>>, vector<8x512xf32>
    %476 = arith.truncf %467 : vector<8x128xf32> to vector<8x128xbf16>
    %cst_119 = arith.constant dense<0.000000e+00> : vector<8x512xf32>
    %477 = tpu.matmul %476, %10, %cst_119 {dimension_numbers = #tpu.dot_dimension_numbers<[1], [0], [0], [1], [0, 0, 1, 1], [], []>} : vector<8x128xbf16>, vector<128x512xbf16>, vector<8x512xf32> -> vector<8x512xf32>
    %478 = arith.addf %475, %477 : vector<8x512xf32>
    %479 = vector.extract_strided_slice %478 {offsets = [0, 0], sizes = [8, 384], strides = [1, 1]} : vector<8x512xf32> to vector<8x384xf32>
    %480 = arith.negf %479 : vector<8x384xf32>
    %481 = math.exp %480 : vector<8x384xf32>
    %cst_120 = arith.constant 1.000000e+00 : f32
    %482 = vector.broadcast %cst_120 : f32 to vector<8x384xf32>
    %483 = arith.addf %482, %481 : vector<8x384xf32>
    %484 = arith.divf %482, %483 : vector<8x384xf32>
    %485 = vector.extract_strided_slice %484 {offsets = [0, 0], sizes = [8, 128], strides = [1, 1]} : vector<8x384xf32> to vector<8x128xf32>
    %486 = vector.extract_strided_slice %484 {offsets = [0, 128], sizes = [8, 128], strides = [1, 1]} : vector<8x384xf32> to vector<8x128xf32>
    %487 = vector.extract_strided_slice %484 {offsets = [0, 256], sizes = [8, 128], strides = [1, 1]} : vector<8x384xf32> to vector<8x128xf32>
    %488 = vector.extract_strided_slice %478 {offsets = [0, 384], sizes = [8, 128], strides = [1, 1]} : vector<8x512xf32> to vector<8x128xf32>
    %489 = math.tanh %488 : vector<8x128xf32>
    %490 = arith.mulf %486, %465 : vector<8x128xf32>
    %491 = arith.mulf %485, %489 : vector<8x128xf32>
    %492 = arith.addf %490, %491 : vector<8x128xf32>
    %493 = math.tanh %492 : vector<8x128xf32>
    %494 = arith.mulf %487, %493 : vector<8x128xf32>
    %495 = arith.index_cast %c17_i32 : i32 to index
    %c0_121 = arith.constant 0 : index
    %c0_122 = arith.constant 0 : index
    %496 = vector.load %arg7[%495, %c0_121, %c0_122] : memref<32x8x128xf32, #tpu.memory_space<vmem>>, vector<1x8x128xf32>
    %497 = vector.shape_cast %496 : vector<1x8x128xf32> to vector<8x128xf32>
    %498 = vector.shape_cast %494 : vector<8x128xf32> to vector<1x8x128xf32>
    tpu.vector_store %arg7[%495, %c0_121, %c0_122], %498 {strides = array<i32>} : memref<32x8x128xf32, #tpu.memory_space<vmem>>, vector<1x8x128xf32>,
    %c18_i32 = arith.constant 18 : i32
    %c8_i32_123 = arith.constant 8 : i32
    %499 = arith.muli %c18_i32, %c8_i32_123 : i32
    %500 = tpu.assume_multiple %499, 8 : i32
    %501 = arith.index_cast %500 : i32 to index
    %c0_124 = arith.constant 0 : index
    %502 = vector.load %arg12[%501, %c0_124] : memref<256x512xf32, #tpu.memory_space<vmem>>, vector<8x512xf32>
    %503 = arith.truncf %494 : vector<8x128xf32> to vector<8x128xbf16>
    %cst_125 = arith.constant dense<0.000000e+00> : vector<8x512xf32>
    %504 = tpu.matmul %503, %10, %cst_125 {dimension_numbers = #tpu.dot_dimension_numbers<[1], [0], [0], [1], [0, 0, 1, 1], [], []>} : vector<8x128xbf16>, vector<128x512xbf16>, vector<8x512xf32> -> vector<8x512xf32>
    %505 = arith.addf %502, %504 : vector<8x512xf32>
    %506 = vector.extract_strided_slice %505 {offsets = [0, 0], sizes = [8, 384], strides = [1, 1]} : vector<8x512xf32> to vector<8x384xf32>
    %507 = arith.negf %506 : vector<8x384xf32>
    %508 = math.exp %507 : vector<8x384xf32>
    %cst_126 = arith.constant 1.000000e+00 : f32
    %509 = vector.broadcast %cst_126 : f32 to vector<8x384xf32>
    %510 = arith.addf %509, %508 : vector<8x384xf32>
    %511 = arith.divf %509, %510 : vector<8x384xf32>
    %512 = vector.extract_strided_slice %511 {offsets = [0, 0], sizes = [8, 128], strides = [1, 1]} : vector<8x384xf32> to vector<8x128xf32>
    %513 = vector.extract_strided_slice %511 {offsets = [0, 128], sizes = [8, 128], strides = [1, 1]} : vector<8x384xf32> to vector<8x128xf32>
    %514 = vector.extract_strided_slice %511 {offsets = [0, 256], sizes = [8, 128], strides = [1, 1]} : vector<8x384xf32> to vector<8x128xf32>
    %515 = vector.extract_strided_slice %505 {offsets = [0, 384], sizes = [8, 128], strides = [1, 1]} : vector<8x512xf32> to vector<8x128xf32>
    %516 = math.tanh %515 : vector<8x128xf32>
    %517 = arith.mulf %513, %492 : vector<8x128xf32>
    %518 = arith.mulf %512, %516 : vector<8x128xf32>
    %519 = arith.addf %517, %518 : vector<8x128xf32>
    %520 = math.tanh %519 : vector<8x128xf32>
    %521 = arith.mulf %514, %520 : vector<8x128xf32>
    %522 = arith.index_cast %c18_i32 : i32 to index
    %c0_127 = arith.constant 0 : index
    %c0_128 = arith.constant 0 : index
    %523 = vector.load %arg7[%522, %c0_127, %c0_128] : memref<32x8x128xf32, #tpu.memory_space<vmem>>, vector<1x8x128xf32>
    %524 = vector.shape_cast %523 : vector<1x8x128xf32> to vector<8x128xf32>
    %525 = vector.shape_cast %521 : vector<8x128xf32> to vector<1x8x128xf32>
    tpu.vector_store %arg7[%522, %c0_127, %c0_128], %525 {strides = array<i32>} : memref<32x8x128xf32, #tpu.memory_space<vmem>>, vector<1x8x128xf32>,
    %c19_i32 = arith.constant 19 : i32
    %c8_i32_129 = arith.constant 8 : i32
    %526 = arith.muli %c19_i32, %c8_i32_129 : i32
    %527 = tpu.assume_multiple %526, 8 : i32
    %528 = arith.index_cast %527 : i32 to index
    %c0_130 = arith.constant 0 : index
    %529 = vector.load %arg12[%528, %c0_130] : memref<256x512xf32, #tpu.memory_space<vmem>>, vector<8x512xf32>
    %530 = arith.truncf %521 : vector<8x128xf32> to vector<8x128xbf16>
    %cst_131 = arith.constant dense<0.000000e+00> : vector<8x512xf32>
    %531 = tpu.matmul %530, %10, %cst_131 {dimension_numbers = #tpu.dot_dimension_numbers<[1], [0], [0], [1], [0, 0, 1, 1], [], []>} : vector<8x128xbf16>, vector<128x512xbf16>, vector<8x512xf32> -> vector<8x512xf32>
    %532 = arith.addf %529, %531 : vector<8x512xf32>
    %533 = vector.extract_strided_slice %532 {offsets = [0, 0], sizes = [8, 384], strides = [1, 1]} : vector<8x512xf32> to vector<8x384xf32>
    %534 = arith.negf %533 : vector<8x384xf32>
    %535 = math.exp %534 : vector<8x384xf32>
    %cst_132 = arith.constant 1.000000e+00 : f32
    %536 = vector.broadcast %cst_132 : f32 to vector<8x384xf32>
    %537 = arith.addf %536, %535 : vector<8x384xf32>
    %538 = arith.divf %536, %537 : vector<8x384xf32>
    %539 = vector.extract_strided_slice %538 {offsets = [0, 0], sizes = [8, 128], strides = [1, 1]} : vector<8x384xf32> to vector<8x128xf32>
    %540 = vector.extract_strided_slice %538 {offsets = [0, 128], sizes = [8, 128], strides = [1, 1]} : vector<8x384xf32> to vector<8x128xf32>
    %541 = vector.extract_strided_slice %538 {offsets = [0, 256], sizes = [8, 128], strides = [1, 1]} : vector<8x384xf32> to vector<8x128xf32>
    %542 = vector.extract_strided_slice %532 {offsets = [0, 384], sizes = [8, 128], strides = [1, 1]} : vector<8x512xf32> to vector<8x128xf32>
    %543 = math.tanh %542 : vector<8x128xf32>
    %544 = arith.mulf %540, %519 : vector<8x128xf32>
    %545 = arith.mulf %539, %543 : vector<8x128xf32>
    %546 = arith.addf %544, %545 : vector<8x128xf32>
    %547 = math.tanh %546 : vector<8x128xf32>
    %548 = arith.mulf %541, %547 : vector<8x128xf32>
    %549 = arith.index_cast %c19_i32 : i32 to index
    %c0_133 = arith.constant 0 : index
    %c0_134 = arith.constant 0 : index
    %550 = vector.load %arg7[%549, %c0_133, %c0_134] : memref<32x8x128xf32, #tpu.memory_space<vmem>>, vector<1x8x128xf32>
    %551 = vector.shape_cast %550 : vector<1x8x128xf32> to vector<8x128xf32>
    %552 = vector.shape_cast %548 : vector<8x128xf32> to vector<1x8x128xf32>
    tpu.vector_store %arg7[%549, %c0_133, %c0_134], %552 {strides = array<i32>} : memref<32x8x128xf32, #tpu.memory_space<vmem>>, vector<1x8x128xf32>,
    %c20_i32 = arith.constant 20 : i32
    %c8_i32_135 = arith.constant 8 : i32
    %553 = arith.muli %c20_i32, %c8_i32_135 : i32
    %554 = tpu.assume_multiple %553, 8 : i32
    %555 = arith.index_cast %554 : i32 to index
    %c0_136 = arith.constant 0 : index
    %556 = vector.load %arg12[%555, %c0_136] : memref<256x512xf32, #tpu.memory_space<vmem>>, vector<8x512xf32>
    %557 = arith.truncf %548 : vector<8x128xf32> to vector<8x128xbf16>
    %cst_137 = arith.constant dense<0.000000e+00> : vector<8x512xf32>
    %558 = tpu.matmul %557, %10, %cst_137 {dimension_numbers = #tpu.dot_dimension_numbers<[1], [0], [0], [1], [0, 0, 1, 1], [], []>} : vector<8x128xbf16>, vector<128x512xbf16>, vector<8x512xf32> -> vector<8x512xf32>
    %559 = arith.addf %556, %558 : vector<8x512xf32>
    %560 = vector.extract_strided_slice %559 {offsets = [0, 0], sizes = [8, 384], strides = [1, 1]} : vector<8x512xf32> to vector<8x384xf32>
    %561 = arith.negf %560 : vector<8x384xf32>
    %562 = math.exp %561 : vector<8x384xf32>
    %cst_138 = arith.constant 1.000000e+00 : f32
    %563 = vector.broadcast %cst_138 : f32 to vector<8x384xf32>
    %564 = arith.addf %563, %562 : vector<8x384xf32>
    %565 = arith.divf %563, %564 : vector<8x384xf32>
    %566 = vector.extract_strided_slice %565 {offsets = [0, 0], sizes = [8, 128], strides = [1, 1]} : vector<8x384xf32> to vector<8x128xf32>
    %567 = vector.extract_strided_slice %565 {offsets = [0, 128], sizes = [8, 128], strides = [1, 1]} : vector<8x384xf32> to vector<8x128xf32>
    %568 = vector.extract_strided_slice %565 {offsets = [0, 256], sizes = [8, 128], strides = [1, 1]} : vector<8x384xf32> to vector<8x128xf32>
    %569 = vector.extract_strided_slice %559 {offsets = [0, 384], sizes = [8, 128], strides = [1, 1]} : vector<8x512xf32> to vector<8x128xf32>
    %570 = math.tanh %569 : vector<8x128xf32>
    %571 = arith.mulf %567, %546 : vector<8x128xf32>
    %572 = arith.mulf %566, %570 : vector<8x128xf32>
    %573 = arith.addf %571, %572 : vector<8x128xf32>
    %574 = math.tanh %573 : vector<8x128xf32>
    %575 = arith.mulf %568, %574 : vector<8x128xf32>
    %576 = arith.index_cast %c20_i32 : i32 to index
    %c0_139 = arith.constant 0 : index
    %c0_140 = arith.constant 0 : index
    %577 = vector.load %arg7[%576, %c0_139, %c0_140] : memref<32x8x128xf32, #tpu.memory_space<vmem>>, vector<1x8x128xf32>
    %578 = vector.shape_cast %577 : vector<1x8x128xf32> to vector<8x128xf32>
    %579 = vector.shape_cast %575 : vector<8x128xf32> to vector<1x8x128xf32>
    tpu.vector_store %arg7[%576, %c0_139, %c0_140], %579 {strides = array<i32>} : memref<32x8x128xf32, #tpu.memory_space<vmem>>, vector<1x8x128xf32>,
    %c21_i32 = arith.constant 21 : i32
    %c8_i32_141 = arith.constant 8 : i32
    %580 = arith.muli %c21_i32, %c8_i32_141 : i32
    %581 = tpu.assume_multiple %580, 8 : i32
    %582 = arith.index_cast %581 : i32 to index
    %c0_142 = arith.constant 0 : index
    %583 = vector.load %arg12[%582, %c0_142] : memref<256x512xf32, #tpu.memory_space<vmem>>, vector<8x512xf32>
    %584 = arith.truncf %575 : vector<8x128xf32> to vector<8x128xbf16>
    %cst_143 = arith.constant dense<0.000000e+00> : vector<8x512xf32>
    %585 = tpu.matmul %584, %10, %cst_143 {dimension_numbers = #tpu.dot_dimension_numbers<[1], [0], [0], [1], [0, 0, 1, 1], [], []>} : vector<8x128xbf16>, vector<128x512xbf16>, vector<8x512xf32> -> vector<8x512xf32>
    %586 = arith.addf %583, %585 : vector<8x512xf32>
    %587 = vector.extract_strided_slice %586 {offsets = [0, 0], sizes = [8, 384], strides = [1, 1]} : vector<8x512xf32> to vector<8x384xf32>
    %588 = arith.negf %587 : vector<8x384xf32>
    %589 = math.exp %588 : vector<8x384xf32>
    %cst_144 = arith.constant 1.000000e+00 : f32
    %590 = vector.broadcast %cst_144 : f32 to vector<8x384xf32>
    %591 = arith.addf %590, %589 : vector<8x384xf32>
    %592 = arith.divf %590, %591 : vector<8x384xf32>
    %593 = vector.extract_strided_slice %592 {offsets = [0, 0], sizes = [8, 128], strides = [1, 1]} : vector<8x384xf32> to vector<8x128xf32>
    %594 = vector.extract_strided_slice %592 {offsets = [0, 128], sizes = [8, 128], strides = [1, 1]} : vector<8x384xf32> to vector<8x128xf32>
    %595 = vector.extract_strided_slice %592 {offsets = [0, 256], sizes = [8, 128], strides = [1, 1]} : vector<8x384xf32> to vector<8x128xf32>
    %596 = vector.extract_strided_slice %586 {offsets = [0, 384], sizes = [8, 128], strides = [1, 1]} : vector<8x512xf32> to vector<8x128xf32>
    %597 = math.tanh %596 : vector<8x128xf32>
    %598 = arith.mulf %594, %573 : vector<8x128xf32>
    %599 = arith.mulf %593, %597 : vector<8x128xf32>
    %600 = arith.addf %598, %599 : vector<8x128xf32>
    %601 = math.tanh %600 : vector<8x128xf32>
    %602 = arith.mulf %595, %601 : vector<8x128xf32>
    %603 = arith.index_cast %c21_i32 : i32 to index
    %c0_145 = arith.constant 0 : index
    %c0_146 = arith.constant 0 : index
    %604 = vector.load %arg7[%603, %c0_145, %c0_146] : memref<32x8x128xf32, #tpu.memory_space<vmem>>, vector<1x8x128xf32>
    %605 = vector.shape_cast %604 : vector<1x8x128xf32> to vector<8x128xf32>
    %606 = vector.shape_cast %602 : vector<8x128xf32> to vector<1x8x128xf32>
    tpu.vector_store %arg7[%603, %c0_145, %c0_146], %606 {strides = array<i32>} : memref<32x8x128xf32, #tpu.memory_space<vmem>>, vector<1x8x128xf32>,
    %c22_i32 = arith.constant 22 : i32
    %c8_i32_147 = arith.constant 8 : i32
    %607 = arith.muli %c22_i32, %c8_i32_147 : i32
    %608 = tpu.assume_multiple %607, 8 : i32
    %609 = arith.index_cast %608 : i32 to index
    %c0_148 = arith.constant 0 : index
    %610 = vector.load %arg12[%609, %c0_148] : memref<256x512xf32, #tpu.memory_space<vmem>>, vector<8x512xf32>
    %611 = arith.truncf %602 : vector<8x128xf32> to vector<8x128xbf16>
    %cst_149 = arith.constant dense<0.000000e+00> : vector<8x512xf32>
    %612 = tpu.matmul %611, %10, %cst_149 {dimension_numbers = #tpu.dot_dimension_numbers<[1], [0], [0], [1], [0, 0, 1, 1], [], []>} : vector<8x128xbf16>, vector<128x512xbf16>, vector<8x512xf32> -> vector<8x512xf32>
    %613 = arith.addf %610, %612 : vector<8x512xf32>
    %614 = vector.extract_strided_slice %613 {offsets = [0, 0], sizes = [8, 384], strides = [1, 1]} : vector<8x512xf32> to vector<8x384xf32>
    %615 = arith.negf %614 : vector<8x384xf32>
    %616 = math.exp %615 : vector<8x384xf32>
    %cst_150 = arith.constant 1.000000e+00 : f32
    %617 = vector.broadcast %cst_150 : f32 to vector<8x384xf32>
    %618 = arith.addf %617, %616 : vector<8x384xf32>
    %619 = arith.divf %617, %618 : vector<8x384xf32>
    %620 = vector.extract_strided_slice %619 {offsets = [0, 0], sizes = [8, 128], strides = [1, 1]} : vector<8x384xf32> to vector<8x128xf32>
    %621 = vector.extract_strided_slice %619 {offsets = [0, 128], sizes = [8, 128], strides = [1, 1]} : vector<8x384xf32> to vector<8x128xf32>
    %622 = vector.extract_strided_slice %619 {offsets = [0, 256], sizes = [8, 128], strides = [1, 1]} : vector<8x384xf32> to vector<8x128xf32>
    %623 = vector.extract_strided_slice %613 {offsets = [0, 384], sizes = [8, 128], strides = [1, 1]} : vector<8x512xf32> to vector<8x128xf32>
    %624 = math.tanh %623 : vector<8x128xf32>
    %625 = arith.mulf %621, %600 : vector<8x128xf32>
    %626 = arith.mulf %620, %624 : vector<8x128xf32>
    %627 = arith.addf %625, %626 : vector<8x128xf32>
    %628 = math.tanh %627 : vector<8x128xf32>
    %629 = arith.mulf %622, %628 : vector<8x128xf32>
    %630 = arith.index_cast %c22_i32 : i32 to index
    %c0_151 = arith.constant 0 : index
    %c0_152 = arith.constant 0 : index
    %631 = vector.load %arg7[%630, %c0_151, %c0_152] : memref<32x8x128xf32, #tpu.memory_space<vmem>>, vector<1x8x128xf32>
    %632 = vector.shape_cast %631 : vector<1x8x128xf32> to vector<8x128xf32>
    %633 = vector.shape_cast %629 : vector<8x128xf32> to vector<1x8x128xf32>
    tpu.vector_store %arg7[%630, %c0_151, %c0_152], %633 {strides = array<i32>} : memref<32x8x128xf32, #tpu.memory_space<vmem>>, vector<1x8x128xf32>,
    %c23_i32 = arith.constant 23 : i32
    %c8_i32_153 = arith.constant 8 : i32
    %634 = arith.muli %c23_i32, %c8_i32_153 : i32
    %635 = tpu.assume_multiple %634, 8 : i32
    %636 = arith.index_cast %635 : i32 to index
    %c0_154 = arith.constant 0 : index
    %637 = vector.load %arg12[%636, %c0_154] : memref<256x512xf32, #tpu.memory_space<vmem>>, vector<8x512xf32>
    %638 = arith.truncf %629 : vector<8x128xf32> to vector<8x128xbf16>
    %cst_155 = arith.constant dense<0.000000e+00> : vector<8x512xf32>
    %639 = tpu.matmul %638, %10, %cst_155 {dimension_numbers = #tpu.dot_dimension_numbers<[1], [0], [0], [1], [0, 0, 1, 1], [], []>} : vector<8x128xbf16>, vector<128x512xbf16>, vector<8x512xf32> -> vector<8x512xf32>
    %640 = arith.addf %637, %639 : vector<8x512xf32>
    %641 = vector.extract_strided_slice %640 {offsets = [0, 0], sizes = [8, 384], strides = [1, 1]} : vector<8x512xf32> to vector<8x384xf32>
    %642 = arith.negf %641 : vector<8x384xf32>
    %643 = math.exp %642 : vector<8x384xf32>
    %cst_156 = arith.constant 1.000000e+00 : f32
    %644 = vector.broadcast %cst_156 : f32 to vector<8x384xf32>
    %645 = arith.addf %644, %643 : vector<8x384xf32>
    %646 = arith.divf %644, %645 : vector<8x384xf32>
    %647 = vector.extract_strided_slice %646 {offsets = [0, 0], sizes = [8, 128], strides = [1, 1]} : vector<8x384xf32> to vector<8x128xf32>
    %648 = vector.extract_strided_slice %646 {offsets = [0, 128], sizes = [8, 128], strides = [1, 1]} : vector<8x384xf32> to vector<8x128xf32>
    %649 = vector.extract_strided_slice %646 {offsets = [0, 256], sizes = [8, 128], strides = [1, 1]} : vector<8x384xf32> to vector<8x128xf32>
    %650 = vector.extract_strided_slice %640 {offsets = [0, 384], sizes = [8, 128], strides = [1, 1]} : vector<8x512xf32> to vector<8x128xf32>
    %651 = math.tanh %650 : vector<8x128xf32>
    %652 = arith.mulf %648, %627 : vector<8x128xf32>
    %653 = arith.mulf %647, %651 : vector<8x128xf32>
    %654 = arith.addf %652, %653 : vector<8x128xf32>
    %655 = math.tanh %654 : vector<8x128xf32>
    %656 = arith.mulf %649, %655 : vector<8x128xf32>
    %657 = arith.index_cast %c23_i32 : i32 to index
    %c0_157 = arith.constant 0 : index
    %c0_158 = arith.constant 0 : index
    %658 = vector.load %arg7[%657, %c0_157, %c0_158] : memref<32x8x128xf32, #tpu.memory_space<vmem>>, vector<1x8x128xf32>
    %659 = vector.shape_cast %658 : vector<1x8x128xf32> to vector<8x128xf32>
    %660 = vector.shape_cast %656 : vector<8x128xf32> to vector<1x8x128xf32>
    tpu.vector_store %arg7[%657, %c0_157, %c0_158], %660 {strides = array<i32>} : memref<32x8x128xf32, #tpu.memory_space<vmem>>, vector<1x8x128xf32>,
    %c24_i32 = arith.constant 24 : i32
    %c8_i32_159 = arith.constant 8 : i32
    %661 = arith.muli %c24_i32, %c8_i32_159 : i32
    %662 = tpu.assume_multiple %661, 8 : i32
    %663 = arith.index_cast %662 : i32 to index
    %c0_160 = arith.constant 0 : index
    %664 = vector.load %arg12[%663, %c0_160] : memref<256x512xf32, #tpu.memory_space<vmem>>, vector<8x512xf32>
    %665 = arith.truncf %656 : vector<8x128xf32> to vector<8x128xbf16>
    %cst_161 = arith.constant dense<0.000000e+00> : vector<8x512xf32>
    %666 = tpu.matmul %665, %10, %cst_161 {dimension_numbers = #tpu.dot_dimension_numbers<[1], [0], [0], [1], [0, 0, 1, 1], [], []>} : vector<8x128xbf16>, vector<128x512xbf16>, vector<8x512xf32> -> vector<8x512xf32>
    %667 = arith.addf %664, %666 : vector<8x512xf32>
    %668 = vector.extract_strided_slice %667 {offsets = [0, 0], sizes = [8, 384], strides = [1, 1]} : vector<8x512xf32> to vector<8x384xf32>
    %669 = arith.negf %668 : vector<8x384xf32>
    %670 = math.exp %669 : vector<8x384xf32>
    %cst_162 = arith.constant 1.000000e+00 : f32
    %671 = vector.broadcast %cst_162 : f32 to vector<8x384xf32>
    %672 = arith.addf %671, %670 : vector<8x384xf32>
    %673 = arith.divf %671, %672 : vector<8x384xf32>
    %674 = vector.extract_strided_slice %673 {offsets = [0, 0], sizes = [8, 128], strides = [1, 1]} : vector<8x384xf32> to vector<8x128xf32>
    %675 = vector.extract_strided_slice %673 {offsets = [0, 128], sizes = [8, 128], strides = [1, 1]} : vector<8x384xf32> to vector<8x128xf32>
    %676 = vector.extract_strided_slice %673 {offsets = [0, 256], sizes = [8, 128], strides = [1, 1]} : vector<8x384xf32> to vector<8x128xf32>
    %677 = vector.extract_strided_slice %667 {offsets = [0, 384], sizes = [8, 128], strides = [1, 1]} : vector<8x512xf32> to vector<8x128xf32>
    %678 = math.tanh %677 : vector<8x128xf32>
    %679 = arith.mulf %675, %654 : vector<8x128xf32>
    %680 = arith.mulf %674, %678 : vector<8x128xf32>
    %681 = arith.addf %679, %680 : vector<8x128xf32>
    %682 = math.tanh %681 : vector<8x128xf32>
    %683 = arith.mulf %676, %682 : vector<8x128xf32>
    %684 = arith.index_cast %c24_i32 : i32 to index
    %c0_163 = arith.constant 0 : index
    %c0_164 = arith.constant 0 : index
    %685 = vector.load %arg7[%684, %c0_163, %c0_164] : memref<32x8x128xf32, #tpu.memory_space<vmem>>, vector<1x8x128xf32>
    %686 = vector.shape_cast %685 : vector<1x8x128xf32> to vector<8x128xf32>
    %687 = vector.shape_cast %683 : vector<8x128xf32> to vector<1x8x128xf32>
    tpu.vector_store %arg7[%684, %c0_163, %c0_164], %687 {strides = array<i32>} : memref<32x8x128xf32, #tpu.memory_space<vmem>>, vector<1x8x128xf32>,
    %c25_i32 = arith.constant 25 : i32
    %c8_i32_165 = arith.constant 8 : i32
    %688 = arith.muli %c25_i32, %c8_i32_165 : i32
    %689 = tpu.assume_multiple %688, 8 : i32
    %690 = arith.index_cast %689 : i32 to index
    %c0_166 = arith.constant 0 : index
    %691 = vector.load %arg12[%690, %c0_166] : memref<256x512xf32, #tpu.memory_space<vmem>>, vector<8x512xf32>
    %692 = arith.truncf %683 : vector<8x128xf32> to vector<8x128xbf16>
    %cst_167 = arith.constant dense<0.000000e+00> : vector<8x512xf32>
    %693 = tpu.matmul %692, %10, %cst_167 {dimension_numbers = #tpu.dot_dimension_numbers<[1], [0], [0], [1], [0, 0, 1, 1], [], []>} : vector<8x128xbf16>, vector<128x512xbf16>, vector<8x512xf32> -> vector<8x512xf32>
    %694 = arith.addf %691, %693 : vector<8x512xf32>
    %695 = vector.extract_strided_slice %694 {offsets = [0, 0], sizes = [8, 384], strides = [1, 1]} : vector<8x512xf32> to vector<8x384xf32>
    %696 = arith.negf %695 : vector<8x384xf32>
    %697 = math.exp %696 : vector<8x384xf32>
    %cst_168 = arith.constant 1.000000e+00 : f32
    %698 = vector.broadcast %cst_168 : f32 to vector<8x384xf32>
    %699 = arith.addf %698, %697 : vector<8x384xf32>
    %700 = arith.divf %698, %699 : vector<8x384xf32>
    %701 = vector.extract_strided_slice %700 {offsets = [0, 0], sizes = [8, 128], strides = [1, 1]} : vector<8x384xf32> to vector<8x128xf32>
    %702 = vector.extract_strided_slice %700 {offsets = [0, 128], sizes = [8, 128], strides = [1, 1]} : vector<8x384xf32> to vector<8x128xf32>
    %703 = vector.extract_strided_slice %700 {offsets = [0, 256], sizes = [8, 128], strides = [1, 1]} : vector<8x384xf32> to vector<8x128xf32>
    %704 = vector.extract_strided_slice %694 {offsets = [0, 384], sizes = [8, 128], strides = [1, 1]} : vector<8x512xf32> to vector<8x128xf32>
    %705 = math.tanh %704 : vector<8x128xf32>
    %706 = arith.mulf %702, %681 : vector<8x128xf32>
    %707 = arith.mulf %701, %705 : vector<8x128xf32>
    %708 = arith.addf %706, %707 : vector<8x128xf32>
    %709 = math.tanh %708 : vector<8x128xf32>
    %710 = arith.mulf %703, %709 : vector<8x128xf32>
    %711 = arith.index_cast %c25_i32 : i32 to index
    %c0_169 = arith.constant 0 : index
    %c0_170 = arith.constant 0 : index
    %712 = vector.load %arg7[%711, %c0_169, %c0_170] : memref<32x8x128xf32, #tpu.memory_space<vmem>>, vector<1x8x128xf32>
    %713 = vector.shape_cast %712 : vector<1x8x128xf32> to vector<8x128xf32>
    %714 = vector.shape_cast %710 : vector<8x128xf32> to vector<1x8x128xf32>
    tpu.vector_store %arg7[%711, %c0_169, %c0_170], %714 {strides = array<i32>} : memref<32x8x128xf32, #tpu.memory_space<vmem>>, vector<1x8x128xf32>,
    %c26_i32 = arith.constant 26 : i32
    %c8_i32_171 = arith.constant 8 : i32
    %715 = arith.muli %c26_i32, %c8_i32_171 : i32
    %716 = tpu.assume_multiple %715, 8 : i32
    %717 = arith.index_cast %716 : i32 to index
    %c0_172 = arith.constant 0 : index
    %718 = vector.load %arg12[%717, %c0_172] : memref<256x512xf32, #tpu.memory_space<vmem>>, vector<8x512xf32>
    %719 = arith.truncf %710 : vector<8x128xf32> to vector<8x128xbf16>
    %cst_173 = arith.constant dense<0.000000e+00> : vector<8x512xf32>
    %720 = tpu.matmul %719, %10, %cst_173 {dimension_numbers = #tpu.dot_dimension_numbers<[1], [0], [0], [1], [0, 0, 1, 1], [], []>} : vector<8x128xbf16>, vector<128x512xbf16>, vector<8x512xf32> -> vector<8x512xf32>
    %721 = arith.addf %718, %720 : vector<8x512xf32>
    %722 = vector.extract_strided_slice %721 {offsets = [0, 0], sizes = [8, 384], strides = [1, 1]} : vector<8x512xf32> to vector<8x384xf32>
    %723 = arith.negf %722 : vector<8x384xf32>
    %724 = math.exp %723 : vector<8x384xf32>
    %cst_174 = arith.constant 1.000000e+00 : f32
    %725 = vector.broadcast %cst_174 : f32 to vector<8x384xf32>
    %726 = arith.addf %725, %724 : vector<8x384xf32>
    %727 = arith.divf %725, %726 : vector<8x384xf32>
    %728 = vector.extract_strided_slice %727 {offsets = [0, 0], sizes = [8, 128], strides = [1, 1]} : vector<8x384xf32> to vector<8x128xf32>
    %729 = vector.extract_strided_slice %727 {offsets = [0, 128], sizes = [8, 128], strides = [1, 1]} : vector<8x384xf32> to vector<8x128xf32>
    %730 = vector.extract_strided_slice %727 {offsets = [0, 256], sizes = [8, 128], strides = [1, 1]} : vector<8x384xf32> to vector<8x128xf32>
    %731 = vector.extract_strided_slice %721 {offsets = [0, 384], sizes = [8, 128], strides = [1, 1]} : vector<8x512xf32> to vector<8x128xf32>
    %732 = math.tanh %731 : vector<8x128xf32>
    %733 = arith.mulf %729, %708 : vector<8x128xf32>
    %734 = arith.mulf %728, %732 : vector<8x128xf32>
    %735 = arith.addf %733, %734 : vector<8x128xf32>
    %736 = math.tanh %735 : vector<8x128xf32>
    %737 = arith.mulf %730, %736 : vector<8x128xf32>
    %738 = arith.index_cast %c26_i32 : i32 to index
    %c0_175 = arith.constant 0 : index
    %c0_176 = arith.constant 0 : index
    %739 = vector.load %arg7[%738, %c0_175, %c0_176] : memref<32x8x128xf32, #tpu.memory_space<vmem>>, vector<1x8x128xf32>
    %740 = vector.shape_cast %739 : vector<1x8x128xf32> to vector<8x128xf32>
    %741 = vector.shape_cast %737 : vector<8x128xf32> to vector<1x8x128xf32>
    tpu.vector_store %arg7[%738, %c0_175, %c0_176], %741 {strides = array<i32>} : memref<32x8x128xf32, #tpu.memory_space<vmem>>, vector<1x8x128xf32>,
    %c27_i32 = arith.constant 27 : i32
    %c8_i32_177 = arith.constant 8 : i32
    %742 = arith.muli %c27_i32, %c8_i32_177 : i32
    %743 = tpu.assume_multiple %742, 8 : i32
    %744 = arith.index_cast %743 : i32 to index
    %c0_178 = arith.constant 0 : index
    %745 = vector.load %arg12[%744, %c0_178] : memref<256x512xf32, #tpu.memory_space<vmem>>, vector<8x512xf32>
    %746 = arith.truncf %737 : vector<8x128xf32> to vector<8x128xbf16>
    %cst_179 = arith.constant dense<0.000000e+00> : vector<8x512xf32>
    %747 = tpu.matmul %746, %10, %cst_179 {dimension_numbers = #tpu.dot_dimension_numbers<[1], [0], [0], [1], [0, 0, 1, 1], [], []>} : vector<8x128xbf16>, vector<128x512xbf16>, vector<8x512xf32> -> vector<8x512xf32>
    %748 = arith.addf %745, %747 : vector<8x512xf32>
    %749 = vector.extract_strided_slice %748 {offsets = [0, 0], sizes = [8, 384], strides = [1, 1]} : vector<8x512xf32> to vector<8x384xf32>
    %750 = arith.negf %749 : vector<8x384xf32>
    %751 = math.exp %750 : vector<8x384xf32>
    %cst_180 = arith.constant 1.000000e+00 : f32
    %752 = vector.broadcast %cst_180 : f32 to vector<8x384xf32>
    %753 = arith.addf %752, %751 : vector<8x384xf32>
    %754 = arith.divf %752, %753 : vector<8x384xf32>
    %755 = vector.extract_strided_slice %754 {offsets = [0, 0], sizes = [8, 128], strides = [1, 1]} : vector<8x384xf32> to vector<8x128xf32>
    %756 = vector.extract_strided_slice %754 {offsets = [0, 128], sizes = [8, 128], strides = [1, 1]} : vector<8x384xf32> to vector<8x128xf32>
    %757 = vector.extract_strided_slice %754 {offsets = [0, 256], sizes = [8, 128], strides = [1, 1]} : vector<8x384xf32> to vector<8x128xf32>
    %758 = vector.extract_strided_slice %748 {offsets = [0, 384], sizes = [8, 128], strides = [1, 1]} : vector<8x512xf32> to vector<8x128xf32>
    %759 = math.tanh %758 : vector<8x128xf32>
    %760 = arith.mulf %756, %735 : vector<8x128xf32>
    %761 = arith.mulf %755, %759 : vector<8x128xf32>
    %762 = arith.addf %760, %761 : vector<8x128xf32>
    %763 = math.tanh %762 : vector<8x128xf32>
    %764 = arith.mulf %757, %763 : vector<8x128xf32>
    %765 = arith.index_cast %c27_i32 : i32 to index
    %c0_181 = arith.constant 0 : index
    %c0_182 = arith.constant 0 : index
    %766 = vector.load %arg7[%765, %c0_181, %c0_182] : memref<32x8x128xf32, #tpu.memory_space<vmem>>, vector<1x8x128xf32>
    %767 = vector.shape_cast %766 : vector<1x8x128xf32> to vector<8x128xf32>
    %768 = vector.shape_cast %764 : vector<8x128xf32> to vector<1x8x128xf32>
    tpu.vector_store %arg7[%765, %c0_181, %c0_182], %768 {strides = array<i32>} : memref<32x8x128xf32, #tpu.memory_space<vmem>>, vector<1x8x128xf32>,
    %c28_i32 = arith.constant 28 : i32
    %c8_i32_183 = arith.constant 8 : i32
    %769 = arith.muli %c28_i32, %c8_i32_183 : i32
    %770 = tpu.assume_multiple %769, 8 : i32
    %771 = arith.index_cast %770 : i32 to index
    %c0_184 = arith.constant 0 : index
    %772 = vector.load %arg12[%771, %c0_184] : memref<256x512xf32, #tpu.memory_space<vmem>>, vector<8x512xf32>
    %773 = arith.truncf %764 : vector<8x128xf32> to vector<8x128xbf16>
    %cst_185 = arith.constant dense<0.000000e+00> : vector<8x512xf32>
    %774 = tpu.matmul %773, %10, %cst_185 {dimension_numbers = #tpu.dot_dimension_numbers<[1], [0], [0], [1], [0, 0, 1, 1], [], []>} : vector<8x128xbf16>, vector<128x512xbf16>, vector<8x512xf32> -> vector<8x512xf32>
    %775 = arith.addf %772, %774 : vector<8x512xf32>
    %776 = vector.extract_strided_slice %775 {offsets = [0, 0], sizes = [8, 384], strides = [1, 1]} : vector<8x512xf32> to vector<8x384xf32>
    %777 = arith.negf %776 : vector<8x384xf32>
    %778 = math.exp %777 : vector<8x384xf32>
    %cst_186 = arith.constant 1.000000e+00 : f32
    %779 = vector.broadcast %cst_186 : f32 to vector<8x384xf32>
    %780 = arith.addf %779, %778 : vector<8x384xf32>
    %781 = arith.divf %779, %780 : vector<8x384xf32>
    %782 = vector.extract_strided_slice %781 {offsets = [0, 0], sizes = [8, 128], strides = [1, 1]} : vector<8x384xf32> to vector<8x128xf32>
    %783 = vector.extract_strided_slice %781 {offsets = [0, 128], sizes = [8, 128], strides = [1, 1]} : vector<8x384xf32> to vector<8x128xf32>
    %784 = vector.extract_strided_slice %781 {offsets = [0, 256], sizes = [8, 128], strides = [1, 1]} : vector<8x384xf32> to vector<8x128xf32>
    %785 = vector.extract_strided_slice %775 {offsets = [0, 384], sizes = [8, 128], strides = [1, 1]} : vector<8x512xf32> to vector<8x128xf32>
    %786 = math.tanh %785 : vector<8x128xf32>
    %787 = arith.mulf %783, %762 : vector<8x128xf32>
    %788 = arith.mulf %782, %786 : vector<8x128xf32>
    %789 = arith.addf %787, %788 : vector<8x128xf32>
    %790 = math.tanh %789 : vector<8x128xf32>
    %791 = arith.mulf %784, %790 : vector<8x128xf32>
    %792 = arith.index_cast %c28_i32 : i32 to index
    %c0_187 = arith.constant 0 : index
    %c0_188 = arith.constant 0 : index
    %793 = vector.load %arg7[%792, %c0_187, %c0_188] : memref<32x8x128xf32, #tpu.memory_space<vmem>>, vector<1x8x128xf32>
    %794 = vector.shape_cast %793 : vector<1x8x128xf32> to vector<8x128xf32>
    %795 = vector.shape_cast %791 : vector<8x128xf32> to vector<1x8x128xf32>
    tpu.vector_store %arg7[%792, %c0_187, %c0_188], %795 {strides = array<i32>} : memref<32x8x128xf32, #tpu.memory_space<vmem>>, vector<1x8x128xf32>,
    %c29_i32 = arith.constant 29 : i32
    %c8_i32_189 = arith.constant 8 : i32
    %796 = arith.muli %c29_i32, %c8_i32_189 : i32
    %797 = tpu.assume_multiple %796, 8 : i32
    %798 = arith.index_cast %797 : i32 to index
    %c0_190 = arith.constant 0 : index
    %799 = vector.load %arg12[%798, %c0_190] : memref<256x512xf32, #tpu.memory_space<vmem>>, vector<8x512xf32>
    %800 = arith.truncf %791 : vector<8x128xf32> to vector<8x128xbf16>
    %cst_191 = arith.constant dense<0.000000e+00> : vector<8x512xf32>
    %801 = tpu.matmul %800, %10, %cst_191 {dimension_numbers = #tpu.dot_dimension_numbers<[1], [0], [0], [1], [0, 0, 1, 1], [], []>} : vector<8x128xbf16>, vector<128x512xbf16>, vector<8x512xf32> -> vector<8x512xf32>
    %802 = arith.addf %799, %801 : vector<8x512xf32>
    %803 = vector.extract_strided_slice %802 {offsets = [0, 0], sizes = [8, 384], strides = [1, 1]} : vector<8x512xf32> to vector<8x384xf32>
    %804 = arith.negf %803 : vector<8x384xf32>
    %805 = math.exp %804 : vector<8x384xf32>
    %cst_192 = arith.constant 1.000000e+00 : f32
    %806 = vector.broadcast %cst_192 : f32 to vector<8x384xf32>
    %807 = arith.addf %806, %805 : vector<8x384xf32>
    %808 = arith.divf %806, %807 : vector<8x384xf32>
    %809 = vector.extract_strided_slice %808 {offsets = [0, 0], sizes = [8, 128], strides = [1, 1]} : vector<8x384xf32> to vector<8x128xf32>
    %810 = vector.extract_strided_slice %808 {offsets = [0, 128], sizes = [8, 128], strides = [1, 1]} : vector<8x384xf32> to vector<8x128xf32>
    %811 = vector.extract_strided_slice %808 {offsets = [0, 256], sizes = [8, 128], strides = [1, 1]} : vector<8x384xf32> to vector<8x128xf32>
    %812 = vector.extract_strided_slice %802 {offsets = [0, 384], sizes = [8, 128], strides = [1, 1]} : vector<8x512xf32> to vector<8x128xf32>
    %813 = math.tanh %812 : vector<8x128xf32>
    %814 = arith.mulf %810, %789 : vector<8x128xf32>
    %815 = arith.mulf %809, %813 : vector<8x128xf32>
    %816 = arith.addf %814, %815 : vector<8x128xf32>
    %817 = math.tanh %816 : vector<8x128xf32>
    %818 = arith.mulf %811, %817 : vector<8x128xf32>
    %819 = arith.index_cast %c29_i32 : i32 to index
    %c0_193 = arith.constant 0 : index
    %c0_194 = arith.constant 0 : index
    %820 = vector.load %arg7[%819, %c0_193, %c0_194] : memref<32x8x128xf32, #tpu.memory_space<vmem>>, vector<1x8x128xf32>
    %821 = vector.shape_cast %820 : vector<1x8x128xf32> to vector<8x128xf32>
    %822 = vector.shape_cast %818 : vector<8x128xf32> to vector<1x8x128xf32>
    tpu.vector_store %arg7[%819, %c0_193, %c0_194], %822 {strides = array<i32>} : memref<32x8x128xf32, #tpu.memory_space<vmem>>, vector<1x8x128xf32>,
    %c30_i32 = arith.constant 30 : i32
    %c8_i32_195 = arith.constant 8 : i32
    %823 = arith.muli %c30_i32, %c8_i32_195 : i32
    %824 = tpu.assume_multiple %823, 8 : i32
    %825 = arith.index_cast %824 : i32 to index
    %c0_196 = arith.constant 0 : index
    %826 = vector.load %arg12[%825, %c0_196] : memref<256x512xf32, #tpu.memory_space<vmem>>, vector<8x512xf32>
    %827 = arith.truncf %818 : vector<8x128xf32> to vector<8x128xbf16>
    %cst_197 = arith.constant dense<0.000000e+00> : vector<8x512xf32>
    %828 = tpu.matmul %827, %10, %cst_197 {dimension_numbers = #tpu.dot_dimension_numbers<[1], [0], [0], [1], [0, 0, 1, 1], [], []>} : vector<8x128xbf16>, vector<128x512xbf16>, vector<8x512xf32> -> vector<8x512xf32>
    %829 = arith.addf %826, %828 : vector<8x512xf32>
    %830 = vector.extract_strided_slice %829 {offsets = [0, 0], sizes = [8, 384], strides = [1, 1]} : vector<8x512xf32> to vector<8x384xf32>
    %831 = arith.negf %830 : vector<8x384xf32>
    %832 = math.exp %831 : vector<8x384xf32>
    %cst_198 = arith.constant 1.000000e+00 : f32
    %833 = vector.broadcast %cst_198 : f32 to vector<8x384xf32>
    %834 = arith.addf %833, %832 : vector<8x384xf32>
    %835 = arith.divf %833, %834 : vector<8x384xf32>
    %836 = vector.extract_strided_slice %835 {offsets = [0, 0], sizes = [8, 128], strides = [1, 1]} : vector<8x384xf32> to vector<8x128xf32>
    %837 = vector.extract_strided_slice %835 {offsets = [0, 128], sizes = [8, 128], strides = [1, 1]} : vector<8x384xf32> to vector<8x128xf32>
    %838 = vector.extract_strided_slice %835 {offsets = [0, 256], sizes = [8, 128], strides = [1, 1]} : vector<8x384xf32> to vector<8x128xf32>
    %839 = vector.extract_strided_slice %829 {offsets = [0, 384], sizes = [8, 128], strides = [1, 1]} : vector<8x512xf32> to vector<8x128xf32>
    %840 = math.tanh %839 : vector<8x128xf32>
    %841 = arith.mulf %837, %816 : vector<8x128xf32>
    %842 = arith.mulf %836, %840 : vector<8x128xf32>
    %843 = arith.addf %841, %842 : vector<8x128xf32>
    %844 = math.tanh %843 : vector<8x128xf32>
    %845 = arith.mulf %838, %844 : vector<8x128xf32>
    %846 = arith.index_cast %c30_i32 : i32 to index
    %c0_199 = arith.constant 0 : index
    %c0_200 = arith.constant 0 : index
    %847 = vector.load %arg7[%846, %c0_199, %c0_200] : memref<32x8x128xf32, #tpu.memory_space<vmem>>, vector<1x8x128xf32>
    %848 = vector.shape_cast %847 : vector<1x8x128xf32> to vector<8x128xf32>
    %849 = vector.shape_cast %845 : vector<8x128xf32> to vector<1x8x128xf32>
    tpu.vector_store %arg7[%846, %c0_199, %c0_200], %849 {strides = array<i32>} : memref<32x8x128xf32, #tpu.memory_space<vmem>>, vector<1x8x128xf32>,
    %c31_i32 = arith.constant 31 : i32
    %c8_i32_201 = arith.constant 8 : i32
    %850 = arith.muli %c31_i32, %c8_i32_201 : i32
    %851 = tpu.assume_multiple %850, 8 : i32
    %852 = arith.index_cast %851 : i32 to index
    %c0_202 = arith.constant 0 : index
    %853 = vector.load %arg12[%852, %c0_202] : memref<256x512xf32, #tpu.memory_space<vmem>>, vector<8x512xf32>
    %854 = arith.truncf %845 : vector<8x128xf32> to vector<8x128xbf16>
    %cst_203 = arith.constant dense<0.000000e+00> : vector<8x512xf32>
    %855 = tpu.matmul %854, %10, %cst_203 {dimension_numbers = #tpu.dot_dimension_numbers<[1], [0], [0], [1], [0, 0, 1, 1], [], []>} : vector<8x128xbf16>, vector<128x512xbf16>, vector<8x512xf32> -> vector<8x512xf32>
    %856 = arith.addf %853, %855 : vector<8x512xf32>
    %857 = vector.extract_strided_slice %856 {offsets = [0, 0], sizes = [8, 384], strides = [1, 1]} : vector<8x512xf32> to vector<8x384xf32>
    %858 = arith.negf %857 : vector<8x384xf32>
    %859 = math.exp %858 : vector<8x384xf32>
    %cst_204 = arith.constant 1.000000e+00 : f32
    %860 = vector.broadcast %cst_204 : f32 to vector<8x384xf32>
    %861 = arith.addf %860, %859 : vector<8x384xf32>
    %862 = arith.divf %860, %861 : vector<8x384xf32>
    %863 = vector.extract_strided_slice %862 {offsets = [0, 0], sizes = [8, 128], strides = [1, 1]} : vector<8x384xf32> to vector<8x128xf32>
    %864 = vector.extract_strided_slice %862 {offsets = [0, 128], sizes = [8, 128], strides = [1, 1]} : vector<8x384xf32> to vector<8x128xf32>
    %865 = vector.extract_strided_slice %862 {offsets = [0, 256], sizes = [8, 128], strides = [1, 1]} : vector<8x384xf32> to vector<8x128xf32>
    %866 = vector.extract_strided_slice %856 {offsets = [0, 384], sizes = [8, 128], strides = [1, 1]} : vector<8x512xf32> to vector<8x128xf32>
    %867 = math.tanh %866 : vector<8x128xf32>
    %868 = arith.mulf %864, %843 : vector<8x128xf32>
    %869 = arith.mulf %863, %867 : vector<8x128xf32>
    %870 = arith.addf %868, %869 : vector<8x128xf32>
    %871 = math.tanh %870 : vector<8x128xf32>
    %872 = arith.mulf %865, %871 : vector<8x128xf32>
    %873 = arith.index_cast %c31_i32 : i32 to index
    %c0_205 = arith.constant 0 : index
    %c0_206 = arith.constant 0 : index
    %874 = vector.load %arg7[%873, %c0_205, %c0_206] : memref<32x8x128xf32, #tpu.memory_space<vmem>>, vector<1x8x128xf32>
    %875 = vector.shape_cast %874 : vector<1x8x128xf32> to vector<8x128xf32>
    %876 = vector.shape_cast %872 : vector<8x128xf32> to vector<1x8x128xf32>
    tpu.vector_store %arg7[%873, %c0_205, %c0_206], %876 {strides = array<i32>} : memref<32x8x128xf32, #tpu.memory_space<vmem>>, vector<1x8x128xf32>,
    %c32_i32 = arith.constant 32 : i32
    %c0_207 = arith.constant 0 : index
    %c0_208 = arith.constant 0 : index
    %877 = vector.load %arg10[%c0_207, %c0_208] : memref<8x128xf32, #tpu.memory_space<vmem>>, vector<8x128xf32>
    tpu.vector_store %arg10[%c0_207, %c0_208], %872 {strides = array<i32>} : memref<8x128xf32, #tpu.memory_space<vmem>>, vector<8x128xf32>,
    %c0_209 = arith.constant 0 : index
    %c0_210 = arith.constant 0 : index
    %878 = vector.load %arg11[%c0_209, %c0_210] : memref<8x128xf32, #tpu.memory_space<vmem>>, vector<8x128xf32>
    tpu.vector_store %arg11[%c0_209, %c0_210], %870 {strides = array<i32>} : memref<8x128xf32, #tpu.memory_space<vmem>>, vector<8x128xf32>,
    %c0_i32_211 = arith.constant 0 : i32
    %879 = arith.cmpi eq, %arg0, %c0_i32_211 : i32
    %880 = arith.extui %879 : i1 to i32
    %c0_i32_212 = arith.constant 0 : i32
    %881 = arith.cmpi ne, %880, %c0_i32_212 : i32
    scf.if %881 {
      %c0_213 = arith.constant 0 : index
      %c0_214 = arith.constant 0 : index
      %882 = vector.load %arg8[%c0_213, %c0_214] : memref<8x128xf32, #tpu.memory_space<vmem>>, vector<8x128xf32>
      tpu.vector_store %arg8[%c0_213, %c0_214], %872 {strides = array<i32>} : memref<8x128xf32, #tpu.memory_space<vmem>>, vector<8x128xf32>,
      %c0_215 = arith.constant 0 : index
      %c0_216 = arith.constant 0 : index
      %883 = vector.load %arg9[%c0_215, %c0_216] : memref<8x128xf32, #tpu.memory_space<vmem>>, vector<8x128xf32>
      tpu.vector_store %arg9[%c0_215, %c0_216], %870 {strides = array<i32>} : memref<8x128xf32, #tpu.memory_space<vmem>>, vector<8x128xf32>,
    } else {
    }
    return
  }
  func.func @transform_0(%arg0: i32) -> (i32, i32) {
    %c0_i32 = arith.constant 0 : i32
    %c0_i32_0 = arith.constant 0 : i32
    return %arg0, %c0_i32 : i32, i32
  }
  func.func @transform_1(%arg0: i32) -> (i32, i32) {
    %c0_i32 = arith.constant 0 : i32
    %c0_i32_0 = arith.constant 0 : i32
    %c0_i32_1 = arith.constant 0 : i32
    return %c0_i32, %c0_i32_0 : i32, i32
  }
  func.func @transform_2(%arg0: i32) -> (i32, i32) {
    %c0_i32 = arith.constant 0 : i32
    %c0_i32_0 = arith.constant 0 : i32
    %c0_i32_1 = arith.constant 0 : i32
    return %c0_i32, %c0_i32_0 : i32, i32
  }
  func.func @transform_3(%arg0: i32) -> (i32, i32) {
    %c0_i32 = arith.constant 0 : i32
    %c0_i32_0 = arith.constant 0 : i32
    %c0_i32_1 = arith.constant 0 : i32
    return %c0_i32, %c0_i32_0 : i32, i32
  }
  func.func @transform_4(%arg0: i32) -> (i32, i32) {
    %c0_i32 = arith.constant 0 : i32
    %c0_i32_0 = arith.constant 0 : i32
    %c0_i32_1 = arith.constant 0 : i32
    return %c0_i32, %c0_i32_0 : i32, i32
  }
  func.func @transform_5(%arg0: i32) -> (i32, i32) {
    %c0_i32 = arith.constant 0 : i32
    %c0_i32_0 = arith.constant 0 : i32
    %c0_i32_1 = arith.constant 0 : i32
    return %c0_i32, %c0_i32_0 : i32, i32
  }
  func.func @transform_6(%arg0: i32) -> (i32, i32, i32) {
    %c0_i32 = arith.constant 0 : i32
    %c0_i32_0 = arith.constant 0 : i32
    %c0_i32_1 = arith.constant 0 : i32
    return %arg0, %c0_i32, %c0_i32_0 : i32, i32, i32
  }
  func.func @transform_7(%arg0: i32) -> (i32, i32) {
    %c0_i32 = arith.constant 0 : i32
    %c0_i32_0 = arith.constant 0 : i32
    %c0_i32_1 = arith.constant 0 : i32
    return %c0_i32, %c0_i32_0 : i32, i32
  }
  func.func @transform_8(%arg0: i32) -> (i32, i32) {
    %c0_i32 = arith.constant 0 : i32
    %c0_i32_0 = arith.constant 0 : i32
    %c0_i32_1 = arith.constant 0 : i32
    return %c0_i32, %c0_i32_0 : i32, i32
  }
}

</mosaic_0001>

<bundles_post_ra>
// kernel: tpu_custom_call.1
= control target key start
LH: loop header
LB: loop body
LE: loop exit
PB: predicated region body
PF: predicated region fallthrough
CT: control target
= control target key end

     0   :  { %14 = vsyncpa [#allocation6], 0  ;;  %s8125_s0 = inlined_call_operand.vmem [shape: bf16[256,16], index: 0, kind: input, shape index: {}]   ;;  %s8126_s1 = inlined_call_operand.vmem [shape: bf16[16,512], index: 1, kind: input, shape index: {}]   ;;  %s8127_s2 = inlined_call_operand.hbm [shape: bf16[128,512], index: 2, kind: input, shape index: {}]   ;;  %s8128_s3 = inlined_call_operand.vmem [shape: f32[1,512], index: 3, kind: input, shape index: {}]   ;;  %s8129_s4 = inlined_call_operand.vmem [shape: f32[8,128], index: 4, kind: input, shape index: {}]   ;;  %s8130_s5 = inlined_call_operand.vmem [shape: f32[8,128], index: 5, kind: input, shape index: {}]   ;;  %s8131_s6 = inlined_call_operand.hbm [shape: f32[32,8,128], index: 6, kind: output, shape index: {0}]   ;;  %s8132_s7 = inlined_call_operand.hbm [shape: f32[8,128], index: 7, kind: output, shape index: {1}]   ;;  %s8133_s8 = inlined_call_operand.hbm [shape: f32[8,128], index: 8, kind: output, shape index: {2}]  }
   0x1   :  { %15 = vsyncpa [#allocation7], 0 }
   0x2   :  { %16 = vsyncpa [#allocation10], 0  ;;  %s25_s29 = sshll.u32 %s8127_s2, 4  ;;  %s6183_s30 = smov [#allocation5]   ;;  %s26_s29 = int_to_ptr.hbm [resolvable:$true] %s25_s29 }
   0x3   :  { %s27_s9 = sshll.u32 %s6183_s30, 4  ;;  %s6184_s10 = smov 256   ;;  %s28_s9 = int_to_ptr.vmem [resolvable:$true] %s27_s9 }
   0x4   :  { %s6185_s11 = smov 16  }
   0x5   :  { %33 = dma.hbm_to_vmem [thread:$0]  %s26_s29, 4096, %s28_s9, [#allocation6], %s6184_s10, %s6184_s10, %s6185_s11  }
   0x6   :  { %6177 = dma.done.wait [#allocation6], 4096  }
   0x7   :  { %6178 = vsyncadd [#allocation6], 4294963200  ;;  %v5207_v0 = vld [vmem:[%s8126_s1] sm:$0xf]  ;;  %v5527_v1 = vld [vmem:[%s8126_s1 + $0xc] sm:$0xf0] }
   0x8   :  { %v5525_v2 = vld [vmem:[%s8126_s1 + $0x4] sm:$0xf]  ;;  %v5208_v3 = vor.u32 %v5527_v1, %v5207_v0  ;;  %v5209_v4 = vld [vmem:[%s8126_s1 + $0x10] sm:$0xf0]  ;;  %v5215_v5 = vld [vmem:[%s8126_s1 + $0x8] sm:$0xf] }
   0x9   :  { %v5528_v6 = vld [vmem:[%s8126_s1 + $0x14] sm:$0xf0]  ;;  %v5212_v7 = vor.u32 %v5525_v2, %v5209_v4  ;;  %v5526_v9 = vld [vmem:[%s8126_s1 + $0xc] sm:$0xf]  ;;  %v5217_v10 = vld [vmem:[%s8126_s1 + $0x18] sm:$0xf0] }
   0xa   :  { %v5216_v8 = vor.u32 %v5528_v6, %v5215_v5  ;;  %v5509_v11 = vld [vmem:[%s8125_s0] sm:$0xff]  ;;  %vm199_vm0 = vcmask 130048   ;;  %255 = vmatpush.bf16.msra.mxu0 %v5208_v3  ;;  %v5220_v12 = vor.u32 %v5526_v9, %v5217_v10  ;;  %v5559_v14 = vld [vmem:[#allocation5 + $0xec] sm:$0xf0]  ;;  %v5401_v17 = vld [vmem:[#allocation5 + $0xf0] sm:$0xf0] }
   0xb   :  { %v5399_v13 = vld [vmem:[#allocation5 + $0xe0] sm:$0xf]  ;;  %v5557_v15 = vld [vmem:[#allocation5 + $0xe4] sm:$0xf]  ;;  %344 = vmatpush.bf16.msra.mxu1 %v5212_v7  ;;  %v5407_v18 = vld [vmem:[#allocation5 + $0xe8] sm:$0xf] }
   0xc   :  { %433 = vmatpush.bf16.msra.mxu2 %v5216_v8  ;;  %v6266_v16 = vor.u32 %v5559_v14, %v5399_v13  ;;  %v5560_v19 = vld [vmem:[#allocation5 + $0xf4] sm:$0xf0]  ;;  %522 = vmatpush.bf16.msra.mxu3 %v5220_v12  ;;  %v6268_v20 = vor.u32 %v5557_v15, %v5401_v17  ;;  %v5558_v22 = vld [vmem:[#allocation5 + $0xec] sm:$0xf]  ;;  %v5409_v23 = vld [vmem:[#allocation5 + $0xf8] sm:$0xf0] }
   0xd   :  { %v6270_v21 = vor.u32 %v5560_v19, %v5407_v18  ;;  %5221 = vmatmul.msk.bf16.vlgmr.msra.gmra.mxu0 %vm199_vm0, %v5509_v11  ;;  %v6273_v24 = vor.u32 %v5558_v22, %v5409_v23  ;;  %v5383_v25 = vld [vmem:[#allocation5 + $0xc0] sm:$0xf]  ;;  %v5555_v26 = vld [vmem:[#allocation5 + $0xcc] sm:$0xf0]  ;;  %v5553_v27 = vld [vmem:[#allocation5 + $0xc4] sm:$0xf] }
   0xe   :  { %5237 = vmatmul.msk.bf16.vlgmr.msra.gmra.mxu1 %vm199_vm0, %v5509_v11  ;;  %934 = vmatpush.bf16.msrb.mxu0 %v6266_v16  ;;  %v6281_v28 = vor.u32 %v5555_v26, %v5383_v25  ;;  %v5385_v29 = vld [vmem:[#allocation5 + $0xd0] sm:$0xf0]  ;;  %v5391_v30 = vld [vmem:[#allocation5 + $0xc8] sm:$0xf]  ;;  %v5556_v31 = vld [vmem:[#allocation5 + $0xd4] sm:$0xf0] }
   0xf   :  { %5253 = vmatmul.msk.bf16.vlgmr.msra.gmra.mxu2 %vm199_vm0, %v5509_v11  ;;  %5269 = vmatmul.msk.bf16.vlgmr.msra.gmra.mxu3 %vm199_vm0, %v5509_v11  ;;  %v6284_v32 = vor.u32 %v5553_v27, %v5385_v29  ;;  %v6286_v33 = vor.u32 %v5556_v31, %v5391_v30  ;;  %v5554_v34 = vld [vmem:[#allocation5 + $0xcc] sm:$0xf]  ;;  %v5393_v35 = vld [vmem:[#allocation5 + $0xd8] sm:$0xf0]  ;;  %v5511_v38 = vld [vmem:[%s8125_s0 + $0x10] sm:$0xff]  ;;  %s5066_s2 = sshll.u32 %s8131_s6, 4  ;;  %s5067_s2 = int_to_ptr.hbm [resolvable:$true] %s5066_s2 }
  0x10   :  { %947 = vmatpush.bf16.msrb.mxu1 %v6268_v20  ;;  %960 = vmatpush.bf16.msrb.mxu2 %v6270_v21  ;;  %v6288_v36 = vor.u32 %v5554_v34, %v5393_v35  ;;  %v5510_v37 = vld [vmem:[%s8125_s0 + $0x8] sm:$0xff]  ;;  %v5367_v39 = vld [vmem:[#allocation5 + $0xa0] sm:$0xf]  ;;  %v5551_v40 = vld [vmem:[#allocation5 + $0xac] sm:$0xf0]  ;;  %s6187_s18 = smov [#allocation9]  }
  0x11   :  { %973 = vmatpush.bf16.msrb.mxu3 %v6273_v24  ;;  %v5549_v41 = vld [vmem:[#allocation5 + $0xa4] sm:$0xf]  ;;  %v6308_v42 = vor.u32 %v5551_v40, %v5367_v39  ;;  %v5369_v43 = vld [vmem:[#allocation5 + $0xb0] sm:$0xf0]  ;;  %v5375_v44 = vld [vmem:[#allocation5 + $0xa8] sm:$0xf] }
  0x12   :  { %935 = vmatpush.bf16.msrb.mxu0 %v6281_v28  ;;  %v5552_v45 = vld [vmem:[#allocation5 + $0xb4] sm:$0xf0]  ;;  %v6310_v46 = vor.u32 %v5549_v41, %v5369_v43  ;;  %v5550_v48 = vld [vmem:[#allocation5 + $0xac] sm:$0xf]  ;;  %v5377_v49 = vld [vmem:[#allocation5 + $0xb8] sm:$0xf0] }
  0x13   :  { %v6312_v47 = vor.u32 %v5552_v45, %v5375_v44  ;;  %v6315_v50 = vor.u32 %v5550_v48, %v5377_v49  ;;  %v5512_v51 = vld [vmem:[%s8125_s0 + $0x18] sm:$0xff]  ;;  %v5513_v52 = vld [vmem:[%s8125_s0 + $0x20] sm:$0xff]  ;;  %v5547_v54 = vld [vmem:[#allocation5 + $0x8c] sm:$0xf0]  ;;  %s5078_s19 = sshll.u32 %s6187_s18, 4  ;;  %s5080_s22 = sshll.u32 %s8132_s7, 4  ;;  %s5079_s19 = int_to_ptr.vmem [resolvable:$true] %s5078_s19  ;;  %s5081_s22 = int_to_ptr.hbm [resolvable:$true] %s5080_s22 }
  0x14   :  { %948 = vmatpush.bf16.msrb.mxu1 %v6284_v32  ;;  %961 = vmatpush.bf16.msrb.mxu2 %v6286_v33  ;;  %v5351_v53 = vld [vmem:[#allocation5 + $0x80] sm:$0xf]  ;;  %v5545_v55 = vld [vmem:[#allocation5 + $0x84] sm:$0xf]  ;;  %v5353_v57 = vld [vmem:[#allocation5 + $0x90] sm:$0xf0] }
  0x15   :  { %974 = vmatpush.bf16.msrb.mxu3 %v6288_v36  ;;  %v6334_v56 = vor.u32 %v5547_v54, %v5351_v53  ;;  %v5359_v58 = vld [vmem:[#allocation5 + $0x88] sm:$0xf]  ;;  %v5548_v59 = vld [vmem:[#allocation5 + $0x94] sm:$0xf0]  ;;  %v6336_v60 = vor.u32 %v5545_v55, %v5353_v57  ;;  %v5546_v62 = vld [vmem:[#allocation5 + $0x8c] sm:$0xf] }
  0x16   :  { %936 = vmatpush.bf16.msrb.mxu0 %v6308_v42  ;;  %v6338_v61 = vor.u32 %v5548_v59, %v5359_v58  ;;  %v5361_v63 = vld [vmem:[#allocation5 + $0x98] sm:$0xf0]  ;;  %v5514_v1 = vld [vmem:[%s8125_s0 + $0x28] sm:$0xff]  ;;  %v5515_v2 = vld [vmem:[%s8125_s0 + $0x30] sm:$0xff]  ;;  %s6188_s23 = smov [#allocation11]   ;;  %s5091_s27 = sshll.u32 %s8133_s8, 4  ;;  %s5092_s27 = int_to_ptr.hbm [resolvable:$true] %s5091_s27 }
  0x17   :  { %v6341_v0 = vor.u32 %v5546_v62, %v5361_v63  ;;  %v5335_v3 = vld [vmem:[#allocation5 + $0x60] sm:$0xf]  ;;  %v5543_v4 = vld [vmem:[#allocation5 + $0x6c] sm:$0xf0]  ;;  %v5541_v5 = vld [vmem:[#allocation5 + $0x64] sm:$0xf] }
  0x18   :  { %949 = vmatpush.bf16.msrb.mxu1 %v6310_v46  ;;  %962 = vmatpush.bf16.msrb.mxu2 %v6312_v47  ;;  %v6360_v6 = vor.u32 %v5543_v4, %v5335_v3  ;;  %v5337_v7 = vld [vmem:[#allocation5 + $0x70] sm:$0xf0]  ;;  %v5343_v9 = vld [vmem:[#allocation5 + $0x68] sm:$0xf]  ;;  %v5544_v10 = vld [vmem:[#allocation5 + $0x74] sm:$0xf0] }
  0x19   :  { %975 = vmatpush.bf16.msrb.mxu3 %v6315_v50  ;;  %v6362_v8 = vor.u32 %v5541_v5, %v5337_v7  ;;  %v6366_v11 = vor.u32 %v5544_v10, %v5343_v9  ;;  %v5516_v12 = vld [vmem:[%s8125_s0 + $0x38] sm:$0xff]  ;;  %v5542_v13 = vld [vmem:[#allocation5 + $0x6c] sm:$0xf]  ;;  %v5517_v17 = vld [vmem:[%s8125_s0 + $0x40] sm:$0xff]  ;;  %s5089_s24 = sshll.u32 %s6188_s23, 4  ;;  %s6189_s6 = smov 128   ;;  %s5090_s24 = int_to_ptr.vmem [resolvable:$true] %s5089_s24 }
  0x1a   :  { %937 = vmatpush.bf16.msrb.mxu0 %v6334_v56  ;;  %v5345_v14 = vld [vmem:[#allocation5 + $0x78] sm:$0xf0]  ;;  %v5319_v22 = vld [vmem:[#allocation5 + $0x40] sm:$0xf]  ;;  %v5539_v23 = vld [vmem:[#allocation5 + $0x4c] sm:$0xf0] }
  0x1b   :  { %v6373_v15 = vor.u32 %v5542_v13, %v5345_v14  ;;  %v5537_v25 = vld [vmem:[#allocation5 + $0x44] sm:$0xf]  ;;  %v6390_v26 = vor.u32 %v5539_v23, %v5319_v22  ;;  %v5321_v27 = vld [vmem:[#allocation5 + $0x50] sm:$0xf0]  ;;  %v5518_v41 = vld [vmem:[%s8125_s0 + $0x48] sm:$0xff]  ;;  %s6190_s7 = smov 8  }
  0x1c   :  { %950 = vmatpush.bf16.msrb.mxu1 %v6336_v60  ;;  %963 = vmatpush.bf16.msrb.mxu2 %v6338_v61  ;;  %v6394_v30 = vor.u32 %v5537_v25, %v5321_v27  ;;  %v5538_v48 = vld [vmem:[#allocation5 + $0x4c] sm:$0xf]  ;;  %v5329_v49 = vld [vmem:[#allocation5 + $0x58] sm:$0xf0]  ;;  %v5519_v58 = vld [vmem:[%s8125_s0 + $0x50] sm:$0xff] }
  0x1d   :  { %5222 = vmatmul.msk.bf16.gmra.mxu0 %vm199_vm0, %v5510_v37  ;;  %976 = vmatpush.bf16.msrb.mxu3 %v6341_v0  ;;  %v5533_v3 = vld [vmem:[#allocation5 + $0x24] sm:$0xf]  ;;  %v5305_v5 = vld [vmem:[#allocation5 + $0x30] sm:$0xf0]  ;;  %v5311_v14 = vld [vmem:[#allocation5 + $0x28] sm:$0xf] }
  0x1e   :  { %5238 = vmatmul.msk.bf16.gmra.mxu1 %vm199_vm0, %v5510_v37  ;;  %938 = vmatpush.bf16.msrb.mxu0 %v6360_v6  ;;  %v6452_v9 = vor.u32 %v5533_v3, %v5305_v5  ;;  %v5520_v25 = vld [vmem:[%s8125_s0 + $0x58] sm:$0xff] }
  0x1f   :  { %5254 = vmatmul.msk.bf16.gmra.mxu2 %vm199_vm0, %v5510_v37  ;;  %5270 = vmatmul.msk.bf16.gmra.mxu3 %vm199_vm0, %v5510_v37  ;;  %v5327_v37 = vld [vmem:[#allocation5 + $0x48] sm:$0xf] }
  0x20   :  { %951 = vmatpush.bf16.msrb.mxu1 %v6362_v8  ;;  %964 = vmatpush.bf16.msrb.mxu2 %v6366_v11 }
  0x21   :  { %977 = vmatpush.bf16.msrb.mxu3 %v6373_v15 }
  0x22   :  { %939 = vmatpush.bf16.msrb.mxu0 %v6390_v26 }
  0x24   :  { %952 = vmatpush.bf16.msrb.mxu1 %v6394_v30 }
  0x28   :  { %953 = vmatpush.bf16.msrb.mxu1 %v6452_v9 }
  0x2d   :  { %5223 = vmatmul.msk.bf16.gmra.mxu0 %vm199_vm0, %v5511_v38 }
  0x2e   :  { %5239 = vmatmul.msk.bf16.gmra.mxu1 %vm199_vm0, %v5511_v38 }
  0x2f   :  { %5255 = vmatmul.msk.bf16.gmra.mxu2 %vm199_vm0, %v5511_v38  ;;  %5271 = vmatmul.msk.bf16.gmra.mxu3 %vm199_vm0, %v5511_v38  ;;  %v5540_v38 = vld [vmem:[#allocation5 + $0x54] sm:$0xf0] }
  0x30   :  { %v6404_v39 = vor.u32 %v5540_v38, %v5327_v37 }
  0x32   :  { %965 = vmatpush.bf16.msrb.mxu2 %v6404_v39 }
  0x3d   :  { %5224 = vmatmul.msk.bf16.gmra.mxu0 %vm199_vm0, %v5512_v51 }
  0x3e   :  { %5240 = vmatmul.msk.bf16.gmra.mxu1 %vm199_vm0, %v5512_v51 }
  0x3f   :  { %5256 = vmatmul.msk.bf16.gmra.mxu2 %vm199_vm0, %v5512_v51  ;;  %5272 = vmatmul.msk.bf16.gmra.mxu3 %vm199_vm0, %v5512_v51  ;;  %v6419_v51 = vor.u32 %v5538_v48, %v5329_v49  ;;  %v5313_v48 = vld [vmem:[#allocation5 + $0x38] sm:$0xf0] }
  0x41   :  { %978 = vmatpush.bf16.msrb.mxu3 %v6419_v51 }
  0x4d   :  { %5225 = vmatmul.msk.bf16.gmra.mxu0 %vm199_vm0, %v5513_v52 }
  0x4e   :  { %5241 = vmatmul.msk.bf16.gmra.mxu1 %vm199_vm0, %v5513_v52 }
  0x4f   :  { %5257 = vmatmul.msk.bf16.gmra.mxu2 %vm199_vm0, %v5513_v52  ;;  %5273 = vmatmul.msk.bf16.gmra.mxu3 %vm199_vm0, %v5513_v52 }
  0x5d   :  { %5226 = vmatmul.msk.bf16.gmra.mxu0 %vm199_vm0, %v5514_v1 }
  0x5e   :  { %5242 = vmatmul.msk.bf16.gmra.mxu1 %vm199_vm0, %v5514_v1 }
  0x5f   :  { %5258 = vmatmul.msk.bf16.gmra.mxu2 %vm199_vm0, %v5514_v1  ;;  %5274 = vmatmul.msk.bf16.gmra.mxu3 %vm199_vm0, %v5514_v1  ;;  %v5303_v1 = vld [vmem:[#allocation5 + $0x20] sm:$0xf] }
  0x6d   :  { %5227 = vmatmul.msk.bf16.gmra.mxu0 %vm199_vm0, %v5515_v2 }
  0x6e   :  { %5243 = vmatmul.msk.bf16.gmra.mxu1 %vm199_vm0, %v5515_v2 }
  0x6f   :  { %5259 = vmatmul.msk.bf16.gmra.mxu2 %vm199_vm0, %v5515_v2  ;;  %5275 = vmatmul.msk.bf16.gmra.mxu3 %vm199_vm0, %v5515_v2  ;;  %v5535_v2 = vld [vmem:[#allocation5 + $0x2c] sm:$0xf0] }
  0x70   :  { %v6448_v4 = vor.u32 %v5535_v2, %v5303_v1 }
  0x72   :  { %940 = vmatpush.bf16.msrb.mxu0 %v6448_v4 }
  0x7d   :  { %5228 = vmatmul.msk.bf16.gmra.mxu0 %vm199_vm0, %v5516_v12 }
  0x7e   :  { %5244 = vmatmul.msk.bf16.gmra.mxu1 %vm199_vm0, %v5516_v12 }
  0x7f   :  { %5260 = vmatmul.msk.bf16.gmra.mxu2 %vm199_vm0, %v5516_v12  ;;  %5276 = vmatmul.msk.bf16.gmra.mxu3 %vm199_vm0, %v5516_v12 }
  0x8a   :  { %v6382_v18 = vpop.f32.mrf.mxu0 }
  0x8b   :  { %v6384_v19 = vpop.f32.mrf.mxu1 }
  0x8d   :  { %5229 = vmatmul.msk.bf16.gmra.mxu0 %vm199_vm0, %v5517_v17 }
  0x8e   :  { %5245 = vmatmul.msk.bf16.gmra.mxu1 %vm199_vm0, %v5517_v17 }
  0x8f   :  { %5261 = vmatmul.msk.bf16.gmra.mxu2 %vm199_vm0, %v5517_v17  ;;  %5277 = vmatmul.msk.bf16.gmra.mxu3 %vm199_vm0, %v5517_v17  ;;  %v5536_v17 = vld [vmem:[#allocation5 + $0x34] sm:$0xf0] }
  0x90   :  { %v6462_v22 = vor.u32 %v5536_v17, %v5311_v14  ;;  %v5521_v14 = vld [vmem:[%s8125_s0 + $0x60] sm:$0xff] }
  0x92   :  { %v6392_v29 = vpop.f32.mrf.mxu2  ;;  %v6396_v31 = vpop.f32.mrf.mxu3  ;;  %966 = vmatpush.bf16.msrb.mxu2 %v6462_v22 }
  0x93   :  { %v6398_v34 = vpop.f32.mrf.mxu0  ;;  %v6401_v35 = vpop.f32.mrf.mxu1 }
  0x9a   :  { %v6407_v40 = vpop.f32.mrf.mxu2  ;;  %v6412_v43 = vpop.f32.mrf.mxu3 }
  0x9b   :  { %8134 = vst [vmem:[#allocation15_spill] sm:$0xff] %v6412_v43  ;;  %v6414_v44 = vpop.f32.mrf.mxu0  ;;  %v6416_v45 = vpop.f32.mrf.mxu1 }
  0x9c   :  { %8135 = vst [vmem:[#allocation16_spill] sm:$0xff] %v6414_v44 }
  0x9d   :  { %8136 = vst [vmem:[#allocation17_spill] sm:$0xff] %v6416_v45  ;;  %5230 = vmatmul.msk.bf16.gmra.mxu0 %vm199_vm0, %v5518_v41 }
  0x9e   :  { %5246 = vmatmul.msk.bf16.gmra.mxu1 %vm199_vm0, %v5518_v41 }
  0x9f   :  { %5262 = vmatmul.msk.bf16.gmra.mxu2 %vm199_vm0, %v5518_v41  ;;  %5278 = vmatmul.msk.bf16.gmra.mxu3 %vm199_vm0, %v5518_v41  ;;  %v5534_v41 = vld [vmem:[#allocation5 + $0x2c] sm:$0xf] }
  0xa0   :  { %v6477_v49 = vor.u32 %v5534_v41, %v5313_v48  ;;  %v5287_v48 = vld [vmem:[#allocation5] sm:$0xf] }
  0xa2   :  { %v6425_v52 = vpop.f32.mrf.mxu2  ;;  %v6427_v53 = vpop.f32.mrf.mxu3  ;;  %979 = vmatpush.bf16.msrb.mxu3 %v6477_v49 }
  0xa3   :  { %8137 = vst [vmem:[#allocation18_spill] sm:$0xff] %v6425_v52  ;;  %v6429_v54 = vpop.f32.mrf.mxu0  ;;  %v6431_v55 = vpop.f32.mrf.mxu1 }
  0xa4   :  { %8138 = vst [vmem:[#allocation19_spill] sm:$0xff] %v6427_v53 }
  0xa5   :  { %8139 = vst [vmem:[#allocation20_spill] sm:$0xff] %v6429_v54 }
  0xa6   :  { %8140 = vst [vmem:[#allocation21_spill] sm:$0xff] %v6431_v55 }
  0xaa   :  { %v6433_v57 = vpop.f32.mrf.mxu2  ;;  %v6438_v59 = vpop.f32.mrf.mxu3 }
  0xab   :  { %8141 = vst [vmem:[#allocation22_spill] sm:$0xff] %v6433_v57  ;;  %v6440_v62 = vpop.f32.mrf.mxu0  ;;  %v6442_v63 = vpop.f32.mrf.mxu1 }
  0xac   :  { %8142 = vst [vmem:[#allocation23_spill] sm:$0xff] %v6438_v59 }
  0xad   :  { %8143 = vst [vmem:[#allocation24_spill] sm:$0xff] %v6440_v62  ;;  %5231 = vmatmul.msk.bf16.gmra.mxu0 %vm199_vm0, %v5519_v58 }
  0xae   :  { %8144 = vst [vmem:[#allocation25_spill] sm:$0xff] %v6442_v63  ;;  %5247 = vmatmul.msk.bf16.gmra.mxu1 %vm199_vm0, %v5519_v58 }
  0xaf   :  { %5263 = vmatmul.msk.bf16.gmra.mxu2 %vm199_vm0, %v5519_v58  ;;  %5279 = vmatmul.msk.bf16.gmra.mxu3 %vm199_vm0, %v5519_v58 }
  0xb2   :  { %v6450_v7 = vpop.f32.mrf.mxu2  ;;  %v6454_v10 = vpop.f32.mrf.mxu3 }
  0xb3   :  { %8145 = vst [vmem:[#allocation26_spill] sm:$0xff] %v6450_v7  ;;  %v6456_v12 = vpop.f32.mrf.mxu0  ;;  %v6459_v13 = vpop.f32.mrf.mxu1 }
  0xb4   :  { %8146 = vst [vmem:[#allocation27_spill] sm:$0xff] %v6454_v10 }
  0xb5   :  { %8147 = vst [vmem:[#allocation28_spill] sm:$0xff] %v6456_v12 }
  0xb6   :  { %8148 = vst [vmem:[#allocation29_spill] sm:$0xff] %v6459_v13 }
  0xba   :  { %v6465_v23 = vpop.f32.mrf.mxu2  ;;  %v6470_v27 = vpop.f32.mrf.mxu3 }
  0xbb   :  { %8149 = vst [vmem:[#allocation30_spill] sm:$0xff] %v6465_v23  ;;  %v6472_v37 = vpop.f32.mrf.mxu0  ;;  %v6474_v38 = vpop.f32.mrf.mxu1 }
  0xbc   :  { %8150 = vst [vmem:[#allocation31_spill] sm:$0xff] %v6470_v27 }
  0xbd   :  { %8151 = vst [vmem:[#allocation32_spill] sm:$0xff] %v6472_v37  ;;  %5232 = vmatmul.msk.bf16.gmra.mxu0 %vm199_vm0, %v5520_v25 }
  0xbe   :  { %8152 = vst [vmem:[#allocation33_spill] sm:$0xff] %v6474_v38  ;;  %5248 = vmatmul.msk.bf16.gmra.mxu1 %vm199_vm0, %v5520_v25 }
  0xbf   :  { %5264 = vmatmul.msk.bf16.gmra.mxu2 %vm199_vm0, %v5520_v25  ;;  %5280 = vmatmul.msk.bf16.gmra.mxu3 %vm199_vm0, %v5520_v25 }
  0xc2   :  { %v6483_v58 = vpop.f32.mrf.mxu2  ;;  %v6485_v1 = vpop.f32.mrf.mxu3 }
  0xc3   :  { %8153 = vst [vmem:[#allocation34_spill] sm:$0xff] %v6483_v58  ;;  %v6487_v2 = vpop.f32.mrf.mxu0  ;;  %v6489_v3 = vpop.f32.mrf.mxu1 }
  0xc4   :  { %8154 = vst [vmem:[#allocation35_spill] sm:$0xff] %v6485_v1  ;;  %v5289_v1 = vld [vmem:[#allocation5 + $0x10] sm:$0xf0] }
  0xc5   :  { %8155 = vst [vmem:[#allocation36_spill] sm:$0xff] %v6487_v2 }
  0xc6   :  { %8156 = vst [vmem:[#allocation37_spill] sm:$0xff] %v6489_v3  ;;  %v5529_v3 = vld [vmem:[#allocation5 + $0x4] sm:$0xf] }
  0xca   :  { %v6491_v5 = vpop.f32.mrf.mxu2  ;;  %v6496_v17 = vpop.f32.mrf.mxu3 }
  0xcb   :  { %8157 = vst [vmem:[#allocation38_spill] sm:$0xff] %v6491_v5  ;;  %v6498_v41 = vpop.f32.mrf.mxu0  ;;  %v6500_v25 = vpop.f32.mrf.mxu1  ;;  %v5531_v5 = vld [vmem:[#allocation5 + $0xc] sm:$0xf0] }
  0xcc   :  { %8158 = vst [vmem:[#allocation39_spill] sm:$0xff] %v6496_v17  ;;  %v6506_v2 = vor.u32 %v5531_v5, %v5287_v48  ;;  %v6510_v17 = vor.u32 %v5529_v3, %v5289_v1  ;;  %v5532_v5 = vld [vmem:[#allocation5 + $0x14] sm:$0xf0]  ;;  %v5522_v3 = vld [vmem:[%s8125_s0 + $0x68] sm:$0xff] }
  0xcd   :  { %8159 = vst [vmem:[#allocation40_spill] sm:$0xff] %v6498_v41  ;;  %5233 = vmatmul.msk.bf16.gmra.mxu0 %vm199_vm0, %v5521_v14 }
  0xce   :  { %8160 = vst [vmem:[#allocation41_spill] sm:$0xff] %v6500_v25  ;;  %5249 = vmatmul.msk.bf16.gmra.mxu1 %vm199_vm0, %v5521_v14  ;;  %941 = vmatpush.bf16.msrb.mxu0 %v6506_v2 }
  0xcf   :  { %5265 = vmatmul.msk.bf16.gmra.mxu2 %vm199_vm0, %v5521_v14  ;;  %5281 = vmatmul.msk.bf16.gmra.mxu3 %vm199_vm0, %v5521_v14  ;;  %v5295_v14 = vld [vmem:[#allocation5 + $0x8] sm:$0xf] }
  0xd0   :  { %954 = vmatpush.bf16.msrb.mxu1 %v6510_v17  ;;  %v6522_v48 = vor.u32 %v5532_v5, %v5295_v14  ;;  %v5530_v5 = vld [vmem:[#allocation5 + $0xc] sm:$0xf] }
  0xd2   :  { %v6508_v58 = vpop.f32.mrf.mxu2  ;;  %v6512_v41 = vpop.f32.mrf.mxu3  ;;  %1062 = vmatpush.bf16.msra.mxu0 %v6266_v16  ;;  %967 = vmatpush.bf16.msrb.mxu2 %v6522_v48 }
  0xd3   :  { %8161 = vst [vmem:[#allocation42_spill] sm:$0xff] %v6508_v58  ;;  %v6514_v25 = vpop.f32.mrf.mxu0  ;;  %v6517_v38 = vpop.f32.mrf.mxu1 }
  0xd4   :  { %8162 = vst [vmem:[#allocation43_spill] sm:$0xff] %v6512_v41  ;;  %1075 = vmatpush.bf16.msra.mxu1 %v6268_v20  ;;  %v5297_v41 = vld [vmem:[#allocation5 + $0x18] sm:$0xf0] }
  0xd5   :  { %8163 = vst [vmem:[#allocation44_spill] sm:$0xff] %v6514_v25 }
  0xd6   :  { %8164 = vst [vmem:[#allocation45_spill] sm:$0xff] %v6517_v38  ;;  %1063 = vmatpush.bf16.msra.mxu0 %v6281_v28  ;;  %1088 = vmatpush.bf16.msra.mxu2 %v6270_v21 }
  0xd8   :  { %1076 = vmatpush.bf16.msra.mxu1 %v6284_v32 }
  0xda   :  { %v6528_v1 = vpop.f32.mrf.mxu2  ;;  %v6533_v38 = vpop.f32.mrf.mxu3  ;;  %1064 = vmatpush.bf16.msra.mxu0 %v6308_v42  ;;  %1089 = vmatpush.bf16.msra.mxu2 %v6286_v33 }
  0xdb   :  { %8165 = vst [vmem:[#allocation46_spill] sm:$0xff] %v6528_v1  ;;  %v6535_v25 = vpop.f32.mrf.mxu0  ;;  %v6537_v14 = vpop.f32.mrf.mxu1  ;;  %v6543_v1 = vor.u32 %v5530_v5, %v5297_v41 }
  0xdc   :  { %8166 = vst [vmem:[#allocation47_spill] sm:$0xff] %v6533_v38  ;;  %1077 = vmatpush.bf16.msra.mxu1 %v6310_v46 }
  0xdd   :  { %8167 = vst [vmem:[#allocation48_spill] sm:$0xff] %v6535_v25  ;;  %5234 = vmatmul.msk.bf16.gmra.mxu0 %vm199_vm0, %v5522_v3  ;;  %980 = vmatpush.bf16.msrb.mxu3 %v6543_v1 }
  0xde   :  { %8168 = vst [vmem:[#allocation49_spill] sm:$0xff] %v6537_v14  ;;  %5250 = vmatmul.msk.bf16.gmra.mxu1 %vm199_vm0, %v5522_v3  ;;  %1065 = vmatpush.bf16.msra.mxu0 %v6334_v56 }
  0xdf   :  { %5266 = vmatmul.msk.bf16.gmra.mxu2 %vm199_vm0, %v5522_v3  ;;  %5282 = vmatmul.msk.bf16.gmra.mxu3 %vm199_vm0, %v5522_v3 }
  0xe0   :  { %1090 = vmatpush.bf16.msra.mxu2 %v6312_v47  ;;  %1078 = vmatpush.bf16.msra.mxu1 %v6336_v60 }
  0xe1   :  { %1101 = vmatpush.bf16.msra.mxu3 %v6273_v24 }
  0xe2   :  { %v6551_v14 = vpop.f32.mrf.mxu2  ;;  %v6555_v41 = vpop.f32.mrf.mxu3  ;;  %1066 = vmatpush.bf16.msra.mxu0 %v6360_v6 }
  0xe3   :  { %8169 = vst [vmem:[#allocation50_spill] sm:$0xff] %v6551_v14  ;;  %v6557_v5 = vpop.f32.mrf.mxu0  ;;  %v6559_v25 = vpop.f32.mrf.mxu1 }
  0xe4   :  { %8170 = vst [vmem:[#allocation51_spill] sm:$0xff] %v6555_v41  ;;  %1091 = vmatpush.bf16.msra.mxu2 %v6338_v61  ;;  %1079 = vmatpush.bf16.msra.mxu1 %v6362_v8 }
  0xe5   :  { %8171 = vst [vmem:[#allocation52_spill] sm:$0xff] %v6557_v5  ;;  %1102 = vmatpush.bf16.msra.mxu3 %v6288_v36  ;;  %v5523_v5 = vld [vmem:[%s8125_s0 + $0x70] sm:$0xff] }
  0xe6   :  { %8172 = vst [vmem:[#allocation53_spill] sm:$0xff] %v6559_v25  ;;  %1067 = vmatpush.bf16.msra.mxu0 %v6390_v26 }
  0xe8   :  { %1092 = vmatpush.bf16.msra.mxu2 %v6366_v11  ;;  %1080 = vmatpush.bf16.msra.mxu1 %v6394_v30 }
  0xe9   :  { %1103 = vmatpush.bf16.msra.mxu3 %v6315_v50 }
  0xea   :  { %v6567_v3 = vpop.f32.mrf.mxu2  ;;  %v6574_v25 = vpop.f32.mrf.mxu3  ;;  %1068 = vmatpush.bf16.msra.mxu0 %v6448_v4 }
  0xeb   :  { %8173 = vst [vmem:[#allocation54_spill] sm:$0xff] %v6567_v3  ;;  %v6576_v41 = vpop.f32.mrf.mxu0  ;;  %v6578_v14 = vpop.f32.mrf.mxu1 }
  0xec   :  { %8174 = vst [vmem:[#allocation55_spill] sm:$0xff] %v6574_v25  ;;  %1093 = vmatpush.bf16.msra.mxu2 %v6404_v39  ;;  %1081 = vmatpush.bf16.msra.mxu1 %v6452_v9 }
  0xed   :  { %8175 = vst [vmem:[#allocation56_spill] sm:$0xff] %v6576_v41  ;;  %5235 = vmatmul.msk.bf16.gmra.mxu0 %vm199_vm0, %v5523_v5  ;;  %1104 = vmatpush.bf16.msra.mxu3 %v6341_v0 }
  0xee   :  { %8176 = vst [vmem:[#allocation57_spill] sm:$0xff] %v6578_v14  ;;  %5251 = vmatmul.msk.bf16.gmra.mxu1 %vm199_vm0, %v5523_v5  ;;  %1069 = vmatpush.bf16.msra.mxu0 %v6506_v2 }
  0xef   :  { %5267 = vmatmul.msk.bf16.gmra.mxu2 %vm199_vm0, %v5523_v5  ;;  %5283 = vmatmul.msk.bf16.gmra.mxu3 %vm199_vm0, %v5523_v5 }
  0xf0   :  { %1094 = vmatpush.bf16.msra.mxu2 %v6462_v22  ;;  %1082 = vmatpush.bf16.msra.mxu1 %v6510_v17 }
  0xf1   :  { %1105 = vmatpush.bf16.msra.mxu3 %v6373_v15 }
  0xf2   :  { %v6590_v14 = vpop.f32.mrf.mxu2  ;;  %v6593_v41 = vpop.f32.mrf.mxu3 }
  0xf3   :  { %8177 = vst [vmem:[#allocation58_spill] sm:$0xff] %v6590_v14  ;;  %v6595_v25 = vpop.f32.mrf.mxu0  ;;  %v6597_v3 = vpop.f32.mrf.mxu1  ;;  %v5524_v14 = vld [vmem:[%s8125_s0 + $0x78] sm:$0xff] }
  0xf4   :  { %8178 = vst [vmem:[#allocation59_spill] sm:$0xff] %v6593_v41  ;;  %1095 = vmatpush.bf16.msra.mxu2 %v6522_v48 }
  0xf5   :  { %8179 = vst [vmem:[#allocation60_spill] sm:$0xff] %v6595_v25  ;;  %1106 = vmatpush.bf16.msra.mxu3 %v6419_v51 }
  0xf6   :  { %8180 = vst [vmem:[#allocation61_spill] sm:$0xff] %v6597_v3 }
  0xf9   :  { %1107 = vmatpush.bf16.msra.mxu3 %v6477_v49 }
  0xfa   :  { %v6602_v5 = vpop.f32.mrf.mxu2  ;;  %v6608_v38 = vpop.f32.mrf.mxu3 }
  0xfb   :  { %8181 = vst [vmem:[#allocation62_spill] sm:$0xff] %v6602_v5  ;;  %v6610_v41 = vpop.f32.mrf.mxu0  ;;  %v6612_v25 = vpop.f32.mrf.mxu1 }
  0xfc   :  { %8182 = vst [vmem:[#allocation63_spill] sm:$0xff] %v6608_v38 }
  0xfd   :  { %8183 = vst [vmem:[#allocation64_spill] sm:$0xff] %v6610_v41  ;;  %5236 = vmatmul.msk.bf16.gmra.mxu0 %vm199_vm0, %v5524_v14  ;;  %1108 = vmatpush.bf16.msra.mxu3 %v6543_v1 }
  0xfe   :  { %8184 = vst [vmem:[#allocation65_spill] sm:$0xff] %v6612_v25  ;;  %5252 = vmatmul.msk.bf16.gmra.mxu1 %vm199_vm0, %v5524_v14  ;;  %v49_v25 = vld [vmem:[%s8129_s4] sm:$0xff] }
  0xff   :  { %5268 = vmatmul.msk.bf16.gmra.mxu2 %vm199_vm0, %v5524_v14  ;;  %5284 = vmatmul.msk.bf16.gmra.mxu3 %vm199_vm0, %v5524_v14  ;;  %v773_v37 = vpack.c.bf16 %v49_v25, %v49_v25 }
 0x102   :  { %v6619_v5 = vpop.f32.mrf.mxu2  ;;  %v6621_v3 = vpop.f32.mrf.mxu3 }
 0x103   :  { %8185 = vst [vmem:[#allocation66_spill] sm:$0xff] %v6619_v5  ;;  %v6623_v58 = vpop.f32.mrf.mxu0  ;;  %v6625_v38 = vpop.f32.mrf.mxu1 }
 0x104   :  { %8186 = vst [vmem:[#allocation67_spill] sm:$0xff] %v6621_v3 }
 0x105   :  { %8187 = vst [vmem:[#allocation68_spill] sm:$0xff] %v6623_v58 }
 0x106   :  { %8188 = vst [vmem:[#allocation69_spill] sm:$0xff] %v6625_v38 }
 0x10a   :  { %v6630_v41 = vpop.f32.mrf.mxu2  ;;  %v6632_v27 = vpop.f32.mrf.mxu3 }
 0x10b   :  { %8189 = vst [vmem:[#allocation70_spill] sm:$0xff] %v6630_v41  ;;  %v6634_v23 = vpop.f32.mrf.mxu0  ;;  %v6636_v14 = vpop.f32.mrf.mxu1 }
 0x10c   :  { %8190 = vst [vmem:[#allocation71_spill] sm:$0xff] %v6632_v27 }
 0x10d   :  { %8191 = vst [vmem:[#allocation72_spill] sm:$0xff] %v6634_v23  ;;  %942 = vmatmul.bf16.vlgmr.msrb.gmra.mxu0 %v773_v37 }
 0x10e   :  { %8192 = vst [vmem:[#allocation73_spill] sm:$0xff] %v6636_v14  ;;  %955 = vmatmul.bf16.vlgmr.msrb.gmra.mxu1 %v773_v37  ;;  %1191 = vmatpush.bf16.msrb.mxu0 %v6266_v16 }
 0x10f   :  { %968 = vmatmul.bf16.vlgmr.msrb.gmra.mxu2 %v773_v37  ;;  %981 = vmatmul.bf16.vlgmr.msrb.gmra.mxu3 %v773_v37 }
 0x110   :  { %1204 = vmatpush.bf16.msrb.mxu1 %v6268_v20  ;;  %1217 = vmatpush.bf16.msrb.mxu2 %v6270_v21 }
 0x111   :  { %1230 = vmatpush.bf16.msrb.mxu3 %v6273_v24 }
 0x112   :  { %v6641_v38 = vpop.f32.mrf.mxu2  ;;  %v6644_v25 = vpop.f32.mrf.mxu3  ;;  %1192 = vmatpush.bf16.msrb.mxu0 %v6281_v28 }
 0x113   :  { %8193 = vst [vmem:[#allocation74_spill] sm:$0xff] %v6641_v38  ;;  %v6646_v27 = vpop.f32.mrf.mxu0  ;;  %v6648_v23 = vpop.f32.mrf.mxu1 }
 0x114   :  { %8194 = vst [vmem:[#allocation75_spill] sm:$0xff] %v6644_v25  ;;  %1205 = vmatpush.bf16.msrb.mxu1 %v6284_v32  ;;  %1218 = vmatpush.bf16.msrb.mxu2 %v6286_v33 }
 0x115   :  { %8195 = vst [vmem:[#allocation76_spill] sm:$0xff] %v6646_v27  ;;  %1231 = vmatpush.bf16.msrb.mxu3 %v6288_v36 }
 0x116   :  { %8196 = vst [vmem:[#allocation77_spill] sm:$0xff] %v6648_v23  ;;  %1193 = vmatpush.bf16.msrb.mxu0 %v6308_v42 }
 0x118   :  { %1206 = vmatpush.bf16.msrb.mxu1 %v6310_v46  ;;  %1219 = vmatpush.bf16.msrb.mxu2 %v6312_v47 }
 0x119   :  { %1232 = vmatpush.bf16.msrb.mxu3 %v6315_v50 }
 0x11a   :  { %v6657_v37 = vpop.f32.mrf.mxu2  ;;  %v6660_v27 = vpop.f32.mrf.mxu3  ;;  %1194 = vmatpush.bf16.msrb.mxu0 %v6334_v56 }
 0x11b   :  { %8197 = vst [vmem:[#allocation78_spill] sm:$0xff] %v6657_v37  ;;  %v6662_v23 = vpop.f32.mrf.mxu0  ;;  %v6664_v25 = vpop.f32.mrf.mxu1 }
 0x11c   :  { %8198 = vst [vmem:[#allocation79_spill] sm:$0xff] %v6660_v27  ;;  %1207 = vmatpush.bf16.msrb.mxu1 %v6336_v60  ;;  %1220 = vmatpush.bf16.msrb.mxu2 %v6338_v61 }
 0x11d   :  { %8199 = vst [vmem:[#allocation80_spill] sm:$0xff] %v6662_v23  ;;  %1233 = vmatpush.bf16.msrb.mxu3 %v6341_v0 }
 0x11e   :  { %8200 = vst [vmem:[#allocation81_spill] sm:$0xff] %v6664_v25  ;;  %1195 = vmatpush.bf16.msrb.mxu0 %v6360_v6 }
 0x120   :  { %1208 = vmatpush.bf16.msrb.mxu1 %v6362_v8  ;;  %1221 = vmatpush.bf16.msrb.mxu2 %v6366_v11 }
 0x121   :  { %1234 = vmatpush.bf16.msrb.mxu3 %v6373_v15 }
 0x122   :  { %v6673_v37 = vpop.f32.mrf.mxu2  ;;  %v6676_v23 = vpop.f32.mrf.mxu3  ;;  %1196 = vmatpush.bf16.msrb.mxu0 %v6390_v26 }
 0x123   :  { %8201 = vst [vmem:[#allocation82_spill] sm:$0xff] %v6673_v37  ;;  %v6678_v25 = vpop.f32.mrf.mxu0  ;;  %v6680_v27 = vpop.f32.mrf.mxu1 }
 0x124   :  { %8202 = vst [vmem:[#allocation83_spill] sm:$0xff] %v6676_v23  ;;  %1209 = vmatpush.bf16.msrb.mxu1 %v6394_v30  ;;  %1222 = vmatpush.bf16.msrb.mxu2 %v6404_v39 }
 0x125   :  { %8203 = vst [vmem:[#allocation84_spill] sm:$0xff] %v6678_v25  ;;  %1235 = vmatpush.bf16.msrb.mxu3 %v6419_v51 }
 0x126   :  { %8204 = vst [vmem:[#allocation85_spill] sm:$0xff] %v6680_v27  ;;  %1197 = vmatpush.bf16.msrb.mxu0 %v6448_v4 }
 0x128   :  { %1210 = vmatpush.bf16.msrb.mxu1 %v6452_v9  ;;  %1223 = vmatpush.bf16.msrb.mxu2 %v6462_v22 }
 0x129   :  { %1236 = vmatpush.bf16.msrb.mxu3 %v6477_v49 }
 0x12a   :  { %v6689_v37 = vpop.f32.mrf.mxu2  ;;  %v6692_v25 = vpop.f32.mrf.mxu3  ;;  %1198 = vmatpush.bf16.msrb.mxu0 %v6506_v2 }
 0x12b   :  { %8205 = vst [vmem:[#allocation86_spill] sm:$0xff] %v6689_v37  ;;  %v6694_v27 = vpop.f32.mrf.mxu0  ;;  %v6696_v23 = vpop.f32.mrf.mxu1 }
 0x12c   :  { %8206 = vst [vmem:[#allocation87_spill] sm:$0xff] %v6692_v25  ;;  %1211 = vmatpush.bf16.msrb.mxu1 %v6510_v17  ;;  %1224 = vmatpush.bf16.msrb.mxu2 %v6522_v48 }
 0x12d   :  { %8207 = vst [vmem:[#allocation88_spill] sm:$0xff] %v6694_v27  ;;  %1237 = vmatpush.bf16.msrb.mxu3 %v6543_v1 }
 0x12e   :  { %8208 = vst [vmem:[#allocation89_spill] sm:$0xff] %v6696_v23 }
 0x132   :  { %v6702_v38 = vpop.f32.mrf.mxu2  ;;  %v6704_v14 = vpop.f32.mrf.mxu3 }
 0x133   :  { %8209 = vst [vmem:[#allocation90_spill] sm:$0xff] %v6702_v38  ;;  %v6706_v37 = vpop.f32.mrf.mxu0  ;;  %v6708_v41 = vpop.f32.mrf.mxu1 }
 0x134   :  { %8210 = vst [vmem:[#allocation91_spill] sm:$0xff] %v6704_v14 }
 0x135   :  { %8211 = vst [vmem:[#allocation92_spill] sm:$0xff] %v6706_v37 }
 0x136   :  { %8212 = vst [vmem:[#allocation93_spill] sm:$0xff] %v6708_v41 }
 0x13a   :  { %v6710_v25 = vpop.f32.mrf.mxu2  ;;  %v6712_v27 = vpop.f32.mrf.mxu3 }
 0x13b   :  { %8213 = vst [vmem:[#allocation94_spill] sm:$0xff] %v6710_v25  ;;  %v6714_v23 = vpop.f32.mrf.mxu0  ;;  %v6716_v58 = vpop.f32.mrf.mxu1 }
 0x13c   :  { %8214 = vst [vmem:[#allocation95_spill] sm:$0xff] %v6712_v27 }
 0x13d   :  { %8215 = vst [vmem:[#allocation96_spill] sm:$0xff] %v6714_v23 }
 0x13e   :  { %8216 = vst [vmem:[#allocation97_spill] sm:$0xff] %v6716_v58 }
 0x142   :  { %v6718_v3 = vpop.f32.mrf.mxu2  ;;  %v6720_v5 = vpop.f32.mrf.mxu3 }
 0x143   :  { %8217 = vst [vmem:[#allocation98_spill] sm:$0xff] %v6718_v3  ;;  %v6722_v13 = vpop.f32.mrf.mxu0  ;;  %v6724_v38 = vpop.f32.mrf.mxu1 }
 0x144   :  { %8218 = vst [vmem:[#allocation99_spill] sm:$0xff] %v6720_v5 }
 0x145   :  { %8219 = vst [vmem:[#allocation100_spill] sm:$0xff] %v6722_v13 }
 0x146   :  { %8220 = vst [vmem:[#allocation101_spill] sm:$0xff] %v6724_v38 }
 0x14a   :  { %v6726_v14 = vpop.f32.mrf.mxu2  ;;  %v6728_v37 = vpop.f32.mrf.mxu3 }
 0x14b   :  { %8221 = vst [vmem:[#allocation102_spill] sm:$0xff] %v6726_v14  ;;  %v6730_v41 = vpop.f32.mrf.mxu0  ;;  %v6732_v25 = vpop.f32.mrf.mxu1 }
 0x14c   :  { %8222 = vst [vmem:[#allocation103_spill] sm:$0xff] %v6728_v37 }
 0x14d   :  { %8223 = vst [vmem:[#allocation104_spill] sm:$0xff] %v6730_v41 }
 0x14e   :  { %8224 = vst [vmem:[#allocation105_spill] sm:$0xff] %v6732_v25 }
 0x152   :  { %v6734_v27 = vpop.f32.mrf.mxu2  ;;  %v6736_v23 = vpop.f32.mrf.mxu3 }
 0x153   :  { %8225 = vst [vmem:[#allocation106_spill] sm:$0xff] %v6734_v27  ;;  %v6738_v58 = vpop.f32.mrf.mxu0  ;;  %v6740_v3 = vpop.f32.mrf.mxu1 }
 0x154   :  { %8226 = vst [vmem:[#allocation107_spill] sm:$0xff] %v6736_v23 }
 0x155   :  { %8227 = vst [vmem:[#allocation108_spill] sm:$0xff] %v6738_v58 }
 0x156   :  { %8228 = vst [vmem:[#allocation109_spill] sm:$0xff] %v6740_v3 }
 0x15a   :  { %v6742_v5 = vpop.f32.mrf.mxu2  ;;  %v6744_v13 = vpop.f32.mrf.mxu3 }
 0x15b   :  { %8229 = vst [vmem:[#allocation110_spill] sm:$0xff] %v6742_v5  ;;  %v6746_v38 = vpop.f32.mrf.mxu0  ;;  %v6748_v14 = vpop.f32.mrf.mxu1 }
 0x15c   :  { %8230 = vst [vmem:[#allocation111_spill] sm:$0xff] %v6744_v13 }
 0x15d   :  { %8231 = vst [vmem:[#allocation112_spill] sm:$0xff] %v6746_v38 }
 0x15e   :  { %8232 = vst [vmem:[#allocation113_spill] sm:$0xff] %v6748_v14 }
 0x162   :  { %v6750_v37 = vpop.f32.mrf.mxu2  ;;  %v6752_v41 = vpop.f32.mrf.mxu3 }
 0x163   :  { %8233 = vst [vmem:[#allocation114_spill] sm:$0xff] %v6750_v37  ;;  %v6754_v25 = vpop.f32.mrf.mxu0  ;;  %v6756_v27 = vpop.f32.mrf.mxu1 }
 0x164   :  { %8234 = vst [vmem:[#allocation115_spill] sm:$0xff] %v6752_v41 }
 0x165   :  { %8235 = vst [vmem:[#allocation116_spill] sm:$0xff] %v6754_v25 }
 0x166   :  { %8236 = vst [vmem:[#allocation117_spill] sm:$0xff] %v6756_v27 }
 0x16a   :  { %v6758_v23 = vpop.f32.mrf.mxu2  ;;  %v6760_v58 = vpop.f32.mrf.mxu3 }
 0x16b   :  { %8237 = vst [vmem:[#allocation118_spill] sm:$0xff] %v6758_v23  ;;  %v6762_v3 = vpop.f32.mrf.mxu0  ;;  %v6764_v5 = vpop.f32.mrf.mxu1 }
 0x16c   :  { %8238 = vst [vmem:[#allocation119_spill] sm:$0xff] %v6760_v58 }
 0x16d   :  { %8239 = vst [vmem:[#allocation120_spill] sm:$0xff] %v6762_v3 }
 0x16e   :  { %8240 = vst [vmem:[#allocation121_spill] sm:$0xff] %v6764_v5 }
 0x172   :  { %v6766_v13 = vpop.f32.mrf.mxu2  ;;  %v6768_v38 = vpop.f32.mrf.mxu3 }
 0x173   :  { %8241 = vst [vmem:[#allocation122_spill] sm:$0xff] %v6766_v13  ;;  %v6770_v14 = vpop.f32.mrf.mxu0  ;;  %v6772_v37 = vpop.f32.mrf.mxu1  ;;  %v89_v13 = vld [vmem:[%s8128_s3] sm:$0xf] }
 0x174   :  { %8242 = vst [vmem:[#allocation123_spill] sm:$0xff] %v6768_v38  ;;  %v6809_v54 = vperm.slane %v89_v13, 3 }
 0x175   :  { %8243 = vst [vmem:[#allocation124_spill] sm:$0xff] %v6770_v14 }
 0x176   :  { %8244 = vst [vmem:[#allocation125_spill] sm:$0xff] %v6772_v37  ;;  %v6793_v37 = vperm.slane %v89_v13, 0 }
 0x17a   :  { %v6774_v41 = vpop.f32.mrf.mxu2  ;;  %v6776_v25 = vpop.f32.mrf.mxu3 }
 0x17b   :  { %8245 = vst [vmem:[#allocation126_spill] sm:$0xff] %v6774_v41  ;;  %v6778_v27 = vpop.f32.mrf.mxu0  ;;  %v6780_v23 = vpop.f32.mrf.mxu1  ;;  %v6795_v41 = vperm.slane %v89_v13, 1 }
 0x17c   :  { %8246 = vst [vmem:[#allocation127_spill] sm:$0xff] %v6776_v25 }
 0x17d   :  { %8247 = vst [vmem:[#allocation128_spill] sm:$0xff] %v6778_v27  ;;  %v258_v27 = vadd.f32 %v6382_v18, %v6793_v37 }
 0x17e   :  { %8248 = vst [vmem:[#allocation129_spill] sm:$0xff] %v6780_v23 }
 0x182   :  { %v6782_v58 = vpop.f32.mrf.mxu2  ;;  %v6787_v5 = vpop.f32.mrf.mxu3 }
 0x183   :  { %8249 = vst [vmem:[#allocation130_spill] sm:$0xff] %v6782_v58  ;;  %v6789_v38 = vpop.f32.mrf.mxu0  ;;  %v6791_v14 = vpop.f32.mrf.mxu1  ;;  %v347_v58 = vadd.f32 %v6384_v19, %v6795_v41 }
 0x184   :  { %8250 = vst [vmem:[#allocation131_spill] sm:$0xff] %v6787_v5 }
 0x185   :  { %8251 = vst [vmem:[#allocation132_spill] sm:$0xff] %v6789_v38  ;;  %v6805_v38 = vperm.slane %v89_v13, 2 }
 0x186   :  { %8252 = vst [vmem:[#allocation133_spill] sm:$0xff] %v6791_v14 }
 0x187   :  { %v436_v63 = vadd.f32 %v6392_v29, %v6805_v38  ;;  %v525_v29 = vadd.f32 %v6396_v31, %v6809_v54 }
 0x18a   :  { %v6799_v23 = vpop.f32.mrf.mxu2  ;;  %v6803_v25 = vpop.f32.mrf.mxu3 }
 0x18b   :  { %8253 = vst [vmem:[#allocation134_spill] sm:$0xff] %v6799_v23  ;;  %v943_v3 = vpop.f32.mrf.mxu0  ;;  %v956_v12 = vpop.f32.mrf.mxu1 }
 0x18c   :  { %8254 = vst [vmem:[#allocation135_spill] sm:$0xff] %v6803_v25  ;;  %v986_v5 = vadd.f32 %v943_v3, %v258_v27  ;;  %v987_v14 = vadd.f32 %v956_v12, %v347_v58 }
 0x18e   :  { %v5413_v10 = vmul.f32 -1.442695, %v986_v5  ;;  %v5414_v7 = vmul.f32 -1.442695, %v987_v14 }
 0x190   :  { %5569 = vpow2.f32 %v5413_v10 }
 0x191   :  { %5571 = vpow2.f32 %v5414_v7 }
 0x192   :  { %v969_v18 = vpop.f32.mrf.mxu2  ;;  %v982_v62 = vpop.f32.mrf.mxu3 }
 0x193   :  { %v988_v23 = vadd.f32 %v969_v18, %v436_v63  ;;  %v945_v59 = vpop.f32.mrf.mxu0  ;;  %v958_v19 = vpop.f32.mrf.mxu1 }
 0x194   :  { %v989_v59 = vadd.f32 %v982_v62, %v525_v29 }
 0x195   :  { %v5415_v57 = vmul.f32 -1.442695, %v988_v23 }
 0x196   :  { %v5570_v25 = vpop.eup %5569 }
 0x197   :  { %v5572_v55 = vpop.eup %5571  ;;  %v999_v27 = vadd.f32 1.0, %v5570_v25  ;;  %5573 = vpow2.f32 %v5415_v57 }
 0x198   :  { %v1000_v3 = vadd.f32 1.0, %v5572_v55 }
 0x199   :  { %5575 = vrcp.f32 %v999_v27  ;;  %v1013_v55 = vand.u32 2147483648, %v999_v27  ;;  %v1011_v19 = vand.u32 2147483647, %v999_v27  ;;  %vm1007_vm3 = vweird.f32 %v999_v27 }
 0x19a   :  { %5577 = vrcp.f32 %v1000_v3  ;;  %v971_v10 = vpop.f32.mrf.mxu2  ;;  %v984_v12 = vpop.f32.mrf.mxu3  ;;  %v1028_v13 = vand.u32 2147483648, %v1000_v3  ;;  %vm1022_vm4 = vweird.f32 %v1000_v3 }
 0x19b   :  { %v1026_v12 = vand.u32 2147483647, %v1000_v3  ;;  %vm1012_vm7 = vcmp.eq.f32.partialorder %v1011_v19, 8.507059e+37 }
 0x19d   :  { %v5574_v58 = vpop.eup %5573  ;;  %vm1027_vm8 = vcmp.eq.f32.partialorder %v1026_v12, 8.507059e+37 }
 0x19e   :  { %v1001_v63 = vadd.f32 1.0, %v5574_v58  ;;  %v1014_v58 = vor.u32 1.1754944e-38, %v1013_v55 }
 0x19f   :  { %v5576_v7 = vpop.eup %5575 }
 0x1a0   :  { %v5578_v5 = vpop.eup %5577  ;;  %v1003_v23 = vmul.f32 %v5576_v7, %v999_v27  ;;  %5579 = vrcp.f32 %v1001_v63  ;;  %vm1008_vm1 = vweird.f32 %v5576_v7  ;;  %vm1037_vm10 = vweird.f32 %v1001_v63 }
 0x1a1   :  { %v1018_v14 = vmul.f32 %v5578_v5, %v1000_v3  ;;  %5581 = vtanh.f32 %v989_v59  ;;  %vm1023_vm2 = vweird.f32 %v5578_v5  ;;  %vm1009_vm5 = vmor %vm1007_vm3, %vm1008_vm1  ;;  %v51_v59 = vld [vmem:[%s8130_s5] sm:$0xff]  ;;  %s6186_s5 = smov [#allocation8]  }
 0x1a2   :  { %v1004_v25 = vsub.f32 1.0, %v1003_v23  ;;  %vm1024_vm6 = vmor %vm1022_vm4, %vm1023_vm2  ;;  %v1029_v23 = vor.u32 1.1754944e-38, %v1028_v13  ;;  %v1043_v13 = vand.u32 2147483648, %v1001_v63  ;;  %s5064_s15 = sshll.u32 %s6186_s5, 4  ;;  %s5065_s15 = int_to_ptr.vmem [resolvable:$true] %s5064_s15 }
 0x1a3   :  { %v1019_v57 = vsub.f32 1.0, %v1018_v14 }
 0x1a4   :  { %v1005_v18 = vmul.f32 %v5576_v7, %v1004_v25  ;;  %v1044_v19 = vor.u32 1.1754944e-38, %v1043_v13 }
 0x1a5   :  { %v1020_v10 = vmul.f32 %v5578_v5, %v1019_v57 }
 0x1a6   :  { %v5580_v53 = vpop.eup %5579  ;;  %v1006_v31 = vadd.f32 %v5576_v7, %v1005_v18 }
 0x1a7   :  { %v1033_v62 = vmul.f32 %v5580_v53, %v1001_v63  ;;  %v1021_v29 = vadd.f32 %v5578_v5, %v1020_v10  ;;  %v5582_v25 = vpop.eup %5581  ;;  %vm1038_vm9 = vweird.f32 %v5580_v53  ;;  %v1041_v10 = vand.u32 2147483647, %v1001_v63 }
 0x1a8   :  { %v1010_v14 = vsel %vm1009_vm5, %v5576_v7, %v1006_v31  ;;  %vm1039_vm11 = vmor %vm1037_vm10, %vm1038_vm9 }
 0x1a9   :  { %v1034_v57 = vsub.f32 1.0, %v1033_v62  ;;  %v1015_v52 = vsel %vm1012_vm7, %v1014_v58, %v1010_v14  ;;  %v1025_v45 = vsel %vm1024_vm6, %v5578_v5, %v1021_v29  ;;  %vm1042_vm12 = vcmp.eq.f32.partialorder %v1041_v10, 8.507059e+37 }
 0x1aa   :  { %v1030_v18 = vsel %vm1027_vm8, %v1029_v23, %v1025_v45  ;;  %v1049_v27 = vmul.f32 %v5582_v25, %v1015_v52  ;;  %v349_v52 = vadd.f32 %v6401_v35, %v6795_v41 }
 0x1ab   :  { %v1035_v3 = vmul.f32 %v5580_v53, %v1034_v57  ;;  %v1048_v44 = vmul.f32 %v1030_v18, %v51_v59  ;;  %v438_v59 = vadd.f32 %v6407_v40, %v6805_v38 }
 0x1ad   :  { %v6816_v43 = vadd.f32 %v1049_v27, %v1048_v44  ;;  %v1036_v55 = vadd.f32 %v5580_v53, %v1035_v3  ;;  %v260_v44 = vadd.f32 %v6398_v34, %v6793_v37 }
 0x1af   :  { %5583 = vtanh.f32 %v6816_v43  ;;  %v1040_v7 = vsel %vm1039_vm11, %v5580_v53, %v1036_v55 }
 0x1b0   :  { %v1045_v5 = vsel %vm1042_vm12, %v1044_v19, %v1040_v7 }
 0x1b5   :  { %v5584_v31 = vpop.eup %5583 }
 0x1b6   :  { %v1052_v12 = vmul.f32 %v5584_v31, %v1045_v5  ;;  %v8255_v31 = vld [vmem:[#allocation15_spill] sm:$0xff] }
 0x1b7   :  { %v527_v40 = vadd.f32 %v8255_v31, %v6809_v54 }
 0x1b8   :  { %1053 = vst [vmem:[#allocation8] sm:$0xff] %v1052_v12  ;;  %v1061_v45 = vpack.c.bf16 %v1052_v12, %v1052_v12 }
 0x1ba   :  { %1070 = vmatmul.bf16.vlgmr.msra.gmra.mxu0 %v1061_v45  ;;  %1083 = vmatmul.bf16.vlgmr.msra.gmra.mxu1 %v1061_v45 }
 0x1bb   :  { %1096 = vmatmul.bf16.vlgmr.msra.gmra.mxu2 %v1061_v45  ;;  %1109 = vmatmul.bf16.vlgmr.msra.gmra.mxu3 %v1061_v45 }
 0x1bc   :  { %1320 = vmatpush.bf16.msra.mxu0 %v6266_v16  ;;  %1333 = vmatpush.bf16.msra.mxu1 %v6268_v20 }
 0x1bd   :  { %1346 = vmatpush.bf16.msra.mxu2 %v6270_v21  ;;  %1359 = vmatpush.bf16.msra.mxu3 %v6273_v24 }
 0x1c0   :  { %1321 = vmatpush.bf16.msra.mxu0 %v6281_v28  ;;  %1334 = vmatpush.bf16.msra.mxu1 %v6284_v32 }
 0x1c1   :  { %1347 = vmatpush.bf16.msra.mxu2 %v6286_v33  ;;  %1360 = vmatpush.bf16.msra.mxu3 %v6288_v36 }
 0x1c4   :  { %1322 = vmatpush.bf16.msra.mxu0 %v6308_v42  ;;  %1335 = vmatpush.bf16.msra.mxu1 %v6310_v46 }
 0x1c5   :  { %1348 = vmatpush.bf16.msra.mxu2 %v6312_v47  ;;  %1361 = vmatpush.bf16.msra.mxu3 %v6315_v50 }
 0x1c8   :  { %1323 = vmatpush.bf16.msra.mxu0 %v6334_v56  ;;  %1336 = vmatpush.bf16.msra.mxu1 %v6336_v60 }
 0x1c9   :  { %1349 = vmatpush.bf16.msra.mxu2 %v6338_v61  ;;  %1362 = vmatpush.bf16.msra.mxu3 %v6341_v0 }
 0x1cc   :  { %1324 = vmatpush.bf16.msra.mxu0 %v6360_v6  ;;  %1337 = vmatpush.bf16.msra.mxu1 %v6362_v8 }
 0x1cd   :  { %1350 = vmatpush.bf16.msra.mxu2 %v6366_v11  ;;  %1363 = vmatpush.bf16.msra.mxu3 %v6373_v15 }
 0x1d0   :  { %1325 = vmatpush.bf16.msra.mxu0 %v6390_v26  ;;  %1338 = vmatpush.bf16.msra.mxu1 %v6394_v30 }
 0x1d1   :  { %1351 = vmatpush.bf16.msra.mxu2 %v6404_v39  ;;  %1364 = vmatpush.bf16.msra.mxu3 %v6419_v51 }
 0x1d4   :  { %1326 = vmatpush.bf16.msra.mxu0 %v6448_v4  ;;  %1339 = vmatpush.bf16.msra.mxu1 %v6452_v9 }
 0x1d5   :  { %1352 = vmatpush.bf16.msra.mxu2 %v6462_v22  ;;  %1365 = vmatpush.bf16.msra.mxu3 %v6477_v49 }
 0x1d8   :  { %1327 = vmatpush.bf16.msra.mxu0 %v6506_v2  ;;  %1340 = vmatpush.bf16.msra.mxu1 %v6510_v17 }
 0x1d9   :  { %1353 = vmatpush.bf16.msra.mxu2 %v6522_v48  ;;  %1366 = vmatpush.bf16.msra.mxu3 %v6543_v1 }
 0x237   :  { %v1071_v53 = vpop.f32.mrf.mxu0  ;;  %v1084_v63 = vpop.f32.mrf.mxu1 }
 0x238   :  { %v1114_v62 = vadd.f32 %v1071_v53, %v260_v44  ;;  %v1115_v58 = vadd.f32 %v1084_v63, %v349_v52 }
 0x23a   :  { %v5416_v29 = vmul.f32 -1.442695, %v1114_v62  ;;  %v5417_v23 = vmul.f32 -1.442695, %v1115_v58 }
 0x23c   :  { %5585 = vpow2.f32 %v5416_v29 }
 0x23d   :  { %5587 = vpow2.f32 %v5417_v23 }
 0x23e   :  { %v1097_v14 = vpop.f32.mrf.mxu2  ;;  %v1110_v25 = vpop.f32.mrf.mxu3 }
 0x23f   :  { %v1116_v57 = vadd.f32 %v1097_v14, %v438_v59  ;;  %v1073_v18 = vpop.f32.mrf.mxu0  ;;  %v1086_v27 = vpop.f32.mrf.mxu1  ;;  %v1117_v45 = vadd.f32 %v1110_v25, %v527_v40 }
 0x241   :  { %v5418_v34 = vmul.f32 -1.442695, %v1116_v57 }
 0x242   :  { %v5586_v3 = vpop.eup %5585 }
 0x243   :  { %v5588_v55 = vpop.eup %5587  ;;  %v1127_v35 = vadd.f32 1.0, %v5586_v3  ;;  %5589 = vpow2.f32 %v5418_v34 }
 0x244   :  { %v1128_v13 = vadd.f32 1.0, %v5588_v55 }
 0x245   :  { %5591 = vrcp.f32 %v1127_v35  ;;  %v1141_v58 = vand.u32 2147483648, %v1127_v35  ;;  %v1139_v59 = vand.u32 2147483647, %v1127_v35  ;;  %vm1135_vm15 = vweird.f32 %v1127_v35 }
 0x246   :  { %5593 = vrcp.f32 %v1128_v13  ;;  %v1099_v10 = vpop.f32.mrf.mxu2  ;;  %v1112_v7 = vpop.f32.mrf.mxu3  ;;  %v1156_v29 = vand.u32 2147483648, %v1128_v13  ;;  %v1154_v57 = vand.u32 2147483647, %v1128_v13  ;;  %vm1150_vm0 = vweird.f32 %v1128_v13 }
 0x247   :  { %v1142_v34 = vor.u32 1.1754944e-38, %v1141_v58  ;;  %vm1140_vm3 = vcmp.eq.f32.partialorder %v1139_v59, 8.507059e+37 }
 0x248   :  { %v1157_v55 = vor.u32 1.1754944e-38, %v1156_v29  ;;  %vm1155_vm4 = vcmp.eq.f32.partialorder %v1154_v57, 8.507059e+37  ;;  %v8257_v57 = vld [vmem:[#allocation17_spill] sm:$0xff] }
 0x249   :  { %v5590_v19 = vpop.eup %5589 }
 0x24a   :  { %v1129_v5 = vadd.f32 1.0, %v5590_v19 }
 0x24b   :  { %v5592_v12 = vpop.eup %5591 }
 0x24c   :  { %v5594_v44 = vpop.eup %5593  ;;  %v1131_v52 = vmul.f32 %v5592_v12, %v1127_v35  ;;  %5595 = vrcp.f32 %v1129_v5  ;;  %vm1136_vm13 = vweird.f32 %v5592_v12  ;;  %vm1165_vm6 = vweird.f32 %v1129_v5 }
 0x24d   :  { %v1146_v53 = vmul.f32 %v5594_v44, %v1128_v13  ;;  %5597 = vtanh.f32 %v1117_v45  ;;  %vm1151_vm14 = vweird.f32 %v5594_v44  ;;  %vm1137_vm1 = vmor %vm1135_vm15, %vm1136_vm13 }
 0x24e   :  { %v1132_v63 = vsub.f32 1.0, %v1131_v52  ;;  %vm1152_vm2 = vmor %vm1150_vm0, %vm1151_vm14 }
 0x24f   :  { %v1147_v62 = vsub.f32 1.0, %v1146_v53 }
 0x250   :  { %v1133_v23 = vmul.f32 %v5592_v12, %v1132_v63 }
 0x251   :  { %v1148_v14 = vmul.f32 %v5594_v44, %v1147_v62  ;;  %v1171_v62 = vand.u32 2147483648, %v1129_v5 }
 0x252   :  { %v5596_v18 = vpop.eup %5595  ;;  %v1134_v27 = vadd.f32 %v5592_v12, %v1133_v23 }
 0x253   :  { %v1161_v25 = vmul.f32 %v5596_v18, %v1129_v5  ;;  %v1149_v3 = vadd.f32 %v5594_v44, %v1148_v14  ;;  %v5598_v7 = vpop.eup %5597  ;;  %vm1166_vm5 = vweird.f32 %v5596_v18  ;;  %v1172_v29 = vor.u32 1.1754944e-38, %v1171_v62 }
 0x254   :  { %v1138_v10 = vsel %vm1137_vm1, %v5592_v12, %v1134_v27  ;;  %v1169_v12 = vand.u32 2147483647, %v1129_v5  ;;  %vm1167_vm7 = vmor %vm1165_vm6, %vm1166_vm5 }
 0x255   :  { %v1162_v19 = vsub.f32 1.0, %v1161_v25  ;;  %v1143_v31 = vsel %vm1140_vm3, %v1142_v34, %v1138_v10  ;;  %v1153_v40 = vsel %vm1152_vm2, %v5594_v44, %v1149_v3 }
 0x256   :  { %v1158_v45 = vsel %vm1155_vm4, %v1157_v55, %v1153_v40  ;;  %v1177_v52 = vmul.f32 %v5598_v7, %v1143_v31  ;;  %vm1170_vm8 = vcmp.eq.f32.partialorder %v1169_v12, 8.507059e+37  ;;  %v8258_v7 = vld [vmem:[#allocation18_spill] sm:$0xff] }
 0x257   :  { %v1163_v53 = vmul.f32 %v5596_v18, %v1162_v19  ;;  %v1176_v63 = vmul.f32 %v1158_v45, %v6816_v43  ;;  %v8256_v43 = vld [vmem:[#allocation16_spill] sm:$0xff]  ;;  %v441_v19 = vadd.f32 %v8258_v7, %v6805_v38 }
 0x258   :  { %v263_v5 = vadd.f32 %v8256_v43, %v6793_v37 }
 0x259   :  { %v6860_v35 = vadd.f32 %v1177_v52, %v1176_v63  ;;  %v1164_v13 = vadd.f32 %v5596_v18, %v1163_v53 }
 0x25b   :  { %5599 = vtanh.f32 %v6860_v35  ;;  %v1168_v58 = vsel %vm1167_vm7, %v5596_v18, %v1164_v13  ;;  %v352_v18 = vadd.f32 %v8257_v57, %v6795_v41 }
 0x25c   :  { %v1173_v23 = vsel %vm1170_vm8, %v1172_v29, %v1168_v58 }
 0x261   :  { %v5600_v44 = vpop.eup %5599 }
 0x262   :  { %v1180_v59 = vmul.f32 %v5600_v44, %v1173_v23 }
 0x264   :  { %1182 = vst [vmem:[#allocation8 + $0x8] sm:$0xff] %v1180_v59  ;;  %v1190_v14 = vpack.c.bf16 %v1180_v59, %v1180_v59  ;;  %v8259_v59 = vld [vmem:[#allocation19_spill] sm:$0xff] }
 0x266   :  { %1199 = vmatmul.bf16.vlgmr.msrb.gmra.mxu0 %v1190_v14  ;;  %1212 = vmatmul.bf16.vlgmr.msrb.gmra.mxu1 %v1190_v14 }
 0x267   :  { %1225 = vmatmul.bf16.vlgmr.msrb.gmra.mxu2 %v1190_v14  ;;  %1238 = vmatmul.bf16.vlgmr.msrb.gmra.mxu3 %v1190_v14  ;;  %v530_v14 = vadd.f32 %v8259_v59, %v6809_v54 }
 0x268   :  { %1449 = vmatpush.bf16.msrb.mxu0 %v6266_v16  ;;  %1462 = vmatpush.bf16.msrb.mxu1 %v6268_v20 }
 0x269   :  { %1475 = vmatpush.bf16.msrb.mxu2 %v6270_v21  ;;  %1488 = vmatpush.bf16.msrb.mxu3 %v6273_v24 }
 0x26c   :  { %1450 = vmatpush.bf16.msrb.mxu0 %v6281_v28  ;;  %1463 = vmatpush.bf16.msrb.mxu1 %v6284_v32 }
 0x26d   :  { %1476 = vmatpush.bf16.msrb.mxu2 %v6286_v33  ;;  %1489 = vmatpush.bf16.msrb.mxu3 %v6288_v36 }
 0x270   :  { %1451 = vmatpush.bf16.msrb.mxu0 %v6308_v42  ;;  %1464 = vmatpush.bf16.msrb.mxu1 %v6310_v46 }
 0x271   :  { %1477 = vmatpush.bf16.msrb.mxu2 %v6312_v47  ;;  %1490 = vmatpush.bf16.msrb.mxu3 %v6315_v50 }
 0x274   :  { %1452 = vmatpush.bf16.msrb.mxu0 %v6334_v56  ;;  %1465 = vmatpush.bf16.msrb.mxu1 %v6336_v60 }
 0x275   :  { %1478 = vmatpush.bf16.msrb.mxu2 %v6338_v61  ;;  %1491 = vmatpush.bf16.msrb.mxu3 %v6341_v0 }
 0x278   :  { %1453 = vmatpush.bf16.msrb.mxu0 %v6360_v6  ;;  %1466 = vmatpush.bf16.msrb.mxu1 %v6362_v8 }
 0x279   :  { %1479 = vmatpush.bf16.msrb.mxu2 %v6366_v11  ;;  %1492 = vmatpush.bf16.msrb.mxu3 %v6373_v15 }
 0x27c   :  { %1454 = vmatpush.bf16.msrb.mxu0 %v6390_v26  ;;  %1467 = vmatpush.bf16.msrb.mxu1 %v6394_v30 }
 0x27d   :  { %1480 = vmatpush.bf16.msrb.mxu2 %v6404_v39  ;;  %1493 = vmatpush.bf16.msrb.mxu3 %v6419_v51 }
 0x280   :  { %1455 = vmatpush.bf16.msrb.mxu0 %v6448_v4  ;;  %1468 = vmatpush.bf16.msrb.mxu1 %v6452_v9 }
 0x281   :  { %1481 = vmatpush.bf16.msrb.mxu2 %v6462_v22  ;;  %1494 = vmatpush.bf16.msrb.mxu3 %v6477_v49 }
 0x284   :  { %1456 = vmatpush.bf16.msrb.mxu0 %v6506_v2  ;;  %1469 = vmatpush.bf16.msrb.mxu1 %v6510_v17 }
 0x285   :  { %1482 = vmatpush.bf16.msrb.mxu2 %v6522_v48  ;;  %1495 = vmatpush.bf16.msrb.mxu3 %v6543_v1 }
 0x2e3   :  { %v1200_v27 = vpop.f32.mrf.mxu0  ;;  %v1213_v25 = vpop.f32.mrf.mxu1 }
 0x2e4   :  { %v1243_v34 = vadd.f32 %v1200_v27, %v263_v5  ;;  %v1244_v3 = vadd.f32 %v1213_v25, %v352_v18 }
 0x2e6   :  { %v5419_v55 = vmul.f32 -1.442695, %v1243_v34  ;;  %v5420_v10 = vmul.f32 -1.442695, %v1244_v3 }
 0x2e8   :  { %5601 = vpow2.f32 %v5419_v55 }
 0x2e9   :  { %5603 = vpow2.f32 %v5420_v10 }
 0x2ea   :  { %v1226_v31 = vpop.f32.mrf.mxu2  ;;  %v1239_v40 = vpop.f32.mrf.mxu3 }
 0x2eb   :  { %v1245_v45 = vadd.f32 %v1226_v31, %v441_v19  ;;  %v1202_v52 = vpop.f32.mrf.mxu0  ;;  %v1215_v53 = vpop.f32.mrf.mxu1  ;;  %v1246_v57 = vadd.f32 %v1239_v40, %v530_v14 }
 0x2ed   :  { %v5421_v63 = vmul.f32 -1.442695, %v1245_v45 }
 0x2ee   :  { %v5602_v13 = vpop.eup %5601 }
 0x2ef   :  { %v5604_v62 = vpop.eup %5603  ;;  %v1256_v12 = vadd.f32 1.0, %v5602_v13  ;;  %5605 = vpow2.f32 %v5421_v63 }
 0x2f0   :  { %v1257_v58 = vadd.f32 1.0, %v5604_v62 }
 0x2f1   :  { %5607 = vrcp.f32 %v1256_v12  ;;  %v1270_v55 = vand.u32 2147483648, %v1256_v12  ;;  %v1268_v19 = vand.u32 2147483647, %v1256_v12  ;;  %vm1264_vm11 = vweird.f32 %v1256_v12 }
 0x2f2   :  { %5609 = vrcp.f32 %v1257_v58  ;;  %v1228_v29 = vpop.f32.mrf.mxu2  ;;  %v1241_v44 = vpop.f32.mrf.mxu3  ;;  %v1285_v10 = vand.u32 2147483648, %v1257_v58  ;;  %v1283_v45 = vand.u32 2147483647, %v1257_v58  ;;  %vm1279_vm12 = vweird.f32 %v1257_v58 }
 0x2f3   :  { %v1271_v63 = vor.u32 1.1754944e-38, %v1270_v55  ;;  %vm1269_vm15 = vcmp.eq.f32.partialorder %v1268_v19, 8.507059e+37 }
 0x2f4   :  { %v1286_v62 = vor.u32 1.1754944e-38, %v1285_v10  ;;  %vm1284_vm0 = vcmp.eq.f32.partialorder %v1283_v45, 8.507059e+37  ;;  %v8261_v45 = vld [vmem:[#allocation21_spill] sm:$0xff] }
 0x2f5   :  { %v5606_v23 = vpop.eup %5605 }
 0x2f6   :  { %v1258_v43 = vadd.f32 1.0, %v5606_v23 }
 0x2f7   :  { %v5608_v5 = vpop.eup %5607 }
 0x2f8   :  { %v5610_v18 = vpop.eup %5609  ;;  %v1260_v27 = vmul.f32 %v5608_v5, %v1256_v12  ;;  %5611 = vrcp.f32 %v1258_v43  ;;  %vm1265_vm9 = vweird.f32 %v5608_v5  ;;  %vm1294_vm2 = vweird.f32 %v1258_v43 }
 0x2f9   :  { %v1275_v25 = vmul.f32 %v5610_v18, %v1257_v58  ;;  %5613 = vtanh.f32 %v1246_v57  ;;  %vm1280_vm10 = vweird.f32 %v5610_v18  ;;  %vm1266_vm13 = vmor %vm1264_vm11, %vm1265_vm9 }
 0x2fa   :  { %v1261_v34 = vsub.f32 1.0, %v1260_v27  ;;  %vm1281_vm14 = vmor %vm1279_vm12, %vm1280_vm10 }
 0x2fb   :  { %v1276_v3 = vsub.f32 1.0, %v1275_v25 }
 0x2fc   :  { %v1262_v7 = vmul.f32 %v5608_v5, %v1261_v34 }
 0x2fd   :  { %v1277_v31 = vmul.f32 %v5610_v18, %v1276_v3  ;;  %v1300_v3 = vand.u32 2147483648, %v1258_v43 }
 0x2fe   :  { %v5612_v52 = vpop.eup %5611  ;;  %v1263_v53 = vadd.f32 %v5608_v5, %v1262_v7 }
 0x2ff   :  { %v1290_v40 = vmul.f32 %v5612_v52, %v1258_v43  ;;  %v1278_v13 = vadd.f32 %v5610_v18, %v1277_v31  ;;  %v5614_v44 = vpop.eup %5613  ;;  %vm1295_vm1 = vweird.f32 %v5612_v52  ;;  %v1301_v10 = vor.u32 1.1754944e-38, %v1300_v3 }
 0x300   :  { %v1267_v29 = vsel %vm1266_vm13, %v5608_v5, %v1263_v53  ;;  %v1298_v5 = vand.u32 2147483647, %v1258_v43  ;;  %vm1296_vm3 = vmor %vm1294_vm2, %vm1295_vm1 }
 0x301   :  { %v1291_v23 = vsub.f32 1.0, %v1290_v40  ;;  %v1272_v59 = vsel %vm1269_vm15, %v1271_v63, %v1267_v29  ;;  %v1282_v14 = vsel %vm1281_vm14, %v5610_v18, %v1278_v13 }
 0x302   :  { %v1287_v57 = vsel %vm1284_vm0, %v1286_v62, %v1282_v14  ;;  %v1306_v27 = vmul.f32 %v5614_v44, %v1272_v59  ;;  %vm1299_vm4 = vcmp.eq.f32.partialorder %v1298_v5, 8.507059e+37  ;;  %v8262_v44 = vld [vmem:[#allocation22_spill] sm:$0xff] }
 0x303   :  { %v1292_v25 = vmul.f32 %v5612_v52, %v1291_v23  ;;  %v1305_v34 = vmul.f32 %v1287_v57, %v6860_v35  ;;  %v8260_v35 = vld [vmem:[#allocation20_spill] sm:$0xff]  ;;  %v443_v23 = vadd.f32 %v8262_v44, %v6805_v38 }
 0x304   :  { %v265_v43 = vadd.f32 %v8260_v35, %v6793_v37 }
 0x305   :  { %v6904_v12 = vadd.f32 %v1306_v27, %v1305_v34  ;;  %v1293_v58 = vadd.f32 %v5612_v52, %v1292_v25 }
 0x307   :  { %5615 = vtanh.f32 %v6904_v12  ;;  %v1297_v55 = vsel %vm1296_vm3, %v5612_v52, %v1293_v58  ;;  %v354_v52 = vadd.f32 %v8261_v45, %v6795_v41 }
 0x308   :  { %v1302_v7 = vsel %vm1299_vm4, %v1301_v10, %v1297_v55 }
 0x30d   :  { %v5616_v18 = vpop.eup %5615 }
 0x30e   :  { %v1309_v19 = vmul.f32 %v5616_v18, %v1302_v7 }
 0x310   :  { %1311 = vst [vmem:[#allocation8 + $0x10] sm:$0xff] %v1309_v19  ;;  %v1319_v31 = vpack.c.bf16 %v1309_v19, %v1309_v19  ;;  %v8263_v19 = vld [vmem:[#allocation23_spill] sm:$0xff] }
 0x312   :  { %1328 = vmatmul.bf16.vlgmr.msra.gmra.mxu0 %v1319_v31  ;;  %1341 = vmatmul.bf16.vlgmr.msra.gmra.mxu1 %v1319_v31 }
 0x313   :  { %1354 = vmatmul.bf16.vlgmr.msra.gmra.mxu2 %v1319_v31  ;;  %1367 = vmatmul.bf16.vlgmr.msra.gmra.mxu3 %v1319_v31  ;;  %v532_v31 = vadd.f32 %v8263_v19, %v6809_v54 }
 0x314   :  { %1578 = vmatpush.bf16.msra.mxu0 %v6266_v16  ;;  %1591 = vmatpush.bf16.msra.mxu1 %v6268_v20 }
 0x315   :  { %1604 = vmatpush.bf16.msra.mxu2 %v6270_v21  ;;  %1617 = vmatpush.bf16.msra.mxu3 %v6273_v24 }
 0x318   :  { %1579 = vmatpush.bf16.msra.mxu0 %v6281_v28  ;;  %1592 = vmatpush.bf16.msra.mxu1 %v6284_v32 }
 0x319   :  { %1605 = vmatpush.bf16.msra.mxu2 %v6286_v33  ;;  %1618 = vmatpush.bf16.msra.mxu3 %v6288_v36 }
 0x31c   :  { %1580 = vmatpush.bf16.msra.mxu0 %v6308_v42  ;;  %1593 = vmatpush.bf16.msra.mxu1 %v6310_v46 }
 0x31d   :  { %1606 = vmatpush.bf16.msra.mxu2 %v6312_v47  ;;  %1619 = vmatpush.bf16.msra.mxu3 %v6315_v50 }
 0x320   :  { %1581 = vmatpush.bf16.msra.mxu0 %v6334_v56  ;;  %1594 = vmatpush.bf16.msra.mxu1 %v6336_v60 }
 0x321   :  { %1607 = vmatpush.bf16.msra.mxu2 %v6338_v61  ;;  %1620 = vmatpush.bf16.msra.mxu3 %v6341_v0 }
 0x324   :  { %1582 = vmatpush.bf16.msra.mxu0 %v6360_v6  ;;  %1595 = vmatpush.bf16.msra.mxu1 %v6362_v8 }
 0x325   :  { %1608 = vmatpush.bf16.msra.mxu2 %v6366_v11  ;;  %1621 = vmatpush.bf16.msra.mxu3 %v6373_v15 }
 0x328   :  { %1583 = vmatpush.bf16.msra.mxu0 %v6390_v26  ;;  %1596 = vmatpush.bf16.msra.mxu1 %v6394_v30 }
 0x329   :  { %1609 = vmatpush.bf16.msra.mxu2 %v6404_v39  ;;  %1622 = vmatpush.bf16.msra.mxu3 %v6419_v51 }
 0x32c   :  { %1584 = vmatpush.bf16.msra.mxu0 %v6448_v4  ;;  %1597 = vmatpush.bf16.msra.mxu1 %v6452_v9 }
 0x32d   :  { %1610 = vmatpush.bf16.msra.mxu2 %v6462_v22  ;;  %1623 = vmatpush.bf16.msra.mxu3 %v6477_v49 }
 0x330   :  { %1585 = vmatpush.bf16.msra.mxu0 %v6506_v2  ;;  %1598 = vmatpush.bf16.msra.mxu1 %v6510_v17 }
 0x331   :  { %1611 = vmatpush.bf16.msra.mxu2 %v6522_v48  ;;  %1624 = vmatpush.bf16.msra.mxu3 %v6543_v1 }
 0x38f   :  { %v1329_v53 = vpop.f32.mrf.mxu0  ;;  %v1342_v40 = vpop.f32.mrf.mxu1 }
 0x390   :  { %v1372_v63 = vadd.f32 %v1329_v53, %v265_v43  ;;  %v1373_v13 = vadd.f32 %v1342_v40, %v354_v52 }
 0x392   :  { %v5422_v62 = vmul.f32 -1.442695, %v1372_v63  ;;  %v5423_v29 = vmul.f32 -1.442695, %v1373_v13 }
 0x394   :  { %5617 = vpow2.f32 %v5422_v62 }
 0x395   :  { %5619 = vpow2.f32 %v5423_v29 }
 0x396   :  { %v1355_v59 = vpop.f32.mrf.mxu2  ;;  %v1368_v14 = vpop.f32.mrf.mxu3 }
 0x397   :  { %v1374_v57 = vadd.f32 %v1355_v59, %v443_v23  ;;  %v1331_v27 = vpop.f32.mrf.mxu0  ;;  %v1344_v25 = vpop.f32.mrf.mxu1  ;;  %v1375_v45 = vadd.f32 %v1368_v14, %v532_v31 }
 0x399   :  { %v5424_v34 = vmul.f32 -1.442695, %v1374_v57 }
 0x39a   :  { %v5618_v58 = vpop.eup %5617 }
 0x39b   :  { %v5620_v3 = vpop.eup %5619  ;;  %v1385_v5 = vadd.f32 1.0, %v5618_v58  ;;  %5621 = vpow2.f32 %v5424_v34 }
 0x39c   :  { %v1386_v55 = vadd.f32 1.0, %v5620_v3 }
 0x39d   :  { %5623 = vrcp.f32 %v1385_v5  ;;  %v1399_v62 = vand.u32 2147483648, %v1385_v5  ;;  %v1397_v23 = vand.u32 2147483647, %v1385_v5  ;;  %vm1393_vm7 = vweird.f32 %v1385_v5 }
 0x39e   :  { %5625 = vrcp.f32 %v1386_v55  ;;  %v1357_v10 = vpop.f32.mrf.mxu2  ;;  %v1370_v18 = vpop.f32.mrf.mxu3  ;;  %v1414_v29 = vand.u32 2147483648, %v1386_v55  ;;  %v1412_v57 = vand.u32 2147483647, %v1386_v55  ;;  %vm1408_vm8 = vweird.f32 %v1386_v55 }
 0x39f   :  { %v1400_v34 = vor.u32 1.1754944e-38, %v1399_v62  ;;  %vm1398_vm11 = vcmp.eq.f32.partialorder %v1397_v23, 8.507059e+37 }
 0x3a0   :  { %v1415_v3 = vor.u32 1.1754944e-38, %v1414_v29  ;;  %vm1413_vm12 = vcmp.eq.f32.partialorder %v1412_v57, 8.507059e+37  ;;  %v8265_v57 = vld [vmem:[#allocation25_spill] sm:$0xff] }
 0x3a1   :  { %v5622_v7 = vpop.eup %5621 }
 0x3a2   :  { %v1387_v35 = vadd.f32 1.0, %v5622_v7 }
 0x3a3   :  { %v5624_v43 = vpop.eup %5623 }
 0x3a4   :  { %v5626_v52 = vpop.eup %5625  ;;  %v1389_v53 = vmul.f32 %v5624_v43, %v1385_v5  ;;  %5627 = vrcp.f32 %v1387_v35  ;;  %vm1394_vm5 = vweird.f32 %v5624_v43  ;;  %vm1423_vm14 = vweird.f32 %v1387_v35 }
 0x3a5   :  { %v1404_v40 = vmul.f32 %v5626_v52, %v1386_v55  ;;  %5629 = vtanh.f32 %v1375_v45  ;;  %vm1409_vm6 = vweird.f32 %v5626_v52  ;;  %vm1395_vm9 = vmor %vm1393_vm7, %vm1394_vm5 }
 0x3a6   :  { %v1390_v63 = vsub.f32 1.0, %v1389_v53  ;;  %vm1410_vm10 = vmor %vm1408_vm8, %vm1409_vm6 }
 0x3a7   :  { %v1405_v13 = vsub.f32 1.0, %v1404_v40 }
 0x3a8   :  { %v1391_v44 = vmul.f32 %v5624_v43, %v1390_v63 }
 0x3a9   :  { %v1406_v59 = vmul.f32 %v5626_v52, %v1405_v13  ;;  %v1429_v13 = vand.u32 2147483648, %v1387_v35 }
 0x3aa   :  { %v5628_v27 = vpop.eup %5627  ;;  %v1392_v25 = vadd.f32 %v5624_v43, %v1391_v44 }
 0x3ab   :  { %v1419_v14 = vmul.f32 %v5628_v27, %v1387_v35  ;;  %v1407_v58 = vadd.f32 %v5626_v52, %v1406_v59  ;;  %v5630_v18 = vpop.eup %5629  ;;  %vm1424_vm13 = vweird.f32 %v5628_v27  ;;  %v1430_v29 = vor.u32 1.1754944e-38, %v1429_v13 }
 0x3ac   :  { %v1396_v10 = vsel %vm1395_vm9, %v5624_v43, %v1392_v25  ;;  %v1427_v43 = vand.u32 2147483647, %v1387_v35  ;;  %vm1425_vm15 = vmor %vm1423_vm14, %vm1424_vm13 }
 0x3ad   :  { %v1420_v7 = vsub.f32 1.0, %v1419_v14  ;;  %v1401_v19 = vsel %vm1398_vm11, %v1400_v34, %v1396_v10  ;;  %v1411_v31 = vsel %vm1410_vm10, %v5626_v52, %v1407_v58 }
 0x3ae   :  { %v1416_v45 = vsel %vm1413_vm12, %v1415_v3, %v1411_v31  ;;  %v1435_v53 = vmul.f32 %v5630_v18, %v1401_v19  ;;  %vm1428_vm0 = vcmp.eq.f32.partialorder %v1427_v43, 8.507059e+37  ;;  %v8266_v18 = vld [vmem:[#allocation26_spill] sm:$0xff] }
 0x3af   :  { %v1421_v40 = vmul.f32 %v5628_v27, %v1420_v7  ;;  %v1434_v63 = vmul.f32 %v1416_v45, %v6904_v12  ;;  %v8264_v12 = vld [vmem:[#allocation24_spill] sm:$0xff]  ;;  %v446_v7 = vadd.f32 %v8266_v18, %v6805_v38 }
 0x3b0   :  { %v268_v35 = vadd.f32 %v8264_v12, %v6793_v37 }
 0x3b1   :  { %v6948_v5 = vadd.f32 %v1435_v53, %v1434_v63  ;;  %v1422_v55 = vadd.f32 %v5628_v27, %v1421_v40 }
 0x3b3   :  { %5631 = vtanh.f32 %v6948_v5  ;;  %v1426_v62 = vsel %vm1425_vm15, %v5628_v27, %v1422_v55  ;;  %v357_v27 = vadd.f32 %v8265_v57, %v6795_v41 }
 0x3b4   :  { %v1431_v44 = vsel %vm1428_vm0, %v1430_v29, %v1426_v62 }
 0x3b9   :  { %v5632_v52 = vpop.eup %5631 }
 0x3ba   :  { %v1438_v23 = vmul.f32 %v5632_v52, %v1431_v44 }
 0x3bc   :  { %1440 = vst [vmem:[#allocation8 + $0x18] sm:$0xff] %v1438_v23  ;;  %v1448_v59 = vpack.c.bf16 %v1438_v23, %v1438_v23  ;;  %v8267_v23 = vld [vmem:[#allocation27_spill] sm:$0xff] }
 0x3be   :  { %1457 = vmatmul.bf16.vlgmr.msrb.gmra.mxu0 %v1448_v59  ;;  %1470 = vmatmul.bf16.vlgmr.msrb.gmra.mxu1 %v1448_v59 }
 0x3bf   :  { %1483 = vmatmul.bf16.vlgmr.msrb.gmra.mxu2 %v1448_v59  ;;  %1496 = vmatmul.bf16.vlgmr.msrb.gmra.mxu3 %v1448_v59  ;;  %v535_v59 = vadd.f32 %v8267_v23, %v6809_v54 }
 0x3c0   :  { %1707 = vmatpush.bf16.msrb.mxu0 %v6266_v16  ;;  %1720 = vmatpush.bf16.msrb.mxu1 %v6268_v20 }
 0x3c1   :  { %1733 = vmatpush.bf16.msrb.mxu2 %v6270_v21  ;;  %1746 = vmatpush.bf16.msrb.mxu3 %v6273_v24 }
 0x3c4   :  { %1708 = vmatpush.bf16.msrb.mxu0 %v6281_v28  ;;  %1721 = vmatpush.bf16.msrb.mxu1 %v6284_v32 }
 0x3c5   :  { %1734 = vmatpush.bf16.msrb.mxu2 %v6286_v33  ;;  %1747 = vmatpush.bf16.msrb.mxu3 %v6288_v36 }
 0x3c8   :  { %1709 = vmatpush.bf16.msrb.mxu0 %v6308_v42  ;;  %1722 = vmatpush.bf16.msrb.mxu1 %v6310_v46 }
 0x3c9   :  { %1735 = vmatpush.bf16.msrb.mxu2 %v6312_v47  ;;  %1748 = vmatpush.bf16.msrb.mxu3 %v6315_v50 }
 0x3cc   :  { %1710 = vmatpush.bf16.msrb.mxu0 %v6334_v56  ;;  %1723 = vmatpush.bf16.msrb.mxu1 %v6336_v60 }
 0x3cd   :  { %1736 = vmatpush.bf16.msrb.mxu2 %v6338_v61  ;;  %1749 = vmatpush.bf16.msrb.mxu3 %v6341_v0 }
 0x3d0   :  { %1711 = vmatpush.bf16.msrb.mxu0 %v6360_v6  ;;  %1724 = vmatpush.bf16.msrb.mxu1 %v6362_v8 }
 0x3d1   :  { %1737 = vmatpush.bf16.msrb.mxu2 %v6366_v11  ;;  %1750 = vmatpush.bf16.msrb.mxu3 %v6373_v15 }
 0x3d4   :  { %1712 = vmatpush.bf16.msrb.mxu0 %v6390_v26  ;;  %1725 = vmatpush.bf16.msrb.mxu1 %v6394_v30 }
 0x3d5   :  { %1738 = vmatpush.bf16.msrb.mxu2 %v6404_v39  ;;  %1751 = vmatpush.bf16.msrb.mxu3 %v6419_v51 }
 0x3d8   :  { %1713 = vmatpush.bf16.msrb.mxu0 %v6448_v4  ;;  %1726 = vmatpush.bf16.msrb.mxu1 %v6452_v9 }
 0x3d9   :  { %1739 = vmatpush.bf16.msrb.mxu2 %v6462_v22  ;;  %1752 = vmatpush.bf16.msrb.mxu3 %v6477_v49 }
 0x3dc   :  { %1714 = vmatpush.bf16.msrb.mxu0 %v6506_v2  ;;  %1727 = vmatpush.bf16.msrb.mxu1 %v6510_v17 }
 0x3dd   :  { %1740 = vmatpush.bf16.msrb.mxu2 %v6522_v48  ;;  %1753 = vmatpush.bf16.msrb.mxu3 %v6543_v1 }
 0x43b   :  { %v1458_v25 = vpop.f32.mrf.mxu0  ;;  %v1471_v14 = vpop.f32.mrf.mxu1 }
 0x43c   :  { %v1501_v34 = vadd.f32 %v1458_v25, %v268_v35  ;;  %v1502_v58 = vadd.f32 %v1471_v14, %v357_v27 }
 0x43e   :  { %v5425_v3 = vmul.f32 -1.442695, %v1501_v34  ;;  %v5426_v10 = vmul.f32 -1.442695, %v1502_v58 }
 0x440   :  { %5633 = vpow2.f32 %v5425_v3 }
 0x441   :  { %5635 = vpow2.f32 %v5426_v10 }
 0x442   :  { %v1484_v19 = vpop.f32.mrf.mxu2  ;;  %v1497_v31 = vpop.f32.mrf.mxu3 }
 0x443   :  { %v1503_v45 = vadd.f32 %v1484_v19, %v446_v7  ;;  %v1460_v53 = vpop.f32.mrf.mxu0  ;;  %v1473_v40 = vpop.f32.mrf.mxu1  ;;  %v1504_v57 = vadd.f32 %v1497_v31, %v535_v59 }
 0x445   :  { %v5427_v63 = vmul.f32 -1.442695, %v1503_v45 }
 0x446   :  { %v5634_v55 = vpop.eup %5633 }
 0x447   :  { %v5636_v13 = vpop.eup %5635  ;;  %v1514_v43 = vadd.f32 1.0, %v5634_v55  ;;  %5637 = vpow2.f32 %v5427_v63 }
 0x448   :  { %v1515_v62 = vadd.f32 1.0, %v5636_v13 }
 0x449   :  { %5639 = vrcp.f32 %v1514_v43  ;;  %v1528_v3 = vand.u32 2147483648, %v1514_v43  ;;  %v1526_v7 = vand.u32 2147483647, %v1514_v43  ;;  %vm1522_vm3 = vweird.f32 %v1514_v43 }
 0x44a   :  { %5641 = vrcp.f32 %v1515_v62  ;;  %v1486_v29 = vpop.f32.mrf.mxu2  ;;  %v1499_v52 = vpop.f32.mrf.mxu3  ;;  %v1543_v10 = vand.u32 2147483648, %v1515_v62  ;;  %v1541_v45 = vand.u32 2147483647, %v1515_v62  ;;  %vm1537_vm4 = vweird.f32 %v1515_v62 }
 0x44b   :  { %v1529_v63 = vor.u32 1.1754944e-38, %v1528_v3  ;;  %vm1527_vm7 = vcmp.eq.f32.partialorder %v1526_v7, 8.507059e+37 }
 0x44c   :  { %v1544_v13 = vor.u32 1.1754944e-38, %v1543_v10  ;;  %vm1542_vm8 = vcmp.eq.f32.partialorder %v1541_v45, 8.507059e+37  ;;  %v8269_v45 = vld [vmem:[#allocation29_spill] sm:$0xff] }
 0x44d   :  { %v5638_v44 = vpop.eup %5637 }
 0x44e   :  { %v1516_v12 = vadd.f32 1.0, %v5638_v44 }
 0x44f   :  { %v5640_v35 = vpop.eup %5639 }
 0x450   :  { %v5642_v27 = vpop.eup %5641  ;;  %v1518_v25 = vmul.f32 %v5640_v35, %v1514_v43  ;;  %5643 = vrcp.f32 %v1516_v12  ;;  %vm1523_vm1 = vweird.f32 %v5640_v35  ;;  %vm1552_vm10 = vweird.f32 %v1516_v12 }
 0x451   :  { %v1533_v14 = vmul.f32 %v5642_v27, %v1515_v62  ;;  %5645 = vtanh.f32 %v1504_v57  ;;  %vm1538_vm2 = vweird.f32 %v5642_v27  ;;  %vm1524_vm5 = vmor %vm1522_vm3, %vm1523_vm1 }
 0x452   :  { %v1519_v34 = vsub.f32 1.0, %v1518_v25  ;;  %vm1539_vm6 = vmor %vm1537_vm4, %vm1538_vm2 }
 0x453   :  { %v1534_v58 = vsub.f32 1.0, %v1533_v14 }
 0x454   :  { %v1520_v18 = vmul.f32 %v5640_v35, %v1519_v34 }
 0x455   :  { %v1535_v19 = vmul.f32 %v5642_v27, %v1534_v58  ;;  %v1558_v58 = vand.u32 2147483648, %v1516_v12 }
 0x456   :  { %v5644_v53 = vpop.eup %5643  ;;  %v1521_v40 = vadd.f32 %v5640_v35, %v1520_v18 }
 0x457   :  { %v1548_v31 = vmul.f32 %v5644_v53, %v1516_v12  ;;  %v1536_v55 = vadd.f32 %v5642_v27, %v1535_v19  ;;  %v5646_v52 = vpop.eup %5645  ;;  %vm1553_vm9 = vweird.f32 %v5644_v53  ;;  %v1559_v10 = vor.u32 1.1754944e-38, %v1558_v58 }
 0x458   :  { %v1525_v29 = vsel %vm1524_vm5, %v5640_v35, %v1521_v40  ;;  %v1556_v35 = vand.u32 2147483647, %v1516_v12  ;;  %vm1554_vm11 = vmor %vm1552_vm10, %vm1553_vm9 }
 0x459   :  { %v1549_v44 = vsub.f32 1.0, %v1548_v31  ;;  %v1530_v23 = vsel %vm1527_vm7, %v1529_v63, %v1525_v29  ;;  %v1540_v59 = vsel %vm1539_vm6, %v5642_v27, %v1536_v55 }
 0x45a   :  { %v1545_v57 = vsel %vm1542_vm8, %v1544_v13, %v1540_v59  ;;  %v1564_v25 = vmul.f32 %v5646_v52, %v1530_v23  ;;  %vm1557_vm12 = vcmp.eq.f32.partialorder %v1556_v35, 8.507059e+37  ;;  %v8270_v52 = vld [vmem:[#allocation30_spill] sm:$0xff] }
 0x45b   :  { %v1550_v14 = vmul.f32 %v5644_v53, %v1549_v44  ;;  %v1563_v34 = vmul.f32 %v1545_v57, %v6948_v5  ;;  %v8268_v5 = vld [vmem:[#allocation28_spill] sm:$0xff]  ;;  %v448_v44 = vadd.f32 %v8270_v52, %v6805_v38 }
 0x45c   :  { %v270_v12 = vadd.f32 %v8268_v5, %v6793_v37 }
 0x45d   :  { %v6992_v43 = vadd.f32 %v1564_v25, %v1563_v34  ;;  %v1551_v62 = vadd.f32 %v5644_v53, %v1550_v14 }
 0x45f   :  { %5647 = vtanh.f32 %v6992_v43  ;;  %v1555_v3 = vsel %vm1554_vm11, %v5644_v53, %v1551_v62  ;;  %v359_v53 = vadd.f32 %v8269_v45, %v6795_v41 }
 0x460   :  { %v1560_v18 = vsel %vm1557_vm12, %v1559_v10, %v1555_v3 }
 0x465   :  { %v5648_v27 = vpop.eup %5647 }
 0x466   :  { %v1567_v7 = vmul.f32 %v5648_v27, %v1560_v18 }
 0x468   :  { %1569 = vst [vmem:[#allocation8 + $0x20] sm:$0xff] %v1567_v7  ;;  %v1577_v19 = vpack.c.bf16 %v1567_v7, %v1567_v7  ;;  %v8271_v7 = vld [vmem:[#allocation31_spill] sm:$0xff] }
 0x46a   :  { %1586 = vmatmul.bf16.vlgmr.msra.gmra.mxu0 %v1577_v19  ;;  %1599 = vmatmul.bf16.vlgmr.msra.gmra.mxu1 %v1577_v19 }
 0x46b   :  { %1612 = vmatmul.bf16.vlgmr.msra.gmra.mxu2 %v1577_v19  ;;  %1625 = vmatmul.bf16.vlgmr.msra.gmra.mxu3 %v1577_v19  ;;  %v537_v19 = vadd.f32 %v8271_v7, %v6809_v54 }
 0x46c   :  { %1836 = vmatpush.bf16.msra.mxu0 %v6266_v16  ;;  %1849 = vmatpush.bf16.msra.mxu1 %v6268_v20 }
 0x46d   :  { %1862 = vmatpush.bf16.msra.mxu2 %v6270_v21  ;;  %1875 = vmatpush.bf16.msra.mxu3 %v6273_v24 }
 0x470   :  { %1837 = vmatpush.bf16.msra.mxu0 %v6281_v28  ;;  %1850 = vmatpush.bf16.msra.mxu1 %v6284_v32 }
 0x471   :  { %1863 = vmatpush.bf16.msra.mxu2 %v6286_v33  ;;  %1876 = vmatpush.bf16.msra.mxu3 %v6288_v36 }
 0x474   :  { %1838 = vmatpush.bf16.msra.mxu0 %v6308_v42  ;;  %1851 = vmatpush.bf16.msra.mxu1 %v6310_v46 }
 0x475   :  { %1864 = vmatpush.bf16.msra.mxu2 %v6312_v47  ;;  %1877 = vmatpush.bf16.msra.mxu3 %v6315_v50 }
 0x478   :  { %1839 = vmatpush.bf16.msra.mxu0 %v6334_v56  ;;  %1852 = vmatpush.bf16.msra.mxu1 %v6336_v60 }
 0x479   :  { %1865 = vmatpush.bf16.msra.mxu2 %v6338_v61  ;;  %1878 = vmatpush.bf16.msra.mxu3 %v6341_v0 }
 0x47c   :  { %1840 = vmatpush.bf16.msra.mxu0 %v6360_v6  ;;  %1853 = vmatpush.bf16.msra.mxu1 %v6362_v8 }
 0x47d   :  { %1866 = vmatpush.bf16.msra.mxu2 %v6366_v11  ;;  %1879 = vmatpush.bf16.msra.mxu3 %v6373_v15 }
 0x480   :  { %1841 = vmatpush.bf16.msra.mxu0 %v6390_v26  ;;  %1854 = vmatpush.bf16.msra.mxu1 %v6394_v30 }
 0x481   :  { %1867 = vmatpush.bf16.msra.mxu2 %v6404_v39  ;;  %1880 = vmatpush.bf16.msra.mxu3 %v6419_v51 }
 0x484   :  { %1842 = vmatpush.bf16.msra.mxu0 %v6448_v4  ;;  %1855 = vmatpush.bf16.msra.mxu1 %v6452_v9 }
 0x485   :  { %1868 = vmatpush.bf16.msra.mxu2 %v6462_v22  ;;  %1881 = vmatpush.bf16.msra.mxu3 %v6477_v49 }
 0x488   :  { %1843 = vmatpush.bf16.msra.mxu0 %v6506_v2  ;;  %1856 = vmatpush.bf16.msra.mxu1 %v6510_v17 }
 0x489   :  { %1869 = vmatpush.bf16.msra.mxu2 %v6522_v48  ;;  %1882 = vmatpush.bf16.msra.mxu3 %v6543_v1 }
 0x4e7   :  { %v1587_v40 = vpop.f32.mrf.mxu0  ;;  %v1600_v31 = vpop.f32.mrf.mxu1 }
 0x4e8   :  { %v1630_v63 = vadd.f32 %v1587_v40, %v270_v12  ;;  %v1631_v55 = vadd.f32 %v1600_v31, %v359_v53 }
 0x4ea   :  { %v5428_v13 = vmul.f32 -1.442695, %v1630_v63  ;;  %v5429_v29 = vmul.f32 -1.442695, %v1631_v55 }
 0x4ec   :  { %5649 = vpow2.f32 %v5428_v13 }
 0x4ed   :  { %5651 = vpow2.f32 %v5429_v29 }
 0x4ee   :  { %v1613_v23 = vpop.f32.mrf.mxu2  ;;  %v1626_v59 = vpop.f32.mrf.mxu3 }
 0x4ef   :  { %v1632_v57 = vadd.f32 %v1613_v23, %v448_v44  ;;  %v1589_v25 = vpop.f32.mrf.mxu0  ;;  %v1602_v14 = vpop.f32.mrf.mxu1  ;;  %v1633_v45 = vadd.f32 %v1626_v59, %v537_v19 }
 0x4f1   :  { %v5430_v34 = vmul.f32 -1.442695, %v1632_v57 }
 0x4f2   :  { %v5650_v62 = vpop.eup %5649 }
 0x4f3   :  { %v5652_v58 = vpop.eup %5651  ;;  %v1643_v35 = vadd.f32 1.0, %v5650_v62  ;;  %5653 = vpow2.f32 %v5430_v34 }
 0x4f4   :  { %v1644_v3 = vadd.f32 1.0, %v5652_v58 }
 0x4f5   :  { %5655 = vrcp.f32 %v1643_v35  ;;  %v1657_v13 = vand.u32 2147483648, %v1643_v35  ;;  %v1655_v44 = vand.u32 2147483647, %v1643_v35  ;;  %vm1651_vm15 = vweird.f32 %v1643_v35 }
 0x4f6   :  { %5657 = vrcp.f32 %v1644_v3  ;;  %v1615_v10 = vpop.f32.mrf.mxu2  ;;  %v1628_v27 = vpop.f32.mrf.mxu3  ;;  %v1672_v29 = vand.u32 2147483648, %v1644_v3  ;;  %v1670_v57 = vand.u32 2147483647, %v1644_v3  ;;  %vm1666_vm0 = vweird.f32 %v1644_v3 }
 0x4f7   :  { %v1658_v34 = vor.u32 1.1754944e-38, %v1657_v13  ;;  %vm1656_vm3 = vcmp.eq.f32.partialorder %v1655_v44, 8.507059e+37 }
 0x4f8   :  { %v1673_v58 = vor.u32 1.1754944e-38, %v1672_v29  ;;  %vm1671_vm4 = vcmp.eq.f32.partialorder %v1670_v57, 8.507059e+37  ;;  %v8273_v57 = vld [vmem:[#allocation33_spill] sm:$0xff] }
 0x4f9   :  { %v5654_v18 = vpop.eup %5653 }
 0x4fa   :  { %v1645_v5 = vadd.f32 1.0, %v5654_v18 }
 0x4fb   :  { %v5656_v12 = vpop.eup %5655 }
 0x4fc   :  { %v5658_v53 = vpop.eup %5657  ;;  %v1647_v40 = vmul.f32 %v5656_v12, %v1643_v35  ;;  %5659 = vrcp.f32 %v1645_v5  ;;  %vm1652_vm13 = vweird.f32 %v5656_v12  ;;  %vm1681_vm6 = vweird.f32 %v1645_v5 }
 0x4fd   :  { %v1662_v31 = vmul.f32 %v5658_v53, %v1644_v3  ;;  %5661 = vtanh.f32 %v1633_v45  ;;  %vm1667_vm14 = vweird.f32 %v5658_v53  ;;  %vm1653_vm1 = vmor %vm1651_vm15, %vm1652_vm13 }
 0x4fe   :  { %v1648_v63 = vsub.f32 1.0, %v1647_v40  ;;  %vm1668_vm2 = vmor %vm1666_vm0, %vm1667_vm14 }
 0x4ff   :  { %v1663_v55 = vsub.f32 1.0, %v1662_v31 }
 0x500   :  { %v1649_v52 = vmul.f32 %v5656_v12, %v1648_v63 }
 0x501   :  { %v1664_v23 = vmul.f32 %v5658_v53, %v1663_v55  ;;  %v1687_v55 = vand.u32 2147483648, %v1645_v5 }
 0x502   :  { %v5660_v25 = vpop.eup %5659  ;;  %v1650_v14 = vadd.f32 %v5656_v12, %v1649_v52 }
 0x503   :  { %v1677_v59 = vmul.f32 %v5660_v25, %v1645_v5  ;;  %v1665_v62 = vadd.f32 %v5658_v53, %v1664_v23  ;;  %v5662_v27 = vpop.eup %5661  ;;  %vm1682_vm5 = vweird.f32 %v5660_v25  ;;  %v1688_v29 = vor.u32 1.1754944e-38, %v1687_v55 }
 0x504   :  { %v1654_v10 = vsel %vm1653_vm1, %v5656_v12, %v1650_v14  ;;  %v1685_v12 = vand.u32 2147483647, %v1645_v5  ;;  %vm1683_vm7 = vmor %vm1681_vm6, %vm1682_vm5 }
 0x505   :  { %v1678_v18 = vsub.f32 1.0, %v1677_v59  ;;  %v1659_v7 = vsel %vm1656_vm3, %v1658_v34, %v1654_v10  ;;  %v1669_v19 = vsel %vm1668_vm2, %v5658_v53, %v1665_v62 }
 0x506   :  { %v1674_v45 = vsel %vm1671_vm4, %v1673_v58, %v1669_v19  ;;  %v1693_v40 = vmul.f32 %v5662_v27, %v1659_v7  ;;  %vm1686_vm8 = vcmp.eq.f32.partialorder %v1685_v12, 8.507059e+37  ;;  %v8274_v27 = vld [vmem:[#allocation34_spill] sm:$0xff] }
 0x507   :  { %v1679_v31 = vmul.f32 %v5660_v25, %v1678_v18  ;;  %v1692_v63 = vmul.f32 %v1674_v45, %v6992_v43  ;;  %v8272_v43 = vld [vmem:[#allocation32_spill] sm:$0xff]  ;;  %v451_v18 = vadd.f32 %v8274_v27, %v6805_v38 }
 0x508   :  { %v273_v5 = vadd.f32 %v8272_v43, %v6793_v37 }
 0x509   :  { %v7036_v35 = vadd.f32 %v1693_v40, %v1692_v63  ;;  %v1680_v3 = vadd.f32 %v5660_v25, %v1679_v31 }
 0x50b   :  { %5663 = vtanh.f32 %v7036_v35  ;;  %v1684_v13 = vsel %vm1683_vm7, %v5660_v25, %v1680_v3  ;;  %v362_v25 = vadd.f32 %v8273_v57, %v6795_v41 }
 0x50c   :  { %v1689_v52 = vsel %vm1686_vm8, %v1688_v29, %v1684_v13 }
 0x511   :  { %v5664_v53 = vpop.eup %5663 }
 0x512   :  { %v1696_v44 = vmul.f32 %v5664_v53, %v1689_v52 }
 0x514   :  { %1698 = vst [vmem:[#allocation8 + $0x28] sm:$0xff] %v1696_v44  ;;  %v1706_v23 = vpack.c.bf16 %v1696_v44, %v1696_v44  ;;  %v8275_v44 = vld [vmem:[#allocation35_spill] sm:$0xff] }
 0x516   :  { %1715 = vmatmul.bf16.vlgmr.msrb.gmra.mxu0 %v1706_v23  ;;  %1728 = vmatmul.bf16.vlgmr.msrb.gmra.mxu1 %v1706_v23 }
 0x517   :  { %1741 = vmatmul.bf16.vlgmr.msrb.gmra.mxu2 %v1706_v23  ;;  %1754 = vmatmul.bf16.vlgmr.msrb.gmra.mxu3 %v1706_v23  ;;  %v540_v23 = vadd.f32 %v8275_v44, %v6809_v54 }
 0x518   :  { %1965 = vmatpush.bf16.msrb.mxu0 %v6266_v16  ;;  %1978 = vmatpush.bf16.msrb.mxu1 %v6268_v20 }
 0x519   :  { %1991 = vmatpush.bf16.msrb.mxu2 %v6270_v21  ;;  %2004 = vmatpush.bf16.msrb.mxu3 %v6273_v24 }
 0x51c   :  { %1966 = vmatpush.bf16.msrb.mxu0 %v6281_v28  ;;  %1979 = vmatpush.bf16.msrb.mxu1 %v6284_v32 }
 0x51d   :  { %1992 = vmatpush.bf16.msrb.mxu2 %v6286_v33  ;;  %2005 = vmatpush.bf16.msrb.mxu3 %v6288_v36 }
 0x520   :  { %1967 = vmatpush.bf16.msrb.mxu0 %v6308_v42  ;;  %1980 = vmatpush.bf16.msrb.mxu1 %v6310_v46 }
 0x521   :  { %1993 = vmatpush.bf16.msrb.mxu2 %v6312_v47  ;;  %2006 = vmatpush.bf16.msrb.mxu3 %v6315_v50 }
 0x524   :  { %1968 = vmatpush.bf16.msrb.mxu0 %v6334_v56  ;;  %1981 = vmatpush.bf16.msrb.mxu1 %v6336_v60 }
 0x525   :  { %1994 = vmatpush.bf16.msrb.mxu2 %v6338_v61  ;;  %2007 = vmatpush.bf16.msrb.mxu3 %v6341_v0 }
 0x528   :  { %1969 = vmatpush.bf16.msrb.mxu0 %v6360_v6  ;;  %1982 = vmatpush.bf16.msrb.mxu1 %v6362_v8 }
 0x529   :  { %1995 = vmatpush.bf16.msrb.mxu2 %v6366_v11  ;;  %2008 = vmatpush.bf16.msrb.mxu3 %v6373_v15 }
 0x52c   :  { %1970 = vmatpush.bf16.msrb.mxu0 %v6390_v26  ;;  %1983 = vmatpush.bf16.msrb.mxu1 %v6394_v30 }
 0x52d   :  { %1996 = vmatpush.bf16.msrb.mxu2 %v6404_v39  ;;  %2009 = vmatpush.bf16.msrb.mxu3 %v6419_v51 }
 0x530   :  { %1971 = vmatpush.bf16.msrb.mxu0 %v6448_v4  ;;  %1984 = vmatpush.bf16.msrb.mxu1 %v6452_v9 }
 0x531   :  { %1997 = vmatpush.bf16.msrb.mxu2 %v6462_v22  ;;  %2010 = vmatpush.bf16.msrb.mxu3 %v6477_v49 }
 0x534   :  { %1972 = vmatpush.bf16.msrb.mxu0 %v6506_v2  ;;  %1985 = vmatpush.bf16.msrb.mxu1 %v6510_v17 }
 0x535   :  { %1998 = vmatpush.bf16.msrb.mxu2 %v6522_v48  ;;  %2011 = vmatpush.bf16.msrb.mxu3 %v6543_v1 }
 0x593   :  { %v1716_v14 = vpop.f32.mrf.mxu0  ;;  %v1729_v59 = vpop.f32.mrf.mxu1 }
 0x594   :  { %v1759_v34 = vadd.f32 %v1716_v14, %v273_v5  ;;  %v1760_v62 = vadd.f32 %v1729_v59, %v362_v25 }
 0x596   :  { %v5431_v58 = vmul.f32 -1.442695, %v1759_v34  ;;  %v5432_v10 = vmul.f32 -1.442695, %v1760_v62 }
 0x598   :  { %5665 = vpow2.f32 %v5431_v58 }
 0x599   :  { %5667 = vpow2.f32 %v5432_v10 }
 0x59a   :  { %v1742_v7 = vpop.f32.mrf.mxu2  ;;  %v1755_v19 = vpop.f32.mrf.mxu3 }
 0x59b   :  { %v1761_v45 = vadd.f32 %v1742_v7, %v451_v18  ;;  %v1718_v40 = vpop.f32.mrf.mxu0  ;;  %v1731_v31 = vpop.f32.mrf.mxu1  ;;  %v1762_v57 = vadd.f32 %v1755_v19, %v540_v23 }
 0x59d   :  { %v5433_v63 = vmul.f32 -1.442695, %v1761_v45 }
 0x59e   :  { %v5666_v3 = vpop.eup %5665 }
 0x59f   :  { %v5668_v55 = vpop.eup %5667  ;;  %v1772_v12 = vadd.f32 1.0, %v5666_v3  ;;  %5669 = vpow2.f32 %v5433_v63 }
 0x5a0   :  { %v1773_v13 = vadd.f32 1.0, %v5668_v55 }
 0x5a1   :  { %5671 = vrcp.f32 %v1772_v12  ;;  %v1786_v58 = vand.u32 2147483648, %v1772_v12  ;;  %v1784_v18 = vand.u32 2147483647, %v1772_v12  ;;  %vm1780_vm11 = vweird.f32 %v1772_v12 }
 0x5a2   :  { %5673 = vrcp.f32 %v1773_v13  ;;  %v1744_v29 = vpop.f32.mrf.mxu2  ;;  %v1757_v53 = vpop.f32.mrf.mxu3  ;;  %v1801_v10 = vand.u32 2147483648, %v1773_v13  ;;  %v1799_v45 = vand.u32 2147483647, %v1773_v13  ;;  %vm1795_vm12 = vweird.f32 %v1773_v13 }
 0x5a3   :  { %v1787_v63 = vor.u32 1.1754944e-38, %v1786_v58  ;;  %vm1785_vm15 = vcmp.eq.f32.partialorder %v1784_v18, 8.507059e+37 }
 0x5a4   :  { %v1802_v55 = vor.u32 1.1754944e-38, %v1801_v10  ;;  %vm1800_vm0 = vcmp.eq.f32.partialorder %v1799_v45, 8.507059e+37  ;;  %v8277_v45 = vld [vmem:[#allocation37_spill] sm:$0xff] }
 0x5a5   :  { %v5670_v52 = vpop.eup %5669 }
 0x5a6   :  { %v1774_v43 = vadd.f32 1.0, %v5670_v52 }
 0x5a7   :  { %v5672_v5 = vpop.eup %5671 }
 0x5a8   :  { %v5674_v25 = vpop.eup %5673  ;;  %v1776_v14 = vmul.f32 %v5672_v5, %v1772_v12  ;;  %5675 = vrcp.f32 %v1774_v43  ;;  %vm1781_vm9 = vweird.f32 %v5672_v5  ;;  %vm1810_vm2 = vweird.f32 %v1774_v43 }
 0x5a9   :  { %v1791_v59 = vmul.f32 %v5674_v25, %v1773_v13  ;;  %5677 = vtanh.f32 %v1762_v57  ;;  %vm1796_vm10 = vweird.f32 %v5674_v25  ;;  %vm1782_vm13 = vmor %vm1780_vm11, %vm1781_vm9 }
 0x5aa   :  { %v1777_v34 = vsub.f32 1.0, %v1776_v14  ;;  %vm1797_vm14 = vmor %vm1795_vm12, %vm1796_vm10 }
 0x5ab   :  { %v1792_v62 = vsub.f32 1.0, %v1791_v59 }
 0x5ac   :  { %v1778_v27 = vmul.f32 %v5672_v5, %v1777_v34 }
 0x5ad   :  { %v1793_v7 = vmul.f32 %v5674_v25, %v1792_v62  ;;  %v1816_v62 = vand.u32 2147483648, %v1774_v43 }
 0x5ae   :  { %v5676_v40 = vpop.eup %5675  ;;  %v1779_v31 = vadd.f32 %v5672_v5, %v1778_v27 }
 0x5af   :  { %v1806_v19 = vmul.f32 %v5676_v40, %v1774_v43  ;;  %v1794_v3 = vadd.f32 %v5674_v25, %v1793_v7  ;;  %v5678_v53 = vpop.eup %5677  ;;  %vm1811_vm1 = vweird.f32 %v5676_v40  ;;  %v1817_v10 = vor.u32 1.1754944e-38, %v1816_v62 }
 0x5b0   :  { %v1783_v29 = vsel %vm1782_vm13, %v5672_v5, %v1779_v31  ;;  %v1814_v5 = vand.u32 2147483647, %v1774_v43  ;;  %vm1812_vm3 = vmor %vm1810_vm2, %vm1811_vm1 }
 0x5b1   :  { %v1807_v52 = vsub.f32 1.0, %v1806_v19  ;;  %v1788_v44 = vsel %vm1785_vm15, %v1787_v63, %v1783_v29  ;;  %v1798_v23 = vsel %vm1797_vm14, %v5674_v25, %v1794_v3 }
 0x5b2   :  { %v1803_v57 = vsel %vm1800_vm0, %v1802_v55, %v1798_v23  ;;  %v1822_v14 = vmul.f32 %v5678_v53, %v1788_v44  ;;  %vm1815_vm4 = vcmp.eq.f32.partialorder %v1814_v5, 8.507059e+37  ;;  %v8278_v53 = vld [vmem:[#allocation38_spill] sm:$0xff] }
 0x5b3   :  { %v1808_v59 = vmul.f32 %v5676_v40, %v1807_v52  ;;  %v1821_v34 = vmul.f32 %v1803_v57, %v7036_v35  ;;  %v8276_v35 = vld [vmem:[#allocation36_spill] sm:$0xff]  ;;  %v453_v52 = vadd.f32 %v8278_v53, %v6805_v38 }
 0x5b4   :  { %v275_v43 = vadd.f32 %v8276_v35, %v6793_v37 }
 0x5b5   :  { %v7080_v12 = vadd.f32 %v1822_v14, %v1821_v34  ;;  %v1809_v13 = vadd.f32 %v5676_v40, %v1808_v59 }
 0x5b7   :  { %5679 = vtanh.f32 %v7080_v12  ;;  %v1813_v58 = vsel %vm1812_vm3, %v5676_v40, %v1809_v13  ;;  %v364_v40 = vadd.f32 %v8277_v45, %v6795_v41 }
 0x5b8   :  { %v1818_v27 = vsel %vm1815_vm4, %v1817_v10, %v1813_v58 }
 0x5bd   :  { %v5680_v25 = vpop.eup %5679 }
 0x5be   :  { %v1825_v18 = vmul.f32 %v5680_v25, %v1818_v27 }
 0x5c0   :  { %1827 = vst [vmem:[#allocation8 + $0x30] sm:$0xff] %v1825_v18  ;;  %v1835_v7 = vpack.c.bf16 %v1825_v18, %v1825_v18  ;;  %v8279_v18 = vld [vmem:[#allocation39_spill] sm:$0xff] }
 0x5c2   :  { %1844 = vmatmul.bf16.vlgmr.msra.gmra.mxu0 %v1835_v7  ;;  %1857 = vmatmul.bf16.vlgmr.msra.gmra.mxu1 %v1835_v7 }
 0x5c3   :  { %1870 = vmatmul.bf16.vlgmr.msra.gmra.mxu2 %v1835_v7  ;;  %1883 = vmatmul.bf16.vlgmr.msra.gmra.mxu3 %v1835_v7  ;;  %v542_v7 = vadd.f32 %v8279_v18, %v6809_v54 }
 0x5c4   :  { %2094 = vmatpush.bf16.msra.mxu0 %v6266_v16  ;;  %2107 = vmatpush.bf16.msra.mxu1 %v6268_v20 }
 0x5c5   :  { %2120 = vmatpush.bf16.msra.mxu2 %v6270_v21  ;;  %2133 = vmatpush.bf16.msra.mxu3 %v6273_v24 }
 0x5c8   :  { %2095 = vmatpush.bf16.msra.mxu0 %v6281_v28  ;;  %2108 = vmatpush.bf16.msra.mxu1 %v6284_v32 }
 0x5c9   :  { %2121 = vmatpush.bf16.msra.mxu2 %v6286_v33  ;;  %2134 = vmatpush.bf16.msra.mxu3 %v6288_v36 }
 0x5cc   :  { %2096 = vmatpush.bf16.msra.mxu0 %v6308_v42  ;;  %2109 = vmatpush.bf16.msra.mxu1 %v6310_v46 }
 0x5cd   :  { %2122 = vmatpush.bf16.msra.mxu2 %v6312_v47  ;;  %2135 = vmatpush.bf16.msra.mxu3 %v6315_v50 }
 0x5d0   :  { %2097 = vmatpush.bf16.msra.mxu0 %v6334_v56  ;;  %2110 = vmatpush.bf16.msra.mxu1 %v6336_v60 }
 0x5d1   :  { %2123 = vmatpush.bf16.msra.mxu2 %v6338_v61  ;;  %2136 = vmatpush.bf16.msra.mxu3 %v6341_v0 }
 0x5d4   :  { %2098 = vmatpush.bf16.msra.mxu0 %v6360_v6  ;;  %2111 = vmatpush.bf16.msra.mxu1 %v6362_v8 }
 0x5d5   :  { %2124 = vmatpush.bf16.msra.mxu2 %v6366_v11  ;;  %2137 = vmatpush.bf16.msra.mxu3 %v6373_v15 }
 0x5d8   :  { %2099 = vmatpush.bf16.msra.mxu0 %v6390_v26  ;;  %2112 = vmatpush.bf16.msra.mxu1 %v6394_v30 }
 0x5d9   :  { %2125 = vmatpush.bf16.msra.mxu2 %v6404_v39  ;;  %2138 = vmatpush.bf16.msra.mxu3 %v6419_v51 }
 0x5dc   :  { %2100 = vmatpush.bf16.msra.mxu0 %v6448_v4  ;;  %2113 = vmatpush.bf16.msra.mxu1 %v6452_v9 }
 0x5dd   :  { %2126 = vmatpush.bf16.msra.mxu2 %v6462_v22  ;;  %2139 = vmatpush.bf16.msra.mxu3 %v6477_v49 }
 0x5e0   :  { %2101 = vmatpush.bf16.msra.mxu0 %v6506_v2  ;;  %2114 = vmatpush.bf16.msra.mxu1 %v6510_v17 }
 0x5e1   :  { %2127 = vmatpush.bf16.msra.mxu2 %v6522_v48  ;;  %2140 = vmatpush.bf16.msra.mxu3 %v6543_v1 }
 0x63f   :  { %v1845_v31 = vpop.f32.mrf.mxu0  ;;  %v1858_v19 = vpop.f32.mrf.mxu1 }
 0x640   :  { %v1888_v63 = vadd.f32 %v1845_v31, %v275_v43  ;;  %v1889_v3 = vadd.f32 %v1858_v19, %v364_v40 }
 0x642   :  { %v5434_v55 = vmul.f32 -1.442695, %v1888_v63  ;;  %v5435_v29 = vmul.f32 -1.442695, %v1889_v3 }
 0x644   :  { %5681 = vpow2.f32 %v5434_v55 }
 0x645   :  { %5683 = vpow2.f32 %v5435_v29 }
 0x646   :  { %v1871_v44 = vpop.f32.mrf.mxu2  ;;  %v1884_v23 = vpop.f32.mrf.mxu3 }
 0x647   :  { %v1890_v57 = vadd.f32 %v1871_v44, %v453_v52  ;;  %v1847_v14 = vpop.f32.mrf.mxu0  ;;  %v1860_v59 = vpop.f32.mrf.mxu1  ;;  %v1891_v45 = vadd.f32 %v1884_v23, %v542_v7 }
 0x649   :  { %v5436_v34 = vmul.f32 -1.442695, %v1890_v57 }
 0x64a   :  { %v5682_v13 = vpop.eup %5681 }
 0x64b   :  { %v5684_v62 = vpop.eup %5683  ;;  %v1901_v5 = vadd.f32 1.0, %v5682_v13  ;;  %5685 = vpow2.f32 %v5436_v34 }
 0x64c   :  { %v1902_v58 = vadd.f32 1.0, %v5684_v62 }
 0x64d   :  { %5687 = vrcp.f32 %v1901_v5  ;;  %v1915_v55 = vand.u32 2147483648, %v1901_v5  ;;  %v1913_v52 = vand.u32 2147483647, %v1901_v5  ;;  %vm1909_vm7 = vweird.f32 %v1901_v5 }
 0x64e   :  { %5689 = vrcp.f32 %v1902_v58  ;;  %v1873_v10 = vpop.f32.mrf.mxu2  ;;  %v1886_v25 = vpop.f32.mrf.mxu3  ;;  %v1930_v29 = vand.u32 2147483648, %v1902_v58  ;;  %v1928_v57 = vand.u32 2147483647, %v1902_v58  ;;  %vm1924_vm8 = vweird.f32 %v1902_v58 }
 0x64f   :  { %v1916_v34 = vor.u32 1.1754944e-38, %v1915_v55  ;;  %vm1914_vm11 = vcmp.eq.f32.partialorder %v1913_v52, 8.507059e+37 }
 0x650   :  { %v1931_v62 = vor.u32 1.1754944e-38, %v1930_v29  ;;  %vm1929_vm12 = vcmp.eq.f32.partialorder %v1928_v57, 8.507059e+37  ;;  %v8281_v57 = vld [vmem:[#allocation41_spill] sm:$0xff] }
 0x651   :  { %v5686_v27 = vpop.eup %5685 }
 0x652   :  { %v1903_v35 = vadd.f32 1.0, %v5686_v27 }
 0x653   :  { %v5688_v43 = vpop.eup %5687 }
 0x654   :  { %v5690_v40 = vpop.eup %5689  ;;  %v1905_v31 = vmul.f32 %v5688_v43, %v1901_v5  ;;  %5691 = vrcp.f32 %v1903_v35  ;;  %vm1910_vm5 = vweird.f32 %v5688_v43  ;;  %vm1939_vm14 = vweird.f32 %v1903_v35 }
 0x655   :  { %v1920_v19 = vmul.f32 %v5690_v40, %v1902_v58  ;;  %5693 = vtanh.f32 %v1891_v45  ;;  %vm1925_vm6 = vweird.f32 %v5690_v40  ;;  %vm1911_vm9 = vmor %vm1909_vm7, %vm1910_vm5 }
 0x656   :  { %v1906_v63 = vsub.f32 1.0, %v1905_v31  ;;  %vm1926_vm10 = vmor %vm1924_vm8, %vm1925_vm6 }
 0x657   :  { %v1921_v3 = vsub.f32 1.0, %v1920_v19 }
 0x658   :  { %v1907_v53 = vmul.f32 %v5688_v43, %v1906_v63 }
 0x659   :  { %v1922_v44 = vmul.f32 %v5690_v40, %v1921_v3  ;;  %v1945_v3 = vand.u32 2147483648, %v1903_v35 }
 0x65a   :  { %v5692_v14 = vpop.eup %5691  ;;  %v1908_v59 = vadd.f32 %v5688_v43, %v1907_v53 }
 0x65b   :  { %v1935_v23 = vmul.f32 %v5692_v14, %v1903_v35  ;;  %v1923_v13 = vadd.f32 %v5690_v40, %v1922_v44  ;;  %v5694_v25 = vpop.eup %5693  ;;  %vm1940_vm13 = vweird.f32 %v5692_v14  ;;  %v1946_v29 = vor.u32 1.1754944e-38, %v1945_v3 }
 0x65c   :  { %v1912_v10 = vsel %vm1911_vm9, %v5688_v43, %v1908_v59  ;;  %v1943_v43 = vand.u32 2147483647, %v1903_v35  ;;  %vm1941_vm15 = vmor %vm1939_vm14, %vm1940_vm13 }
 0x65d   :  { %v1936_v27 = vsub.f32 1.0, %v1935_v23  ;;  %v1917_v18 = vsel %vm1914_vm11, %v1916_v34, %v1912_v10  ;;  %v1927_v7 = vsel %vm1926_vm10, %v5690_v40, %v1923_v13 }
 0x65e   :  { %v1932_v45 = vsel %vm1929_vm12, %v1931_v62, %v1927_v7  ;;  %v1951_v31 = vmul.f32 %v5694_v25, %v1917_v18  ;;  %vm1944_vm0 = vcmp.eq.f32.partialorder %v1943_v43, 8.507059e+37  ;;  %v8282_v25 = vld [vmem:[#allocation42_spill] sm:$0xff] }
 0x65f   :  { %v1937_v19 = vmul.f32 %v5692_v14, %v1936_v27  ;;  %v1950_v63 = vmul.f32 %v1932_v45, %v7080_v12  ;;  %v8280_v12 = vld [vmem:[#allocation40_spill] sm:$0xff]  ;;  %v456_v27 = vadd.f32 %v8282_v25, %v6805_v38 }
 0x660   :  { %v278_v35 = vadd.f32 %v8280_v12, %v6793_v37 }
 0x661   :  { %v7124_v5 = vadd.f32 %v1951_v31, %v1950_v63  ;;  %v1938_v58 = vadd.f32 %v5692_v14, %v1937_v19 }
 0x663   :  { %5695 = vtanh.f32 %v7124_v5  ;;  %v1942_v55 = vsel %vm1941_vm15, %v5692_v14, %v1938_v58  ;;  %v367_v14 = vadd.f32 %v8281_v57, %v6795_v41 }
 0x664   :  { %v1947_v53 = vsel %vm1944_vm0, %v1946_v29, %v1942_v55 }
 0x669   :  { %v5696_v40 = vpop.eup %5695 }
 0x66a   :  { %v1954_v52 = vmul.f32 %v5696_v40, %v1947_v53 }
 0x66c   :  { %1956 = vst [vmem:[#allocation8 + $0x38] sm:$0xff] %v1954_v52  ;;  %v1964_v44 = vpack.c.bf16 %v1954_v52, %v1954_v52  ;;  %v8283_v52 = vld [vmem:[#allocation43_spill] sm:$0xff] }
 0x66e   :  { %1973 = vmatmul.bf16.vlgmr.msrb.gmra.mxu0 %v1964_v44  ;;  %1986 = vmatmul.bf16.vlgmr.msrb.gmra.mxu1 %v1964_v44 }
 0x66f   :  { %1999 = vmatmul.bf16.vlgmr.msrb.gmra.mxu2 %v1964_v44  ;;  %2012 = vmatmul.bf16.vlgmr.msrb.gmra.mxu3 %v1964_v44  ;;  %v545_v44 = vadd.f32 %v8283_v52, %v6809_v54 }
 0x670   :  { %2223 = vmatpush.bf16.msrb.mxu0 %v6266_v16  ;;  %2236 = vmatpush.bf16.msrb.mxu1 %v6268_v20 }
 0x671   :  { %2249 = vmatpush.bf16.msrb.mxu2 %v6270_v21  ;;  %2262 = vmatpush.bf16.msrb.mxu3 %v6273_v24 }
 0x674   :  { %2224 = vmatpush.bf16.msrb.mxu0 %v6281_v28  ;;  %2237 = vmatpush.bf16.msrb.mxu1 %v6284_v32 }
 0x675   :  { %2250 = vmatpush.bf16.msrb.mxu2 %v6286_v33  ;;  %2263 = vmatpush.bf16.msrb.mxu3 %v6288_v36 }
 0x678   :  { %2225 = vmatpush.bf16.msrb.mxu0 %v6308_v42  ;;  %2238 = vmatpush.bf16.msrb.mxu1 %v6310_v46 }
 0x679   :  { %2251 = vmatpush.bf16.msrb.mxu2 %v6312_v47  ;;  %2264 = vmatpush.bf16.msrb.mxu3 %v6315_v50 }
 0x67c   :  { %2226 = vmatpush.bf16.msrb.mxu0 %v6334_v56  ;;  %2239 = vmatpush.bf16.msrb.mxu1 %v6336_v60 }
 0x67d   :  { %2252 = vmatpush.bf16.msrb.mxu2 %v6338_v61  ;;  %2265 = vmatpush.bf16.msrb.mxu3 %v6341_v0 }
 0x680   :  { %2227 = vmatpush.bf16.msrb.mxu0 %v6360_v6  ;;  %2240 = vmatpush.bf16.msrb.mxu1 %v6362_v8 }
 0x681   :  { %2253 = vmatpush.bf16.msrb.mxu2 %v6366_v11  ;;  %2266 = vmatpush.bf16.msrb.mxu3 %v6373_v15 }
 0x684   :  { %2228 = vmatpush.bf16.msrb.mxu0 %v6390_v26  ;;  %2241 = vmatpush.bf16.msrb.mxu1 %v6394_v30 }
 0x685   :  { %2254 = vmatpush.bf16.msrb.mxu2 %v6404_v39  ;;  %2267 = vmatpush.bf16.msrb.mxu3 %v6419_v51 }
 0x688   :  { %2229 = vmatpush.bf16.msrb.mxu0 %v6448_v4  ;;  %2242 = vmatpush.bf16.msrb.mxu1 %v6452_v9 }
 0x689   :  { %2255 = vmatpush.bf16.msrb.mxu2 %v6462_v22  ;;  %2268 = vmatpush.bf16.msrb.mxu3 %v6477_v49 }
 0x68c   :  { %2230 = vmatpush.bf16.msrb.mxu0 %v6506_v2  ;;  %2243 = vmatpush.bf16.msrb.mxu1 %v6510_v17 }
 0x68d   :  { %2256 = vmatpush.bf16.msrb.mxu2 %v6522_v48  ;;  %2269 = vmatpush.bf16.msrb.mxu3 %v6543_v1 }
 0x6eb   :  { %v1974_v59 = vpop.f32.mrf.mxu0  ;;  %v1987_v23 = vpop.f32.mrf.mxu1 }
 0x6ec   :  { %v2017_v34 = vadd.f32 %v1974_v59, %v278_v35  ;;  %v2018_v13 = vadd.f32 %v1987_v23, %v367_v14 }
 0x6ee   :  { %v5437_v62 = vmul.f32 -1.442695, %v2017_v34  ;;  %v5438_v10 = vmul.f32 -1.442695, %v2018_v13 }
 0x6f0   :  { %5697 = vpow2.f32 %v5437_v62 }
 0x6f1   :  { %5699 = vpow2.f32 %v5438_v10 }
 0x6f2   :  { %v2000_v18 = vpop.f32.mrf.mxu2  ;;  %v2013_v7 = vpop.f32.mrf.mxu3 }
 0x6f3   :  { %v2019_v45 = vadd.f32 %v2000_v18, %v456_v27  ;;  %v1976_v31 = vpop.f32.mrf.mxu0  ;;  %v1989_v19 = vpop.f32.mrf.mxu1  ;;  %v2020_v57 = vadd.f32 %v2013_v7, %v545_v44 }
 0x6f5   :  { %v5439_v63 = vmul.f32 -1.442695, %v2019_v45 }
 0x6f6   :  { %v5698_v58 = vpop.eup %5697 }
 0x6f7   :  { %v5700_v3 = vpop.eup %5699  ;;  %v2030_v43 = vadd.f32 1.0, %v5698_v58  ;;  %5701 = vpow2.f32 %v5439_v63 }
 0x6f8   :  { %v2031_v55 = vadd.f32 1.0, %v5700_v3 }
 0x6f9   :  { %5703 = vrcp.f32 %v2030_v43  ;;  %v2044_v62 = vand.u32 2147483648, %v2030_v43  ;;  %v2042_v27 = vand.u32 2147483647, %v2030_v43  ;;  %vm2038_vm3 = vweird.f32 %v2030_v43 }
 0x6fa   :  { %5705 = vrcp.f32 %v2031_v55  ;;  %v2002_v29 = vpop.f32.mrf.mxu2  ;;  %v2015_v40 = vpop.f32.mrf.mxu3  ;;  %v2059_v10 = vand.u32 2147483648, %v2031_v55  ;;  %v2057_v45 = vand.u32 2147483647, %v2031_v55  ;;  %vm2053_vm4 = vweird.f32 %v2031_v55 }
 0x6fb   :  { %v2045_v63 = vor.u32 1.1754944e-38, %v2044_v62  ;;  %vm2043_vm7 = vcmp.eq.f32.partialorder %v2042_v27, 8.507059e+37 }
 0x6fc   :  { %v2060_v3 = vor.u32 1.1754944e-38, %v2059_v10  ;;  %vm2058_vm8 = vcmp.eq.f32.partialorder %v2057_v45, 8.507059e+37  ;;  %v8285_v45 = vld [vmem:[#allocation45_spill] sm:$0xff] }
 0x6fd   :  { %v5702_v53 = vpop.eup %5701 }
 0x6fe   :  { %v2032_v12 = vadd.f32 1.0, %v5702_v53 }
 0x6ff   :  { %v5704_v35 = vpop.eup %5703 }
 0x700   :  { %v5706_v14 = vpop.eup %5705  ;;  %v2034_v59 = vmul.f32 %v5704_v35, %v2030_v43  ;;  %5707 = vrcp.f32 %v2032_v12  ;;  %vm2039_vm1 = vweird.f32 %v5704_v35  ;;  %vm2068_vm10 = vweird.f32 %v2032_v12 }
 0x701   :  { %v2049_v23 = vmul.f32 %v5706_v14, %v2031_v55  ;;  %5709 = vtanh.f32 %v2020_v57  ;;  %vm2054_vm2 = vweird.f32 %v5706_v14  ;;  %vm2040_vm5 = vmor %vm2038_vm3, %vm2039_vm1 }
 0x702   :  { %v2035_v34 = vsub.f32 1.0, %v2034_v59  ;;  %vm2055_vm6 = vmor %vm2053_vm4, %vm2054_vm2 }
 0x703   :  { %v2050_v13 = vsub.f32 1.0, %v2049_v23 }
 0x704   :  { %v2036_v25 = vmul.f32 %v5704_v35, %v2035_v34 }
 0x705   :  { %v2051_v18 = vmul.f32 %v5706_v14, %v2050_v13  ;;  %v2074_v13 = vand.u32 2147483648, %v2032_v12 }
 0x706   :  { %v5708_v31 = vpop.eup %5707  ;;  %v2037_v19 = vadd.f32 %v5704_v35, %v2036_v25 }
 0x707   :  { %v2064_v7 = vmul.f32 %v5708_v31, %v2032_v12  ;;  %v2052_v58 = vadd.f32 %v5706_v14, %v2051_v18  ;;  %v5710_v40 = vpop.eup %5709  ;;  %vm2069_vm9 = vweird.f32 %v5708_v31  ;;  %v2075_v10 = vor.u32 1.1754944e-38, %v2074_v13 }
 0x708   :  { %v2041_v29 = vsel %vm2040_vm5, %v5704_v35, %v2037_v19  ;;  %v2072_v35 = vand.u32 2147483647, %v2032_v12  ;;  %vm2070_vm11 = vmor %vm2068_vm10, %vm2069_vm9 }
 0x709   :  { %v2065_v53 = vsub.f32 1.0, %v2064_v7  ;;  %v2046_v52 = vsel %vm2043_vm7, %v2045_v63, %v2041_v29  ;;  %v2056_v44 = vsel %vm2055_vm6, %v5706_v14, %v2052_v58 }
 0x70a   :  { %v2061_v57 = vsel %vm2058_vm8, %v2060_v3, %v2056_v44  ;;  %v2080_v59 = vmul.f32 %v5710_v40, %v2046_v52  ;;  %vm2073_vm12 = vcmp.eq.f32.partialorder %v2072_v35, 8.507059e+37  ;;  %v8286_v40 = vld [vmem:[#allocation46_spill] sm:$0xff] }
 0x70b   :  { %v2066_v23 = vmul.f32 %v5708_v31, %v2065_v53  ;;  %v2079_v34 = vmul.f32 %v2061_v57, %v7124_v5  ;;  %v8284_v5 = vld [vmem:[#allocation44_spill] sm:$0xff]  ;;  %v458_v53 = vadd.f32 %v8286_v40, %v6805_v38 }
 0x70c   :  { %v280_v12 = vadd.f32 %v8284_v5, %v6793_v37 }
 0x70d   :  { %v7168_v43 = vadd.f32 %v2080_v59, %v2079_v34  ;;  %v2067_v55 = vadd.f32 %v5708_v31, %v2066_v23 }
 0x70f   :  { %5711 = vtanh.f32 %v7168_v43  ;;  %v2071_v62 = vsel %vm2070_vm11, %v5708_v31, %v2067_v55  ;;  %v369_v31 = vadd.f32 %v8285_v45, %v6795_v41 }
 0x710   :  { %v2076_v25 = vsel %vm2073_vm12, %v2075_v10, %v2071_v62 }
 0x715   :  { %v5712_v14 = vpop.eup %5711 }
 0x716   :  { %v2083_v27 = vmul.f32 %v5712_v14, %v2076_v25 }
 0x718   :  { %2085 = vst [vmem:[#allocation8 + $0x40] sm:$0xff] %v2083_v27  ;;  %v2093_v18 = vpack.c.bf16 %v2083_v27, %v2083_v27  ;;  %v8287_v27 = vld [vmem:[#allocation47_spill] sm:$0xff] }
 0x71a   :  { %2102 = vmatmul.bf16.vlgmr.msra.gmra.mxu0 %v2093_v18  ;;  %2115 = vmatmul.bf16.vlgmr.msra.gmra.mxu1 %v2093_v18 }
 0x71b   :  { %2128 = vmatmul.bf16.vlgmr.msra.gmra.mxu2 %v2093_v18  ;;  %2141 = vmatmul.bf16.vlgmr.msra.gmra.mxu3 %v2093_v18  ;;  %v547_v18 = vadd.f32 %v8287_v27, %v6809_v54 }
 0x71c   :  { %2352 = vmatpush.bf16.msra.mxu0 %v6266_v16  ;;  %2365 = vmatpush.bf16.msra.mxu1 %v6268_v20 }
 0x71d   :  { %2378 = vmatpush.bf16.msra.mxu2 %v6270_v21  ;;  %2391 = vmatpush.bf16.msra.mxu3 %v6273_v24 }
 0x720   :  { %2353 = vmatpush.bf16.msra.mxu0 %v6281_v28  ;;  %2366 = vmatpush.bf16.msra.mxu1 %v6284_v32 }
 0x721   :  { %2379 = vmatpush.bf16.msra.mxu2 %v6286_v33  ;;  %2392 = vmatpush.bf16.msra.mxu3 %v6288_v36 }
 0x724   :  { %2354 = vmatpush.bf16.msra.mxu0 %v6308_v42  ;;  %2367 = vmatpush.bf16.msra.mxu1 %v6310_v46 }
 0x725   :  { %2380 = vmatpush.bf16.msra.mxu2 %v6312_v47  ;;  %2393 = vmatpush.bf16.msra.mxu3 %v6315_v50 }
 0x728   :  { %2355 = vmatpush.bf16.msra.mxu0 %v6334_v56  ;;  %2368 = vmatpush.bf16.msra.mxu1 %v6336_v60 }
 0x729   :  { %2381 = vmatpush.bf16.msra.mxu2 %v6338_v61  ;;  %2394 = vmatpush.bf16.msra.mxu3 %v6341_v0 }
 0x72c   :  { %2356 = vmatpush.bf16.msra.mxu0 %v6360_v6  ;;  %2369 = vmatpush.bf16.msra.mxu1 %v6362_v8 }
 0x72d   :  { %2382 = vmatpush.bf16.msra.mxu2 %v6366_v11  ;;  %2395 = vmatpush.bf16.msra.mxu3 %v6373_v15 }
 0x730   :  { %2357 = vmatpush.bf16.msra.mxu0 %v6390_v26  ;;  %2370 = vmatpush.bf16.msra.mxu1 %v6394_v30 }
 0x731   :  { %2383 = vmatpush.bf16.msra.mxu2 %v6404_v39  ;;  %2396 = vmatpush.bf16.msra.mxu3 %v6419_v51 }
 0x734   :  { %2358 = vmatpush.bf16.msra.mxu0 %v6448_v4  ;;  %2371 = vmatpush.bf16.msra.mxu1 %v6452_v9 }
 0x735   :  { %2384 = vmatpush.bf16.msra.mxu2 %v6462_v22  ;;  %2397 = vmatpush.bf16.msra.mxu3 %v6477_v49 }
 0x738   :  { %2359 = vmatpush.bf16.msra.mxu0 %v6506_v2  ;;  %2372 = vmatpush.bf16.msra.mxu1 %v6510_v17 }
 0x739   :  { %2385 = vmatpush.bf16.msra.mxu2 %v6522_v48  ;;  %2398 = vmatpush.bf16.msra.mxu3 %v6543_v1 }
 0x797   :  { %v2103_v19 = vpop.f32.mrf.mxu0  ;;  %v2116_v7 = vpop.f32.mrf.mxu1 }
 0x798   :  { %v2146_v63 = vadd.f32 %v2103_v19, %v280_v12  ;;  %v2147_v58 = vadd.f32 %v2116_v7, %v369_v31 }
 0x79a   :  { %v5440_v3 = vmul.f32 -1.442695, %v2146_v63  ;;  %v5441_v29 = vmul.f32 -1.442695, %v2147_v58 }
 0x79c   :  { %5713 = vpow2.f32 %v5440_v3 }
 0x79d   :  { %5715 = vpow2.f32 %v5441_v29 }
 0x79e   :  { %v2129_v52 = vpop.f32.mrf.mxu2  ;;  %v2142_v44 = vpop.f32.mrf.mxu3 }
 0x79f   :  { %v2148_v57 = vadd.f32 %v2129_v52, %v458_v53  ;;  %v2105_v59 = vpop.f32.mrf.mxu0  ;;  %v2118_v23 = vpop.f32.mrf.mxu1  ;;  %v2149_v45 = vadd.f32 %v2142_v44, %v547_v18 }
 0x7a1   :  { %v5442_v34 = vmul.f32 -1.442695, %v2148_v57 }
 0x7a2   :  { %v5714_v55 = vpop.eup %5713 }
 0x7a3   :  { %v5716_v13 = vpop.eup %5715  ;;  %v2159_v35 = vadd.f32 1.0, %v5714_v55  ;;  %5717 = vpow2.f32 %v5442_v34 }
 0x7a4   :  { %v2160_v62 = vadd.f32 1.0, %v5716_v13 }
 0x7a5   :  { %5719 = vrcp.f32 %v2159_v35  ;;  %v2173_v3 = vand.u32 2147483648, %v2159_v35  ;;  %v2171_v53 = vand.u32 2147483647, %v2159_v35  ;;  %vm2167_vm15 = vweird.f32 %v2159_v35 }
 0x7a6   :  { %5721 = vrcp.f32 %v2160_v62  ;;  %v2131_v10 = vpop.f32.mrf.mxu2  ;;  %v2144_v14 = vpop.f32.mrf.mxu3  ;;  %v2188_v29 = vand.u32 2147483648, %v2160_v62  ;;  %v2186_v57 = vand.u32 2147483647, %v2160_v62  ;;  %vm2182_vm0 = vweird.f32 %v2160_v62 }
 0x7a7   :  { %v2174_v34 = vor.u32 1.1754944e-38, %v2173_v3  ;;  %vm2172_vm3 = vcmp.eq.f32.partialorder %v2171_v53, 8.507059e+37 }
 0x7a8   :  { %v2189_v13 = vor.u32 1.1754944e-38, %v2188_v29  ;;  %vm2187_vm4 = vcmp.eq.f32.partialorder %v2186_v57, 8.507059e+37  ;;  %v8289_v57 = vld [vmem:[#allocation49_spill] sm:$0xff] }
 0x7a9   :  { %v5718_v25 = vpop.eup %5717 }
 0x7aa   :  { %v2161_v5 = vadd.f32 1.0, %v5718_v25 }
 0x7ab   :  { %v5720_v12 = vpop.eup %5719 }
 0x7ac   :  { %v5722_v31 = vpop.eup %5721  ;;  %v2163_v19 = vmul.f32 %v5720_v12, %v2159_v35  ;;  %5723 = vrcp.f32 %v2161_v5  ;;  %vm2168_vm13 = vweird.f32 %v5720_v12  ;;  %vm2197_vm6 = vweird.f32 %v2161_v5 }
 0x7ad   :  { %v2178_v7 = vmul.f32 %v5722_v31, %v2160_v62  ;;  %5725 = vtanh.f32 %v2149_v45  ;;  %vm2183_vm14 = vweird.f32 %v5722_v31  ;;  %vm2169_vm1 = vmor %vm2167_vm15, %vm2168_vm13 }
 0x7ae   :  { %v2164_v63 = vsub.f32 1.0, %v2163_v19  ;;  %vm2184_vm2 = vmor %vm2182_vm0, %vm2183_vm14 }
 0x7af   :  { %v2179_v58 = vsub.f32 1.0, %v2178_v7 }
 0x7b0   :  { %v2165_v40 = vmul.f32 %v5720_v12, %v2164_v63 }
 0x7b1   :  { %v2180_v52 = vmul.f32 %v5722_v31, %v2179_v58  ;;  %v2203_v58 = vand.u32 2147483648, %v2161_v5 }
 0x7b2   :  { %v5724_v59 = vpop.eup %5723  ;;  %v2166_v23 = vadd.f32 %v5720_v12, %v2165_v40 }
 0x7b3   :  { %v2193_v44 = vmul.f32 %v5724_v59, %v2161_v5  ;;  %v2181_v55 = vadd.f32 %v5722_v31, %v2180_v52  ;;  %v5726_v14 = vpop.eup %5725  ;;  %vm2198_vm5 = vweird.f32 %v5724_v59  ;;  %v2204_v29 = vor.u32 1.1754944e-38, %v2203_v58 }
 0x7b4   :  { %v2170_v10 = vsel %vm2169_vm1, %v5720_v12, %v2166_v23  ;;  %v2201_v12 = vand.u32 2147483647, %v2161_v5  ;;  %vm2199_vm7 = vmor %vm2197_vm6, %vm2198_vm5 }
 0x7b5   :  { %v2194_v25 = vsub.f32 1.0, %v2193_v44  ;;  %v2175_v27 = vsel %vm2172_vm3, %v2174_v34, %v2170_v10  ;;  %v2185_v18 = vsel %vm2184_vm2, %v5722_v31, %v2181_v55 }
 0x7b6   :  { %v2190_v45 = vsel %vm2187_vm4, %v2189_v13, %v2185_v18  ;;  %v2209_v19 = vmul.f32 %v5726_v14, %v2175_v27  ;;  %vm2202_vm8 = vcmp.eq.f32.partialorder %v2201_v12, 8.507059e+37  ;;  %v8290_v14 = vld [vmem:[#allocation50_spill] sm:$0xff] }
 0x7b7   :  { %v2195_v7 = vmul.f32 %v5724_v59, %v2194_v25  ;;  %v2208_v63 = vmul.f32 %v2190_v45, %v7168_v43  ;;  %v8288_v43 = vld [vmem:[#allocation48_spill] sm:$0xff]  ;;  %v461_v25 = vadd.f32 %v8290_v14, %v6805_v38 }
 0x7b8   :  { %v283_v5 = vadd.f32 %v8288_v43, %v6793_v37 }
 0x7b9   :  { %v7212_v35 = vadd.f32 %v2209_v19, %v2208_v63  ;;  %v2196_v62 = vadd.f32 %v5724_v59, %v2195_v7 }
 0x7bb   :  { %5727 = vtanh.f32 %v7212_v35  ;;  %v2200_v3 = vsel %vm2199_vm7, %v5724_v59, %v2196_v62  ;;  %v372_v59 = vadd.f32 %v8289_v57, %v6795_v41 }
 0x7bc   :  { %v2205_v40 = vsel %vm2202_vm8, %v2204_v29, %v2200_v3 }
 0x7c1   :  { %v5728_v31 = vpop.eup %5727 }
 0x7c2   :  { %v2212_v53 = vmul.f32 %v5728_v31, %v2205_v40 }
 0x7c4   :  { %2214 = vst [vmem:[#allocation8 + $0x48] sm:$0xff] %v2212_v53  ;;  %v2222_v52 = vpack.c.bf16 %v2212_v53, %v2212_v53  ;;  %v8291_v53 = vld [vmem:[#allocation51_spill] sm:$0xff] }
 0x7c6   :  { %2231 = vmatmul.bf16.vlgmr.msrb.gmra.mxu0 %v2222_v52  ;;  %2244 = vmatmul.bf16.vlgmr.msrb.gmra.mxu1 %v2222_v52 }
 0x7c7   :  { %2257 = vmatmul.bf16.vlgmr.msrb.gmra.mxu2 %v2222_v52  ;;  %2270 = vmatmul.bf16.vlgmr.msrb.gmra.mxu3 %v2222_v52  ;;  %v550_v52 = vadd.f32 %v8291_v53, %v6809_v54 }
 0x7c8   :  { %2481 = vmatpush.bf16.msrb.mxu0 %v6266_v16  ;;  %2494 = vmatpush.bf16.msrb.mxu1 %v6268_v20 }
 0x7c9   :  { %2507 = vmatpush.bf16.msrb.mxu2 %v6270_v21  ;;  %2520 = vmatpush.bf16.msrb.mxu3 %v6273_v24 }
 0x7cc   :  { %2482 = vmatpush.bf16.msrb.mxu0 %v6281_v28  ;;  %2495 = vmatpush.bf16.msrb.mxu1 %v6284_v32 }
 0x7cd   :  { %2508 = vmatpush.bf16.msrb.mxu2 %v6286_v33  ;;  %2521 = vmatpush.bf16.msrb.mxu3 %v6288_v36 }
 0x7d0   :  { %2483 = vmatpush.bf16.msrb.mxu0 %v6308_v42  ;;  %2496 = vmatpush.bf16.msrb.mxu1 %v6310_v46 }
 0x7d1   :  { %2509 = vmatpush.bf16.msrb.mxu2 %v6312_v47  ;;  %2522 = vmatpush.bf16.msrb.mxu3 %v6315_v50 }
 0x7d4   :  { %2484 = vmatpush.bf16.msrb.mxu0 %v6334_v56  ;;  %2497 = vmatpush.bf16.msrb.mxu1 %v6336_v60 }
 0x7d5   :  { %2510 = vmatpush.bf16.msrb.mxu2 %v6338_v61  ;;  %2523 = vmatpush.bf16.msrb.mxu3 %v6341_v0 }
 0x7d8   :  { %2485 = vmatpush.bf16.msrb.mxu0 %v6360_v6  ;;  %2498 = vmatpush.bf16.msrb.mxu1 %v6362_v8 }
 0x7d9   :  { %2511 = vmatpush.bf16.msrb.mxu2 %v6366_v11  ;;  %2524 = vmatpush.bf16.msrb.mxu3 %v6373_v15 }
 0x7dc   :  { %2486 = vmatpush.bf16.msrb.mxu0 %v6390_v26  ;;  %2499 = vmatpush.bf16.msrb.mxu1 %v6394_v30 }
 0x7dd   :  { %2512 = vmatpush.bf16.msrb.mxu2 %v6404_v39  ;;  %2525 = vmatpush.bf16.msrb.mxu3 %v6419_v51 }
 0x7e0   :  { %2487 = vmatpush.bf16.msrb.mxu0 %v6448_v4  ;;  %2500 = vmatpush.bf16.msrb.mxu1 %v6452_v9 }
 0x7e1   :  { %2513 = vmatpush.bf16.msrb.mxu2 %v6462_v22  ;;  %2526 = vmatpush.bf16.msrb.mxu3 %v6477_v49 }
 0x7e4   :  { %2488 = vmatpush.bf16.msrb.mxu0 %v6506_v2  ;;  %2501 = vmatpush.bf16.msrb.mxu1 %v6510_v17 }
 0x7e5   :  { %2514 = vmatpush.bf16.msrb.mxu2 %v6522_v48  ;;  %2527 = vmatpush.bf16.msrb.mxu3 %v6543_v1 }
 0x843   :  { %v2232_v23 = vpop.f32.mrf.mxu0  ;;  %v2245_v44 = vpop.f32.mrf.mxu1 }
 0x844   :  { %v2275_v34 = vadd.f32 %v2232_v23, %v283_v5  ;;  %v2276_v55 = vadd.f32 %v2245_v44, %v372_v59 }
 0x846   :  { %v5443_v13 = vmul.f32 -1.442695, %v2275_v34  ;;  %v5444_v10 = vmul.f32 -1.442695, %v2276_v55 }
 0x848   :  { %5729 = vpow2.f32 %v5443_v13 }
 0x849   :  { %5731 = vpow2.f32 %v5444_v10 }
 0x84a   :  { %v2258_v27 = vpop.f32.mrf.mxu2  ;;  %v2271_v18 = vpop.f32.mrf.mxu3 }
 0x84b   :  { %v2277_v45 = vadd.f32 %v2258_v27, %v461_v25  ;;  %v2234_v19 = vpop.f32.mrf.mxu0  ;;  %v2247_v7 = vpop.f32.mrf.mxu1  ;;  %v2278_v57 = vadd.f32 %v2271_v18, %v550_v52 }
 0x84d   :  { %v5445_v63 = vmul.f32 -1.442695, %v2277_v45 }
 0x84e   :  { %v5730_v62 = vpop.eup %5729 }
 0x84f   :  { %v5732_v58 = vpop.eup %5731  ;;  %v2288_v12 = vadd.f32 1.0, %v5730_v62  ;;  %5733 = vpow2.f32 %v5445_v63 }
 0x850   :  { %v2289_v3 = vadd.f32 1.0, %v5732_v58 }
 0x851   :  { %5735 = vrcp.f32 %v2288_v12  ;;  %v2302_v13 = vand.u32 2147483648, %v2288_v12  ;;  %v2300_v25 = vand.u32 2147483647, %v2288_v12  ;;  %vm2296_vm11 = vweird.f32 %v2288_v12 }
 0x852   :  { %5737 = vrcp.f32 %v2289_v3  ;;  %v2260_v29 = vpop.f32.mrf.mxu2  ;;  %v2273_v31 = vpop.f32.mrf.mxu3  ;;  %v2317_v10 = vand.u32 2147483648, %v2289_v3  ;;  %v2315_v45 = vand.u32 2147483647, %v2289_v3  ;;  %vm2311_vm12 = vweird.f32 %v2289_v3 }
 0x853   :  { %v2303_v63 = vor.u32 1.1754944e-38, %v2302_v13  ;;  %vm2301_vm15 = vcmp.eq.f32.partialorder %v2300_v25, 8.507059e+37 }
 0x854   :  { %v2318_v58 = vor.u32 1.1754944e-38, %v2317_v10  ;;  %vm2316_vm0 = vcmp.eq.f32.partialorder %v2315_v45, 8.507059e+37  ;;  %v8293_v45 = vld [vmem:[#allocation53_spill] sm:$0xff] }
 0x855   :  { %v5734_v40 = vpop.eup %5733 }
 0x856   :  { %v2290_v43 = vadd.f32 1.0, %v5734_v40 }
 0x857   :  { %v5736_v5 = vpop.eup %5735 }
 0x858   :  { %v5738_v59 = vpop.eup %5737  ;;  %v2292_v23 = vmul.f32 %v5736_v5, %v2288_v12  ;;  %5739 = vrcp.f32 %v2290_v43  ;;  %vm2297_vm9 = vweird.f32 %v5736_v5  ;;  %vm2326_vm2 = vweird.f32 %v2290_v43 }
 0x859   :  { %v2307_v44 = vmul.f32 %v5738_v59, %v2289_v3  ;;  %5741 = vtanh.f32 %v2278_v57  ;;  %vm2312_vm10 = vweird.f32 %v5738_v59  ;;  %vm2298_vm13 = vmor %vm2296_vm11, %vm2297_vm9 }
 0x85a   :  { %v2293_v34 = vsub.f32 1.0, %v2292_v23  ;;  %vm2313_vm14 = vmor %vm2311_vm12, %vm2312_vm10 }
 0x85b   :  { %v2308_v55 = vsub.f32 1.0, %v2307_v44 }
 0x85c   :  { %v2294_v14 = vmul.f32 %v5736_v5, %v2293_v34 }
 0x85d   :  { %v2309_v27 = vmul.f32 %v5738_v59, %v2308_v55  ;;  %v2332_v55 = vand.u32 2147483648, %v2290_v43 }
 0x85e   :  { %v5740_v19 = vpop.eup %5739  ;;  %v2295_v7 = vadd.f32 %v5736_v5, %v2294_v14 }
 0x85f   :  { %v2322_v18 = vmul.f32 %v5740_v19, %v2290_v43  ;;  %v2310_v62 = vadd.f32 %v5738_v59, %v2309_v27  ;;  %v5742_v31 = vpop.eup %5741  ;;  %vm2327_vm1 = vweird.f32 %v5740_v19  ;;  %v2333_v10 = vor.u32 1.1754944e-38, %v2332_v55 }
 0x860   :  { %v2299_v29 = vsel %vm2298_vm13, %v5736_v5, %v2295_v7  ;;  %v2330_v5 = vand.u32 2147483647, %v2290_v43  ;;  %vm2328_vm3 = vmor %vm2326_vm2, %vm2327_vm1 }
 0x861   :  { %v2323_v40 = vsub.f32 1.0, %v2322_v18  ;;  %v2304_v53 = vsel %vm2301_vm15, %v2303_v63, %v2299_v29  ;;  %v2314_v52 = vsel %vm2313_vm14, %v5738_v59, %v2310_v62 }
 0x862   :  { %v2319_v57 = vsel %vm2316_vm0, %v2318_v58, %v2314_v52  ;;  %v2338_v23 = vmul.f32 %v5742_v31, %v2304_v53  ;;  %vm2331_vm4 = vcmp.eq.f32.partialorder %v2330_v5, 8.507059e+37  ;;  %v8294_v31 = vld [vmem:[#allocation54_spill] sm:$0xff] }
 0x863   :  { %v2324_v44 = vmul.f32 %v5740_v19, %v2323_v40  ;;  %v2337_v34 = vmul.f32 %v2319_v57, %v7212_v35  ;;  %v8292_v35 = vld [vmem:[#allocation52_spill] sm:$0xff]  ;;  %v463_v40 = vadd.f32 %v8294_v31, %v6805_v38 }
 0x864   :  { %v285_v43 = vadd.f32 %v8292_v35, %v6793_v37 }
 0x865   :  { %v7256_v12 = vadd.f32 %v2338_v23, %v2337_v34  ;;  %v2325_v3 = vadd.f32 %v5740_v19, %v2324_v44 }
 0x867   :  { %5743 = vtanh.f32 %v7256_v12  ;;  %v2329_v13 = vsel %vm2328_vm3, %v5740_v19, %v2325_v3  ;;  %v374_v19 = vadd.f32 %v8293_v45, %v6795_v41 }
 0x868   :  { %v2334_v14 = vsel %vm2331_vm4, %v2333_v10, %v2329_v13 }
 0x86d   :  { %v5744_v59 = vpop.eup %5743 }
 0x86e   :  { %v2341_v25 = vmul.f32 %v5744_v59, %v2334_v14 }
 0x870   :  { %2343 = vst [vmem:[#allocation8 + $0x50] sm:$0xff] %v2341_v25  ;;  %v2351_v27 = vpack.c.bf16 %v2341_v25, %v2341_v25  ;;  %v8295_v25 = vld [vmem:[#allocation55_spill] sm:$0xff] }
 0x872   :  { %2360 = vmatmul.bf16.vlgmr.msra.gmra.mxu0 %v2351_v27  ;;  %2373 = vmatmul.bf16.vlgmr.msra.gmra.mxu1 %v2351_v27 }
 0x873   :  { %2386 = vmatmul.bf16.vlgmr.msra.gmra.mxu2 %v2351_v27  ;;  %2399 = vmatmul.bf16.vlgmr.msra.gmra.mxu3 %v2351_v27  ;;  %v552_v27 = vadd.f32 %v8295_v25, %v6809_v54 }
 0x874   :  { %2610 = vmatpush.bf16.msra.mxu0 %v6266_v16  ;;  %2623 = vmatpush.bf16.msra.mxu1 %v6268_v20 }
 0x875   :  { %2636 = vmatpush.bf16.msra.mxu2 %v6270_v21  ;;  %2649 = vmatpush.bf16.msra.mxu3 %v6273_v24 }
 0x878   :  { %2611 = vmatpush.bf16.msra.mxu0 %v6281_v28  ;;  %2624 = vmatpush.bf16.msra.mxu1 %v6284_v32 }
 0x879   :  { %2637 = vmatpush.bf16.msra.mxu2 %v6286_v33  ;;  %2650 = vmatpush.bf16.msra.mxu3 %v6288_v36 }
 0x87c   :  { %2612 = vmatpush.bf16.msra.mxu0 %v6308_v42  ;;  %2625 = vmatpush.bf16.msra.mxu1 %v6310_v46 }
 0x87d   :  { %2638 = vmatpush.bf16.msra.mxu2 %v6312_v47  ;;  %2651 = vmatpush.bf16.msra.mxu3 %v6315_v50 }
 0x880   :  { %2613 = vmatpush.bf16.msra.mxu0 %v6334_v56  ;;  %2626 = vmatpush.bf16.msra.mxu1 %v6336_v60 }
 0x881   :  { %2639 = vmatpush.bf16.msra.mxu2 %v6338_v61  ;;  %2652 = vmatpush.bf16.msra.mxu3 %v6341_v0 }
 0x884   :  { %2614 = vmatpush.bf16.msra.mxu0 %v6360_v6  ;;  %2627 = vmatpush.bf16.msra.mxu1 %v6362_v8 }
 0x885   :  { %2640 = vmatpush.bf16.msra.mxu2 %v6366_v11  ;;  %2653 = vmatpush.bf16.msra.mxu3 %v6373_v15 }
 0x888   :  { %2615 = vmatpush.bf16.msra.mxu0 %v6390_v26  ;;  %2628 = vmatpush.bf16.msra.mxu1 %v6394_v30 }
 0x889   :  { %2641 = vmatpush.bf16.msra.mxu2 %v6404_v39  ;;  %2654 = vmatpush.bf16.msra.mxu3 %v6419_v51 }
 0x88c   :  { %2616 = vmatpush.bf16.msra.mxu0 %v6448_v4  ;;  %2629 = vmatpush.bf16.msra.mxu1 %v6452_v9 }
 0x88d   :  { %2642 = vmatpush.bf16.msra.mxu2 %v6462_v22  ;;  %2655 = vmatpush.bf16.msra.mxu3 %v6477_v49 }
 0x890   :  { %2617 = vmatpush.bf16.msra.mxu0 %v6506_v2  ;;  %2630 = vmatpush.bf16.msra.mxu1 %v6510_v17 }
 0x891   :  { %2643 = vmatpush.bf16.msra.mxu2 %v6522_v48  ;;  %2656 = vmatpush.bf16.msra.mxu3 %v6543_v1 }
 0x8ef   :  { %v2361_v7 = vpop.f32.mrf.mxu0  ;;  %v2374_v18 = vpop.f32.mrf.mxu1 }
 0x8f0   :  { %v2404_v63 = vadd.f32 %v2361_v7, %v285_v43  ;;  %v2405_v62 = vadd.f32 %v2374_v18, %v374_v19 }
 0x8f2   :  { %v5446_v58 = vmul.f32 -1.442695, %v2404_v63  ;;  %v5447_v29 = vmul.f32 -1.442695, %v2405_v62 }
 0x8f4   :  { %5745 = vpow2.f32 %v5446_v58 }
 0x8f5   :  { %5747 = vpow2.f32 %v5447_v29 }
 0x8f6   :  { %v2387_v53 = vpop.f32.mrf.mxu2  ;;  %v2400_v52 = vpop.f32.mrf.mxu3 }
 0x8f7   :  { %v2406_v57 = vadd.f32 %v2387_v53, %v463_v40  ;;  %v2363_v23 = vpop.f32.mrf.mxu0  ;;  %v2376_v44 = vpop.f32.mrf.mxu1  ;;  %v2407_v45 = vadd.f32 %v2400_v52, %v552_v27 }
 0x8f9   :  { %v5448_v34 = vmul.f32 -1.442695, %v2406_v57 }
 0x8fa   :  { %v5746_v3 = vpop.eup %5745 }
 0x8fb   :  { %v5748_v55 = vpop.eup %5747  ;;  %v2417_v5 = vadd.f32 1.0, %v5746_v3  ;;  %5749 = vpow2.f32 %v5448_v34 }
 0x8fc   :  { %v2418_v13 = vadd.f32 1.0, %v5748_v55 }
 0x8fd   :  { %5751 = vrcp.f32 %v2417_v5  ;;  %v2431_v58 = vand.u32 2147483648, %v2417_v5  ;;  %v2429_v40 = vand.u32 2147483647, %v2417_v5  ;;  %vm2425_vm7 = vweird.f32 %v2417_v5 }
 0x8fe   :  { %5753 = vrcp.f32 %v2418_v13  ;;  %v2389_v10 = vpop.f32.mrf.mxu2  ;;  %v2402_v59 = vpop.f32.mrf.mxu3  ;;  %v2446_v29 = vand.u32 2147483648, %v2418_v13  ;;  %v2444_v57 = vand.u32 2147483647, %v2418_v13  ;;  %vm2440_vm8 = vweird.f32 %v2418_v13 }
 0x8ff   :  { %v2432_v34 = vor.u32 1.1754944e-38, %v2431_v58  ;;  %vm2430_vm11 = vcmp.eq.f32.partialorder %v2429_v40, 8.507059e+37 }
 0x900   :  { %v2447_v55 = vor.u32 1.1754944e-38, %v2446_v29  ;;  %vm2445_vm12 = vcmp.eq.f32.partialorder %v2444_v57, 8.507059e+37  ;;  %v8297_v57 = vld [vmem:[#allocation57_spill] sm:$0xff] }
 0x901   :  { %v5750_v14 = vpop.eup %5749 }
 0x902   :  { %v2419_v35 = vadd.f32 1.0, %v5750_v14 }
 0x903   :  { %v5752_v43 = vpop.eup %5751 }
 0x904   :  { %v5754_v19 = vpop.eup %5753  ;;  %v2421_v7 = vmul.f32 %v5752_v43, %v2417_v5  ;;  %5755 = vrcp.f32 %v2419_v35  ;;  %vm2426_vm5 = vweird.f32 %v5752_v43  ;;  %vm2455_vm14 = vweird.f32 %v2419_v35 }
 0x905   :  { %v2436_v18 = vmul.f32 %v5754_v19, %v2418_v13  ;;  %5757 = vtanh.f32 %v2407_v45  ;;  %vm2441_vm6 = vweird.f32 %v5754_v19  ;;  %vm2427_vm9 = vmor %vm2425_vm7, %vm2426_vm5 }
 0x906   :  { %v2422_v63 = vsub.f32 1.0, %v2421_v7  ;;  %vm2442_vm10 = vmor %vm2440_vm8, %vm2441_vm6 }
 0x907   :  { %v2437_v62 = vsub.f32 1.0, %v2436_v18 }
 0x908   :  { %v2423_v31 = vmul.f32 %v5752_v43, %v2422_v63 }
 0x909   :  { %v2438_v53 = vmul.f32 %v5754_v19, %v2437_v62  ;;  %v2461_v62 = vand.u32 2147483648, %v2419_v35 }
 0x90a   :  { %v5756_v23 = vpop.eup %5755  ;;  %v2424_v44 = vadd.f32 %v5752_v43, %v2423_v31 }
 0x90b   :  { %v2451_v52 = vmul.f32 %v5756_v23, %v2419_v35  ;;  %v2439_v3 = vadd.f32 %v5754_v19, %v2438_v53  ;;  %v5758_v59 = vpop.eup %5757  ;;  %vm2456_vm13 = vweird.f32 %v5756_v23  ;;  %v2462_v29 = vor.u32 1.1754944e-38, %v2461_v62 }
 0x90c   :  { %v2428_v10 = vsel %vm2427_vm9, %v5752_v43, %v2424_v44  ;;  %v2459_v43 = vand.u32 2147483647, %v2419_v35  ;;  %vm2457_vm15 = vmor %vm2455_vm14, %vm2456_vm13 }
 0x90d   :  { %v2452_v14 = vsub.f32 1.0, %v2451_v52  ;;  %v2433_v25 = vsel %vm2430_vm11, %v2432_v34, %v2428_v10  ;;  %v2443_v27 = vsel %vm2442_vm10, %v5754_v19, %v2439_v3 }
 0x90e   :  { %v2448_v45 = vsel %vm2445_vm12, %v2447_v55, %v2443_v27  ;;  %v2467_v7 = vmul.f32 %v5758_v59, %v2433_v25  ;;  %vm2460_vm0 = vcmp.eq.f32.partialorder %v2459_v43, 8.507059e+37  ;;  %v8298_v59 = vld [vmem:[#allocation58_spill] sm:$0xff] }
 0x90f   :  { %v2453_v18 = vmul.f32 %v5756_v23, %v2452_v14  ;;  %v2466_v63 = vmul.f32 %v2448_v45, %v7256_v12  ;;  %v8296_v12 = vld [vmem:[#allocation56_spill] sm:$0xff]  ;;  %v466_v14 = vadd.f32 %v8298_v59, %v6805_v38 }
 0x910   :  { %v288_v35 = vadd.f32 %v8296_v12, %v6793_v37 }
 0x911   :  { %v7300_v5 = vadd.f32 %v2467_v7, %v2466_v63  ;;  %v2454_v13 = vadd.f32 %v5756_v23, %v2453_v18 }
 0x913   :  { %5759 = vtanh.f32 %v7300_v5  ;;  %v2458_v58 = vsel %vm2457_vm15, %v5756_v23, %v2454_v13  ;;  %v377_v23 = vadd.f32 %v8297_v57, %v6795_v41 }
 0x914   :  { %v2463_v31 = vsel %vm2460_vm0, %v2462_v29, %v2458_v58 }
 0x919   :  { %v5760_v19 = vpop.eup %5759 }
 0x91a   :  { %v2470_v40 = vmul.f32 %v5760_v19, %v2463_v31 }
 0x91c   :  { %2472 = vst [vmem:[#allocation8 + $0x58] sm:$0xff] %v2470_v40  ;;  %v2480_v53 = vpack.c.bf16 %v2470_v40, %v2470_v40  ;;  %v8299_v40 = vld [vmem:[#allocation59_spill] sm:$0xff] }
 0x91e   :  { %2489 = vmatmul.bf16.vlgmr.msrb.gmra.mxu0 %v2480_v53  ;;  %2502 = vmatmul.bf16.vlgmr.msrb.gmra.mxu1 %v2480_v53 }
 0x91f   :  { %2515 = vmatmul.bf16.vlgmr.msrb.gmra.mxu2 %v2480_v53  ;;  %2528 = vmatmul.bf16.vlgmr.msrb.gmra.mxu3 %v2480_v53  ;;  %v555_v53 = vadd.f32 %v8299_v40, %v6809_v54 }
 0x920   :  { %2739 = vmatpush.bf16.msrb.mxu0 %v6266_v16  ;;  %2752 = vmatpush.bf16.msrb.mxu1 %v6268_v20 }
 0x921   :  { %2765 = vmatpush.bf16.msrb.mxu2 %v6270_v21  ;;  %2778 = vmatpush.bf16.msrb.mxu3 %v6273_v24 }
 0x924   :  { %2740 = vmatpush.bf16.msrb.mxu0 %v6281_v28  ;;  %2753 = vmatpush.bf16.msrb.mxu1 %v6284_v32 }
 0x925   :  { %2766 = vmatpush.bf16.msrb.mxu2 %v6286_v33  ;;  %2779 = vmatpush.bf16.msrb.mxu3 %v6288_v36 }
 0x928   :  { %2741 = vmatpush.bf16.msrb.mxu0 %v6308_v42  ;;  %2754 = vmatpush.bf16.msrb.mxu1 %v6310_v46 }
 0x929   :  { %2767 = vmatpush.bf16.msrb.mxu2 %v6312_v47  ;;  %2780 = vmatpush.bf16.msrb.mxu3 %v6315_v50 }
 0x92c   :  { %2742 = vmatpush.bf16.msrb.mxu0 %v6334_v56  ;;  %2755 = vmatpush.bf16.msrb.mxu1 %v6336_v60 }
 0x92d   :  { %2768 = vmatpush.bf16.msrb.mxu2 %v6338_v61  ;;  %2781 = vmatpush.bf16.msrb.mxu3 %v6341_v0 }
 0x930   :  { %2743 = vmatpush.bf16.msrb.mxu0 %v6360_v6  ;;  %2756 = vmatpush.bf16.msrb.mxu1 %v6362_v8 }
 0x931   :  { %2769 = vmatpush.bf16.msrb.mxu2 %v6366_v11  ;;  %2782 = vmatpush.bf16.msrb.mxu3 %v6373_v15 }
 0x934   :  { %2744 = vmatpush.bf16.msrb.mxu0 %v6390_v26  ;;  %2757 = vmatpush.bf16.msrb.mxu1 %v6394_v30 }
 0x935   :  { %2770 = vmatpush.bf16.msrb.mxu2 %v6404_v39  ;;  %2783 = vmatpush.bf16.msrb.mxu3 %v6419_v51 }
 0x938   :  { %2745 = vmatpush.bf16.msrb.mxu0 %v6448_v4  ;;  %2758 = vmatpush.bf16.msrb.mxu1 %v6452_v9 }
 0x939   :  { %2771 = vmatpush.bf16.msrb.mxu2 %v6462_v22  ;;  %2784 = vmatpush.bf16.msrb.mxu3 %v6477_v49 }
 0x93c   :  { %2746 = vmatpush.bf16.msrb.mxu0 %v6506_v2  ;;  %2759 = vmatpush.bf16.msrb.mxu1 %v6510_v17 }
 0x93d   :  { %2772 = vmatpush.bf16.msrb.mxu2 %v6522_v48  ;;  %2785 = vmatpush.bf16.msrb.mxu3 %v6543_v1 }
 0x99b   :  { %v2490_v44 = vpop.f32.mrf.mxu0  ;;  %v2503_v52 = vpop.f32.mrf.mxu1 }
 0x99c   :  { %v2533_v34 = vadd.f32 %v2490_v44, %v288_v35  ;;  %v2534_v3 = vadd.f32 %v2503_v52, %v377_v23 }
 0x99e   :  { %v5449_v55 = vmul.f32 -1.442695, %v2533_v34  ;;  %v5450_v10 = vmul.f32 -1.442695, %v2534_v3 }
 0x9a0   :  { %5761 = vpow2.f32 %v5449_v55 }
 0x9a1   :  { %5763 = vpow2.f32 %v5450_v10 }
 0x9a2   :  { %v2516_v25 = vpop.f32.mrf.mxu2  ;;  %v2529_v27 = vpop.f32.mrf.mxu3 }
 0x9a3   :  { %v2535_v45 = vadd.f32 %v2516_v25, %v466_v14  ;;  %v2492_v7 = vpop.f32.mrf.mxu0  ;;  %v2505_v18 = vpop.f32.mrf.mxu1  ;;  %v2536_v57 = vadd.f32 %v2529_v27, %v555_v53 }
 0x9a5   :  { %v5451_v63 = vmul.f32 -1.442695, %v2535_v45 }
 0x9a6   :  { %v5762_v13 = vpop.eup %5761 }
 0x9a7   :  { %v5764_v62 = vpop.eup %5763  ;;  %v2546_v43 = vadd.f32 1.0, %v5762_v13  ;;  %5765 = vpow2.f32 %v5451_v63 }
 0x9a8   :  { %v2547_v58 = vadd.f32 1.0, %v5764_v62 }
 0x9a9   :  { %5767 = vrcp.f32 %v2546_v43  ;;  %v2560_v55 = vand.u32 2147483648, %v2546_v43  ;;  %v2558_v14 = vand.u32 2147483647, %v2546_v43  ;;  %vm2554_vm3 = vweird.f32 %v2546_v43 }
 0x9aa   :  { %5769 = vrcp.f32 %v2547_v58  ;;  %v2518_v29 = vpop.f32.mrf.mxu2  ;;  %v2531_v19 = vpop.f32.mrf.mxu3  ;;  %v2575_v10 = vand.u32 2147483648, %v2547_v58  ;;  %v2573_v45 = vand.u32 2147483647, %v2547_v58  ;;  %vm2569_vm4 = vweird.f32 %v2547_v58 }
 0x9ab   :  { %v2561_v63 = vor.u32 1.1754944e-38, %v2560_v55  ;;  %vm2559_vm7 = vcmp.eq.f32.partialorder %v2558_v14, 8.507059e+37 }
 0x9ac   :  { %v2576_v62 = vor.u32 1.1754944e-38, %v2575_v10  ;;  %vm2574_vm8 = vcmp.eq.f32.partialorder %v2573_v45, 8.507059e+37  ;;  %v8301_v45 = vld [vmem:[#allocation61_spill] sm:$0xff] }
 0x9ad   :  { %v5766_v31 = vpop.eup %5765 }
 0x9ae   :  { %v2548_v12 = vadd.f32 1.0, %v5766_v31 }
 0x9af   :  { %v5768_v35 = vpop.eup %5767 }
 0x9b0   :  { %v5770_v23 = vpop.eup %5769  ;;  %v2550_v44 = vmul.f32 %v5768_v35, %v2546_v43  ;;  %5771 = vrcp.f32 %v2548_v12  ;;  %vm2555_vm1 = vweird.f32 %v5768_v35  ;;  %vm2584_vm10 = vweird.f32 %v2548_v12 }
 0x9b1   :  { %v2565_v52 = vmul.f32 %v5770_v23, %v2547_v58  ;;  %5773 = vtanh.f32 %v2536_v57  ;;  %vm2570_vm2 = vweird.f32 %v5770_v23  ;;  %vm2556_vm5 = vmor %vm2554_vm3, %vm2555_vm1 }
 0x9b2   :  { %v2551_v34 = vsub.f32 1.0, %v2550_v44  ;;  %vm2571_vm6 = vmor %vm2569_vm4, %vm2570_vm2 }
 0x9b3   :  { %v2566_v3 = vsub.f32 1.0, %v2565_v52 }
 0x9b4   :  { %v2552_v59 = vmul.f32 %v5768_v35, %v2551_v34 }
 0x9b5   :  { %v2567_v25 = vmul.f32 %v5770_v23, %v2566_v3  ;;  %v2590_v3 = vand.u32 2147483648, %v2548_v12 }
 0x9b6   :  { %v5772_v7 = vpop.eup %5771  ;;  %v2553_v18 = vadd.f32 %v5768_v35, %v2552_v59 }
 0x9b7   :  { %v2580_v27 = vmul.f32 %v5772_v7, %v2548_v12  ;;  %v2568_v13 = vadd.f32 %v5770_v23, %v2567_v25  ;;  %v5774_v19 = vpop.eup %5773  ;;  %vm2585_vm9 = vweird.f32 %v5772_v7  ;;  %v2591_v10 = vor.u32 1.1754944e-38, %v2590_v3 }
 0x9b8   :  { %v2557_v29 = vsel %vm2556_vm5, %v5768_v35, %v2553_v18  ;;  %v2588_v35 = vand.u32 2147483647, %v2548_v12  ;;  %vm2586_vm11 = vmor %vm2584_vm10, %vm2585_vm9 }
 0x9b9   :  { %v2581_v31 = vsub.f32 1.0, %v2580_v27  ;;  %v2562_v40 = vsel %vm2559_vm7, %v2561_v63, %v2557_v29  ;;  %v2572_v53 = vsel %vm2571_vm6, %v5770_v23, %v2568_v13 }
 0x9ba   :  { %v2577_v57 = vsel %vm2574_vm8, %v2576_v62, %v2572_v53  ;;  %v2596_v44 = vmul.f32 %v5774_v19, %v2562_v40  ;;  %vm2589_vm12 = vcmp.eq.f32.partialorder %v2588_v35, 8.507059e+37  ;;  %v8302_v19 = vld [vmem:[#allocation62_spill] sm:$0xff] }
 0x9bb   :  { %v2582_v52 = vmul.f32 %v5772_v7, %v2581_v31  ;;  %v2595_v34 = vmul.f32 %v2577_v57, %v7300_v5  ;;  %v8300_v5 = vld [vmem:[#allocation60_spill] sm:$0xff]  ;;  %v468_v31 = vadd.f32 %v8302_v19, %v6805_v38 }
 0x9bc   :  { %v290_v12 = vadd.f32 %v8300_v5, %v6793_v37 }
 0x9bd   :  { %v7344_v43 = vadd.f32 %v2596_v44, %v2595_v34  ;;  %v2583_v58 = vadd.f32 %v5772_v7, %v2582_v52 }
 0x9bf   :  { %5775 = vtanh.f32 %v7344_v43  ;;  %v2587_v55 = vsel %vm2586_vm11, %v5772_v7, %v2583_v58  ;;  %v379_v7 = vadd.f32 %v8301_v45, %v6795_v41 }
 0x9c0   :  { %v2592_v59 = vsel %vm2589_vm12, %v2591_v10, %v2587_v55 }
 0x9c5   :  { %v5776_v23 = vpop.eup %5775 }
 0x9c6   :  { %v2599_v14 = vmul.f32 %v5776_v23, %v2592_v59 }
 0x9c8   :  { %2601 = vst [vmem:[#allocation8 + $0x60] sm:$0xff] %v2599_v14  ;;  %v2609_v25 = vpack.c.bf16 %v2599_v14, %v2599_v14  ;;  %v8303_v14 = vld [vmem:[#allocation63_spill] sm:$0xff] }
 0x9ca   :  { %2618 = vmatmul.bf16.vlgmr.msra.gmra.mxu0 %v2609_v25  ;;  %2631 = vmatmul.bf16.vlgmr.msra.gmra.mxu1 %v2609_v25 }
 0x9cb   :  { %2644 = vmatmul.bf16.vlgmr.msra.gmra.mxu2 %v2609_v25  ;;  %2657 = vmatmul.bf16.vlgmr.msra.gmra.mxu3 %v2609_v25  ;;  %v557_v25 = vadd.f32 %v8303_v14, %v6809_v54 }
 0x9cc   :  { %2868 = vmatpush.bf16.msra.mxu0 %v6266_v16  ;;  %2881 = vmatpush.bf16.msra.mxu1 %v6268_v20 }
 0x9cd   :  { %2894 = vmatpush.bf16.msra.mxu2 %v6270_v21  ;;  %2907 = vmatpush.bf16.msra.mxu3 %v6273_v24 }
 0x9d0   :  { %2869 = vmatpush.bf16.msra.mxu0 %v6281_v28  ;;  %2882 = vmatpush.bf16.msra.mxu1 %v6284_v32 }
 0x9d1   :  { %2895 = vmatpush.bf16.msra.mxu2 %v6286_v33  ;;  %2908 = vmatpush.bf16.msra.mxu3 %v6288_v36 }
 0x9d4   :  { %2870 = vmatpush.bf16.msra.mxu0 %v6308_v42  ;;  %2883 = vmatpush.bf16.msra.mxu1 %v6310_v46 }
 0x9d5   :  { %2896 = vmatpush.bf16.msra.mxu2 %v6312_v47  ;;  %2909 = vmatpush.bf16.msra.mxu3 %v6315_v50 }
 0x9d8   :  { %2871 = vmatpush.bf16.msra.mxu0 %v6334_v56  ;;  %2884 = vmatpush.bf16.msra.mxu1 %v6336_v60 }
 0x9d9   :  { %2897 = vmatpush.bf16.msra.mxu2 %v6338_v61  ;;  %2910 = vmatpush.bf16.msra.mxu3 %v6341_v0 }
 0x9dc   :  { %2872 = vmatpush.bf16.msra.mxu0 %v6360_v6  ;;  %2885 = vmatpush.bf16.msra.mxu1 %v6362_v8 }
 0x9dd   :  { %2898 = vmatpush.bf16.msra.mxu2 %v6366_v11  ;;  %2911 = vmatpush.bf16.msra.mxu3 %v6373_v15 }
 0x9e0   :  { %2873 = vmatpush.bf16.msra.mxu0 %v6390_v26  ;;  %2886 = vmatpush.bf16.msra.mxu1 %v6394_v30 }
 0x9e1   :  { %2899 = vmatpush.bf16.msra.mxu2 %v6404_v39  ;;  %2912 = vmatpush.bf16.msra.mxu3 %v6419_v51 }
 0x9e4   :  { %2874 = vmatpush.bf16.msra.mxu0 %v6448_v4  ;;  %2887 = vmatpush.bf16.msra.mxu1 %v6452_v9 }
 0x9e5   :  { %2900 = vmatpush.bf16.msra.mxu2 %v6462_v22  ;;  %2913 = vmatpush.bf16.msra.mxu3 %v6477_v49 }
 0x9e8   :  { %2875 = vmatpush.bf16.msra.mxu0 %v6506_v2  ;;  %2888 = vmatpush.bf16.msra.mxu1 %v6510_v17 }
 0x9e9   :  { %2901 = vmatpush.bf16.msra.mxu2 %v6522_v48  ;;  %2914 = vmatpush.bf16.msra.mxu3 %v6543_v1 }
 0xa47   :  { %v2619_v18 = vpop.f32.mrf.mxu0  ;;  %v2632_v27 = vpop.f32.mrf.mxu1 }
 0xa48   :  { %v2662_v63 = vadd.f32 %v2619_v18, %v290_v12  ;;  %v2663_v13 = vadd.f32 %v2632_v27, %v379_v7 }
 0xa4a   :  { %v5452_v62 = vmul.f32 -1.442695, %v2662_v63  ;;  %v5453_v29 = vmul.f32 -1.442695, %v2663_v13 }
 0xa4c   :  { %5777 = vpow2.f32 %v5452_v62 }
 0xa4d   :  { %5779 = vpow2.f32 %v5453_v29 }
 0xa4e   :  { %v2645_v40 = vpop.f32.mrf.mxu2  ;;  %v2658_v53 = vpop.f32.mrf.mxu3 }
 0xa4f   :  { %v2664_v57 = vadd.f32 %v2645_v40, %v468_v31  ;;  %v2621_v44 = vpop.f32.mrf.mxu0  ;;  %v2634_v52 = vpop.f32.mrf.mxu1  ;;  %v2665_v45 = vadd.f32 %v2658_v53, %v557_v25 }
 0xa51   :  { %v5454_v34 = vmul.f32 -1.442695, %v2664_v57 }
 0xa52   :  { %v5778_v58 = vpop.eup %5777 }
 0xa53   :  { %v5780_v3 = vpop.eup %5779  ;;  %v2675_v35 = vadd.f32 1.0, %v5778_v58  ;;  %5781 = vpow2.f32 %v5454_v34 }
 0xa54   :  { %v2676_v55 = vadd.f32 1.0, %v5780_v3 }
 0xa55   :  { %5783 = vrcp.f32 %v2675_v35  ;;  %v2689_v62 = vand.u32 2147483648, %v2675_v35  ;;  %v2687_v31 = vand.u32 2147483647, %v2675_v35  ;;  %vm2683_vm15 = vweird.f32 %v2675_v35 }
 0xa56   :  { %5785 = vrcp.f32 %v2676_v55  ;;  %v2647_v10 = vpop.f32.mrf.mxu2  ;;  %v2660_v23 = vpop.f32.mrf.mxu3  ;;  %v2704_v29 = vand.u32 2147483648, %v2676_v55  ;;  %v2702_v57 = vand.u32 2147483647, %v2676_v55  ;;  %vm2698_vm0 = vweird.f32 %v2676_v55 }
 0xa57   :  { %v2690_v34 = vor.u32 1.1754944e-38, %v2689_v62  ;;  %vm2688_vm3 = vcmp.eq.f32.partialorder %v2687_v31, 8.507059e+37 }
 0xa58   :  { %v2705_v3 = vor.u32 1.1754944e-38, %v2704_v29  ;;  %vm2703_vm4 = vcmp.eq.f32.partialorder %v2702_v57, 8.507059e+37  ;;  %v8305_v57 = vld [vmem:[#allocation65_spill] sm:$0xff] }
 0xa59   :  { %v5782_v59 = vpop.eup %5781 }
 0xa5a   :  { %v2677_v5 = vadd.f32 1.0, %v5782_v59 }
 0xa5b   :  { %v5784_v12 = vpop.eup %5783 }
 0xa5c   :  { %v5786_v7 = vpop.eup %5785  ;;  %v2679_v18 = vmul.f32 %v5784_v12, %v2675_v35  ;;  %5787 = vrcp.f32 %v2677_v5  ;;  %vm2684_vm13 = vweird.f32 %v5784_v12  ;;  %vm2713_vm6 = vweird.f32 %v2677_v5 }
 0xa5d   :  { %v2694_v27 = vmul.f32 %v5786_v7, %v2676_v55  ;;  %5789 = vtanh.f32 %v2665_v45  ;;  %vm2699_vm14 = vweird.f32 %v5786_v7  ;;  %vm2685_vm1 = vmor %vm2683_vm15, %vm2684_vm13 }
 0xa5e   :  { %v2680_v63 = vsub.f32 1.0, %v2679_v18  ;;  %vm2700_vm2 = vmor %vm2698_vm0, %vm2699_vm14 }
 0xa5f   :  { %v2695_v13 = vsub.f32 1.0, %v2694_v27 }
 0xa60   :  { %v2681_v19 = vmul.f32 %v5784_v12, %v2680_v63 }
 0xa61   :  { %v2696_v40 = vmul.f32 %v5786_v7, %v2695_v13  ;;  %v2719_v13 = vand.u32 2147483648, %v2677_v5 }
 0xa62   :  { %v5788_v44 = vpop.eup %5787  ;;  %v2682_v52 = vadd.f32 %v5784_v12, %v2681_v19 }
 0xa63   :  { %v2709_v53 = vmul.f32 %v5788_v44, %v2677_v5  ;;  %v2697_v58 = vadd.f32 %v5786_v7, %v2696_v40  ;;  %v5790_v23 = vpop.eup %5789  ;;  %vm2714_vm5 = vweird.f32 %v5788_v44  ;;  %v2720_v29 = vor.u32 1.1754944e-38, %v2719_v13 }
 0xa64   :  { %v2686_v10 = vsel %vm2685_vm1, %v5784_v12, %v2682_v52  ;;  %v2717_v12 = vand.u32 2147483647, %v2677_v5  ;;  %vm2715_vm7 = vmor %vm2713_vm6, %vm2714_vm5 }
 0xa65   :  { %v2710_v59 = vsub.f32 1.0, %v2709_v53  ;;  %v2691_v14 = vsel %vm2688_vm3, %v2690_v34, %v2686_v10  ;;  %v2701_v25 = vsel %vm2700_vm2, %v5786_v7, %v2697_v58 }
 0xa66   :  { %v2706_v45 = vsel %vm2703_vm4, %v2705_v3, %v2701_v25  ;;  %v2725_v18 = vmul.f32 %v5790_v23, %v2691_v14  ;;  %vm2718_vm8 = vcmp.eq.f32.partialorder %v2717_v12, 8.507059e+37  ;;  %v8306_v23 = vld [vmem:[#allocation66_spill] sm:$0xff] }
 0xa67   :  { %v2711_v27 = vmul.f32 %v5788_v44, %v2710_v59  ;;  %v2724_v63 = vmul.f32 %v2706_v45, %v7344_v43  ;;  %v8304_v43 = vld [vmem:[#allocation64_spill] sm:$0xff]  ;;  %v471_v59 = vadd.f32 %v8306_v23, %v6805_v38 }
 0xa68   :  { %v293_v5 = vadd.f32 %v8304_v43, %v6793_v37 }
 0xa69   :  { %v7388_v35 = vadd.f32 %v2725_v18, %v2724_v63  ;;  %v2712_v55 = vadd.f32 %v5788_v44, %v2711_v27 }
 0xa6b   :  { %5791 = vtanh.f32 %v7388_v35  ;;  %v2716_v62 = vsel %vm2715_vm7, %v5788_v44, %v2712_v55  ;;  %v382_v44 = vadd.f32 %v8305_v57, %v6795_v41 }
 0xa6c   :  { %v2721_v19 = vsel %vm2718_vm8, %v2720_v29, %v2716_v62 }
 0xa71   :  { %v5792_v7 = vpop.eup %5791 }
 0xa72   :  { %v2728_v31 = vmul.f32 %v5792_v7, %v2721_v19 }
 0xa74   :  { %2730 = vst [vmem:[#allocation8 + $0x68] sm:$0xff] %v2728_v31  ;;  %v2738_v40 = vpack.c.bf16 %v2728_v31, %v2728_v31  ;;  %v8307_v31 = vld [vmem:[#allocation67_spill] sm:$0xff] }
 0xa76   :  { %2747 = vmatmul.bf16.vlgmr.msrb.gmra.mxu0 %v2738_v40  ;;  %2760 = vmatmul.bf16.vlgmr.msrb.gmra.mxu1 %v2738_v40 }
 0xa77   :  { %2773 = vmatmul.bf16.vlgmr.msrb.gmra.mxu2 %v2738_v40  ;;  %2786 = vmatmul.bf16.vlgmr.msrb.gmra.mxu3 %v2738_v40  ;;  %v560_v40 = vadd.f32 %v8307_v31, %v6809_v54 }
 0xa78   :  { %2997 = vmatpush.bf16.msrb.mxu0 %v6266_v16  ;;  %3010 = vmatpush.bf16.msrb.mxu1 %v6268_v20 }
 0xa79   :  { %3023 = vmatpush.bf16.msrb.mxu2 %v6270_v21  ;;  %3036 = vmatpush.bf16.msrb.mxu3 %v6273_v24 }
 0xa7c   :  { %2998 = vmatpush.bf16.msrb.mxu0 %v6281_v28  ;;  %3011 = vmatpush.bf16.msrb.mxu1 %v6284_v32 }
 0xa7d   :  { %3024 = vmatpush.bf16.msrb.mxu2 %v6286_v33  ;;  %3037 = vmatpush.bf16.msrb.mxu3 %v6288_v36 }
 0xa80   :  { %2999 = vmatpush.bf16.msrb.mxu0 %v6308_v42  ;;  %3012 = vmatpush.bf16.msrb.mxu1 %v6310_v46 }
 0xa81   :  { %3025 = vmatpush.bf16.msrb.mxu2 %v6312_v47  ;;  %3038 = vmatpush.bf16.msrb.mxu3 %v6315_v50 }
 0xa84   :  { %3000 = vmatpush.bf16.msrb.mxu0 %v6334_v56  ;;  %3013 = vmatpush.bf16.msrb.mxu1 %v6336_v60 }
 0xa85   :  { %3026 = vmatpush.bf16.msrb.mxu2 %v6338_v61  ;;  %3039 = vmatpush.bf16.msrb.mxu3 %v6341_v0 }
 0xa88   :  { %3001 = vmatpush.bf16.msrb.mxu0 %v6360_v6  ;;  %3014 = vmatpush.bf16.msrb.mxu1 %v6362_v8 }
 0xa89   :  { %3027 = vmatpush.bf16.msrb.mxu2 %v6366_v11  ;;  %3040 = vmatpush.bf16.msrb.mxu3 %v6373_v15 }
 0xa8c   :  { %3002 = vmatpush.bf16.msrb.mxu0 %v6390_v26  ;;  %3015 = vmatpush.bf16.msrb.mxu1 %v6394_v30 }
 0xa8d   :  { %3028 = vmatpush.bf16.msrb.mxu2 %v6404_v39  ;;  %3041 = vmatpush.bf16.msrb.mxu3 %v6419_v51 }
 0xa90   :  { %3003 = vmatpush.bf16.msrb.mxu0 %v6448_v4  ;;  %3016 = vmatpush.bf16.msrb.mxu1 %v6452_v9 }
 0xa91   :  { %3029 = vmatpush.bf16.msrb.mxu2 %v6462_v22  ;;  %3042 = vmatpush.bf16.msrb.mxu3 %v6477_v49 }
 0xa94   :  { %3004 = vmatpush.bf16.msrb.mxu0 %v6506_v2  ;;  %3017 = vmatpush.bf16.msrb.mxu1 %v6510_v17 }
 0xa95   :  { %3030 = vmatpush.bf16.msrb.mxu2 %v6522_v48  ;;  %3043 = vmatpush.bf16.msrb.mxu3 %v6543_v1 }
 0xaf3   :  { %v2748_v52 = vpop.f32.mrf.mxu0  ;;  %v2761_v53 = vpop.f32.mrf.mxu1 }
 0xaf4   :  { %v2791_v34 = vadd.f32 %v2748_v52, %v293_v5  ;;  %v2792_v58 = vadd.f32 %v2761_v53, %v382_v44 }
 0xaf6   :  { %v5455_v3 = vmul.f32 -1.442695, %v2791_v34  ;;  %v5456_v10 = vmul.f32 -1.442695, %v2792_v58 }
 0xaf8   :  { %5793 = vpow2.f32 %v5455_v3 }
 0xaf9   :  { %5795 = vpow2.f32 %v5456_v10 }
 0xafa   :  { %v2774_v14 = vpop.f32.mrf.mxu2  ;;  %v2787_v25 = vpop.f32.mrf.mxu3 }
 0xafb   :  { %v2793_v45 = vadd.f32 %v2774_v14, %v471_v59  ;;  %v2750_v18 = vpop.f32.mrf.mxu0  ;;  %v2763_v27 = vpop.f32.mrf.mxu1  ;;  %v2794_v57 = vadd.f32 %v2787_v25, %v560_v40 }
 0xafd   :  { %v5457_v63 = vmul.f32 -1.442695, %v2793_v45 }
 0xafe   :  { %v5794_v55 = vpop.eup %5793 }
 0xaff   :  { %v5796_v13 = vpop.eup %5795  ;;  %v2804_v12 = vadd.f32 1.0, %v5794_v55  ;;  %5797 = vpow2.f32 %v5457_v63 }
 0xb00   :  { %v2805_v62 = vadd.f32 1.0, %v5796_v13 }
 0xb01   :  { %5799 = vrcp.f32 %v2804_v12  ;;  %v2818_v3 = vand.u32 2147483648, %v2804_v12  ;;  %v2816_v59 = vand.u32 2147483647, %v2804_v12  ;;  %vm2812_vm11 = vweird.f32 %v2804_v12 }
 0xb02   :  { %5801 = vrcp.f32 %v2805_v62  ;;  %v2776_v29 = vpop.f32.mrf.mxu2  ;;  %v2789_v7 = vpop.f32.mrf.mxu3  ;;  %v2833_v10 = vand.u32 2147483648, %v2805_v62  ;;  %v2831_v45 = vand.u32 2147483647, %v2805_v62  ;;  %vm2827_vm12 = vweird.f32 %v2805_v62 }
 0xb03   :  { %v2819_v63 = vor.u32 1.1754944e-38, %v2818_v3  ;;  %vm2817_vm15 = vcmp.eq.f32.partialorder %v2816_v59, 8.507059e+37 }
 0xb04   :  { %v2834_v13 = vor.u32 1.1754944e-38, %v2833_v10  ;;  %vm2832_vm0 = vcmp.eq.f32.partialorder %v2831_v45, 8.507059e+37  ;;  %v8309_v45 = vld [vmem:[#allocation69_spill] sm:$0xff] }
 0xb05   :  { %v5798_v19 = vpop.eup %5797 }
 0xb06   :  { %v2806_v43 = vadd.f32 1.0, %v5798_v19 }
 0xb07   :  { %v5800_v5 = vpop.eup %5799 }
 0xb08   :  { %v5802_v44 = vpop.eup %5801  ;;  %v2808_v52 = vmul.f32 %v5800_v5, %v2804_v12  ;;  %5803 = vrcp.f32 %v2806_v43  ;;  %vm2813_vm9 = vweird.f32 %v5800_v5  ;;  %vm2842_vm2 = vweird.f32 %v2806_v43 }
 0xb09   :  { %v2823_v53 = vmul.f32 %v5802_v44, %v2805_v62  ;;  %5805 = vtanh.f32 %v2794_v57  ;;  %vm2828_vm10 = vweird.f32 %v5802_v44  ;;  %vm2814_vm13 = vmor %vm2812_vm11, %vm2813_vm9 }
 0xb0a   :  { %v2809_v34 = vsub.f32 1.0, %v2808_v52  ;;  %vm2829_vm14 = vmor %vm2827_vm12, %vm2828_vm10 }
 0xb0b   :  { %v2824_v58 = vsub.f32 1.0, %v2823_v53 }
 0xb0c   :  { %v2810_v23 = vmul.f32 %v5800_v5, %v2809_v34 }
 0xb0d   :  { %v2825_v14 = vmul.f32 %v5802_v44, %v2824_v58  ;;  %v2848_v58 = vand.u32 2147483648, %v2806_v43 }
 0xb0e   :  { %v5804_v18 = vpop.eup %5803  ;;  %v2811_v27 = vadd.f32 %v5800_v5, %v2810_v23 }
 0xb0f   :  { %v2838_v25 = vmul.f32 %v5804_v18, %v2806_v43  ;;  %v2826_v55 = vadd.f32 %v5802_v44, %v2825_v14  ;;  %v5806_v7 = vpop.eup %5805  ;;  %vm2843_vm1 = vweird.f32 %v5804_v18  ;;  %v2849_v10 = vor.u32 1.1754944e-38, %v2848_v58 }
 0xb10   :  { %v2815_v29 = vsel %vm2814_vm13, %v5800_v5, %v2811_v27  ;;  %v2846_v5 = vand.u32 2147483647, %v2806_v43  ;;  %vm2844_vm3 = vmor %vm2842_vm2, %vm2843_vm1 }
 0xb11   :  { %v2839_v19 = vsub.f32 1.0, %v2838_v25  ;;  %v2820_v31 = vsel %vm2817_vm15, %v2819_v63, %v2815_v29  ;;  %v2830_v40 = vsel %vm2829_vm14, %v5802_v44, %v2826_v55 }
 0xb12   :  { %v2835_v57 = vsel %vm2832_vm0, %v2834_v13, %v2830_v40  ;;  %v2854_v52 = vmul.f32 %v5806_v7, %v2820_v31  ;;  %vm2847_vm4 = vcmp.eq.f32.partialorder %v2846_v5, 8.507059e+37  ;;  %v8310_v7 = vld [vmem:[#allocation70_spill] sm:$0xff] }
 0xb13   :  { %v2840_v53 = vmul.f32 %v5804_v18, %v2839_v19  ;;  %v2853_v34 = vmul.f32 %v2835_v57, %v7388_v35  ;;  %v8308_v35 = vld [vmem:[#allocation68_spill] sm:$0xff]  ;;  %v473_v19 = vadd.f32 %v8310_v7, %v6805_v38 }
 0xb14   :  { %v295_v43 = vadd.f32 %v8308_v35, %v6793_v37 }
 0xb15   :  { %v7432_v12 = vadd.f32 %v2854_v52, %v2853_v34  ;;  %v2841_v62 = vadd.f32 %v5804_v18, %v2840_v53 }
 0xb17   :  { %5807 = vtanh.f32 %v7432_v12  ;;  %v2845_v3 = vsel %vm2844_vm3, %v5804_v18, %v2841_v62  ;;  %v384_v18 = vadd.f32 %v8309_v45, %v6795_v41 }
 0xb18   :  { %v2850_v23 = vsel %vm2847_vm4, %v2849_v10, %v2845_v3 }
 0xb1d   :  { %v5808_v44 = vpop.eup %5807 }
 0xb1e   :  { %v2857_v59 = vmul.f32 %v5808_v44, %v2850_v23 }
 0xb20   :  { %2859 = vst [vmem:[#allocation8 + $0x70] sm:$0xff] %v2857_v59  ;;  %v2867_v14 = vpack.c.bf16 %v2857_v59, %v2857_v59  ;;  %v8311_v59 = vld [vmem:[#allocation71_spill] sm:$0xff] }
 0xb22   :  { %2876 = vmatmul.bf16.vlgmr.msra.gmra.mxu0 %v2867_v14  ;;  %2889 = vmatmul.bf16.vlgmr.msra.gmra.mxu1 %v2867_v14 }
 0xb23   :  { %2902 = vmatmul.bf16.vlgmr.msra.gmra.mxu2 %v2867_v14  ;;  %2915 = vmatmul.bf16.vlgmr.msra.gmra.mxu3 %v2867_v14  ;;  %v562_v14 = vadd.f32 %v8311_v59, %v6809_v54 }
 0xb24   :  { %3126 = vmatpush.bf16.msra.mxu0 %v6266_v16  ;;  %3139 = vmatpush.bf16.msra.mxu1 %v6268_v20 }
 0xb25   :  { %3152 = vmatpush.bf16.msra.mxu2 %v6270_v21  ;;  %3165 = vmatpush.bf16.msra.mxu3 %v6273_v24 }
 0xb28   :  { %3127 = vmatpush.bf16.msra.mxu0 %v6281_v28  ;;  %3140 = vmatpush.bf16.msra.mxu1 %v6284_v32 }
 0xb29   :  { %3153 = vmatpush.bf16.msra.mxu2 %v6286_v33  ;;  %3166 = vmatpush.bf16.msra.mxu3 %v6288_v36 }
 0xb2c   :  { %3128 = vmatpush.bf16.msra.mxu0 %v6308_v42  ;;  %3141 = vmatpush.bf16.msra.mxu1 %v6310_v46 }
 0xb2d   :  { %3154 = vmatpush.bf16.msra.mxu2 %v6312_v47  ;;  %3167 = vmatpush.bf16.msra.mxu3 %v6315_v50 }
 0xb30   :  { %3129 = vmatpush.bf16.msra.mxu0 %v6334_v56  ;;  %3142 = vmatpush.bf16.msra.mxu1 %v6336_v60 }
 0xb31   :  { %3155 = vmatpush.bf16.msra.mxu2 %v6338_v61  ;;  %3168 = vmatpush.bf16.msra.mxu3 %v6341_v0 }
 0xb34   :  { %3130 = vmatpush.bf16.msra.mxu0 %v6360_v6  ;;  %3143 = vmatpush.bf16.msra.mxu1 %v6362_v8 }
 0xb35   :  { %3156 = vmatpush.bf16.msra.mxu2 %v6366_v11  ;;  %3169 = vmatpush.bf16.msra.mxu3 %v6373_v15 }
 0xb38   :  { %3131 = vmatpush.bf16.msra.mxu0 %v6390_v26  ;;  %3144 = vmatpush.bf16.msra.mxu1 %v6394_v30 }
 0xb39   :  { %3157 = vmatpush.bf16.msra.mxu2 %v6404_v39  ;;  %3170 = vmatpush.bf16.msra.mxu3 %v6419_v51 }
 0xb3c   :  { %3132 = vmatpush.bf16.msra.mxu0 %v6448_v4  ;;  %3145 = vmatpush.bf16.msra.mxu1 %v6452_v9 }
 0xb3d   :  { %3158 = vmatpush.bf16.msra.mxu2 %v6462_v22  ;;  %3171 = vmatpush.bf16.msra.mxu3 %v6477_v49 }
 0xb40   :  { %3133 = vmatpush.bf16.msra.mxu0 %v6506_v2  ;;  %3146 = vmatpush.bf16.msra.mxu1 %v6510_v17 }
 0xb41   :  { %3159 = vmatpush.bf16.msra.mxu2 %v6522_v48  ;;  %3172 = vmatpush.bf16.msra.mxu3 %v6543_v1 }
 0xb9f   :  { %v2877_v27 = vpop.f32.mrf.mxu0  ;;  %v2890_v25 = vpop.f32.mrf.mxu1 }
 0xba0   :  { %v2920_v63 = vadd.f32 %v2877_v27, %v295_v43  ;;  %v2921_v55 = vadd.f32 %v2890_v25, %v384_v18 }
 0xba2   :  { %v5458_v13 = vmul.f32 -1.442695, %v2920_v63  ;;  %v5459_v29 = vmul.f32 -1.442695, %v2921_v55 }
 0xba4   :  { %5809 = vpow2.f32 %v5458_v13 }
 0xba5   :  { %5811 = vpow2.f32 %v5459_v29 }
 0xba6   :  { %v2903_v31 = vpop.f32.mrf.mxu2  ;;  %v2916_v40 = vpop.f32.mrf.mxu3 }
 0xba7   :  { %v2922_v57 = vadd.f32 %v2903_v31, %v473_v19  ;;  %v2879_v52 = vpop.f32.mrf.mxu0  ;;  %v2892_v53 = vpop.f32.mrf.mxu1  ;;  %v2923_v45 = vadd.f32 %v2916_v40, %v562_v14 }
 0xba9   :  { %v5460_v34 = vmul.f32 -1.442695, %v2922_v57 }
 0xbaa   :  { %v5810_v62 = vpop.eup %5809 }
 0xbab   :  { %v5812_v58 = vpop.eup %5811  ;;  %v2933_v5 = vadd.f32 1.0, %v5810_v62  ;;  %5813 = vpow2.f32 %v5460_v34 }
 0xbac   :  { %v2934_v3 = vadd.f32 1.0, %v5812_v58 }
 0xbad   :  { %5815 = vrcp.f32 %v2933_v5  ;;  %v2947_v13 = vand.u32 2147483648, %v2933_v5  ;;  %v2945_v19 = vand.u32 2147483647, %v2933_v5  ;;  %vm2941_vm7 = vweird.f32 %v2933_v5 }
 0xbae   :  { %5817 = vrcp.f32 %v2934_v3  ;;  %v2905_v10 = vpop.f32.mrf.mxu2  ;;  %v2918_v44 = vpop.f32.mrf.mxu3  ;;  %v2962_v29 = vand.u32 2147483648, %v2934_v3  ;;  %v2960_v57 = vand.u32 2147483647, %v2934_v3  ;;  %vm2956_vm8 = vweird.f32 %v2934_v3 }
 0xbaf   :  { %v2948_v34 = vor.u32 1.1754944e-38, %v2947_v13  ;;  %vm2946_vm11 = vcmp.eq.f32.partialorder %v2945_v19, 8.507059e+37 }
 0xbb0   :  { %v2963_v58 = vor.u32 1.1754944e-38, %v2962_v29  ;;  %vm2961_vm12 = vcmp.eq.f32.partialorder %v2960_v57, 8.507059e+37  ;;  %v8313_v57 = vld [vmem:[#allocation73_spill] sm:$0xff] }
 0xbb1   :  { %v5814_v23 = vpop.eup %5813 }
 0xbb2   :  { %v2935_v35 = vadd.f32 1.0, %v5814_v23 }
 0xbb3   :  { %v5816_v43 = vpop.eup %5815 }
 0xbb4   :  { %v5818_v18 = vpop.eup %5817  ;;  %v2937_v27 = vmul.f32 %v5816_v43, %v2933_v5  ;;  %5819 = vrcp.f32 %v2935_v35  ;;  %vm2942_vm5 = vweird.f32 %v5816_v43  ;;  %vm2971_vm14 = vweird.f32 %v2935_v35 }
 0xbb5   :  { %v2952_v25 = vmul.f32 %v5818_v18, %v2934_v3  ;;  %5821 = vtanh.f32 %v2923_v45  ;;  %vm2957_vm6 = vweird.f32 %v5818_v18  ;;  %vm2943_vm9 = vmor %vm2941_vm7, %vm2942_vm5 }
 0xbb6   :  { %v2938_v63 = vsub.f32 1.0, %v2937_v27  ;;  %vm2958_vm10 = vmor %vm2956_vm8, %vm2957_vm6 }
 0xbb7   :  { %v2953_v55 = vsub.f32 1.0, %v2952_v25 }
 0xbb8   :  { %v2939_v7 = vmul.f32 %v5816_v43, %v2938_v63 }
 0xbb9   :  { %v2954_v31 = vmul.f32 %v5818_v18, %v2953_v55  ;;  %v2977_v55 = vand.u32 2147483648, %v2935_v35 }
 0xbba   :  { %v5820_v52 = vpop.eup %5819  ;;  %v2940_v53 = vadd.f32 %v5816_v43, %v2939_v7 }
 0xbbb   :  { %v2967_v40 = vmul.f32 %v5820_v52, %v2935_v35  ;;  %v2955_v62 = vadd.f32 %v5818_v18, %v2954_v31  ;;  %v5822_v44 = vpop.eup %5821  ;;  %vm2972_vm13 = vweird.f32 %v5820_v52  ;;  %v2978_v29 = vor.u32 1.1754944e-38, %v2977_v55 }
 0xbbc   :  { %v2944_v10 = vsel %vm2943_vm9, %v5816_v43, %v2940_v53  ;;  %v2975_v43 = vand.u32 2147483647, %v2935_v35  ;;  %vm2973_vm15 = vmor %vm2971_vm14, %vm2972_vm13 }
 0xbbd   :  { %v2968_v23 = vsub.f32 1.0, %v2967_v40  ;;  %v2949_v59 = vsel %vm2946_vm11, %v2948_v34, %v2944_v10  ;;  %v2959_v14 = vsel %vm2958_vm10, %v5818_v18, %v2955_v62 }
 0xbbe   :  { %v2964_v45 = vsel %vm2961_vm12, %v2963_v58, %v2959_v14  ;;  %v2983_v27 = vmul.f32 %v5822_v44, %v2949_v59  ;;  %vm2976_vm0 = vcmp.eq.f32.partialorder %v2975_v43, 8.507059e+37  ;;  %v8314_v44 = vld [vmem:[#allocation74_spill] sm:$0xff] }
 0xbbf   :  { %v2969_v25 = vmul.f32 %v5820_v52, %v2968_v23  ;;  %v2982_v63 = vmul.f32 %v2964_v45, %v7432_v12  ;;  %v8312_v12 = vld [vmem:[#allocation72_spill] sm:$0xff]  ;;  %v476_v23 = vadd.f32 %v8314_v44, %v6805_v38 }
 0xbc0   :  { %v298_v35 = vadd.f32 %v8312_v12, %v6793_v37 }
 0xbc1   :  { %v7476_v5 = vadd.f32 %v2983_v27, %v2982_v63  ;;  %v2970_v3 = vadd.f32 %v5820_v52, %v2969_v25 }
 0xbc3   :  { %5823 = vtanh.f32 %v7476_v5  ;;  %v2974_v13 = vsel %vm2973_vm15, %v5820_v52, %v2970_v3  ;;  %v387_v52 = vadd.f32 %v8313_v57, %v6795_v41 }
 0xbc4   :  { %v2979_v7 = vsel %vm2976_vm0, %v2978_v29, %v2974_v13 }
 0xbc9   :  { %v5824_v18 = vpop.eup %5823 }
 0xbca   :  { %v2986_v19 = vmul.f32 %v5824_v18, %v2979_v7 }
 0xbcc   :  { %2988 = vst [vmem:[#allocation8 + $0x78] sm:$0xff] %v2986_v19  ;;  %v2996_v31 = vpack.c.bf16 %v2986_v19, %v2986_v19  ;;  %v8315_v19 = vld [vmem:[#allocation75_spill] sm:$0xff] }
 0xbce   :  { %3005 = vmatmul.bf16.vlgmr.msrb.gmra.mxu0 %v2996_v31  ;;  %3018 = vmatmul.bf16.vlgmr.msrb.gmra.mxu1 %v2996_v31 }
 0xbcf   :  { %3031 = vmatmul.bf16.vlgmr.msrb.gmra.mxu2 %v2996_v31  ;;  %3044 = vmatmul.bf16.vlgmr.msrb.gmra.mxu3 %v2996_v31  ;;  %v565_v31 = vadd.f32 %v8315_v19, %v6809_v54 }
 0xbd0   :  { %3255 = vmatpush.bf16.msrb.mxu0 %v6266_v16  ;;  %3268 = vmatpush.bf16.msrb.mxu1 %v6268_v20 }
 0xbd1   :  { %3281 = vmatpush.bf16.msrb.mxu2 %v6270_v21  ;;  %3294 = vmatpush.bf16.msrb.mxu3 %v6273_v24 }
 0xbd4   :  { %3256 = vmatpush.bf16.msrb.mxu0 %v6281_v28  ;;  %3269 = vmatpush.bf16.msrb.mxu1 %v6284_v32 }
 0xbd5   :  { %3282 = vmatpush.bf16.msrb.mxu2 %v6286_v33  ;;  %3295 = vmatpush.bf16.msrb.mxu3 %v6288_v36 }
 0xbd8   :  { %3257 = vmatpush.bf16.msrb.mxu0 %v6308_v42  ;;  %3270 = vmatpush.bf16.msrb.mxu1 %v6310_v46 }
 0xbd9   :  { %3283 = vmatpush.bf16.msrb.mxu2 %v6312_v47  ;;  %3296 = vmatpush.bf16.msrb.mxu3 %v6315_v50 }
 0xbdc   :  { %3258 = vmatpush.bf16.msrb.mxu0 %v6334_v56  ;;  %3271 = vmatpush.bf16.msrb.mxu1 %v6336_v60 }
 0xbdd   :  { %3284 = vmatpush.bf16.msrb.mxu2 %v6338_v61  ;;  %3297 = vmatpush.bf16.msrb.mxu3 %v6341_v0 }
 0xbe0   :  { %3259 = vmatpush.bf16.msrb.mxu0 %v6360_v6  ;;  %3272 = vmatpush.bf16.msrb.mxu1 %v6362_v8 }
 0xbe1   :  { %3285 = vmatpush.bf16.msrb.mxu2 %v6366_v11  ;;  %3298 = vmatpush.bf16.msrb.mxu3 %v6373_v15 }
 0xbe4   :  { %3260 = vmatpush.bf16.msrb.mxu0 %v6390_v26  ;;  %3273 = vmatpush.bf16.msrb.mxu1 %v6394_v30 }
 0xbe5   :  { %3286 = vmatpush.bf16.msrb.mxu2 %v6404_v39  ;;  %3299 = vmatpush.bf16.msrb.mxu3 %v6419_v51 }
 0xbe8   :  { %3261 = vmatpush.bf16.msrb.mxu0 %v6448_v4  ;;  %3274 = vmatpush.bf16.msrb.mxu1 %v6452_v9 }
 0xbe9   :  { %3287 = vmatpush.bf16.msrb.mxu2 %v6462_v22  ;;  %3300 = vmatpush.bf16.msrb.mxu3 %v6477_v49 }
 0xbec   :  { %3262 = vmatpush.bf16.msrb.mxu0 %v6506_v2  ;;  %3275 = vmatpush.bf16.msrb.mxu1 %v6510_v17 }
 0xbed   :  { %3288 = vmatpush.bf16.msrb.mxu2 %v6522_v48  ;;  %3301 = vmatpush.bf16.msrb.mxu3 %v6543_v1 }
 0xc4b   :  { %v3006_v53 = vpop.f32.mrf.mxu0  ;;  %v3019_v40 = vpop.f32.mrf.mxu1 }
 0xc4c   :  { %v3049_v34 = vadd.f32 %v3006_v53, %v298_v35  ;;  %v3050_v62 = vadd.f32 %v3019_v40, %v387_v52 }
 0xc4e   :  { %v5461_v58 = vmul.f32 -1.442695, %v3049_v34  ;;  %v5462_v10 = vmul.f32 -1.442695, %v3050_v62 }
 0xc50   :  { %5825 = vpow2.f32 %v5461_v58 }
 0xc51   :  { %5827 = vpow2.f32 %v5462_v10 }
 0xc52   :  { %v3032_v59 = vpop.f32.mrf.mxu2  ;;  %v3045_v14 = vpop.f32.mrf.mxu3 }
 0xc53   :  { %v3051_v45 = vadd.f32 %v3032_v59, %v476_v23  ;;  %v3008_v27 = vpop.f32.mrf.mxu0  ;;  %v3021_v25 = vpop.f32.mrf.mxu1  ;;  %v3052_v57 = vadd.f32 %v3045_v14, %v565_v31 }
 0xc55   :  { %v5463_v63 = vmul.f32 -1.442695, %v3051_v45 }
 0xc56   :  { %v5826_v3 = vpop.eup %5825 }
 0xc57   :  { %v5828_v55 = vpop.eup %5827  ;;  %v3062_v43 = vadd.f32 1.0, %v5826_v3  ;;  %5829 = vpow2.f32 %v5463_v63 }
 0xc58   :  { %v3063_v13 = vadd.f32 1.0, %v5828_v55 }
 0xc59   :  { %5831 = vrcp.f32 %v3062_v43  ;;  %v3076_v58 = vand.u32 2147483648, %v3062_v43  ;;  %v3074_v23 = vand.u32 2147483647, %v3062_v43  ;;  %vm3070_vm3 = vweird.f32 %v3062_v43 }
 0xc5a   :  { %5833 = vrcp.f32 %v3063_v13  ;;  %v3034_v29 = vpop.f32.mrf.mxu2  ;;  %v3047_v18 = vpop.f32.mrf.mxu3  ;;  %v3091_v10 = vand.u32 2147483648, %v3063_v13  ;;  %v3089_v45 = vand.u32 2147483647, %v3063_v13  ;;  %vm3085_vm4 = vweird.f32 %v3063_v13 }
 0xc5b   :  { %v3077_v63 = vor.u32 1.1754944e-38, %v3076_v58  ;;  %vm3075_vm7 = vcmp.eq.f32.partialorder %v3074_v23, 8.507059e+37 }
 0xc5c   :  { %v3092_v55 = vor.u32 1.1754944e-38, %v3091_v10  ;;  %vm3090_vm8 = vcmp.eq.f32.partialorder %v3089_v45, 8.507059e+37  ;;  %v8317_v45 = vld [vmem:[#allocation77_spill] sm:$0xff] }
 0xc5d   :  { %v5830_v7 = vpop.eup %5829 }
 0xc5e   :  { %v3064_v12 = vadd.f32 1.0, %v5830_v7 }
 0xc5f   :  { %v5832_v35 = vpop.eup %5831 }
 0xc60   :  { %v5834_v52 = vpop.eup %5833  ;;  %v3066_v53 = vmul.f32 %v5832_v35, %v3062_v43  ;;  %5835 = vrcp.f32 %v3064_v12  ;;  %vm3071_vm1 = vweird.f32 %v5832_v35  ;;  %vm3100_vm10 = vweird.f32 %v3064_v12 }
 0xc61   :  { %v3081_v40 = vmul.f32 %v5834_v52, %v3063_v13  ;;  %5837 = vtanh.f32 %v3052_v57  ;;  %vm3086_vm2 = vweird.f32 %v5834_v52  ;;  %vm3072_vm5 = vmor %vm3070_vm3, %vm3071_vm1 }
 0xc62   :  { %v3067_v34 = vsub.f32 1.0, %v3066_v53  ;;  %vm3087_vm6 = vmor %vm3085_vm4, %vm3086_vm2 }
 0xc63   :  { %v3082_v62 = vsub.f32 1.0, %v3081_v40 }
 0xc64   :  { %v3068_v44 = vmul.f32 %v5832_v35, %v3067_v34 }
 0xc65   :  { %v3083_v59 = vmul.f32 %v5834_v52, %v3082_v62  ;;  %v3106_v62 = vand.u32 2147483648, %v3064_v12 }
 0xc66   :  { %v5836_v27 = vpop.eup %5835  ;;  %v3069_v25 = vadd.f32 %v5832_v35, %v3068_v44 }
 0xc67   :  { %v3096_v14 = vmul.f32 %v5836_v27, %v3064_v12  ;;  %v3084_v3 = vadd.f32 %v5834_v52, %v3083_v59  ;;  %v5838_v18 = vpop.eup %5837  ;;  %vm3101_vm9 = vweird.f32 %v5836_v27  ;;  %v3107_v10 = vor.u32 1.1754944e-38, %v3106_v62 }
 0xc68   :  { %v3073_v29 = vsel %vm3072_vm5, %v5832_v35, %v3069_v25  ;;  %v3104_v35 = vand.u32 2147483647, %v3064_v12  ;;  %vm3102_vm11 = vmor %vm3100_vm10, %vm3101_vm9 }
 0xc69   :  { %v3097_v7 = vsub.f32 1.0, %v3096_v14  ;;  %v3078_v19 = vsel %vm3075_vm7, %v3077_v63, %v3073_v29  ;;  %v3088_v31 = vsel %vm3087_vm6, %v5834_v52, %v3084_v3 }
 0xc6a   :  { %v3093_v57 = vsel %vm3090_vm8, %v3092_v55, %v3088_v31  ;;  %v3112_v53 = vmul.f32 %v5838_v18, %v3078_v19  ;;  %vm3105_vm12 = vcmp.eq.f32.partialorder %v3104_v35, 8.507059e+37  ;;  %v8318_v18 = vld [vmem:[#allocation78_spill] sm:$0xff] }
 0xc6b   :  { %v3098_v40 = vmul.f32 %v5836_v27, %v3097_v7  ;;  %v3111_v34 = vmul.f32 %v3093_v57, %v7476_v5  ;;  %v8316_v5 = vld [vmem:[#allocation76_spill] sm:$0xff]  ;;  %v478_v7 = vadd.f32 %v8318_v18, %v6805_v38 }
 0xc6c   :  { %v300_v12 = vadd.f32 %v8316_v5, %v6793_v37 }
 0xc6d   :  { %v7520_v43 = vadd.f32 %v3112_v53, %v3111_v34  ;;  %v3099_v13 = vadd.f32 %v5836_v27, %v3098_v40 }
 0xc6f   :  { %5839 = vtanh.f32 %v7520_v43  ;;  %v3103_v58 = vsel %vm3102_vm11, %v5836_v27, %v3099_v13  ;;  %v389_v27 = vadd.f32 %v8317_v45, %v6795_v41 }
 0xc70   :  { %v3108_v44 = vsel %vm3105_vm12, %v3107_v10, %v3103_v58 }
 0xc75   :  { %v5840_v52 = vpop.eup %5839 }
 0xc76   :  { %v3115_v23 = vmul.f32 %v5840_v52, %v3108_v44 }
 0xc78   :  { %3117 = vst [vmem:[#allocation8 + $0x80] sm:$0xff] %v3115_v23  ;;  %v3125_v59 = vpack.c.bf16 %v3115_v23, %v3115_v23  ;;  %v8319_v23 = vld [vmem:[#allocation79_spill] sm:$0xff] }
 0xc7a   :  { %3134 = vmatmul.bf16.vlgmr.msra.gmra.mxu0 %v3125_v59  ;;  %3147 = vmatmul.bf16.vlgmr.msra.gmra.mxu1 %v3125_v59 }
 0xc7b   :  { %3160 = vmatmul.bf16.vlgmr.msra.gmra.mxu2 %v3125_v59  ;;  %3173 = vmatmul.bf16.vlgmr.msra.gmra.mxu3 %v3125_v59  ;;  %v567_v59 = vadd.f32 %v8319_v23, %v6809_v54 }
 0xc7c   :  { %3384 = vmatpush.bf16.msra.mxu0 %v6266_v16  ;;  %3397 = vmatpush.bf16.msra.mxu1 %v6268_v20 }
 0xc7d   :  { %3410 = vmatpush.bf16.msra.mxu2 %v6270_v21  ;;  %3423 = vmatpush.bf16.msra.mxu3 %v6273_v24 }
 0xc80   :  { %3385 = vmatpush.bf16.msra.mxu0 %v6281_v28  ;;  %3398 = vmatpush.bf16.msra.mxu1 %v6284_v32 }
 0xc81   :  { %3411 = vmatpush.bf16.msra.mxu2 %v6286_v33  ;;  %3424 = vmatpush.bf16.msra.mxu3 %v6288_v36 }
 0xc84   :  { %3386 = vmatpush.bf16.msra.mxu0 %v6308_v42  ;;  %3399 = vmatpush.bf16.msra.mxu1 %v6310_v46 }
 0xc85   :  { %3412 = vmatpush.bf16.msra.mxu2 %v6312_v47  ;;  %3425 = vmatpush.bf16.msra.mxu3 %v6315_v50 }
 0xc88   :  { %3387 = vmatpush.bf16.msra.mxu0 %v6334_v56  ;;  %3400 = vmatpush.bf16.msra.mxu1 %v6336_v60 }
 0xc89   :  { %3413 = vmatpush.bf16.msra.mxu2 %v6338_v61  ;;  %3426 = vmatpush.bf16.msra.mxu3 %v6341_v0 }
 0xc8c   :  { %3388 = vmatpush.bf16.msra.mxu0 %v6360_v6  ;;  %3401 = vmatpush.bf16.msra.mxu1 %v6362_v8 }
 0xc8d   :  { %3414 = vmatpush.bf16.msra.mxu2 %v6366_v11  ;;  %3427 = vmatpush.bf16.msra.mxu3 %v6373_v15 }
 0xc90   :  { %3389 = vmatpush.bf16.msra.mxu0 %v6390_v26  ;;  %3402 = vmatpush.bf16.msra.mxu1 %v6394_v30 }
 0xc91   :  { %3415 = vmatpush.bf16.msra.mxu2 %v6404_v39  ;;  %3428 = vmatpush.bf16.msra.mxu3 %v6419_v51 }
 0xc94   :  { %3390 = vmatpush.bf16.msra.mxu0 %v6448_v4  ;;  %3403 = vmatpush.bf16.msra.mxu1 %v6452_v9 }
 0xc95   :  { %3416 = vmatpush.bf16.msra.mxu2 %v6462_v22  ;;  %3429 = vmatpush.bf16.msra.mxu3 %v6477_v49 }
 0xc98   :  { %3391 = vmatpush.bf16.msra.mxu0 %v6506_v2  ;;  %3404 = vmatpush.bf16.msra.mxu1 %v6510_v17 }
 0xc99   :  { %3417 = vmatpush.bf16.msra.mxu2 %v6522_v48  ;;  %3430 = vmatpush.bf16.msra.mxu3 %v6543_v1 }
 0xcf7   :  { %v3135_v25 = vpop.f32.mrf.mxu0  ;;  %v3148_v14 = vpop.f32.mrf.mxu1 }
 0xcf8   :  { %v3178_v63 = vadd.f32 %v3135_v25, %v300_v12  ;;  %v3179_v3 = vadd.f32 %v3148_v14, %v389_v27 }
 0xcfa   :  { %v5464_v55 = vmul.f32 -1.442695, %v3178_v63  ;;  %v5465_v29 = vmul.f32 -1.442695, %v3179_v3 }
 0xcfc   :  { %5841 = vpow2.f32 %v5464_v55 }
 0xcfd   :  { %5843 = vpow2.f32 %v5465_v29 }
 0xcfe   :  { %v3161_v19 = vpop.f32.mrf.mxu2  ;;  %v3174_v31 = vpop.f32.mrf.mxu3 }
 0xcff   :  { %v3180_v57 = vadd.f32 %v3161_v19, %v478_v7  ;;  %v3137_v53 = vpop.f32.mrf.mxu0  ;;  %v3150_v40 = vpop.f32.mrf.mxu1  ;;  %v3181_v45 = vadd.f32 %v3174_v31, %v567_v59 }
 0xd01   :  { %v5466_v34 = vmul.f32 -1.442695, %v3180_v57 }
 0xd02   :  { %v5842_v13 = vpop.eup %5841 }
 0xd03   :  { %v5844_v62 = vpop.eup %5843  ;;  %v3191_v35 = vadd.f32 1.0, %v5842_v13  ;;  %5845 = vpow2.f32 %v5466_v34 }
 0xd04   :  { %v3192_v58 = vadd.f32 1.0, %v5844_v62 }
 0xd05   :  { %5847 = vrcp.f32 %v3191_v35  ;;  %v3205_v55 = vand.u32 2147483648, %v3191_v35  ;;  %v3203_v7 = vand.u32 2147483647, %v3191_v35  ;;  %vm3199_vm15 = vweird.f32 %v3191_v35 }
 0xd06   :  { %5849 = vrcp.f32 %v3192_v58  ;;  %v3163_v10 = vpop.f32.mrf.mxu2  ;;  %v3176_v52 = vpop.f32.mrf.mxu3  ;;  %v3220_v29 = vand.u32 2147483648, %v3192_v58  ;;  %v3218_v57 = vand.u32 2147483647, %v3192_v58  ;;  %vm3214_vm0 = vweird.f32 %v3192_v58 }
 0xd07   :  { %v3206_v34 = vor.u32 1.1754944e-38, %v3205_v55  ;;  %vm3204_vm3 = vcmp.eq.f32.partialorder %v3203_v7, 8.507059e+37 }
 0xd08   :  { %v3221_v62 = vor.u32 1.1754944e-38, %v3220_v29  ;;  %vm3219_vm4 = vcmp.eq.f32.partialorder %v3218_v57, 8.507059e+37  ;;  %v8321_v57 = vld [vmem:[#allocation81_spill] sm:$0xff] }
 0xd09   :  { %v5846_v44 = vpop.eup %5845 }
 0xd0a   :  { %v3193_v5 = vadd.f32 1.0, %v5846_v44 }
 0xd0b   :  { %v5848_v12 = vpop.eup %5847 }
 0xd0c   :  { %v5850_v27 = vpop.eup %5849  ;;  %v3195_v25 = vmul.f32 %v5848_v12, %v3191_v35  ;;  %5851 = vrcp.f32 %v3193_v5  ;;  %vm3200_vm13 = vweird.f32 %v5848_v12  ;;  %vm3229_vm6 = vweird.f32 %v3193_v5 }
 0xd0d   :  { %v3210_v14 = vmul.f32 %v5850_v27, %v3192_v58  ;;  %5853 = vtanh.f32 %v3181_v45  ;;  %vm3215_vm14 = vweird.f32 %v5850_v27  ;;  %vm3201_vm1 = vmor %vm3199_vm15, %vm3200_vm13 }
 0xd0e   :  { %v3196_v63 = vsub.f32 1.0, %v3195_v25  ;;  %vm3216_vm2 = vmor %vm3214_vm0, %vm3215_vm14 }
 0xd0f   :  { %v3211_v3 = vsub.f32 1.0, %v3210_v14 }
 0xd10   :  { %v3197_v18 = vmul.f32 %v5848_v12, %v3196_v63 }
 0xd11   :  { %v3212_v19 = vmul.f32 %v5850_v27, %v3211_v3  ;;  %v3235_v3 = vand.u32 2147483648, %v3193_v5 }
 0xd12   :  { %v5852_v53 = vpop.eup %5851  ;;  %v3198_v40 = vadd.f32 %v5848_v12, %v3197_v18 }
 0xd13   :  { %v3225_v31 = vmul.f32 %v5852_v53, %v3193_v5  ;;  %v3213_v13 = vadd.f32 %v5850_v27, %v3212_v19  ;;  %v5854_v52 = vpop.eup %5853  ;;  %vm3230_vm5 = vweird.f32 %v5852_v53  ;;  %v3236_v29 = vor.u32 1.1754944e-38, %v3235_v3 }
 0xd14   :  { %v3202_v10 = vsel %vm3201_vm1, %v5848_v12, %v3198_v40  ;;  %v3233_v12 = vand.u32 2147483647, %v3193_v5  ;;  %vm3231_vm7 = vmor %vm3229_vm6, %vm3230_vm5 }
 0xd15   :  { %v3226_v44 = vsub.f32 1.0, %v3225_v31  ;;  %v3207_v23 = vsel %vm3204_vm3, %v3206_v34, %v3202_v10  ;;  %v3217_v59 = vsel %vm3216_vm2, %v5850_v27, %v3213_v13 }
 0xd16   :  { %v3222_v45 = vsel %vm3219_vm4, %v3221_v62, %v3217_v59  ;;  %v3241_v25 = vmul.f32 %v5854_v52, %v3207_v23  ;;  %vm3234_vm8 = vcmp.eq.f32.partialorder %v3233_v12, 8.507059e+37  ;;  %v8322_v52 = vld [vmem:[#allocation82_spill] sm:$0xff] }
 0xd17   :  { %v3227_v14 = vmul.f32 %v5852_v53, %v3226_v44  ;;  %v3240_v63 = vmul.f32 %v3222_v45, %v7520_v43  ;;  %v8320_v43 = vld [vmem:[#allocation80_spill] sm:$0xff]  ;;  %v481_v44 = vadd.f32 %v8322_v52, %v6805_v38 }
 0xd18   :  { %v303_v5 = vadd.f32 %v8320_v43, %v6793_v37 }
 0xd19   :  { %v7564_v35 = vadd.f32 %v3241_v25, %v3240_v63  ;;  %v3228_v58 = vadd.f32 %v5852_v53, %v3227_v14 }
 0xd1b   :  { %5855 = vtanh.f32 %v7564_v35  ;;  %v3232_v55 = vsel %vm3231_vm7, %v5852_v53, %v3228_v58  ;;  %v392_v53 = vadd.f32 %v8321_v57, %v6795_v41 }
 0xd1c   :  { %v3237_v18 = vsel %vm3234_vm8, %v3236_v29, %v3232_v55 }
 0xd21   :  { %v5856_v27 = vpop.eup %5855 }
 0xd22   :  { %v3244_v7 = vmul.f32 %v5856_v27, %v3237_v18 }
 0xd24   :  { %3246 = vst [vmem:[#allocation8 + $0x88] sm:$0xff] %v3244_v7  ;;  %v3254_v19 = vpack.c.bf16 %v3244_v7, %v3244_v7  ;;  %v8323_v7 = vld [vmem:[#allocation83_spill] sm:$0xff] }
 0xd26   :  { %3263 = vmatmul.bf16.vlgmr.msrb.gmra.mxu0 %v3254_v19  ;;  %3276 = vmatmul.bf16.vlgmr.msrb.gmra.mxu1 %v3254_v19 }
 0xd27   :  { %3289 = vmatmul.bf16.vlgmr.msrb.gmra.mxu2 %v3254_v19  ;;  %3302 = vmatmul.bf16.vlgmr.msrb.gmra.mxu3 %v3254_v19  ;;  %v570_v19 = vadd.f32 %v8323_v7, %v6809_v54 }
 0xd28   :  { %3513 = vmatpush.bf16.msrb.mxu0 %v6266_v16  ;;  %3526 = vmatpush.bf16.msrb.mxu1 %v6268_v20 }
 0xd29   :  { %3539 = vmatpush.bf16.msrb.mxu2 %v6270_v21  ;;  %3552 = vmatpush.bf16.msrb.mxu3 %v6273_v24 }
 0xd2c   :  { %3514 = vmatpush.bf16.msrb.mxu0 %v6281_v28  ;;  %3527 = vmatpush.bf16.msrb.mxu1 %v6284_v32 }
 0xd2d   :  { %3540 = vmatpush.bf16.msrb.mxu2 %v6286_v33  ;;  %3553 = vmatpush.bf16.msrb.mxu3 %v6288_v36 }
 0xd30   :  { %3515 = vmatpush.bf16.msrb.mxu0 %v6308_v42  ;;  %3528 = vmatpush.bf16.msrb.mxu1 %v6310_v46 }
 0xd31   :  { %3541 = vmatpush.bf16.msrb.mxu2 %v6312_v47  ;;  %3554 = vmatpush.bf16.msrb.mxu3 %v6315_v50 }
 0xd34   :  { %3516 = vmatpush.bf16.msrb.mxu0 %v6334_v56  ;;  %3529 = vmatpush.bf16.msrb.mxu1 %v6336_v60 }
 0xd35   :  { %3542 = vmatpush.bf16.msrb.mxu2 %v6338_v61  ;;  %3555 = vmatpush.bf16.msrb.mxu3 %v6341_v0 }
 0xd38   :  { %3517 = vmatpush.bf16.msrb.mxu0 %v6360_v6  ;;  %3530 = vmatpush.bf16.msrb.mxu1 %v6362_v8 }
 0xd39   :  { %3543 = vmatpush.bf16.msrb.mxu2 %v6366_v11  ;;  %3556 = vmatpush.bf16.msrb.mxu3 %v6373_v15 }
 0xd3c   :  { %3518 = vmatpush.bf16.msrb.mxu0 %v6390_v26  ;;  %3531 = vmatpush.bf16.msrb.mxu1 %v6394_v30 }
 0xd3d   :  { %3544 = vmatpush.bf16.msrb.mxu2 %v6404_v39  ;;  %3557 = vmatpush.bf16.msrb.mxu3 %v6419_v51 }
 0xd40   :  { %3519 = vmatpush.bf16.msrb.mxu0 %v6448_v4  ;;  %3532 = vmatpush.bf16.msrb.mxu1 %v6452_v9 }
 0xd41   :  { %3545 = vmatpush.bf16.msrb.mxu2 %v6462_v22  ;;  %3558 = vmatpush.bf16.msrb.mxu3 %v6477_v49 }
 0xd44   :  { %3520 = vmatpush.bf16.msrb.mxu0 %v6506_v2  ;;  %3533 = vmatpush.bf16.msrb.mxu1 %v6510_v17 }
 0xd45   :  { %3546 = vmatpush.bf16.msrb.mxu2 %v6522_v48  ;;  %3559 = vmatpush.bf16.msrb.mxu3 %v6543_v1 }
 0xda3   :  { %v3264_v40 = vpop.f32.mrf.mxu0  ;;  %v3277_v31 = vpop.f32.mrf.mxu1 }
 0xda4   :  { %v3307_v34 = vadd.f32 %v3264_v40, %v303_v5  ;;  %v3308_v13 = vadd.f32 %v3277_v31, %v392_v53 }
 0xda6   :  { %v5467_v62 = vmul.f32 -1.442695, %v3307_v34  ;;  %v5468_v10 = vmul.f32 -1.442695, %v3308_v13 }
 0xda8   :  { %5857 = vpow2.f32 %v5467_v62 }
 0xda9   :  { %5859 = vpow2.f32 %v5468_v10 }
 0xdaa   :  { %v3290_v23 = vpop.f32.mrf.mxu2  ;;  %v3303_v59 = vpop.f32.mrf.mxu3 }
 0xdab   :  { %v3309_v45 = vadd.f32 %v3290_v23, %v481_v44  ;;  %v3266_v25 = vpop.f32.mrf.mxu0  ;;  %v3279_v14 = vpop.f32.mrf.mxu1  ;;  %v3310_v57 = vadd.f32 %v3303_v59, %v570_v19 }
 0xdad   :  { %v5469_v63 = vmul.f32 -1.442695, %v3309_v45 }
 0xdae   :  { %v5858_v58 = vpop.eup %5857 }
 0xdaf   :  { %v5860_v3 = vpop.eup %5859  ;;  %v3320_v12 = vadd.f32 1.0, %v5858_v58  ;;  %5861 = vpow2.f32 %v5469_v63 }
 0xdb0   :  { %v3321_v55 = vadd.f32 1.0, %v5860_v3 }
 0xdb1   :  { %5863 = vrcp.f32 %v3320_v12  ;;  %v3334_v62 = vand.u32 2147483648, %v3320_v12  ;;  %v3332_v44 = vand.u32 2147483647, %v3320_v12  ;;  %vm3328_vm11 = vweird.f32 %v3320_v12 }
 0xdb2   :  { %5865 = vrcp.f32 %v3321_v55  ;;  %v3292_v29 = vpop.f32.mrf.mxu2  ;;  %v3305_v27 = vpop.f32.mrf.mxu3  ;;  %v3349_v10 = vand.u32 2147483648, %v3321_v55  ;;  %v3347_v45 = vand.u32 2147483647, %v3321_v55  ;;  %vm3343_vm12 = vweird.f32 %v3321_v55 }
 0xdb3   :  { %v3335_v63 = vor.u32 1.1754944e-38, %v3334_v62  ;;  %vm3333_vm15 = vcmp.eq.f32.partialorder %v3332_v44, 8.507059e+37 }
 0xdb4   :  { %v3350_v3 = vor.u32 1.1754944e-38, %v3349_v10  ;;  %vm3348_vm0 = vcmp.eq.f32.partialorder %v3347_v45, 8.507059e+37  ;;  %v8325_v45 = vld [vmem:[#allocation85_spill] sm:$0xff] }
 0xdb5   :  { %v5862_v18 = vpop.eup %5861 }
 0xdb6   :  { %v3322_v43 = vadd.f32 1.0, %v5862_v18 }
 0xdb7   :  { %v5864_v5 = vpop.eup %5863 }
 0xdb8   :  { %v5866_v53 = vpop.eup %5865  ;;  %v3324_v40 = vmul.f32 %v5864_v5, %v3320_v12  ;;  %5867 = vrcp.f32 %v3322_v43  ;;  %vm3329_vm9 = vweird.f32 %v5864_v5  ;;  %vm3358_vm2 = vweird.f32 %v3322_v43 }
 0xdb9   :  { %v3339_v31 = vmul.f32 %v5866_v53, %v3321_v55  ;;  %5869 = vtanh.f32 %v3310_v57  ;;  %vm3344_vm10 = vweird.f32 %v5866_v53  ;;  %vm3330_vm13 = vmor %vm3328_vm11, %vm3329_vm9 }
 0xdba   :  { %v3325_v34 = vsub.f32 1.0, %v3324_v40  ;;  %vm3345_vm14 = vmor %vm3343_vm12, %vm3344_vm10 }
 0xdbb   :  { %v3340_v13 = vsub.f32 1.0, %v3339_v31 }
 0xdbc   :  { %v3326_v52 = vmul.f32 %v5864_v5, %v3325_v34 }
 0xdbd   :  { %v3341_v23 = vmul.f32 %v5866_v53, %v3340_v13  ;;  %v3364_v13 = vand.u32 2147483648, %v3322_v43 }
 0xdbe   :  { %v5868_v25 = vpop.eup %5867  ;;  %v3327_v14 = vadd.f32 %v5864_v5, %v3326_v52 }
 0xdbf   :  { %v3354_v59 = vmul.f32 %v5868_v25, %v3322_v43  ;;  %v3342_v58 = vadd.f32 %v5866_v53, %v3341_v23  ;;  %v5870_v27 = vpop.eup %5869  ;;  %vm3359_vm1 = vweird.f32 %v5868_v25  ;;  %v3365_v10 = vor.u32 1.1754944e-38, %v3364_v13 }
 0xdc0   :  { %v3331_v29 = vsel %vm3330_vm13, %v5864_v5, %v3327_v14  ;;  %v3362_v5 = vand.u32 2147483647, %v3322_v43  ;;  %vm3360_vm3 = vmor %vm3358_vm2, %vm3359_vm1 }
 0xdc1   :  { %v3355_v18 = vsub.f32 1.0, %v3354_v59  ;;  %v3336_v7 = vsel %vm3333_vm15, %v3335_v63, %v3331_v29  ;;  %v3346_v19 = vsel %vm3345_vm14, %v5866_v53, %v3342_v58 }
 0xdc2   :  { %v3351_v57 = vsel %vm3348_vm0, %v3350_v3, %v3346_v19  ;;  %v3370_v40 = vmul.f32 %v5870_v27, %v3336_v7  ;;  %vm3363_vm4 = vcmp.eq.f32.partialorder %v3362_v5, 8.507059e+37  ;;  %v8326_v27 = vld [vmem:[#allocation86_spill] sm:$0xff] }
 0xdc3   :  { %v3356_v31 = vmul.f32 %v5868_v25, %v3355_v18  ;;  %v3369_v34 = vmul.f32 %v3351_v57, %v7564_v35  ;;  %v8324_v35 = vld [vmem:[#allocation84_spill] sm:$0xff]  ;;  %v483_v18 = vadd.f32 %v8326_v27, %v6805_v38 }
 0xdc4   :  { %v305_v43 = vadd.f32 %v8324_v35, %v6793_v37 }
 0xdc5   :  { %v7608_v12 = vadd.f32 %v3370_v40, %v3369_v34  ;;  %v3357_v55 = vadd.f32 %v5868_v25, %v3356_v31 }
 0xdc7   :  { %5871 = vtanh.f32 %v7608_v12  ;;  %v3361_v62 = vsel %vm3360_vm3, %v5868_v25, %v3357_v55  ;;  %v394_v25 = vadd.f32 %v8325_v45, %v6795_v41 }
 0xdc8   :  { %v3366_v52 = vsel %vm3363_vm4, %v3365_v10, %v3361_v62 }
 0xdcd   :  { %v5872_v53 = vpop.eup %5871 }
 0xdce   :  { %v3373_v44 = vmul.f32 %v5872_v53, %v3366_v52 }
 0xdd0   :  { %3375 = vst [vmem:[#allocation8 + $0x90] sm:$0xff] %v3373_v44  ;;  %v3383_v23 = vpack.c.bf16 %v3373_v44, %v3373_v44  ;;  %v8327_v44 = vld [vmem:[#allocation87_spill] sm:$0xff] }
 0xdd2   :  { %3392 = vmatmul.bf16.vlgmr.msra.gmra.mxu0 %v3383_v23  ;;  %3405 = vmatmul.bf16.vlgmr.msra.gmra.mxu1 %v3383_v23 }
 0xdd3   :  { %3418 = vmatmul.bf16.vlgmr.msra.gmra.mxu2 %v3383_v23  ;;  %3431 = vmatmul.bf16.vlgmr.msra.gmra.mxu3 %v3383_v23  ;;  %v572_v23 = vadd.f32 %v8327_v44, %v6809_v54 }
 0xdd4   :  { %3642 = vmatpush.bf16.msra.mxu0 %v6266_v16  ;;  %3655 = vmatpush.bf16.msra.mxu1 %v6268_v20 }
 0xdd5   :  { %3668 = vmatpush.bf16.msra.mxu2 %v6270_v21  ;;  %3681 = vmatpush.bf16.msra.mxu3 %v6273_v24 }
 0xdd8   :  { %3643 = vmatpush.bf16.msra.mxu0 %v6281_v28  ;;  %3656 = vmatpush.bf16.msra.mxu1 %v6284_v32 }
 0xdd9   :  { %3669 = vmatpush.bf16.msra.mxu2 %v6286_v33  ;;  %3682 = vmatpush.bf16.msra.mxu3 %v6288_v36 }
 0xddc   :  { %3644 = vmatpush.bf16.msra.mxu0 %v6308_v42  ;;  %3657 = vmatpush.bf16.msra.mxu1 %v6310_v46 }
 0xddd   :  { %3670 = vmatpush.bf16.msra.mxu2 %v6312_v47  ;;  %3683 = vmatpush.bf16.msra.mxu3 %v6315_v50 }
 0xde0   :  { %3645 = vmatpush.bf16.msra.mxu0 %v6334_v56  ;;  %3658 = vmatpush.bf16.msra.mxu1 %v6336_v60 }
 0xde1   :  { %3671 = vmatpush.bf16.msra.mxu2 %v6338_v61  ;;  %3684 = vmatpush.bf16.msra.mxu3 %v6341_v0 }
 0xde4   :  { %3646 = vmatpush.bf16.msra.mxu0 %v6360_v6  ;;  %3659 = vmatpush.bf16.msra.mxu1 %v6362_v8 }
 0xde5   :  { %3672 = vmatpush.bf16.msra.mxu2 %v6366_v11  ;;  %3685 = vmatpush.bf16.msra.mxu3 %v6373_v15 }
 0xde8   :  { %3647 = vmatpush.bf16.msra.mxu0 %v6390_v26  ;;  %3660 = vmatpush.bf16.msra.mxu1 %v6394_v30 }
 0xde9   :  { %3673 = vmatpush.bf16.msra.mxu2 %v6404_v39  ;;  %3686 = vmatpush.bf16.msra.mxu3 %v6419_v51 }
 0xdec   :  { %3648 = vmatpush.bf16.msra.mxu0 %v6448_v4  ;;  %3661 = vmatpush.bf16.msra.mxu1 %v6452_v9 }
 0xded   :  { %3674 = vmatpush.bf16.msra.mxu2 %v6462_v22  ;;  %3687 = vmatpush.bf16.msra.mxu3 %v6477_v49 }
 0xdf0   :  { %3649 = vmatpush.bf16.msra.mxu0 %v6506_v2  ;;  %3662 = vmatpush.bf16.msra.mxu1 %v6510_v17 }
 0xdf1   :  { %3675 = vmatpush.bf16.msra.mxu2 %v6522_v48  ;;  %3688 = vmatpush.bf16.msra.mxu3 %v6543_v1 }
 0xe4f   :  { %v3393_v14 = vpop.f32.mrf.mxu0  ;;  %v3406_v59 = vpop.f32.mrf.mxu1 }
 0xe50   :  { %v3436_v63 = vadd.f32 %v3393_v14, %v305_v43  ;;  %v3437_v58 = vadd.f32 %v3406_v59, %v394_v25 }
 0xe52   :  { %v5470_v3 = vmul.f32 -1.442695, %v3436_v63  ;;  %v5471_v29 = vmul.f32 -1.442695, %v3437_v58 }
 0xe54   :  { %5873 = vpow2.f32 %v5470_v3 }
 0xe55   :  { %5875 = vpow2.f32 %v5471_v29 }
 0xe56   :  { %v3419_v7 = vpop.f32.mrf.mxu2  ;;  %v3432_v19 = vpop.f32.mrf.mxu3 }
 0xe57   :  { %v3438_v57 = vadd.f32 %v3419_v7, %v483_v18  ;;  %v3395_v40 = vpop.f32.mrf.mxu0  ;;  %v3408_v31 = vpop.f32.mrf.mxu1  ;;  %v3439_v45 = vadd.f32 %v3432_v19, %v572_v23 }
 0xe59   :  { %v5472_v34 = vmul.f32 -1.442695, %v3438_v57 }
 0xe5a   :  { %v5874_v55 = vpop.eup %5873 }
 0xe5b   :  { %v5876_v13 = vpop.eup %5875  ;;  %v3449_v5 = vadd.f32 1.0, %v5874_v55  ;;  %5877 = vpow2.f32 %v5472_v34 }
 0xe5c   :  { %v3450_v62 = vadd.f32 1.0, %v5876_v13 }
 0xe5d   :  { %5879 = vrcp.f32 %v3449_v5  ;;  %v3463_v3 = vand.u32 2147483648, %v3449_v5  ;;  %v3461_v18 = vand.u32 2147483647, %v3449_v5  ;;  %vm3457_vm7 = vweird.f32 %v3449_v5 }
 0xe5e   :  { %5881 = vrcp.f32 %v3450_v62  ;;  %v3421_v10 = vpop.f32.mrf.mxu2  ;;  %v3434_v53 = vpop.f32.mrf.mxu3  ;;  %v3478_v29 = vand.u32 2147483648, %v3450_v62  ;;  %v3476_v57 = vand.u32 2147483647, %v3450_v62  ;;  %vm3472_vm8 = vweird.f32 %v3450_v62 }
 0xe5f   :  { %v3464_v34 = vor.u32 1.1754944e-38, %v3463_v3  ;;  %vm3462_vm11 = vcmp.eq.f32.partialorder %v3461_v18, 8.507059e+37 }
 0xe60   :  { %v3479_v13 = vor.u32 1.1754944e-38, %v3478_v29  ;;  %vm3477_vm12 = vcmp.eq.f32.partialorder %v3476_v57, 8.507059e+37  ;;  %v8329_v57 = vld [vmem:[#allocation89_spill] sm:$0xff] }
 0xe61   :  { %v5878_v52 = vpop.eup %5877 }
 0xe62   :  { %v3451_v35 = vadd.f32 1.0, %v5878_v52 }
 0xe63   :  { %v5880_v43 = vpop.eup %5879 }
 0xe64   :  { %v5882_v25 = vpop.eup %5881  ;;  %v3453_v14 = vmul.f32 %v5880_v43, %v3449_v5  ;;  %5883 = vrcp.f32 %v3451_v35  ;;  %vm3458_vm5 = vweird.f32 %v5880_v43  ;;  %vm3487_vm14 = vweird.f32 %v3451_v35 }
 0xe65   :  { %v3468_v59 = vmul.f32 %v5882_v25, %v3450_v62  ;;  %5885 = vtanh.f32 %v3439_v45  ;;  %vm3473_vm6 = vweird.f32 %v5882_v25  ;;  %vm3459_vm9 = vmor %vm3457_vm7, %vm3458_vm5 }
 0xe66   :  { %v3454_v63 = vsub.f32 1.0, %v3453_v14  ;;  %vm3474_vm10 = vmor %vm3472_vm8, %vm3473_vm6 }
 0xe67   :  { %v3469_v58 = vsub.f32 1.0, %v3468_v59 }
 0xe68   :  { %v3455_v27 = vmul.f32 %v5880_v43, %v3454_v63 }
 0xe69   :  { %v3470_v7 = vmul.f32 %v5882_v25, %v3469_v58  ;;  %v3493_v58 = vand.u32 2147483648, %v3451_v35 }
 0xe6a   :  { %v5884_v40 = vpop.eup %5883  ;;  %v3456_v31 = vadd.f32 %v5880_v43, %v3455_v27 }
 0xe6b   :  { %v3483_v19 = vmul.f32 %v5884_v40, %v3451_v35  ;;  %v3471_v55 = vadd.f32 %v5882_v25, %v3470_v7  ;;  %v5886_v53 = vpop.eup %5885  ;;  %vm3488_vm13 = vweird.f32 %v5884_v40  ;;  %v3494_v29 = vor.u32 1.1754944e-38, %v3493_v58 }
 0xe6c   :  { %v3460_v10 = vsel %vm3459_vm9, %v5880_v43, %v3456_v31  ;;  %v3491_v43 = vand.u32 2147483647, %v3451_v35  ;;  %vm3489_vm15 = vmor %vm3487_vm14, %vm3488_vm13 }
 0xe6d   :  { %v3484_v52 = vsub.f32 1.0, %v3483_v19  ;;  %v3465_v44 = vsel %vm3462_vm11, %v3464_v34, %v3460_v10  ;;  %v3475_v23 = vsel %vm3474_vm10, %v5882_v25, %v3471_v55 }
 0xe6e   :  { %v3480_v45 = vsel %vm3477_vm12, %v3479_v13, %v3475_v23  ;;  %v3499_v14 = vmul.f32 %v5886_v53, %v3465_v44  ;;  %vm3492_vm0 = vcmp.eq.f32.partialorder %v3491_v43, 8.507059e+37  ;;  %v8330_v53 = vld [vmem:[#allocation90_spill] sm:$0xff] }
 0xe6f   :  { %v3485_v59 = vmul.f32 %v5884_v40, %v3484_v52  ;;  %v3498_v63 = vmul.f32 %v3480_v45, %v7608_v12  ;;  %v8328_v12 = vld [vmem:[#allocation88_spill] sm:$0xff]  ;;  %v486_v52 = vadd.f32 %v8330_v53, %v6805_v38 }
 0xe70   :  { %v308_v35 = vadd.f32 %v8328_v12, %v6793_v37 }
 0xe71   :  { %v7652_v5 = vadd.f32 %v3499_v14, %v3498_v63  ;;  %v3486_v62 = vadd.f32 %v5884_v40, %v3485_v59 }
 0xe73   :  { %5887 = vtanh.f32 %v7652_v5  ;;  %v3490_v3 = vsel %vm3489_vm15, %v5884_v40, %v3486_v62  ;;  %v397_v40 = vadd.f32 %v8329_v57, %v6795_v41 }
 0xe74   :  { %v3495_v27 = vsel %vm3492_vm0, %v3494_v29, %v3490_v3 }
 0xe79   :  { %v5888_v25 = vpop.eup %5887 }
 0xe7a   :  { %v3502_v18 = vmul.f32 %v5888_v25, %v3495_v27 }
 0xe7c   :  { %3504 = vst [vmem:[#allocation8 + $0x98] sm:$0xff] %v3502_v18  ;;  %v3512_v7 = vpack.c.bf16 %v3502_v18, %v3502_v18  ;;  %v8331_v18 = vld [vmem:[#allocation91_spill] sm:$0xff] }
 0xe7e   :  { %3521 = vmatmul.bf16.vlgmr.msrb.gmra.mxu0 %v3512_v7  ;;  %3534 = vmatmul.bf16.vlgmr.msrb.gmra.mxu1 %v3512_v7 }
 0xe7f   :  { %3547 = vmatmul.bf16.vlgmr.msrb.gmra.mxu2 %v3512_v7  ;;  %3560 = vmatmul.bf16.vlgmr.msrb.gmra.mxu3 %v3512_v7  ;;  %v575_v7 = vadd.f32 %v8331_v18, %v6809_v54 }
 0xe80   :  { %3771 = vmatpush.bf16.msrb.mxu0 %v6266_v16  ;;  %3784 = vmatpush.bf16.msrb.mxu1 %v6268_v20 }
 0xe81   :  { %3797 = vmatpush.bf16.msrb.mxu2 %v6270_v21  ;;  %3810 = vmatpush.bf16.msrb.mxu3 %v6273_v24 }
 0xe84   :  { %3772 = vmatpush.bf16.msrb.mxu0 %v6281_v28  ;;  %3785 = vmatpush.bf16.msrb.mxu1 %v6284_v32 }
 0xe85   :  { %3798 = vmatpush.bf16.msrb.mxu2 %v6286_v33  ;;  %3811 = vmatpush.bf16.msrb.mxu3 %v6288_v36 }
 0xe88   :  { %3773 = vmatpush.bf16.msrb.mxu0 %v6308_v42  ;;  %3786 = vmatpush.bf16.msrb.mxu1 %v6310_v46 }
 0xe89   :  { %3799 = vmatpush.bf16.msrb.mxu2 %v6312_v47  ;;  %3812 = vmatpush.bf16.msrb.mxu3 %v6315_v50 }
 0xe8c   :  { %3774 = vmatpush.bf16.msrb.mxu0 %v6334_v56  ;;  %3787 = vmatpush.bf16.msrb.mxu1 %v6336_v60 }
 0xe8d   :  { %3800 = vmatpush.bf16.msrb.mxu2 %v6338_v61  ;;  %3813 = vmatpush.bf16.msrb.mxu3 %v6341_v0 }
 0xe90   :  { %3775 = vmatpush.bf16.msrb.mxu0 %v6360_v6  ;;  %3788 = vmatpush.bf16.msrb.mxu1 %v6362_v8 }
 0xe91   :  { %3801 = vmatpush.bf16.msrb.mxu2 %v6366_v11  ;;  %3814 = vmatpush.bf16.msrb.mxu3 %v6373_v15 }
 0xe94   :  { %3776 = vmatpush.bf16.msrb.mxu0 %v6390_v26  ;;  %3789 = vmatpush.bf16.msrb.mxu1 %v6394_v30 }
 0xe95   :  { %3802 = vmatpush.bf16.msrb.mxu2 %v6404_v39  ;;  %3815 = vmatpush.bf16.msrb.mxu3 %v6419_v51 }
 0xe98   :  { %3777 = vmatpush.bf16.msrb.mxu0 %v6448_v4  ;;  %3790 = vmatpush.bf16.msrb.mxu1 %v6452_v9 }
 0xe99   :  { %3803 = vmatpush.bf16.msrb.mxu2 %v6462_v22  ;;  %3816 = vmatpush.bf16.msrb.mxu3 %v6477_v49 }
 0xe9c   :  { %3778 = vmatpush.bf16.msrb.mxu0 %v6506_v2  ;;  %3791 = vmatpush.bf16.msrb.mxu1 %v6510_v17 }
 0xe9d   :  { %3804 = vmatpush.bf16.msrb.mxu2 %v6522_v48  ;;  %3817 = vmatpush.bf16.msrb.mxu3 %v6543_v1 }
 0xefb   :  { %v3522_v31 = vpop.f32.mrf.mxu0  ;;  %v3535_v19 = vpop.f32.mrf.mxu1 }
 0xefc   :  { %v3565_v34 = vadd.f32 %v3522_v31, %v308_v35  ;;  %v3566_v55 = vadd.f32 %v3535_v19, %v397_v40 }
 0xefe   :  { %v5473_v13 = vmul.f32 -1.442695, %v3565_v34  ;;  %v5474_v10 = vmul.f32 -1.442695, %v3566_v55 }
 0xf00   :  { %5889 = vpow2.f32 %v5473_v13 }
 0xf01   :  { %5891 = vpow2.f32 %v5474_v10 }
 0xf02   :  { %v3548_v44 = vpop.f32.mrf.mxu2  ;;  %v3561_v23 = vpop.f32.mrf.mxu3 }
 0xf03   :  { %v3567_v45 = vadd.f32 %v3548_v44, %v486_v52  ;;  %v3524_v14 = vpop.f32.mrf.mxu0  ;;  %v3537_v59 = vpop.f32.mrf.mxu1  ;;  %v3568_v57 = vadd.f32 %v3561_v23, %v575_v7 }
 0xf05   :  { %v5475_v63 = vmul.f32 -1.442695, %v3567_v45 }
 0xf06   :  { %v5890_v62 = vpop.eup %5889 }
 0xf07   :  { %v5892_v58 = vpop.eup %5891  ;;  %v3578_v43 = vadd.f32 1.0, %v5890_v62  ;;  %5893 = vpow2.f32 %v5475_v63 }
 0xf08   :  { %v3579_v3 = vadd.f32 1.0, %v5892_v58 }
 0xf09   :  { %5895 = vrcp.f32 %v3578_v43  ;;  %v3592_v13 = vand.u32 2147483648, %v3578_v43  ;;  %v3590_v52 = vand.u32 2147483647, %v3578_v43  ;;  %vm3586_vm3 = vweird.f32 %v3578_v43 }
 0xf0a   :  { %5897 = vrcp.f32 %v3579_v3  ;;  %v3550_v29 = vpop.f32.mrf.mxu2  ;;  %v3563_v25 = vpop.f32.mrf.mxu3  ;;  %v3607_v10 = vand.u32 2147483648, %v3579_v3  ;;  %v3605_v45 = vand.u32 2147483647, %v3579_v3  ;;  %vm3601_vm4 = vweird.f32 %v3579_v3 }
 0xf0b   :  { %v3593_v63 = vor.u32 1.1754944e-38, %v3592_v13  ;;  %vm3591_vm7 = vcmp.eq.f32.partialorder %v3590_v52, 8.507059e+37 }
 0xf0c   :  { %v3608_v58 = vor.u32 1.1754944e-38, %v3607_v10  ;;  %vm3606_vm8 = vcmp.eq.f32.partialorder %v3605_v45, 8.507059e+37  ;;  %v8333_v45 = vld [vmem:[#allocation93_spill] sm:$0xff] }
 0xf0d   :  { %v5894_v27 = vpop.eup %5893 }
 0xf0e   :  { %v3580_v12 = vadd.f32 1.0, %v5894_v27 }
 0xf0f   :  { %v5896_v35 = vpop.eup %5895 }
 0xf10   :  { %v5898_v40 = vpop.eup %5897  ;;  %v3582_v31 = vmul.f32 %v5896_v35, %v3578_v43  ;;  %5899 = vrcp.f32 %v3580_v12  ;;  %vm3587_vm1 = vweird.f32 %v5896_v35  ;;  %vm3616_vm10 = vweird.f32 %v3580_v12 }
 0xf11   :  { %v3597_v19 = vmul.f32 %v5898_v40, %v3579_v3  ;;  %5901 = vtanh.f32 %v3568_v57  ;;  %vm3602_vm2 = vweird.f32 %v5898_v40  ;;  %vm3588_vm5 = vmor %vm3586_vm3, %vm3587_vm1 }
 0xf12   :  { %v3583_v34 = vsub.f32 1.0, %v3582_v31  ;;  %vm3603_vm6 = vmor %vm3601_vm4, %vm3602_vm2 }
 0xf13   :  { %v3598_v55 = vsub.f32 1.0, %v3597_v19 }
 0xf14   :  { %v3584_v53 = vmul.f32 %v5896_v35, %v3583_v34 }
 0xf15   :  { %v3599_v44 = vmul.f32 %v5898_v40, %v3598_v55  ;;  %v3622_v55 = vand.u32 2147483648, %v3580_v12 }
 0xf16   :  { %v5900_v14 = vpop.eup %5899  ;;  %v3585_v59 = vadd.f32 %v5896_v35, %v3584_v53 }
 0xf17   :  { %v3612_v23 = vmul.f32 %v5900_v14, %v3580_v12  ;;  %v3600_v62 = vadd.f32 %v5898_v40, %v3599_v44  ;;  %v5902_v25 = vpop.eup %5901  ;;  %vm3617_vm9 = vweird.f32 %v5900_v14  ;;  %v3623_v10 = vor.u32 1.1754944e-38, %v3622_v55 }
 0xf18   :  { %v3589_v29 = vsel %vm3588_vm5, %v5896_v35, %v3585_v59  ;;  %v3620_v35 = vand.u32 2147483647, %v3580_v12  ;;  %vm3618_vm11 = vmor %vm3616_vm10, %vm3617_vm9 }
 0xf19   :  { %v3613_v27 = vsub.f32 1.0, %v3612_v23  ;;  %v3594_v18 = vsel %vm3591_vm7, %v3593_v63, %v3589_v29  ;;  %v3604_v7 = vsel %vm3603_vm6, %v5898_v40, %v3600_v62 }
 0xf1a   :  { %v3609_v57 = vsel %vm3606_vm8, %v3608_v58, %v3604_v7  ;;  %v3628_v31 = vmul.f32 %v5902_v25, %v3594_v18  ;;  %vm3621_vm12 = vcmp.eq.f32.partialorder %v3620_v35, 8.507059e+37  ;;  %v8334_v25 = vld [vmem:[#allocation94_spill] sm:$0xff] }
 0xf1b   :  { %v3614_v19 = vmul.f32 %v5900_v14, %v3613_v27  ;;  %v3627_v34 = vmul.f32 %v3609_v57, %v7652_v5  ;;  %v8332_v5 = vld [vmem:[#allocation92_spill] sm:$0xff]  ;;  %v488_v27 = vadd.f32 %v8334_v25, %v6805_v38 }
 0xf1c   :  { %v310_v12 = vadd.f32 %v8332_v5, %v6793_v37 }
 0xf1d   :  { %v7696_v43 = vadd.f32 %v3628_v31, %v3627_v34  ;;  %v3615_v3 = vadd.f32 %v5900_v14, %v3614_v19 }
 0xf1f   :  { %5903 = vtanh.f32 %v7696_v43  ;;  %v3619_v13 = vsel %vm3618_vm11, %v5900_v14, %v3615_v3  ;;  %v399_v14 = vadd.f32 %v8333_v45, %v6795_v41 }
 0xf20   :  { %v3624_v53 = vsel %vm3621_vm12, %v3623_v10, %v3619_v13 }
 0xf25   :  { %v5904_v40 = vpop.eup %5903 }
 0xf26   :  { %v3631_v52 = vmul.f32 %v5904_v40, %v3624_v53 }
 0xf28   :  { %3633 = vst [vmem:[#allocation8 + $0xa0] sm:$0xff] %v3631_v52  ;;  %v3641_v44 = vpack.c.bf16 %v3631_v52, %v3631_v52  ;;  %v8335_v52 = vld [vmem:[#allocation95_spill] sm:$0xff] }
 0xf2a   :  { %3650 = vmatmul.bf16.vlgmr.msra.gmra.mxu0 %v3641_v44  ;;  %3663 = vmatmul.bf16.vlgmr.msra.gmra.mxu1 %v3641_v44 }
 0xf2b   :  { %3676 = vmatmul.bf16.vlgmr.msra.gmra.mxu2 %v3641_v44  ;;  %3689 = vmatmul.bf16.vlgmr.msra.gmra.mxu3 %v3641_v44  ;;  %v577_v44 = vadd.f32 %v8335_v52, %v6809_v54 }
 0xf2c   :  { %3900 = vmatpush.bf16.msra.mxu0 %v6266_v16  ;;  %3913 = vmatpush.bf16.msra.mxu1 %v6268_v20 }
 0xf2d   :  { %3926 = vmatpush.bf16.msra.mxu2 %v6270_v21  ;;  %3939 = vmatpush.bf16.msra.mxu3 %v6273_v24 }
 0xf30   :  { %3901 = vmatpush.bf16.msra.mxu0 %v6281_v28  ;;  %3914 = vmatpush.bf16.msra.mxu1 %v6284_v32 }
 0xf31   :  { %3927 = vmatpush.bf16.msra.mxu2 %v6286_v33  ;;  %3940 = vmatpush.bf16.msra.mxu3 %v6288_v36 }
 0xf34   :  { %3902 = vmatpush.bf16.msra.mxu0 %v6308_v42  ;;  %3915 = vmatpush.bf16.msra.mxu1 %v6310_v46 }
 0xf35   :  { %3928 = vmatpush.bf16.msra.mxu2 %v6312_v47  ;;  %3941 = vmatpush.bf16.msra.mxu3 %v6315_v50 }
 0xf38   :  { %3903 = vmatpush.bf16.msra.mxu0 %v6334_v56  ;;  %3916 = vmatpush.bf16.msra.mxu1 %v6336_v60 }
 0xf39   :  { %3929 = vmatpush.bf16.msra.mxu2 %v6338_v61  ;;  %3942 = vmatpush.bf16.msra.mxu3 %v6341_v0 }
 0xf3c   :  { %3904 = vmatpush.bf16.msra.mxu0 %v6360_v6  ;;  %3917 = vmatpush.bf16.msra.mxu1 %v6362_v8 }
 0xf3d   :  { %3930 = vmatpush.bf16.msra.mxu2 %v6366_v11  ;;  %3943 = vmatpush.bf16.msra.mxu3 %v6373_v15 }
 0xf40   :  { %3905 = vmatpush.bf16.msra.mxu0 %v6390_v26  ;;  %3918 = vmatpush.bf16.msra.mxu1 %v6394_v30 }
 0xf41   :  { %3931 = vmatpush.bf16.msra.mxu2 %v6404_v39  ;;  %3944 = vmatpush.bf16.msra.mxu3 %v6419_v51 }
 0xf44   :  { %3906 = vmatpush.bf16.msra.mxu0 %v6448_v4  ;;  %3919 = vmatpush.bf16.msra.mxu1 %v6452_v9 }
 0xf45   :  { %3932 = vmatpush.bf16.msra.mxu2 %v6462_v22  ;;  %3945 = vmatpush.bf16.msra.mxu3 %v6477_v49 }
 0xf48   :  { %3907 = vmatpush.bf16.msra.mxu0 %v6506_v2  ;;  %3920 = vmatpush.bf16.msra.mxu1 %v6510_v17 }
 0xf49   :  { %3933 = vmatpush.bf16.msra.mxu2 %v6522_v48  ;;  %3946 = vmatpush.bf16.msra.mxu3 %v6543_v1 }
 0xfa7   :  { %v3651_v59 = vpop.f32.mrf.mxu0  ;;  %v3664_v23 = vpop.f32.mrf.mxu1 }
 0xfa8   :  { %v3694_v63 = vadd.f32 %v3651_v59, %v310_v12  ;;  %v3695_v62 = vadd.f32 %v3664_v23, %v399_v14 }
 0xfaa   :  { %v5476_v58 = vmul.f32 -1.442695, %v3694_v63  ;;  %v5477_v29 = vmul.f32 -1.442695, %v3695_v62 }
 0xfac   :  { %5905 = vpow2.f32 %v5476_v58 }
 0xfad   :  { %5907 = vpow2.f32 %v5477_v29 }
 0xfae   :  { %v3677_v18 = vpop.f32.mrf.mxu2  ;;  %v3690_v7 = vpop.f32.mrf.mxu3 }
 0xfaf   :  { %v3696_v57 = vadd.f32 %v3677_v18, %v488_v27  ;;  %v3653_v31 = vpop.f32.mrf.mxu0  ;;  %v3666_v19 = vpop.f32.mrf.mxu1  ;;  %v3697_v45 = vadd.f32 %v3690_v7, %v577_v44 }
 0xfb1   :  { %v5478_v34 = vmul.f32 -1.442695, %v3696_v57 }
 0xfb2   :  { %v5906_v3 = vpop.eup %5905 }
 0xfb3   :  { %v5908_v55 = vpop.eup %5907  ;;  %v3707_v35 = vadd.f32 1.0, %v5906_v3  ;;  %5909 = vpow2.f32 %v5478_v34 }
 0xfb4   :  { %v3708_v13 = vadd.f32 1.0, %v5908_v55 }
 0xfb5   :  { %5911 = vrcp.f32 %v3707_v35  ;;  %v3721_v58 = vand.u32 2147483648, %v3707_v35  ;;  %v3719_v27 = vand.u32 2147483647, %v3707_v35  ;;  %vm3715_vm15 = vweird.f32 %v3707_v35 }
 0xfb6   :  { %5913 = vrcp.f32 %v3708_v13  ;;  %v3679_v10 = vpop.f32.mrf.mxu2  ;;  %v3692_v40 = vpop.f32.mrf.mxu3  ;;  %v3736_v29 = vand.u32 2147483648, %v3708_v13  ;;  %v3734_v57 = vand.u32 2147483647, %v3708_v13  ;;  %vm3730_vm0 = vweird.f32 %v3708_v13 }
 0xfb7   :  { %v3722_v34 = vor.u32 1.1754944e-38, %v3721_v58  ;;  %vm3720_vm3 = vcmp.eq.f32.partialorder %v3719_v27, 8.507059e+37 }
 0xfb8   :  { %v3737_v55 = vor.u32 1.1754944e-38, %v3736_v29  ;;  %vm3735_vm4 = vcmp.eq.f32.partialorder %v3734_v57, 8.507059e+37  ;;  %v8337_v57 = vld [vmem:[#allocation97_spill] sm:$0xff] }
 0xfb9   :  { %v5910_v53 = vpop.eup %5909 }
 0xfba   :  { %v3709_v5 = vadd.f32 1.0, %v5910_v53 }
 0xfbb   :  { %v5912_v12 = vpop.eup %5911 }
 0xfbc   :  { %v5914_v14 = vpop.eup %5913  ;;  %v3711_v59 = vmul.f32 %v5912_v12, %v3707_v35  ;;  %5915 = vrcp.f32 %v3709_v5  ;;  %vm3716_vm13 = vweird.f32 %v5912_v12  ;;  %vm3745_vm6 = vweird.f32 %v3709_v5 }
 0xfbd   :  { %v3726_v23 = vmul.f32 %v5914_v14, %v3708_v13  ;;  %5917 = vtanh.f32 %v3697_v45  ;;  %vm3731_vm14 = vweird.f32 %v5914_v14  ;;  %vm3717_vm1 = vmor %vm3715_vm15, %vm3716_vm13 }
 0xfbe   :  { %v3712_v63 = vsub.f32 1.0, %v3711_v59  ;;  %vm3732_vm2 = vmor %vm3730_vm0, %vm3731_vm14 }
 0xfbf   :  { %v3727_v62 = vsub.f32 1.0, %v3726_v23 }
 0xfc0   :  { %v3713_v25 = vmul.f32 %v5912_v12, %v3712_v63 }
 0xfc1   :  { %v3728_v18 = vmul.f32 %v5914_v14, %v3727_v62  ;;  %v3751_v62 = vand.u32 2147483648, %v3709_v5 }
 0xfc2   :  { %v5916_v31 = vpop.eup %5915  ;;  %v3714_v19 = vadd.f32 %v5912_v12, %v3713_v25 }
 0xfc3   :  { %v3741_v7 = vmul.f32 %v5916_v31, %v3709_v5  ;;  %v3729_v3 = vadd.f32 %v5914_v14, %v3728_v18  ;;  %v5918_v40 = vpop.eup %5917  ;;  %vm3746_vm5 = vweird.f32 %v5916_v31  ;;  %v3752_v29 = vor.u32 1.1754944e-38, %v3751_v62 }
 0xfc4   :  { %v3718_v10 = vsel %vm3717_vm1, %v5912_v12, %v3714_v19  ;;  %v3749_v12 = vand.u32 2147483647, %v3709_v5  ;;  %vm3747_vm7 = vmor %vm3745_vm6, %vm3746_vm5 }
 0xfc5   :  { %v3742_v53 = vsub.f32 1.0, %v3741_v7  ;;  %v3723_v52 = vsel %vm3720_vm3, %v3722_v34, %v3718_v10  ;;  %v3733_v44 = vsel %vm3732_vm2, %v5914_v14, %v3729_v3 }
 0xfc6   :  { %v3738_v45 = vsel %vm3735_vm4, %v3737_v55, %v3733_v44  ;;  %v3757_v59 = vmul.f32 %v5918_v40, %v3723_v52  ;;  %vm3750_vm8 = vcmp.eq.f32.partialorder %v3749_v12, 8.507059e+37  ;;  %v8338_v40 = vld [vmem:[#allocation98_spill] sm:$0xff] }
 0xfc7   :  { %v3743_v23 = vmul.f32 %v5916_v31, %v3742_v53  ;;  %v3756_v63 = vmul.f32 %v3738_v45, %v7696_v43  ;;  %v8336_v43 = vld [vmem:[#allocation96_spill] sm:$0xff]  ;;  %v491_v53 = vadd.f32 %v8338_v40, %v6805_v38 }
 0xfc8   :  { %v313_v5 = vadd.f32 %v8336_v43, %v6793_v37 }
 0xfc9   :  { %v7740_v35 = vadd.f32 %v3757_v59, %v3756_v63  ;;  %v3744_v13 = vadd.f32 %v5916_v31, %v3743_v23 }
 0xfcb   :  { %5919 = vtanh.f32 %v7740_v35  ;;  %v3748_v58 = vsel %vm3747_vm7, %v5916_v31, %v3744_v13  ;;  %v402_v31 = vadd.f32 %v8337_v57, %v6795_v41 }
 0xfcc   :  { %v3753_v25 = vsel %vm3750_vm8, %v3752_v29, %v3748_v58 }
 0xfd1   :  { %v5920_v14 = vpop.eup %5919 }
 0xfd2   :  { %v3760_v27 = vmul.f32 %v5920_v14, %v3753_v25 }
 0xfd4   :  { %3762 = vst [vmem:[#allocation8 + $0xa8] sm:$0xff] %v3760_v27  ;;  %v3770_v18 = vpack.c.bf16 %v3760_v27, %v3760_v27  ;;  %v8339_v27 = vld [vmem:[#allocation99_spill] sm:$0xff] }
 0xfd6   :  { %3779 = vmatmul.bf16.vlgmr.msrb.gmra.mxu0 %v3770_v18  ;;  %3792 = vmatmul.bf16.vlgmr.msrb.gmra.mxu1 %v3770_v18 }
 0xfd7   :  { %3805 = vmatmul.bf16.vlgmr.msrb.gmra.mxu2 %v3770_v18  ;;  %3818 = vmatmul.bf16.vlgmr.msrb.gmra.mxu3 %v3770_v18  ;;  %v580_v18 = vadd.f32 %v8339_v27, %v6809_v54 }
 0xfd8   :  { %4029 = vmatpush.bf16.msrb.mxu0 %v6266_v16  ;;  %4042 = vmatpush.bf16.msrb.mxu1 %v6268_v20 }
 0xfd9   :  { %4055 = vmatpush.bf16.msrb.mxu2 %v6270_v21  ;;  %4068 = vmatpush.bf16.msrb.mxu3 %v6273_v24 }
 0xfdc   :  { %4030 = vmatpush.bf16.msrb.mxu0 %v6281_v28  ;;  %4043 = vmatpush.bf16.msrb.mxu1 %v6284_v32 }
 0xfdd   :  { %4056 = vmatpush.bf16.msrb.mxu2 %v6286_v33  ;;  %4069 = vmatpush.bf16.msrb.mxu3 %v6288_v36 }
 0xfe0   :  { %4031 = vmatpush.bf16.msrb.mxu0 %v6308_v42  ;;  %4044 = vmatpush.bf16.msrb.mxu1 %v6310_v46 }
 0xfe1   :  { %4057 = vmatpush.bf16.msrb.mxu2 %v6312_v47  ;;  %4070 = vmatpush.bf16.msrb.mxu3 %v6315_v50 }
 0xfe4   :  { %4032 = vmatpush.bf16.msrb.mxu0 %v6334_v56  ;;  %4045 = vmatpush.bf16.msrb.mxu1 %v6336_v60 }
 0xfe5   :  { %4058 = vmatpush.bf16.msrb.mxu2 %v6338_v61  ;;  %4071 = vmatpush.bf16.msrb.mxu3 %v6341_v0 }
 0xfe8   :  { %4033 = vmatpush.bf16.msrb.mxu0 %v6360_v6  ;;  %4046 = vmatpush.bf16.msrb.mxu1 %v6362_v8 }
 0xfe9   :  { %4059 = vmatpush.bf16.msrb.mxu2 %v6366_v11  ;;  %4072 = vmatpush.bf16.msrb.mxu3 %v6373_v15 }
 0xfec   :  { %4034 = vmatpush.bf16.msrb.mxu0 %v6390_v26  ;;  %4047 = vmatpush.bf16.msrb.mxu1 %v6394_v30 }
 0xfed   :  { %4060 = vmatpush.bf16.msrb.mxu2 %v6404_v39  ;;  %4073 = vmatpush.bf16.msrb.mxu3 %v6419_v51 }
 0xff0   :  { %4035 = vmatpush.bf16.msrb.mxu0 %v6448_v4  ;;  %4048 = vmatpush.bf16.msrb.mxu1 %v6452_v9 }
 0xff1   :  { %4061 = vmatpush.bf16.msrb.mxu2 %v6462_v22  ;;  %4074 = vmatpush.bf16.msrb.mxu3 %v6477_v49 }
 0xff4   :  { %4036 = vmatpush.bf16.msrb.mxu0 %v6506_v2  ;;  %4049 = vmatpush.bf16.msrb.mxu1 %v6510_v17 }
 0xff5   :  { %4062 = vmatpush.bf16.msrb.mxu2 %v6522_v48  ;;  %4075 = vmatpush.bf16.msrb.mxu3 %v6543_v1 }
0x1053   :  { %v3780_v19 = vpop.f32.mrf.mxu0  ;;  %v3793_v7 = vpop.f32.mrf.mxu1 }
0x1054   :  { %v3823_v34 = vadd.f32 %v3780_v19, %v313_v5  ;;  %v3824_v3 = vadd.f32 %v3793_v7, %v402_v31 }
0x1056   :  { %v5479_v55 = vmul.f32 -1.442695, %v3823_v34  ;;  %v5480_v10 = vmul.f32 -1.442695, %v3824_v3 }
0x1058   :  { %5921 = vpow2.f32 %v5479_v55 }
0x1059   :  { %5923 = vpow2.f32 %v5480_v10 }
0x105a   :  { %v3806_v52 = vpop.f32.mrf.mxu2  ;;  %v3819_v44 = vpop.f32.mrf.mxu3 }
0x105b   :  { %v3825_v45 = vadd.f32 %v3806_v52, %v491_v53  ;;  %v3782_v59 = vpop.f32.mrf.mxu0  ;;  %v3795_v23 = vpop.f32.mrf.mxu1  ;;  %v3826_v57 = vadd.f32 %v3819_v44, %v580_v18 }
0x105d   :  { %v5481_v63 = vmul.f32 -1.442695, %v3825_v45 }
0x105e   :  { %v5922_v13 = vpop.eup %5921 }
0x105f   :  { %v5924_v62 = vpop.eup %5923  ;;  %v3836_v12 = vadd.f32 1.0, %v5922_v13  ;;  %5925 = vpow2.f32 %v5481_v63 }
0x1060   :  { %v3837_v58 = vadd.f32 1.0, %v5924_v62 }
0x1061   :  { %5927 = vrcp.f32 %v3836_v12  ;;  %v3850_v55 = vand.u32 2147483648, %v3836_v12  ;;  %v3848_v53 = vand.u32 2147483647, %v3836_v12  ;;  %vm3844_vm11 = vweird.f32 %v3836_v12 }
0x1062   :  { %5929 = vrcp.f32 %v3837_v58  ;;  %v3808_v29 = vpop.f32.mrf.mxu2  ;;  %v3821_v14 = vpop.f32.mrf.mxu3  ;;  %v3865_v10 = vand.u32 2147483648, %v3837_v58  ;;  %v3863_v45 = vand.u32 2147483647, %v3837_v58  ;;  %vm3859_vm12 = vweird.f32 %v3837_v58 }
0x1063   :  { %v3851_v63 = vor.u32 1.1754944e-38, %v3850_v55  ;;  %vm3849_vm15 = vcmp.eq.f32.partialorder %v3848_v53, 8.507059e+37 }
0x1064   :  { %v3866_v62 = vor.u32 1.1754944e-38, %v3865_v10  ;;  %vm3864_vm0 = vcmp.eq.f32.partialorder %v3863_v45, 8.507059e+37  ;;  %v8341_v45 = vld [vmem:[#allocation101_spill] sm:$0xff] }
0x1065   :  { %v5926_v25 = vpop.eup %5925 }
0x1066   :  { %v3838_v43 = vadd.f32 1.0, %v5926_v25 }
0x1067   :  { %v5928_v5 = vpop.eup %5927 }
0x1068   :  { %v5930_v31 = vpop.eup %5929  ;;  %v3840_v19 = vmul.f32 %v5928_v5, %v3836_v12  ;;  %5931 = vrcp.f32 %v3838_v43  ;;  %vm3845_vm9 = vweird.f32 %v5928_v5  ;;  %vm3874_vm2 = vweird.f32 %v3838_v43 }
0x1069   :  { %v3855_v7 = vmul.f32 %v5930_v31, %v3837_v58  ;;  %5933 = vtanh.f32 %v3826_v57  ;;  %vm3860_vm10 = vweird.f32 %v5930_v31  ;;  %vm3846_vm13 = vmor %vm3844_vm11, %vm3845_vm9 }
0x106a   :  { %v3841_v34 = vsub.f32 1.0, %v3840_v19  ;;  %vm3861_vm14 = vmor %vm3859_vm12, %vm3860_vm10 }
0x106b   :  { %v3856_v3 = vsub.f32 1.0, %v3855_v7 }
0x106c   :  { %v3842_v40 = vmul.f32 %v5928_v5, %v3841_v34 }
0x106d   :  { %v3857_v52 = vmul.f32 %v5930_v31, %v3856_v3  ;;  %v3880_v3 = vand.u32 2147483648, %v3838_v43 }
0x106e   :  { %v5932_v59 = vpop.eup %5931  ;;  %v3843_v23 = vadd.f32 %v5928_v5, %v3842_v40 }
0x106f   :  { %v3870_v44 = vmul.f32 %v5932_v59, %v3838_v43  ;;  %v3858_v13 = vadd.f32 %v5930_v31, %v3857_v52  ;;  %v5934_v14 = vpop.eup %5933  ;;  %vm3875_vm1 = vweird.f32 %v5932_v59  ;;  %v3881_v10 = vor.u32 1.1754944e-38, %v3880_v3 }
0x1070   :  { %v3847_v29 = vsel %vm3846_vm13, %v5928_v5, %v3843_v23  ;;  %v3878_v5 = vand.u32 2147483647, %v3838_v43  ;;  %vm3876_vm3 = vmor %vm3874_vm2, %vm3875_vm1 }
0x1071   :  { %v3871_v25 = vsub.f32 1.0, %v3870_v44  ;;  %v3852_v27 = vsel %vm3849_vm15, %v3851_v63, %v3847_v29  ;;  %v3862_v18 = vsel %vm3861_vm14, %v5930_v31, %v3858_v13 }
0x1072   :  { %v3867_v57 = vsel %vm3864_vm0, %v3866_v62, %v3862_v18  ;;  %v3886_v19 = vmul.f32 %v5934_v14, %v3852_v27  ;;  %vm3879_vm4 = vcmp.eq.f32.partialorder %v3878_v5, 8.507059e+37  ;;  %v8342_v14 = vld [vmem:[#allocation102_spill] sm:$0xff] }
0x1073   :  { %v3872_v7 = vmul.f32 %v5932_v59, %v3871_v25  ;;  %v3885_v34 = vmul.f32 %v3867_v57, %v7740_v35  ;;  %v8340_v35 = vld [vmem:[#allocation100_spill] sm:$0xff]  ;;  %v493_v25 = vadd.f32 %v8342_v14, %v6805_v38 }
0x1074   :  { %v315_v43 = vadd.f32 %v8340_v35, %v6793_v37 }
0x1075   :  { %v7784_v12 = vadd.f32 %v3886_v19, %v3885_v34  ;;  %v3873_v58 = vadd.f32 %v5932_v59, %v3872_v7 }
0x1077   :  { %5935 = vtanh.f32 %v7784_v12  ;;  %v3877_v55 = vsel %vm3876_vm3, %v5932_v59, %v3873_v58  ;;  %v404_v59 = vadd.f32 %v8341_v45, %v6795_v41 }
0x1078   :  { %v3882_v40 = vsel %vm3879_vm4, %v3881_v10, %v3877_v55 }
0x107d   :  { %v5936_v31 = vpop.eup %5935 }
0x107e   :  { %v3889_v53 = vmul.f32 %v5936_v31, %v3882_v40 }
0x1080   :  { %3891 = vst [vmem:[#allocation8 + $0xb0] sm:$0xff] %v3889_v53  ;;  %v3899_v52 = vpack.c.bf16 %v3889_v53, %v3889_v53  ;;  %v8343_v53 = vld [vmem:[#allocation103_spill] sm:$0xff] }
0x1082   :  { %3908 = vmatmul.bf16.vlgmr.msra.gmra.mxu0 %v3899_v52  ;;  %3921 = vmatmul.bf16.vlgmr.msra.gmra.mxu1 %v3899_v52 }
0x1083   :  { %3934 = vmatmul.bf16.vlgmr.msra.gmra.mxu2 %v3899_v52  ;;  %3947 = vmatmul.bf16.vlgmr.msra.gmra.mxu3 %v3899_v52  ;;  %v582_v52 = vadd.f32 %v8343_v53, %v6809_v54 }
0x1084   :  { %4158 = vmatpush.bf16.msra.mxu0 %v6266_v16  ;;  %4171 = vmatpush.bf16.msra.mxu1 %v6268_v20 }
0x1085   :  { %4184 = vmatpush.bf16.msra.mxu2 %v6270_v21  ;;  %4197 = vmatpush.bf16.msra.mxu3 %v6273_v24 }
0x1088   :  { %4159 = vmatpush.bf16.msra.mxu0 %v6281_v28  ;;  %4172 = vmatpush.bf16.msra.mxu1 %v6284_v32 }
0x1089   :  { %4185 = vmatpush.bf16.msra.mxu2 %v6286_v33  ;;  %4198 = vmatpush.bf16.msra.mxu3 %v6288_v36 }
0x108c   :  { %4160 = vmatpush.bf16.msra.mxu0 %v6308_v42  ;;  %4173 = vmatpush.bf16.msra.mxu1 %v6310_v46 }
0x108d   :  { %4186 = vmatpush.bf16.msra.mxu2 %v6312_v47  ;;  %4199 = vmatpush.bf16.msra.mxu3 %v6315_v50 }
0x1090   :  { %4161 = vmatpush.bf16.msra.mxu0 %v6334_v56  ;;  %4174 = vmatpush.bf16.msra.mxu1 %v6336_v60 }
0x1091   :  { %4187 = vmatpush.bf16.msra.mxu2 %v6338_v61  ;;  %4200 = vmatpush.bf16.msra.mxu3 %v6341_v0 }
0x1094   :  { %4162 = vmatpush.bf16.msra.mxu0 %v6360_v6  ;;  %4175 = vmatpush.bf16.msra.mxu1 %v6362_v8 }
0x1095   :  { %4188 = vmatpush.bf16.msra.mxu2 %v6366_v11  ;;  %4201 = vmatpush.bf16.msra.mxu3 %v6373_v15 }
0x1098   :  { %4163 = vmatpush.bf16.msra.mxu0 %v6390_v26  ;;  %4176 = vmatpush.bf16.msra.mxu1 %v6394_v30 }
0x1099   :  { %4189 = vmatpush.bf16.msra.mxu2 %v6404_v39  ;;  %4202 = vmatpush.bf16.msra.mxu3 %v6419_v51 }
0x109c   :  { %4164 = vmatpush.bf16.msra.mxu0 %v6448_v4  ;;  %4177 = vmatpush.bf16.msra.mxu1 %v6452_v9 }
0x109d   :  { %4190 = vmatpush.bf16.msra.mxu2 %v6462_v22  ;;  %4203 = vmatpush.bf16.msra.mxu3 %v6477_v49 }
0x10a0   :  { %4165 = vmatpush.bf16.msra.mxu0 %v6506_v2  ;;  %4178 = vmatpush.bf16.msra.mxu1 %v6510_v17 }
0x10a1   :  { %4191 = vmatpush.bf16.msra.mxu2 %v6522_v48  ;;  %4204 = vmatpush.bf16.msra.mxu3 %v6543_v1 }
0x10ff   :  { %v3909_v23 = vpop.f32.mrf.mxu0  ;;  %v3922_v44 = vpop.f32.mrf.mxu1 }
0x1100   :  { %v3952_v63 = vadd.f32 %v3909_v23, %v315_v43  ;;  %v3953_v13 = vadd.f32 %v3922_v44, %v404_v59 }
0x1102   :  { %v5482_v62 = vmul.f32 -1.442695, %v3952_v63  ;;  %v5483_v29 = vmul.f32 -1.442695, %v3953_v13 }
0x1104   :  { %5937 = vpow2.f32 %v5482_v62 }
0x1105   :  { %5939 = vpow2.f32 %v5483_v29 }
0x1106   :  { %v3935_v27 = vpop.f32.mrf.mxu2  ;;  %v3948_v18 = vpop.f32.mrf.mxu3 }
0x1107   :  { %v3954_v57 = vadd.f32 %v3935_v27, %v493_v25  ;;  %v3911_v19 = vpop.f32.mrf.mxu0  ;;  %v3924_v7 = vpop.f32.mrf.mxu1  ;;  %v3955_v45 = vadd.f32 %v3948_v18, %v582_v52 }
0x1109   :  { %v5484_v34 = vmul.f32 -1.442695, %v3954_v57 }
0x110a   :  { %v5938_v58 = vpop.eup %5937 }
0x110b   :  { %v5940_v3 = vpop.eup %5939  ;;  %v3965_v5 = vadd.f32 1.0, %v5938_v58  ;;  %5941 = vpow2.f32 %v5484_v34 }
0x110c   :  { %v3966_v55 = vadd.f32 1.0, %v5940_v3 }
0x110d   :  { %5943 = vrcp.f32 %v3965_v5  ;;  %v3979_v62 = vand.u32 2147483648, %v3965_v5  ;;  %v3977_v25 = vand.u32 2147483647, %v3965_v5  ;;  %vm3973_vm7 = vweird.f32 %v3965_v5 }
0x110e   :  { %5945 = vrcp.f32 %v3966_v55  ;;  %v3937_v10 = vpop.f32.mrf.mxu2  ;;  %v3950_v31 = vpop.f32.mrf.mxu3  ;;  %v3994_v29 = vand.u32 2147483648, %v3966_v55  ;;  %v3992_v57 = vand.u32 2147483647, %v3966_v55  ;;  %vm3988_vm8 = vweird.f32 %v3966_v55 }
0x110f   :  { %v3980_v34 = vor.u32 1.1754944e-38, %v3979_v62  ;;  %vm3978_vm11 = vcmp.eq.f32.partialorder %v3977_v25, 8.507059e+37 }
0x1110   :  { %v3995_v3 = vor.u32 1.1754944e-38, %v3994_v29  ;;  %vm3993_vm12 = vcmp.eq.f32.partialorder %v3992_v57, 8.507059e+37  ;;  %v8345_v57 = vld [vmem:[#allocation105_spill] sm:$0xff] }
0x1111   :  { %v5942_v40 = vpop.eup %5941 }
0x1112   :  { %v3967_v35 = vadd.f32 1.0, %v5942_v40 }
0x1113   :  { %v5944_v43 = vpop.eup %5943 }
0x1114   :  { %v5946_v59 = vpop.eup %5945  ;;  %v3969_v23 = vmul.f32 %v5944_v43, %v3965_v5  ;;  %5947 = vrcp.f32 %v3967_v35  ;;  %vm3974_vm5 = vweird.f32 %v5944_v43  ;;  %vm4003_vm14 = vweird.f32 %v3967_v35 }
0x1115   :  { %v3984_v44 = vmul.f32 %v5946_v59, %v3966_v55  ;;  %5949 = vtanh.f32 %v3955_v45  ;;  %vm3989_vm6 = vweird.f32 %v5946_v59  ;;  %vm3975_vm9 = vmor %vm3973_vm7, %vm3974_vm5 }
0x1116   :  { %v3970_v63 = vsub.f32 1.0, %v3969_v23  ;;  %vm3990_vm10 = vmor %vm3988_vm8, %vm3989_vm6 }
0x1117   :  { %v3985_v13 = vsub.f32 1.0, %v3984_v44 }
0x1118   :  { %v3971_v14 = vmul.f32 %v5944_v43, %v3970_v63 }
0x1119   :  { %v3986_v27 = vmul.f32 %v5946_v59, %v3985_v13  ;;  %v4009_v13 = vand.u32 2147483648, %v3967_v35 }
0x111a   :  { %v5948_v19 = vpop.eup %5947  ;;  %v3972_v7 = vadd.f32 %v5944_v43, %v3971_v14 }
0x111b   :  { %v3999_v18 = vmul.f32 %v5948_v19, %v3967_v35  ;;  %v3987_v58 = vadd.f32 %v5946_v59, %v3986_v27  ;;  %v5950_v31 = vpop.eup %5949  ;;  %vm4004_vm13 = vweird.f32 %v5948_v19  ;;  %v4010_v29 = vor.u32 1.1754944e-38, %v4009_v13 }
0x111c   :  { %v3976_v10 = vsel %vm3975_vm9, %v5944_v43, %v3972_v7  ;;  %v4007_v43 = vand.u32 2147483647, %v3967_v35  ;;  %vm4005_vm15 = vmor %vm4003_vm14, %vm4004_vm13 }
0x111d   :  { %v4000_v40 = vsub.f32 1.0, %v3999_v18  ;;  %v3981_v53 = vsel %vm3978_vm11, %v3980_v34, %v3976_v10  ;;  %v3991_v52 = vsel %vm3990_vm10, %v5946_v59, %v3987_v58 }
0x111e   :  { %v3996_v45 = vsel %vm3993_vm12, %v3995_v3, %v3991_v52  ;;  %v4015_v23 = vmul.f32 %v5950_v31, %v3981_v53  ;;  %vm4008_vm0 = vcmp.eq.f32.partialorder %v4007_v43, 8.507059e+37  ;;  %v8346_v31 = vld [vmem:[#allocation106_spill] sm:$0xff] }
0x111f   :  { %v4001_v44 = vmul.f32 %v5948_v19, %v4000_v40  ;;  %v4014_v63 = vmul.f32 %v3996_v45, %v7784_v12  ;;  %v8344_v12 = vld [vmem:[#allocation104_spill] sm:$0xff]  ;;  %v496_v40 = vadd.f32 %v8346_v31, %v6805_v38 }
0x1120   :  { %v318_v35 = vadd.f32 %v8344_v12, %v6793_v37 }
0x1121   :  { %v7828_v5 = vadd.f32 %v4015_v23, %v4014_v63  ;;  %v4002_v55 = vadd.f32 %v5948_v19, %v4001_v44 }
0x1123   :  { %5951 = vtanh.f32 %v7828_v5  ;;  %v4006_v62 = vsel %vm4005_vm15, %v5948_v19, %v4002_v55  ;;  %v407_v19 = vadd.f32 %v8345_v57, %v6795_v41 }
0x1124   :  { %v4011_v14 = vsel %vm4008_vm0, %v4010_v29, %v4006_v62 }
0x1129   :  { %v5952_v59 = vpop.eup %5951 }
0x112a   :  { %v4018_v25 = vmul.f32 %v5952_v59, %v4011_v14 }
0x112c   :  { %4020 = vst [vmem:[#allocation8 + $0xb8] sm:$0xff] %v4018_v25  ;;  %v4028_v27 = vpack.c.bf16 %v4018_v25, %v4018_v25  ;;  %v8347_v25 = vld [vmem:[#allocation107_spill] sm:$0xff] }
0x112e   :  { %4037 = vmatmul.bf16.vlgmr.msrb.gmra.mxu0 %v4028_v27  ;;  %4050 = vmatmul.bf16.vlgmr.msrb.gmra.mxu1 %v4028_v27 }
0x112f   :  { %4063 = vmatmul.bf16.vlgmr.msrb.gmra.mxu2 %v4028_v27  ;;  %4076 = vmatmul.bf16.vlgmr.msrb.gmra.mxu3 %v4028_v27  ;;  %v585_v27 = vadd.f32 %v8347_v25, %v6809_v54 }
0x1130   :  { %4287 = vmatpush.bf16.msrb.mxu0 %v6266_v16  ;;  %4300 = vmatpush.bf16.msrb.mxu1 %v6268_v20 }
0x1131   :  { %4313 = vmatpush.bf16.msrb.mxu2 %v6270_v21  ;;  %4326 = vmatpush.bf16.msrb.mxu3 %v6273_v24 }
0x1134   :  { %4288 = vmatpush.bf16.msrb.mxu0 %v6281_v28  ;;  %4301 = vmatpush.bf16.msrb.mxu1 %v6284_v32 }
0x1135   :  { %4314 = vmatpush.bf16.msrb.mxu2 %v6286_v33  ;;  %4327 = vmatpush.bf16.msrb.mxu3 %v6288_v36 }
0x1138   :  { %4289 = vmatpush.bf16.msrb.mxu0 %v6308_v42  ;;  %4302 = vmatpush.bf16.msrb.mxu1 %v6310_v46 }
0x1139   :  { %4315 = vmatpush.bf16.msrb.mxu2 %v6312_v47  ;;  %4328 = vmatpush.bf16.msrb.mxu3 %v6315_v50 }
0x113c   :  { %4290 = vmatpush.bf16.msrb.mxu0 %v6334_v56  ;;  %4303 = vmatpush.bf16.msrb.mxu1 %v6336_v60 }
0x113d   :  { %4316 = vmatpush.bf16.msrb.mxu2 %v6338_v61  ;;  %4329 = vmatpush.bf16.msrb.mxu3 %v6341_v0 }
0x1140   :  { %4291 = vmatpush.bf16.msrb.mxu0 %v6360_v6  ;;  %4304 = vmatpush.bf16.msrb.mxu1 %v6362_v8 }
0x1141   :  { %4317 = vmatpush.bf16.msrb.mxu2 %v6366_v11  ;;  %4330 = vmatpush.bf16.msrb.mxu3 %v6373_v15 }
0x1144   :  { %4292 = vmatpush.bf16.msrb.mxu0 %v6390_v26  ;;  %4305 = vmatpush.bf16.msrb.mxu1 %v6394_v30 }
0x1145   :  { %4318 = vmatpush.bf16.msrb.mxu2 %v6404_v39  ;;  %4331 = vmatpush.bf16.msrb.mxu3 %v6419_v51 }
0x1148   :  { %4293 = vmatpush.bf16.msrb.mxu0 %v6448_v4  ;;  %4306 = vmatpush.bf16.msrb.mxu1 %v6452_v9 }
0x1149   :  { %4319 = vmatpush.bf16.msrb.mxu2 %v6462_v22  ;;  %4332 = vmatpush.bf16.msrb.mxu3 %v6477_v49 }
0x114c   :  { %4294 = vmatpush.bf16.msrb.mxu0 %v6506_v2  ;;  %4307 = vmatpush.bf16.msrb.mxu1 %v6510_v17 }
0x114d   :  { %4320 = vmatpush.bf16.msrb.mxu2 %v6522_v48  ;;  %4333 = vmatpush.bf16.msrb.mxu3 %v6543_v1 }
0x11ab   :  { %v4038_v7 = vpop.f32.mrf.mxu0  ;;  %v4051_v18 = vpop.f32.mrf.mxu1 }
0x11ac   :  { %v4081_v34 = vadd.f32 %v4038_v7, %v318_v35  ;;  %v4082_v58 = vadd.f32 %v4051_v18, %v407_v19 }
0x11ae   :  { %v5485_v3 = vmul.f32 -1.442695, %v4081_v34  ;;  %v5486_v10 = vmul.f32 -1.442695, %v4082_v58 }
0x11b0   :  { %5953 = vpow2.f32 %v5485_v3 }
0x11b1   :  { %5955 = vpow2.f32 %v5486_v10 }
0x11b2   :  { %v4064_v53 = vpop.f32.mrf.mxu2  ;;  %v4077_v52 = vpop.f32.mrf.mxu3 }
0x11b3   :  { %v4083_v45 = vadd.f32 %v4064_v53, %v496_v40  ;;  %v4040_v23 = vpop.f32.mrf.mxu0  ;;  %v4053_v44 = vpop.f32.mrf.mxu1  ;;  %v4084_v57 = vadd.f32 %v4077_v52, %v585_v27 }
0x11b5   :  { %v5487_v63 = vmul.f32 -1.442695, %v4083_v45 }
0x11b6   :  { %v5954_v55 = vpop.eup %5953 }
0x11b7   :  { %v5956_v13 = vpop.eup %5955  ;;  %v4094_v43 = vadd.f32 1.0, %v5954_v55  ;;  %5957 = vpow2.f32 %v5487_v63 }
0x11b8   :  { %v4095_v62 = vadd.f32 1.0, %v5956_v13 }
0x11b9   :  { %5959 = vrcp.f32 %v4094_v43  ;;  %v4108_v3 = vand.u32 2147483648, %v4094_v43  ;;  %v4106_v40 = vand.u32 2147483647, %v4094_v43  ;;  %vm4102_vm3 = vweird.f32 %v4094_v43 }
0x11ba   :  { %5961 = vrcp.f32 %v4095_v62  ;;  %v4066_v29 = vpop.f32.mrf.mxu2  ;;  %v4079_v59 = vpop.f32.mrf.mxu3  ;;  %v4123_v10 = vand.u32 2147483648, %v4095_v62  ;;  %v4121_v45 = vand.u32 2147483647, %v4095_v62  ;;  %vm4117_vm4 = vweird.f32 %v4095_v62 }
0x11bb   :  { %v4109_v63 = vor.u32 1.1754944e-38, %v4108_v3  ;;  %vm4107_vm7 = vcmp.eq.f32.partialorder %v4106_v40, 8.507059e+37 }
0x11bc   :  { %v4124_v13 = vor.u32 1.1754944e-38, %v4123_v10  ;;  %vm4122_vm8 = vcmp.eq.f32.partialorder %v4121_v45, 8.507059e+37  ;;  %v8349_v45 = vld [vmem:[#allocation109_spill] sm:$0xff] }
0x11bd   :  { %v5958_v14 = vpop.eup %5957 }
0x11be   :  { %v4096_v12 = vadd.f32 1.0, %v5958_v14 }
0x11bf   :  { %v5960_v35 = vpop.eup %5959 }
0x11c0   :  { %v5962_v19 = vpop.eup %5961  ;;  %v4098_v7 = vmul.f32 %v5960_v35, %v4094_v43  ;;  %5963 = vrcp.f32 %v4096_v12  ;;  %vm4103_vm1 = vweird.f32 %v5960_v35  ;;  %vm4132_vm10 = vweird.f32 %v4096_v12 }
0x11c1   :  { %v4113_v18 = vmul.f32 %v5962_v19, %v4095_v62  ;;  %5965 = vtanh.f32 %v4084_v57  ;;  %vm4118_vm2 = vweird.f32 %v5962_v19  ;;  %vm4104_vm5 = vmor %vm4102_vm3, %vm4103_vm1 }
0x11c2   :  { %v4099_v34 = vsub.f32 1.0, %v4098_v7  ;;  %vm4119_vm6 = vmor %vm4117_vm4, %vm4118_vm2 }
0x11c3   :  { %v4114_v58 = vsub.f32 1.0, %v4113_v18 }
0x11c4   :  { %v4100_v31 = vmul.f32 %v5960_v35, %v4099_v34 }
0x11c5   :  { %v4115_v53 = vmul.f32 %v5962_v19, %v4114_v58  ;;  %v4138_v58 = vand.u32 2147483648, %v4096_v12 }
0x11c6   :  { %v5964_v23 = vpop.eup %5963  ;;  %v4101_v44 = vadd.f32 %v5960_v35, %v4100_v31 }
0x11c7   :  { %v4128_v52 = vmul.f32 %v5964_v23, %v4096_v12  ;;  %v4116_v55 = vadd.f32 %v5962_v19, %v4115_v53  ;;  %v5966_v59 = vpop.eup %5965  ;;  %vm4133_vm9 = vweird.f32 %v5964_v23  ;;  %v4139_v10 = vor.u32 1.1754944e-38, %v4138_v58 }
0x11c8   :  { %v4105_v29 = vsel %vm4104_vm5, %v5960_v35, %v4101_v44  ;;  %v4136_v35 = vand.u32 2147483647, %v4096_v12  ;;  %vm4134_vm11 = vmor %vm4132_vm10, %vm4133_vm9 }
0x11c9   :  { %v4129_v14 = vsub.f32 1.0, %v4128_v52  ;;  %v4110_v25 = vsel %vm4107_vm7, %v4109_v63, %v4105_v29  ;;  %v4120_v27 = vsel %vm4119_vm6, %v5962_v19, %v4116_v55 }
0x11ca   :  { %v4125_v57 = vsel %vm4122_vm8, %v4124_v13, %v4120_v27  ;;  %v4144_v7 = vmul.f32 %v5966_v59, %v4110_v25  ;;  %vm4137_vm12 = vcmp.eq.f32.partialorder %v4136_v35, 8.507059e+37  ;;  %v8350_v59 = vld [vmem:[#allocation110_spill] sm:$0xff] }
0x11cb   :  { %v4130_v18 = vmul.f32 %v5964_v23, %v4129_v14  ;;  %v4143_v34 = vmul.f32 %v4125_v57, %v7828_v5  ;;  %v8348_v5 = vld [vmem:[#allocation108_spill] sm:$0xff]  ;;  %v498_v14 = vadd.f32 %v8350_v59, %v6805_v38 }
0x11cc   :  { %v320_v12 = vadd.f32 %v8348_v5, %v6793_v37 }
0x11cd   :  { %v7872_v43 = vadd.f32 %v4144_v7, %v4143_v34  ;;  %v4131_v62 = vadd.f32 %v5964_v23, %v4130_v18 }
0x11cf   :  { %5967 = vtanh.f32 %v7872_v43  ;;  %v4135_v3 = vsel %vm4134_vm11, %v5964_v23, %v4131_v62  ;;  %v409_v23 = vadd.f32 %v8349_v45, %v6795_v41 }
0x11d0   :  { %v4140_v31 = vsel %vm4137_vm12, %v4139_v10, %v4135_v3 }
0x11d5   :  { %v5968_v19 = vpop.eup %5967 }
0x11d6   :  { %v4147_v40 = vmul.f32 %v5968_v19, %v4140_v31 }
0x11d8   :  { %4149 = vst [vmem:[#allocation8 + $0xc0] sm:$0xff] %v4147_v40  ;;  %v4157_v53 = vpack.c.bf16 %v4147_v40, %v4147_v40  ;;  %v8351_v40 = vld [vmem:[#allocation111_spill] sm:$0xff] }
0x11da   :  { %4166 = vmatmul.bf16.vlgmr.msra.gmra.mxu0 %v4157_v53  ;;  %4179 = vmatmul.bf16.vlgmr.msra.gmra.mxu1 %v4157_v53 }
0x11db   :  { %4192 = vmatmul.bf16.vlgmr.msra.gmra.mxu2 %v4157_v53  ;;  %4205 = vmatmul.bf16.vlgmr.msra.gmra.mxu3 %v4157_v53  ;;  %v587_v53 = vadd.f32 %v8351_v40, %v6809_v54 }
0x11dc   :  { %4416 = vmatpush.bf16.msra.mxu0 %v6266_v16  ;;  %4429 = vmatpush.bf16.msra.mxu1 %v6268_v20 }
0x11dd   :  { %4442 = vmatpush.bf16.msra.mxu2 %v6270_v21  ;;  %4455 = vmatpush.bf16.msra.mxu3 %v6273_v24 }
0x11e0   :  { %4417 = vmatpush.bf16.msra.mxu0 %v6281_v28  ;;  %4430 = vmatpush.bf16.msra.mxu1 %v6284_v32 }
0x11e1   :  { %4443 = vmatpush.bf16.msra.mxu2 %v6286_v33  ;;  %4456 = vmatpush.bf16.msra.mxu3 %v6288_v36 }
0x11e4   :  { %4418 = vmatpush.bf16.msra.mxu0 %v6308_v42  ;;  %4431 = vmatpush.bf16.msra.mxu1 %v6310_v46 }
0x11e5   :  { %4444 = vmatpush.bf16.msra.mxu2 %v6312_v47  ;;  %4457 = vmatpush.bf16.msra.mxu3 %v6315_v50 }
0x11e8   :  { %4419 = vmatpush.bf16.msra.mxu0 %v6334_v56  ;;  %4432 = vmatpush.bf16.msra.mxu1 %v6336_v60 }
0x11e9   :  { %4445 = vmatpush.bf16.msra.mxu2 %v6338_v61  ;;  %4458 = vmatpush.bf16.msra.mxu3 %v6341_v0 }
0x11ec   :  { %4420 = vmatpush.bf16.msra.mxu0 %v6360_v6  ;;  %4433 = vmatpush.bf16.msra.mxu1 %v6362_v8 }
0x11ed   :  { %4446 = vmatpush.bf16.msra.mxu2 %v6366_v11  ;;  %4459 = vmatpush.bf16.msra.mxu3 %v6373_v15 }
0x11f0   :  { %4421 = vmatpush.bf16.msra.mxu0 %v6390_v26  ;;  %4434 = vmatpush.bf16.msra.mxu1 %v6394_v30 }
0x11f1   :  { %4447 = vmatpush.bf16.msra.mxu2 %v6404_v39  ;;  %4460 = vmatpush.bf16.msra.mxu3 %v6419_v51 }
0x11f4   :  { %4422 = vmatpush.bf16.msra.mxu0 %v6448_v4  ;;  %4435 = vmatpush.bf16.msra.mxu1 %v6452_v9 }
0x11f5   :  { %4448 = vmatpush.bf16.msra.mxu2 %v6462_v22  ;;  %4461 = vmatpush.bf16.msra.mxu3 %v6477_v49 }
0x11f8   :  { %4423 = vmatpush.bf16.msra.mxu0 %v6506_v2  ;;  %4436 = vmatpush.bf16.msra.mxu1 %v6510_v17 }
0x11f9   :  { %4449 = vmatpush.bf16.msra.mxu2 %v6522_v48  ;;  %4462 = vmatpush.bf16.msra.mxu3 %v6543_v1 }
0x1257   :  { %v4167_v44 = vpop.f32.mrf.mxu0  ;;  %v4180_v52 = vpop.f32.mrf.mxu1 }
0x1258   :  { %v4210_v63 = vadd.f32 %v4167_v44, %v320_v12  ;;  %v4211_v55 = vadd.f32 %v4180_v52, %v409_v23 }
0x125a   :  { %v5488_v13 = vmul.f32 -1.442695, %v4210_v63  ;;  %v5489_v29 = vmul.f32 -1.442695, %v4211_v55 }
0x125c   :  { %5969 = vpow2.f32 %v5488_v13 }
0x125d   :  { %5971 = vpow2.f32 %v5489_v29 }
0x125e   :  { %v4193_v25 = vpop.f32.mrf.mxu2  ;;  %v4206_v27 = vpop.f32.mrf.mxu3 }
0x125f   :  { %v4212_v57 = vadd.f32 %v4193_v25, %v498_v14  ;;  %v4169_v7 = vpop.f32.mrf.mxu0  ;;  %v4182_v18 = vpop.f32.mrf.mxu1  ;;  %v4213_v45 = vadd.f32 %v4206_v27, %v587_v53 }
0x1261   :  { %v5490_v34 = vmul.f32 -1.442695, %v4212_v57 }
0x1262   :  { %v5970_v62 = vpop.eup %5969 }
0x1263   :  { %v5972_v58 = vpop.eup %5971  ;;  %v4223_v35 = vadd.f32 1.0, %v5970_v62  ;;  %5973 = vpow2.f32 %v5490_v34 }
0x1264   :  { %v4224_v3 = vadd.f32 1.0, %v5972_v58 }
0x1265   :  { %5975 = vrcp.f32 %v4223_v35  ;;  %v4237_v13 = vand.u32 2147483648, %v4223_v35  ;;  %v4235_v14 = vand.u32 2147483647, %v4223_v35  ;;  %vm4231_vm15 = vweird.f32 %v4223_v35 }
0x1266   :  { %5977 = vrcp.f32 %v4224_v3  ;;  %v4195_v10 = vpop.f32.mrf.mxu2  ;;  %v4208_v19 = vpop.f32.mrf.mxu3  ;;  %v4252_v29 = vand.u32 2147483648, %v4224_v3  ;;  %v4250_v57 = vand.u32 2147483647, %v4224_v3  ;;  %vm4246_vm0 = vweird.f32 %v4224_v3 }
0x1267   :  { %v4238_v34 = vor.u32 1.1754944e-38, %v4237_v13  ;;  %vm4236_vm3 = vcmp.eq.f32.partialorder %v4235_v14, 8.507059e+37 }
0x1268   :  { %v4253_v58 = vor.u32 1.1754944e-38, %v4252_v29  ;;  %vm4251_vm4 = vcmp.eq.f32.partialorder %v4250_v57, 8.507059e+37  ;;  %v8353_v57 = vld [vmem:[#allocation113_spill] sm:$0xff] }
0x1269   :  { %v5974_v31 = vpop.eup %5973 }
0x126a   :  { %v4225_v5 = vadd.f32 1.0, %v5974_v31 }
0x126b   :  { %v5976_v12 = vpop.eup %5975 }
0x126c   :  { %v5978_v23 = vpop.eup %5977  ;;  %v4227_v44 = vmul.f32 %v5976_v12, %v4223_v35  ;;  %5979 = vrcp.f32 %v4225_v5  ;;  %vm4232_vm13 = vweird.f32 %v5976_v12  ;;  %vm4261_vm6 = vweird.f32 %v4225_v5 }
0x126d   :  { %v4242_v52 = vmul.f32 %v5978_v23, %v4224_v3  ;;  %5981 = vtanh.f32 %v4213_v45  ;;  %vm4247_vm14 = vweird.f32 %v5978_v23  ;;  %vm4233_vm1 = vmor %vm4231_vm15, %vm4232_vm13 }
0x126e   :  { %v4228_v63 = vsub.f32 1.0, %v4227_v44  ;;  %vm4248_vm2 = vmor %vm4246_vm0, %vm4247_vm14 }
0x126f   :  { %v4243_v55 = vsub.f32 1.0, %v4242_v52 }
0x1270   :  { %v4229_v59 = vmul.f32 %v5976_v12, %v4228_v63 }
0x1271   :  { %v4244_v25 = vmul.f32 %v5978_v23, %v4243_v55  ;;  %v4267_v55 = vand.u32 2147483648, %v4225_v5 }
0x1272   :  { %v5980_v7 = vpop.eup %5979  ;;  %v4230_v18 = vadd.f32 %v5976_v12, %v4229_v59 }
0x1273   :  { %v4257_v27 = vmul.f32 %v5980_v7, %v4225_v5  ;;  %v4245_v62 = vadd.f32 %v5978_v23, %v4244_v25  ;;  %v5982_v19 = vpop.eup %5981  ;;  %vm4262_vm5 = vweird.f32 %v5980_v7  ;;  %v4268_v29 = vor.u32 1.1754944e-38, %v4267_v55 }
0x1274   :  { %v4234_v10 = vsel %vm4233_vm1, %v5976_v12, %v4230_v18  ;;  %v4265_v12 = vand.u32 2147483647, %v4225_v5  ;;  %vm4263_vm7 = vmor %vm4261_vm6, %vm4262_vm5 }
0x1275   :  { %v4258_v31 = vsub.f32 1.0, %v4257_v27  ;;  %v4239_v40 = vsel %vm4236_vm3, %v4238_v34, %v4234_v10  ;;  %v4249_v53 = vsel %vm4248_vm2, %v5978_v23, %v4245_v62 }
0x1276   :  { %v4254_v45 = vsel %vm4251_vm4, %v4253_v58, %v4249_v53  ;;  %v4273_v44 = vmul.f32 %v5982_v19, %v4239_v40  ;;  %vm4266_vm8 = vcmp.eq.f32.partialorder %v4265_v12, 8.507059e+37  ;;  %v8354_v19 = vld [vmem:[#allocation114_spill] sm:$0xff] }
0x1277   :  { %v4259_v52 = vmul.f32 %v5980_v7, %v4258_v31  ;;  %v4272_v63 = vmul.f32 %v4254_v45, %v7872_v43  ;;  %v8352_v43 = vld [vmem:[#allocation112_spill] sm:$0xff]  ;;  %v501_v31 = vadd.f32 %v8354_v19, %v6805_v38 }
0x1278   :  { %v323_v5 = vadd.f32 %v8352_v43, %v6793_v37 }
0x1279   :  { %v7916_v35 = vadd.f32 %v4273_v44, %v4272_v63  ;;  %v4260_v3 = vadd.f32 %v5980_v7, %v4259_v52 }
0x127b   :  { %5983 = vtanh.f32 %v7916_v35  ;;  %v4264_v13 = vsel %vm4263_vm7, %v5980_v7, %v4260_v3  ;;  %v412_v7 = vadd.f32 %v8353_v57, %v6795_v41 }
0x127c   :  { %v4269_v59 = vsel %vm4266_vm8, %v4268_v29, %v4264_v13 }
0x1281   :  { %v5984_v23 = vpop.eup %5983 }
0x1282   :  { %v4276_v14 = vmul.f32 %v5984_v23, %v4269_v59 }
0x1284   :  { %4278 = vst [vmem:[#allocation8 + $0xc8] sm:$0xff] %v4276_v14  ;;  %v4286_v25 = vpack.c.bf16 %v4276_v14, %v4276_v14  ;;  %v8355_v14 = vld [vmem:[#allocation115_spill] sm:$0xff] }
0x1286   :  { %4295 = vmatmul.bf16.vlgmr.msrb.gmra.mxu0 %v4286_v25  ;;  %4308 = vmatmul.bf16.vlgmr.msrb.gmra.mxu1 %v4286_v25 }
0x1287   :  { %4321 = vmatmul.bf16.vlgmr.msrb.gmra.mxu2 %v4286_v25  ;;  %4334 = vmatmul.bf16.vlgmr.msrb.gmra.mxu3 %v4286_v25  ;;  %v590_v25 = vadd.f32 %v8355_v14, %v6809_v54 }
0x1288   :  { %4545 = vmatpush.bf16.msrb.mxu0 %v6266_v16  ;;  %4558 = vmatpush.bf16.msrb.mxu1 %v6268_v20 }
0x1289   :  { %4571 = vmatpush.bf16.msrb.mxu2 %v6270_v21  ;;  %4584 = vmatpush.bf16.msrb.mxu3 %v6273_v24 }
0x128c   :  { %4546 = vmatpush.bf16.msrb.mxu0 %v6281_v28  ;;  %4559 = vmatpush.bf16.msrb.mxu1 %v6284_v32 }
0x128d   :  { %4572 = vmatpush.bf16.msrb.mxu2 %v6286_v33  ;;  %4585 = vmatpush.bf16.msrb.mxu3 %v6288_v36 }
0x1290   :  { %4547 = vmatpush.bf16.msrb.mxu0 %v6308_v42  ;;  %4560 = vmatpush.bf16.msrb.mxu1 %v6310_v46 }
0x1291   :  { %4573 = vmatpush.bf16.msrb.mxu2 %v6312_v47  ;;  %4586 = vmatpush.bf16.msrb.mxu3 %v6315_v50 }
0x1294   :  { %4548 = vmatpush.bf16.msrb.mxu0 %v6334_v56  ;;  %4561 = vmatpush.bf16.msrb.mxu1 %v6336_v60 }
0x1295   :  { %4574 = vmatpush.bf16.msrb.mxu2 %v6338_v61  ;;  %4587 = vmatpush.bf16.msrb.mxu3 %v6341_v0 }
0x1298   :  { %4549 = vmatpush.bf16.msrb.mxu0 %v6360_v6  ;;  %4562 = vmatpush.bf16.msrb.mxu1 %v6362_v8 }
0x1299   :  { %4575 = vmatpush.bf16.msrb.mxu2 %v6366_v11  ;;  %4588 = vmatpush.bf16.msrb.mxu3 %v6373_v15 }
0x129c   :  { %4550 = vmatpush.bf16.msrb.mxu0 %v6390_v26  ;;  %4563 = vmatpush.bf16.msrb.mxu1 %v6394_v30 }
0x129d   :  { %4576 = vmatpush.bf16.msrb.mxu2 %v6404_v39  ;;  %4589 = vmatpush.bf16.msrb.mxu3 %v6419_v51 }
0x12a0   :  { %4551 = vmatpush.bf16.msrb.mxu0 %v6448_v4  ;;  %4564 = vmatpush.bf16.msrb.mxu1 %v6452_v9 }
0x12a1   :  { %4577 = vmatpush.bf16.msrb.mxu2 %v6462_v22  ;;  %4590 = vmatpush.bf16.msrb.mxu3 %v6477_v49 }
0x12a4   :  { %4552 = vmatpush.bf16.msrb.mxu0 %v6506_v2  ;;  %4565 = vmatpush.bf16.msrb.mxu1 %v6510_v17 }
0x12a5   :  { %4578 = vmatpush.bf16.msrb.mxu2 %v6522_v48  ;;  %4591 = vmatpush.bf16.msrb.mxu3 %v6543_v1 }
0x1303   :  { %v4296_v18 = vpop.f32.mrf.mxu0  ;;  %v4309_v27 = vpop.f32.mrf.mxu1 }
0x1304   :  { %v4339_v34 = vadd.f32 %v4296_v18, %v323_v5  ;;  %v4340_v62 = vadd.f32 %v4309_v27, %v412_v7 }
0x1306   :  { %v5491_v58 = vmul.f32 -1.442695, %v4339_v34  ;;  %v5492_v10 = vmul.f32 -1.442695, %v4340_v62 }
0x1308   :  { %5985 = vpow2.f32 %v5491_v58 }
0x1309   :  { %5987 = vpow2.f32 %v5492_v10 }
0x130a   :  { %v4322_v40 = vpop.f32.mrf.mxu2  ;;  %v4335_v53 = vpop.f32.mrf.mxu3 }
0x130b   :  { %v4341_v45 = vadd.f32 %v4322_v40, %v501_v31  ;;  %v4298_v44 = vpop.f32.mrf.mxu0  ;;  %v4311_v52 = vpop.f32.mrf.mxu1  ;;  %v4342_v57 = vadd.f32 %v4335_v53, %v590_v25 }
0x130d   :  { %v5493_v63 = vmul.f32 -1.442695, %v4341_v45 }
0x130e   :  { %v5986_v3 = vpop.eup %5985 }
0x130f   :  { %v5988_v55 = vpop.eup %5987  ;;  %v4352_v12 = vadd.f32 1.0, %v5986_v3  ;;  %5989 = vpow2.f32 %v5493_v63 }
0x1310   :  { %v4353_v13 = vadd.f32 1.0, %v5988_v55 }
0x1311   :  { %5991 = vrcp.f32 %v4352_v12  ;;  %v4366_v58 = vand.u32 2147483648, %v4352_v12  ;;  %v4364_v31 = vand.u32 2147483647, %v4352_v12  ;;  %vm4360_vm11 = vweird.f32 %v4352_v12 }
0x1312   :  { %5993 = vrcp.f32 %v4353_v13  ;;  %v4324_v29 = vpop.f32.mrf.mxu2  ;;  %v4337_v23 = vpop.f32.mrf.mxu3  ;;  %v4381_v10 = vand.u32 2147483648, %v4353_v13  ;;  %v4379_v45 = vand.u32 2147483647, %v4353_v13  ;;  %vm4375_vm12 = vweird.f32 %v4353_v13 }
0x1313   :  { %v4367_v63 = vor.u32 1.1754944e-38, %v4366_v58  ;;  %vm4365_vm15 = vcmp.eq.f32.partialorder %v4364_v31, 8.507059e+37 }
0x1314   :  { %v4382_v55 = vor.u32 1.1754944e-38, %v4381_v10  ;;  %vm4380_vm0 = vcmp.eq.f32.partialorder %v4379_v45, 8.507059e+37  ;;  %v8357_v45 = vld [vmem:[#allocation117_spill] sm:$0xff] }
0x1315   :  { %v5990_v59 = vpop.eup %5989 }
0x1316   :  { %v4354_v43 = vadd.f32 1.0, %v5990_v59 }
0x1317   :  { %v5992_v5 = vpop.eup %5991 }
0x1318   :  { %v5994_v7 = vpop.eup %5993  ;;  %v4356_v18 = vmul.f32 %v5992_v5, %v4352_v12  ;;  %5995 = vrcp.f32 %v4354_v43  ;;  %vm4361_vm9 = vweird.f32 %v5992_v5  ;;  %vm4390_vm2 = vweird.f32 %v4354_v43 }
0x1319   :  { %v4371_v27 = vmul.f32 %v5994_v7, %v4353_v13  ;;  %5997 = vtanh.f32 %v4342_v57  ;;  %vm4376_vm10 = vweird.f32 %v5994_v7  ;;  %vm4362_vm13 = vmor %vm4360_vm11, %vm4361_vm9 }
0x131a   :  { %v4357_v34 = vsub.f32 1.0, %v4356_v18  ;;  %vm4377_vm14 = vmor %vm4375_vm12, %vm4376_vm10 }
0x131b   :  { %v4372_v62 = vsub.f32 1.0, %v4371_v27 }
0x131c   :  { %v4358_v19 = vmul.f32 %v5992_v5, %v4357_v34 }
0x131d   :  { %v4373_v40 = vmul.f32 %v5994_v7, %v4372_v62  ;;  %v4396_v62 = vand.u32 2147483648, %v4354_v43 }
0x131e   :  { %v5996_v44 = vpop.eup %5995  ;;  %v4359_v52 = vadd.f32 %v5992_v5, %v4358_v19 }
0x131f   :  { %v4386_v53 = vmul.f32 %v5996_v44, %v4354_v43  ;;  %v4374_v3 = vadd.f32 %v5994_v7, %v4373_v40  ;;  %v5998_v23 = vpop.eup %5997  ;;  %vm4391_vm1 = vweird.f32 %v5996_v44  ;;  %v4397_v10 = vor.u32 1.1754944e-38, %v4396_v62 }
0x1320   :  { %v4363_v29 = vsel %vm4362_vm13, %v5992_v5, %v4359_v52  ;;  %v4394_v5 = vand.u32 2147483647, %v4354_v43  ;;  %vm4392_vm3 = vmor %vm4390_vm2, %vm4391_vm1 }
0x1321   :  { %v4387_v59 = vsub.f32 1.0, %v4386_v53  ;;  %v4368_v14 = vsel %vm4365_vm15, %v4367_v63, %v4363_v29  ;;  %v4378_v25 = vsel %vm4377_vm14, %v5994_v7, %v4374_v3 }
0x1322   :  { %v4383_v57 = vsel %vm4380_vm0, %v4382_v55, %v4378_v25  ;;  %v4402_v18 = vmul.f32 %v5998_v23, %v4368_v14  ;;  %vm4395_vm4 = vcmp.eq.f32.partialorder %v4394_v5, 8.507059e+37  ;;  %v8358_v23 = vld [vmem:[#allocation118_spill] sm:$0xff] }
0x1323   :  { %v4388_v27 = vmul.f32 %v5996_v44, %v4387_v59  ;;  %v4401_v34 = vmul.f32 %v4383_v57, %v7916_v35  ;;  %v8356_v35 = vld [vmem:[#allocation116_spill] sm:$0xff]  ;;  %v503_v59 = vadd.f32 %v8358_v23, %v6805_v38 }
0x1324   :  { %v325_v43 = vadd.f32 %v8356_v35, %v6793_v37 }
0x1325   :  { %v7960_v12 = vadd.f32 %v4402_v18, %v4401_v34  ;;  %v4389_v13 = vadd.f32 %v5996_v44, %v4388_v27 }
0x1327   :  { %5999 = vtanh.f32 %v7960_v12  ;;  %v4393_v58 = vsel %vm4392_vm3, %v5996_v44, %v4389_v13  ;;  %v414_v44 = vadd.f32 %v8357_v45, %v6795_v41 }
0x1328   :  { %v4398_v19 = vsel %vm4395_vm4, %v4397_v10, %v4393_v58 }
0x132d   :  { %v6000_v7 = vpop.eup %5999 }
0x132e   :  { %v4405_v31 = vmul.f32 %v6000_v7, %v4398_v19 }
0x1330   :  { %4407 = vst [vmem:[#allocation8 + $0xd0] sm:$0xff] %v4405_v31  ;;  %v4415_v40 = vpack.c.bf16 %v4405_v31, %v4405_v31  ;;  %v8359_v31 = vld [vmem:[#allocation119_spill] sm:$0xff] }
0x1332   :  { %4424 = vmatmul.bf16.vlgmr.msra.gmra.mxu0 %v4415_v40  ;;  %4437 = vmatmul.bf16.vlgmr.msra.gmra.mxu1 %v4415_v40 }
0x1333   :  { %4450 = vmatmul.bf16.vlgmr.msra.gmra.mxu2 %v4415_v40  ;;  %4463 = vmatmul.bf16.vlgmr.msra.gmra.mxu3 %v4415_v40  ;;  %v592_v40 = vadd.f32 %v8359_v31, %v6809_v54 }
0x1334   :  { %4674 = vmatpush.bf16.msra.mxu0 %v6266_v16  ;;  %4687 = vmatpush.bf16.msra.mxu1 %v6268_v20 }
0x1335   :  { %4700 = vmatpush.bf16.msra.mxu2 %v6270_v21  ;;  %4713 = vmatpush.bf16.msra.mxu3 %v6273_v24 }
0x1338   :  { %4675 = vmatpush.bf16.msra.mxu0 %v6281_v28  ;;  %4688 = vmatpush.bf16.msra.mxu1 %v6284_v32 }
0x1339   :  { %4701 = vmatpush.bf16.msra.mxu2 %v6286_v33  ;;  %4714 = vmatpush.bf16.msra.mxu3 %v6288_v36 }
0x133c   :  { %4676 = vmatpush.bf16.msra.mxu0 %v6308_v42  ;;  %4689 = vmatpush.bf16.msra.mxu1 %v6310_v46 }
0x133d   :  { %4702 = vmatpush.bf16.msra.mxu2 %v6312_v47  ;;  %4715 = vmatpush.bf16.msra.mxu3 %v6315_v50 }
0x1340   :  { %4677 = vmatpush.bf16.msra.mxu0 %v6334_v56  ;;  %4690 = vmatpush.bf16.msra.mxu1 %v6336_v60 }
0x1341   :  { %4703 = vmatpush.bf16.msra.mxu2 %v6338_v61  ;;  %4716 = vmatpush.bf16.msra.mxu3 %v6341_v0 }
0x1344   :  { %4678 = vmatpush.bf16.msra.mxu0 %v6360_v6  ;;  %4691 = vmatpush.bf16.msra.mxu1 %v6362_v8 }
0x1345   :  { %4704 = vmatpush.bf16.msra.mxu2 %v6366_v11  ;;  %4717 = vmatpush.bf16.msra.mxu3 %v6373_v15 }
0x1348   :  { %4679 = vmatpush.bf16.msra.mxu0 %v6390_v26  ;;  %4692 = vmatpush.bf16.msra.mxu1 %v6394_v30 }
0x1349   :  { %4705 = vmatpush.bf16.msra.mxu2 %v6404_v39  ;;  %4718 = vmatpush.bf16.msra.mxu3 %v6419_v51 }
0x134c   :  { %4680 = vmatpush.bf16.msra.mxu0 %v6448_v4  ;;  %4693 = vmatpush.bf16.msra.mxu1 %v6452_v9 }
0x134d   :  { %4706 = vmatpush.bf16.msra.mxu2 %v6462_v22  ;;  %4719 = vmatpush.bf16.msra.mxu3 %v6477_v49 }
0x1350   :  { %4681 = vmatpush.bf16.msra.mxu0 %v6506_v2  ;;  %4694 = vmatpush.bf16.msra.mxu1 %v6510_v17 }
0x1351   :  { %4707 = vmatpush.bf16.msra.mxu2 %v6522_v48  ;;  %4720 = vmatpush.bf16.msra.mxu3 %v6543_v1 }
0x13af   :  { %v4425_v52 = vpop.f32.mrf.mxu0  ;;  %v4438_v53 = vpop.f32.mrf.mxu1 }
0x13b0   :  { %v4468_v63 = vadd.f32 %v4425_v52, %v325_v43  ;;  %v4469_v3 = vadd.f32 %v4438_v53, %v414_v44 }
0x13b2   :  { %v5494_v55 = vmul.f32 -1.442695, %v4468_v63  ;;  %v5495_v29 = vmul.f32 -1.442695, %v4469_v3 }
0x13b4   :  { %6001 = vpow2.f32 %v5494_v55 }
0x13b5   :  { %6003 = vpow2.f32 %v5495_v29 }
0x13b6   :  { %v4451_v14 = vpop.f32.mrf.mxu2  ;;  %v4464_v25 = vpop.f32.mrf.mxu3 }
0x13b7   :  { %v4470_v57 = vadd.f32 %v4451_v14, %v503_v59  ;;  %v4427_v18 = vpop.f32.mrf.mxu0  ;;  %v4440_v27 = vpop.f32.mrf.mxu1  ;;  %v4471_v45 = vadd.f32 %v4464_v25, %v592_v40 }
0x13b9   :  { %v5496_v34 = vmul.f32 -1.442695, %v4470_v57 }
0x13ba   :  { %v6002_v13 = vpop.eup %6001 }
0x13bb   :  { %v6004_v62 = vpop.eup %6003  ;;  %v4481_v5 = vadd.f32 1.0, %v6002_v13  ;;  %6005 = vpow2.f32 %v5496_v34 }
0x13bc   :  { %v4482_v58 = vadd.f32 1.0, %v6004_v62 }
0x13bd   :  { %6007 = vrcp.f32 %v4481_v5  ;;  %v4495_v55 = vand.u32 2147483648, %v4481_v5  ;;  %v4493_v59 = vand.u32 2147483647, %v4481_v5  ;;  %vm4489_vm7 = vweird.f32 %v4481_v5 }
0x13be   :  { %6009 = vrcp.f32 %v4482_v58  ;;  %v4453_v10 = vpop.f32.mrf.mxu2  ;;  %v4466_v7 = vpop.f32.mrf.mxu3  ;;  %v4510_v29 = vand.u32 2147483648, %v4482_v58  ;;  %v4508_v57 = vand.u32 2147483647, %v4482_v58  ;;  %vm4504_vm8 = vweird.f32 %v4482_v58 }
0x13bf   :  { %v4496_v34 = vor.u32 1.1754944e-38, %v4495_v55  ;;  %vm4494_vm11 = vcmp.eq.f32.partialorder %v4493_v59, 8.507059e+37 }
0x13c0   :  { %v4511_v62 = vor.u32 1.1754944e-38, %v4510_v29  ;;  %vm4509_vm12 = vcmp.eq.f32.partialorder %v4508_v57, 8.507059e+37  ;;  %v8361_v57 = vld [vmem:[#allocation121_spill] sm:$0xff] }
0x13c1   :  { %v6006_v19 = vpop.eup %6005 }
0x13c2   :  { %v4483_v35 = vadd.f32 1.0, %v6006_v19 }
0x13c3   :  { %v6008_v43 = vpop.eup %6007 }
0x13c4   :  { %v6010_v44 = vpop.eup %6009  ;;  %v4485_v52 = vmul.f32 %v6008_v43, %v4481_v5  ;;  %6011 = vrcp.f32 %v4483_v35  ;;  %vm4490_vm5 = vweird.f32 %v6008_v43  ;;  %vm4519_vm14 = vweird.f32 %v4483_v35 }
0x13c5   :  { %v4500_v53 = vmul.f32 %v6010_v44, %v4482_v58  ;;  %6013 = vtanh.f32 %v4471_v45  ;;  %vm4505_vm6 = vweird.f32 %v6010_v44  ;;  %vm4491_vm9 = vmor %vm4489_vm7, %vm4490_vm5 }
0x13c6   :  { %v4486_v63 = vsub.f32 1.0, %v4485_v52  ;;  %vm4506_vm10 = vmor %vm4504_vm8, %vm4505_vm6 }
0x13c7   :  { %v4501_v3 = vsub.f32 1.0, %v4500_v53 }
0x13c8   :  { %v4487_v23 = vmul.f32 %v6008_v43, %v4486_v63 }
0x13c9   :  { %v4502_v14 = vmul.f32 %v6010_v44, %v4501_v3  ;;  %v4525_v3 = vand.u32 2147483648, %v4483_v35 }
0x13ca   :  { %v6012_v18 = vpop.eup %6011  ;;  %v4488_v27 = vadd.f32 %v6008_v43, %v4487_v23 }
0x13cb   :  { %v4515_v25 = vmul.f32 %v6012_v18, %v4483_v35  ;;  %v4503_v13 = vadd.f32 %v6010_v44, %v4502_v14  ;;  %v6014_v7 = vpop.eup %6013  ;;  %vm4520_vm13 = vweird.f32 %v6012_v18  ;;  %v4526_v29 = vor.u32 1.1754944e-38, %v4525_v3 }
0x13cc   :  { %v4492_v10 = vsel %vm4491_vm9, %v6008_v43, %v4488_v27  ;;  %v4523_v43 = vand.u32 2147483647, %v4483_v35  ;;  %vm4521_vm15 = vmor %vm4519_vm14, %vm4520_vm13 }
0x13cd   :  { %v4516_v19 = vsub.f32 1.0, %v4515_v25  ;;  %v4497_v31 = vsel %vm4494_vm11, %v4496_v34, %v4492_v10  ;;  %v4507_v40 = vsel %vm4506_vm10, %v6010_v44, %v4503_v13 }
0x13ce   :  { %v4512_v45 = vsel %vm4509_vm12, %v4511_v62, %v4507_v40  ;;  %v4531_v52 = vmul.f32 %v6014_v7, %v4497_v31  ;;  %vm4524_vm0 = vcmp.eq.f32.partialorder %v4523_v43, 8.507059e+37  ;;  %v8362_v7 = vld [vmem:[#allocation122_spill] sm:$0xff] }
0x13cf   :  { %v4517_v53 = vmul.f32 %v6012_v18, %v4516_v19  ;;  %v4530_v63 = vmul.f32 %v4512_v45, %v7960_v12  ;;  %v8360_v12 = vld [vmem:[#allocation120_spill] sm:$0xff]  ;;  %v506_v19 = vadd.f32 %v8362_v7, %v6805_v38 }
0x13d0   :  { %v328_v35 = vadd.f32 %v8360_v12, %v6793_v37 }
0x13d1   :  { %v8004_v5 = vadd.f32 %v4531_v52, %v4530_v63  ;;  %v4518_v58 = vadd.f32 %v6012_v18, %v4517_v53 }
0x13d3   :  { %6015 = vtanh.f32 %v8004_v5  ;;  %v4522_v55 = vsel %vm4521_vm15, %v6012_v18, %v4518_v58  ;;  %v417_v18 = vadd.f32 %v8361_v57, %v6795_v41 }
0x13d4   :  { %v4527_v23 = vsel %vm4524_vm0, %v4526_v29, %v4522_v55 }
0x13d9   :  { %v6016_v44 = vpop.eup %6015 }
0x13da   :  { %v4534_v59 = vmul.f32 %v6016_v44, %v4527_v23 }
0x13dc   :  { %4536 = vst [vmem:[#allocation8 + $0xd8] sm:$0xff] %v4534_v59  ;;  %v4544_v14 = vpack.c.bf16 %v4534_v59, %v4534_v59  ;;  %v8363_v59 = vld [vmem:[#allocation123_spill] sm:$0xff] }
0x13de   :  { %4553 = vmatmul.bf16.vlgmr.msrb.gmra.mxu0 %v4544_v14  ;;  %4566 = vmatmul.bf16.vlgmr.msrb.gmra.mxu1 %v4544_v14 }
0x13df   :  { %4579 = vmatmul.bf16.vlgmr.msrb.gmra.mxu2 %v4544_v14  ;;  %4592 = vmatmul.bf16.vlgmr.msrb.gmra.mxu3 %v4544_v14  ;;  %v595_v14 = vadd.f32 %v8363_v59, %v6809_v54 }
0x13e0   :  { %4803 = vmatpush.bf16.msrb.mxu0 %v6266_v16  ;;  %4816 = vmatpush.bf16.msrb.mxu1 %v6268_v20 }
0x13e1   :  { %4829 = vmatpush.bf16.msrb.mxu2 %v6270_v21  ;;  %4842 = vmatpush.bf16.msrb.mxu3 %v6273_v24 }
0x13e4   :  { %4804 = vmatpush.bf16.msrb.mxu0 %v6281_v28  ;;  %4817 = vmatpush.bf16.msrb.mxu1 %v6284_v32 }
0x13e5   :  { %4830 = vmatpush.bf16.msrb.mxu2 %v6286_v33  ;;  %4843 = vmatpush.bf16.msrb.mxu3 %v6288_v36 }
0x13e8   :  { %4805 = vmatpush.bf16.msrb.mxu0 %v6308_v42  ;;  %4818 = vmatpush.bf16.msrb.mxu1 %v6310_v46 }
0x13e9   :  { %4831 = vmatpush.bf16.msrb.mxu2 %v6312_v47  ;;  %4844 = vmatpush.bf16.msrb.mxu3 %v6315_v50 }
0x13ec   :  { %4806 = vmatpush.bf16.msrb.mxu0 %v6334_v56  ;;  %4819 = vmatpush.bf16.msrb.mxu1 %v6336_v60 }
0x13ed   :  { %4832 = vmatpush.bf16.msrb.mxu2 %v6338_v61  ;;  %4845 = vmatpush.bf16.msrb.mxu3 %v6341_v0 }
0x13f0   :  { %4807 = vmatpush.bf16.msrb.mxu0 %v6360_v6  ;;  %4820 = vmatpush.bf16.msrb.mxu1 %v6362_v8 }
0x13f1   :  { %4833 = vmatpush.bf16.msrb.mxu2 %v6366_v11  ;;  %4846 = vmatpush.bf16.msrb.mxu3 %v6373_v15 }
0x13f4   :  { %4808 = vmatpush.bf16.msrb.mxu0 %v6390_v26  ;;  %4821 = vmatpush.bf16.msrb.mxu1 %v6394_v30 }
0x13f5   :  { %4834 = vmatpush.bf16.msrb.mxu2 %v6404_v39  ;;  %4847 = vmatpush.bf16.msrb.mxu3 %v6419_v51 }
0x13f8   :  { %4809 = vmatpush.bf16.msrb.mxu0 %v6448_v4  ;;  %4822 = vmatpush.bf16.msrb.mxu1 %v6452_v9 }
0x13f9   :  { %4835 = vmatpush.bf16.msrb.mxu2 %v6462_v22  ;;  %4848 = vmatpush.bf16.msrb.mxu3 %v6477_v49 }
0x13fc   :  { %4810 = vmatpush.bf16.msrb.mxu0 %v6506_v2  ;;  %4823 = vmatpush.bf16.msrb.mxu1 %v6510_v17 }
0x13fd   :  { %4836 = vmatpush.bf16.msrb.mxu2 %v6522_v48  ;;  %4849 = vmatpush.bf16.msrb.mxu3 %v6543_v1 }
0x145b   :  { %v4554_v27 = vpop.f32.mrf.mxu0  ;;  %v4567_v25 = vpop.f32.mrf.mxu1 }
0x145c   :  { %v4597_v34 = vadd.f32 %v4554_v27, %v328_v35  ;;  %v4598_v13 = vadd.f32 %v4567_v25, %v417_v18 }
0x145e   :  { %v5497_v62 = vmul.f32 -1.442695, %v4597_v34  ;;  %v5498_v10 = vmul.f32 -1.442695, %v4598_v13 }
0x1460   :  { %6017 = vpow2.f32 %v5497_v62 }
0x1461   :  { %6019 = vpow2.f32 %v5498_v10 }
0x1462   :  { %v4580_v31 = vpop.f32.mrf.mxu2  ;;  %v4593_v40 = vpop.f32.mrf.mxu3 }
0x1463   :  { %v4599_v45 = vadd.f32 %v4580_v31, %v506_v19  ;;  %v4556_v52 = vpop.f32.mrf.mxu0  ;;  %v4569_v53 = vpop.f32.mrf.mxu1  ;;  %v4600_v57 = vadd.f32 %v4593_v40, %v595_v14 }
0x1465   :  { %v5499_v63 = vmul.f32 -1.442695, %v4599_v45 }
0x1466   :  { %v6018_v58 = vpop.eup %6017 }
0x1467   :  { %v6020_v3 = vpop.eup %6019  ;;  %v4610_v43 = vadd.f32 1.0, %v6018_v58  ;;  %6021 = vpow2.f32 %v5499_v63 }
0x1468   :  { %v4611_v55 = vadd.f32 1.0, %v6020_v3 }
0x1469   :  { %6023 = vrcp.f32 %v4610_v43  ;;  %v4624_v62 = vand.u32 2147483648, %v4610_v43  ;;  %v4622_v19 = vand.u32 2147483647, %v4610_v43  ;;  %vm4618_vm3 = vweird.f32 %v4610_v43 }
0x146a   :  { %6025 = vrcp.f32 %v4611_v55  ;;  %v4582_v29 = vpop.f32.mrf.mxu2  ;;  %v4595_v44 = vpop.f32.mrf.mxu3  ;;  %v4639_v10 = vand.u32 2147483648, %v4611_v55  ;;  %v4637_v45 = vand.u32 2147483647, %v4611_v55  ;;  %vm4633_vm4 = vweird.f32 %v4611_v55 }
0x146b   :  { %v4625_v63 = vor.u32 1.1754944e-38, %v4624_v62  ;;  %vm4623_vm7 = vcmp.eq.f32.partialorder %v4622_v19, 8.507059e+37 }
0x146c   :  { %v4640_v3 = vor.u32 1.1754944e-38, %v4639_v10  ;;  %vm4638_vm8 = vcmp.eq.f32.partialorder %v4637_v45, 8.507059e+37 }
0x146d   :  { %v6022_v23 = vpop.eup %6021 }
0x146e   :  { %v4612_v12 = vadd.f32 1.0, %v6022_v23 }
0x146f   :  { %v6024_v35 = vpop.eup %6023 }
0x1470   :  { %v6026_v18 = vpop.eup %6025  ;;  %v4614_v27 = vmul.f32 %v6024_v35, %v4610_v43  ;;  %6027 = vrcp.f32 %v4612_v12  ;;  %vm4619_vm1 = vweird.f32 %v6024_v35  ;;  %vm4648_vm10 = vweird.f32 %v4612_v12 }
0x1471   :  { %v4629_v25 = vmul.f32 %v6026_v18, %v4611_v55  ;;  %6029 = vtanh.f32 %v4600_v57  ;;  %vm4634_vm2 = vweird.f32 %v6026_v18  ;;  %vm4620_vm5 = vmor %vm4618_vm3, %vm4619_vm1 }
0x1472   :  { %v4615_v34 = vsub.f32 1.0, %v4614_v27  ;;  %vm4635_vm6 = vmor %vm4633_vm4, %vm4634_vm2 }
0x1473   :  { %v4630_v13 = vsub.f32 1.0, %v4629_v25 }
0x1474   :  { %v4616_v7 = vmul.f32 %v6024_v35, %v4615_v34 }
0x1475   :  { %v4631_v31 = vmul.f32 %v6026_v18, %v4630_v13  ;;  %v4654_v13 = vand.u32 2147483648, %v4612_v12 }
0x1476   :  { %v6028_v52 = vpop.eup %6027  ;;  %v4617_v53 = vadd.f32 %v6024_v35, %v4616_v7 }
0x1477   :  { %v4644_v40 = vmul.f32 %v6028_v52, %v4612_v12  ;;  %v4632_v58 = vadd.f32 %v6026_v18, %v4631_v31  ;;  %v6030_v44 = vpop.eup %6029  ;;  %vm4649_vm9 = vweird.f32 %v6028_v52  ;;  %v4655_v10 = vor.u32 1.1754944e-38, %v4654_v13 }
0x1478   :  { %v4621_v29 = vsel %vm4620_vm5, %v6024_v35, %v4617_v53  ;;  %v4652_v35 = vand.u32 2147483647, %v4612_v12  ;;  %vm4650_vm11 = vmor %vm4648_vm10, %vm4649_vm9 }
0x1479   :  { %v4645_v23 = vsub.f32 1.0, %v4644_v40  ;;  %v4626_v59 = vsel %vm4623_vm7, %v4625_v63, %v4621_v29  ;;  %v4636_v14 = vsel %vm4635_vm6, %v6026_v18, %v4632_v58 }
0x147a   :  { %v4641_v57 = vsel %vm4638_vm8, %v4640_v3, %v4636_v14  ;;  %v4660_v27 = vmul.f32 %v6030_v44, %v4626_v59  ;;  %vm4653_vm12 = vcmp.eq.f32.partialorder %v4652_v35, 8.507059e+37 }
0x147b   :  { %v4646_v25 = vmul.f32 %v6028_v52, %v4645_v23  ;;  %v4659_v34 = vmul.f32 %v4641_v57, %v8004_v5 }
0x147d   :  { %v8048_v43 = vadd.f32 %v4660_v27, %v4659_v34  ;;  %v4647_v55 = vadd.f32 %v6028_v52, %v4646_v25 }
0x147f   :  { %6031 = vtanh.f32 %v8048_v43  ;;  %v4651_v62 = vsel %vm4650_vm11, %v6028_v52, %v4647_v55 }
0x1480   :  { %v4656_v7 = vsel %vm4653_vm12, %v4655_v10, %v4651_v62 }
0x1485   :  { %v6032_v18 = vpop.eup %6031 }
0x1486   :  { %v4663_v19 = vmul.f32 %v6032_v18, %v4656_v7 }
0x1488   :  { %4665 = vst [vmem:[#allocation8 + $0xe0] sm:$0xff] %v4663_v19  ;;  %v4673_v31 = vpack.c.bf16 %v4663_v19, %v4663_v19 }
0x148a   :  { %4682 = vmatmul.bf16.vlgmr.msra.gmra.mxu0 %v4673_v31  ;;  %4695 = vmatmul.bf16.vlgmr.msra.gmra.mxu1 %v4673_v31 }
0x148b   :  { %4708 = vmatmul.bf16.vlgmr.msra.gmra.mxu2 %v4673_v31  ;;  %4721 = vmatmul.bf16.vlgmr.msra.gmra.mxu3 %v4673_v31 }
0x148c   :  { %4932 = vmatpush.bf16.msra.mxu0 %v6266_v16  ;;  %4945 = vmatpush.bf16.msra.mxu1 %v6268_v20  ;;  %v8364_v16 = vld [vmem:[#allocation124_spill] sm:$0xff] }
0x148d   :  { %4958 = vmatpush.bf16.msra.mxu2 %v6270_v21  ;;  %4971 = vmatpush.bf16.msra.mxu3 %v6273_v24  ;;  %v330_v20 = vadd.f32 %v8364_v16, %v6793_v37  ;;  %v8365_v21 = vld [vmem:[#allocation125_spill] sm:$0xff] }
0x148e   :  { %v419_v24 = vadd.f32 %v8365_v21, %v6795_v41 }
0x1490   :  { %4933 = vmatpush.bf16.msra.mxu0 %v6281_v28  ;;  %4946 = vmatpush.bf16.msra.mxu1 %v6284_v32 }
0x1491   :  { %4959 = vmatpush.bf16.msra.mxu2 %v6286_v33  ;;  %4972 = vmatpush.bf16.msra.mxu3 %v6288_v36 }
0x1494   :  { %4934 = vmatpush.bf16.msra.mxu0 %v6308_v42  ;;  %4947 = vmatpush.bf16.msra.mxu1 %v6310_v46 }
0x1495   :  { %4960 = vmatpush.bf16.msra.mxu2 %v6312_v47  ;;  %4973 = vmatpush.bf16.msra.mxu3 %v6315_v50  ;;  %v8366_v47 = vld [vmem:[#allocation126_spill] sm:$0xff] }
0x1496   :  { %v508_v50 = vadd.f32 %v8366_v47, %v6805_v38 }
0x1498   :  { %4935 = vmatpush.bf16.msra.mxu0 %v6334_v56  ;;  %4948 = vmatpush.bf16.msra.mxu1 %v6336_v60 }
0x1499   :  { %4961 = vmatpush.bf16.msra.mxu2 %v6338_v61  ;;  %4974 = vmatpush.bf16.msra.mxu3 %v6341_v0 }
0x149c   :  { %4936 = vmatpush.bf16.msra.mxu0 %v6360_v6  ;;  %4949 = vmatpush.bf16.msra.mxu1 %v6362_v8 }
0x149d   :  { %4962 = vmatpush.bf16.msra.mxu2 %v6366_v11  ;;  %4975 = vmatpush.bf16.msra.mxu3 %v6373_v15 }
0x14a0   :  { %4937 = vmatpush.bf16.msra.mxu0 %v6390_v26  ;;  %4950 = vmatpush.bf16.msra.mxu1 %v6394_v30 }
0x14a1   :  { %4963 = vmatpush.bf16.msra.mxu2 %v6404_v39  ;;  %4976 = vmatpush.bf16.msra.mxu3 %v6419_v51 }
0x14a4   :  { %4938 = vmatpush.bf16.msra.mxu0 %v6448_v4  ;;  %4951 = vmatpush.bf16.msra.mxu1 %v6452_v9  ;;  %v8367_v9 = vld [vmem:[#allocation127_spill] sm:$0xff] }
0x14a5   :  { %4964 = vmatpush.bf16.msra.mxu2 %v6462_v22  ;;  %4977 = vmatpush.bf16.msra.mxu3 %v6477_v49  ;;  %v597_v22 = vadd.f32 %v8367_v9, %v6809_v54 }
0x14a8   :  { %4939 = vmatpush.bf16.msra.mxu0 %v6506_v2  ;;  %4952 = vmatpush.bf16.msra.mxu1 %v6510_v17 }
0x14a9   :  { %4965 = vmatpush.bf16.msra.mxu2 %v6522_v48  ;;  %4978 = vmatpush.bf16.msra.mxu3 %v6543_v1 }
0x1507   :  { %v4683_v28 = vpop.f32.mrf.mxu0  ;;  %v4696_v32 = vpop.f32.mrf.mxu1 }
0x1508   :  { %v4726_v33 = vadd.f32 %v4683_v28, %v330_v20  ;;  %v4727_v36 = vadd.f32 %v4696_v32, %v419_v24 }
0x150a   :  { %v5500_v42 = vmul.f32 -1.442695, %v4726_v33  ;;  %v5501_v46 = vmul.f32 -1.442695, %v4727_v36 }
0x150c   :  { %6033 = vpow2.f32 %v5500_v42  ;;  %v8369_v42 = vld [vmem:[#allocation129_spill] sm:$0xff] }
0x150d   :  { %6035 = vpow2.f32 %v5501_v46  ;;  %v422_v46 = vadd.f32 %v8369_v42, %v6795_v41 }
0x150e   :  { %v4709_v56 = vpop.f32.mrf.mxu2  ;;  %v4722_v60 = vpop.f32.mrf.mxu3 }
0x150f   :  { %v4728_v61 = vadd.f32 %v4709_v56, %v508_v50  ;;  %v4685_v0 = vpop.f32.mrf.mxu0  ;;  %v4698_v6 = vpop.f32.mrf.mxu1  ;;  %v4729_v17 = vadd.f32 %v4722_v60, %v597_v22 }
0x1510   :  { %v8370_v6 = vld [vmem:[#allocation130_spill] sm:$0xff] }
0x1511   :  { %v5502_v8 = vmul.f32 -1.442695, %v4728_v61 }
0x1512   :  { %v6034_v11 = vpop.eup %6033 }
0x1513   :  { %v6036_v15 = vpop.eup %6035  ;;  %v4739_v26 = vadd.f32 1.0, %v6034_v11  ;;  %6037 = vpow2.f32 %v5502_v8  ;;  %v511_v8 = vadd.f32 %v8370_v6, %v6805_v38 }
0x1514   :  { %v4740_v30 = vadd.f32 1.0, %v6036_v15 }
0x1515   :  { %6039 = vrcp.f32 %v4739_v26  ;;  %v4753_v52 = vand.u32 2147483648, %v4739_v26  ;;  %v4751_v63 = vand.u32 2147483647, %v4739_v26  ;;  %vm4747_vm15 = vweird.f32 %v4739_v26 }
0x1516   :  { %6041 = vrcp.f32 %v4740_v30  ;;  %v4711_v39 = vpop.f32.mrf.mxu2  ;;  %v4724_v51 = vpop.f32.mrf.mxu3  ;;  %v4768_v53 = vand.u32 2147483648, %v4740_v30  ;;  %v4766_v3 = vand.u32 2147483647, %v4740_v30  ;;  %vm4762_vm0 = vweird.f32 %v4740_v30 }
0x1517   :  { %v4754_v59 = vor.u32 1.1754944e-38, %v4753_v52  ;;  %vm4752_vm3 = vcmp.eq.f32.partialorder %v4751_v63, 8.507059e+37 }
0x1518   :  { %v4769_v57 = vor.u32 1.1754944e-38, %v4768_v53  ;;  %vm4767_vm4 = vcmp.eq.f32.partialorder %v4766_v3, 8.507059e+37 }
0x1519   :  { %v6038_v4 = vpop.eup %6037 }
0x151a   :  { %v4741_v49 = vadd.f32 1.0, %v6038_v4 }
0x151b   :  { %v6040_v2 = vpop.eup %6039 }
0x151c   :  { %v6042_v48 = vpop.eup %6041  ;;  %v4743_v1 = vmul.f32 %v6040_v2, %v4739_v26  ;;  %6043 = vrcp.f32 %v4741_v49  ;;  %vm4748_vm13 = vweird.f32 %v6040_v2  ;;  %v4783_v31 = vand.u32 2147483648, %v4741_v49 }
0x151d   :  { %v4758_v5 = vmul.f32 %v6042_v48, %v4740_v30  ;;  %6045 = vtanh.f32 %v4729_v17  ;;  %vm4763_vm14 = vweird.f32 %v6042_v48  ;;  %vm4749_vm1 = vmor %vm4747_vm15, %vm4748_vm13  ;;  %vm4777_vm6 = vweird.f32 %v4741_v49 }
0x151e   :  { %v4744_v12 = vsub.f32 1.0, %v4743_v1  ;;  %vm4764_vm2 = vmor %vm4762_vm0, %vm4763_vm14  ;;  %v4781_v16 = vand.u32 2147483647, %v4741_v49  ;;  %v4784_v21 = vor.u32 1.1754944e-38, %v4783_v31  ;;  %v8371_v1 = vld [vmem:[#allocation131_spill] sm:$0xff] }
0x151f   :  { %v4759_v45 = vsub.f32 1.0, %v4758_v5  ;;  %v600_v5 = vadd.f32 %v8371_v1, %v6809_v54 }
0x1520   :  { %v4745_v40 = vmul.f32 %v6040_v2, %v4744_v12  ;;  %vm4782_vm8 = vcmp.eq.f32.partialorder %v4781_v16, 8.507059e+37 }
0x1521   :  { %v4760_v58 = vmul.f32 %v6042_v48, %v4759_v45 }
0x1522   :  { %v6044_v29 = vpop.eup %6043  ;;  %v4746_v44 = vadd.f32 %v6040_v2, %v4745_v40 }
0x1523   :  { %v4773_v23 = vmul.f32 %v6044_v29, %v4741_v49  ;;  %v4761_v14 = vadd.f32 %v6042_v48, %v4760_v58  ;;  %v6046_v25 = vpop.eup %6045  ;;  %vm4778_vm5 = vweird.f32 %v6044_v29 }
0x1524   :  { %v4750_v27 = vsel %vm4749_vm1, %v6040_v2, %v4746_v44  ;;  %vm4779_vm7 = vmor %vm4777_vm6, %vm4778_vm5 }
0x1525   :  { %v4774_v34 = vsub.f32 1.0, %v4773_v23  ;;  %v4755_v55 = vsel %vm4752_vm3, %v4754_v59, %v4750_v27  ;;  %v4765_v13 = vsel %vm4764_vm2, %v6042_v48, %v4761_v14 }
0x1526   :  { %v4770_v35 = vsel %vm4767_vm4, %v4769_v57, %v4765_v13  ;;  %v4789_v62 = vmul.f32 %v6046_v25, %v4755_v55 }
0x1527   :  { %v4775_v10 = vmul.f32 %v6044_v29, %v4774_v34  ;;  %v4788_v18 = vmul.f32 %v4770_v35, %v8048_v43  ;;  %v8368_v43 = vld [vmem:[#allocation128_spill] sm:$0xff] }
0x1528   :  { %v333_v36 = vadd.f32 %v8368_v43, %v6793_v37 }
0x1529   :  { %v8092_v7 = vadd.f32 %v4789_v62, %v4788_v18  ;;  %v4776_v19 = vadd.f32 %v6044_v29, %v4775_v10 }
0x152b   :  { %6047 = vtanh.f32 %v8092_v7  ;;  %v4780_v20 = vsel %vm4779_vm7, %v6044_v29, %v4776_v19 }
0x152c   :  { %v4785_v28 = vsel %vm4782_vm8, %v4784_v21, %v4780_v20 }
0x1531   :  { %v6048_v24 = vpop.eup %6047 }
0x1532   :  { %v4792_v32 = vmul.f32 %v6048_v24, %v4785_v28 }
0x1534   :  { %4794 = vst [vmem:[#allocation8 + $0xe8] sm:$0xff] %v4792_v32  ;;  %v4802_v33 = vpack.c.bf16 %v4792_v32, %v4792_v32 }
0x1536   :  { %4811 = vmatmul.bf16.vlgmr.msrb.gmra.mxu0 %v4802_v33  ;;  %4824 = vmatmul.bf16.vlgmr.msrb.gmra.mxu1 %v4802_v33 }
0x1537   :  { %4837 = vmatmul.bf16.vlgmr.msrb.gmra.mxu2 %v4802_v33  ;;  %4850 = vmatmul.bf16.vlgmr.msrb.gmra.mxu3 %v4802_v33 }
0x15b3   :  { %v4812_v47 = vpop.f32.mrf.mxu0  ;;  %v4825_v50 = vpop.f32.mrf.mxu1 }
0x15b4   :  { %v4855_v56 = vadd.f32 %v4812_v47, %v333_v36  ;;  %v4856_v60 = vadd.f32 %v4825_v50, %v422_v46 }
0x15b6   :  { %v5503_v61 = vmul.f32 -1.442695, %v4855_v56  ;;  %v5504_v0 = vmul.f32 -1.442695, %v4856_v60 }
0x15b8   :  { %6049 = vpow2.f32 %v5503_v61  ;;  %v8373_v61 = vld [vmem:[#allocation133_spill] sm:$0xff] }
0x15b9   :  { %6051 = vpow2.f32 %v5504_v0  ;;  %v424_v0 = vadd.f32 %v8373_v61, %v6795_v41 }
0x15ba   :  { %v4838_v11 = vpop.f32.mrf.mxu2  ;;  %v4851_v15 = vpop.f32.mrf.mxu3 }
0x15bb   :  { %v4857_v26 = vadd.f32 %v4838_v11, %v511_v8  ;;  %v4814_v30 = vpop.f32.mrf.mxu0  ;;  %v4827_v39 = vpop.f32.mrf.mxu1  ;;  %v4858_v52 = vadd.f32 %v4851_v15, %v600_v5 }
0x15bc   :  { %v8374_v39 = vld [vmem:[#allocation134_spill] sm:$0xff] }
0x15bd   :  { %v5505_v51 = vmul.f32 -1.442695, %v4857_v26 }
0x15be   :  { %v6050_v4 = vpop.eup %6049 }
0x15bf   :  { %v6052_v9 = vpop.eup %6051  ;;  %v4868_v22 = vadd.f32 1.0, %v6050_v4  ;;  %6053 = vpow2.f32 %v5505_v51  ;;  %v513_v51 = vadd.f32 %v8374_v39, %v6805_v38 }
0x15c0   :  { %v4869_v49 = vadd.f32 1.0, %v6052_v9 }
0x15c1   :  { %6055 = vrcp.f32 %v4868_v22  ;;  %v4882_v29 = vand.u32 2147483648, %v4868_v22  ;;  %v4880_v59 = vand.u32 2147483647, %v4868_v22  ;;  %vm4876_vm11 = vweird.f32 %v4868_v22 }
0x15c2   :  { %6057 = vrcp.f32 %v4869_v49  ;;  %v4840_v2 = vpop.f32.mrf.mxu2  ;;  %v4853_v17 = vpop.f32.mrf.mxu3  ;;  %v4897_v44 = vand.u32 2147483648, %v4869_v49  ;;  %v4895_v57 = vand.u32 2147483647, %v4869_v49  ;;  %vm4891_vm12 = vweird.f32 %v4869_v49 }
0x15c3   :  { %v4883_v55 = vor.u32 1.1754944e-38, %v4882_v29  ;;  %vm4881_vm15 = vcmp.eq.f32.partialorder %v4880_v59, 8.507059e+37 }
0x15c4   :  { %v4898_v35 = vor.u32 1.1754944e-38, %v4897_v44  ;;  %vm4896_vm0 = vcmp.eq.f32.partialorder %v4895_v57, 8.507059e+37 }
0x15c5   :  { %v6054_v48 = vpop.eup %6053 }
0x15c6   :  { %v4870_v12 = vadd.f32 1.0, %v6054_v48 }
0x15c7   :  { %v6056_v45 = vpop.eup %6055 }
0x15c8   :  { %v6058_v53 = vpop.eup %6057  ;;  %v4872_v40 = vmul.f32 %v6056_v45, %v4868_v22  ;;  %6059 = vrcp.f32 %v4870_v12  ;;  %vm4877_vm9 = vweird.f32 %v6056_v45  ;;  %v4912_v33 = vand.u32 2147483648, %v4870_v12 }
0x15c9   :  { %v4887_v63 = vmul.f32 %v6058_v53, %v4869_v49  ;;  %6061 = vtanh.f32 %v4858_v52  ;;  %vm4892_vm10 = vweird.f32 %v6058_v53  ;;  %vm4878_vm13 = vmor %vm4876_vm11, %vm4877_vm9  ;;  %vm4906_vm2 = vweird.f32 %v4870_v12  ;;  %v8375_v52 = vld [vmem:[#allocation135_spill] sm:$0xff] }
0x15ca   :  { %v4873_v58 = vsub.f32 1.0, %v4872_v40  ;;  %vm4893_vm14 = vmor %vm4891_vm12, %vm4892_vm10  ;;  %v4910_v43 = vand.u32 2147483647, %v4870_v12  ;;  %v4913_v42 = vor.u32 1.1754944e-38, %v4912_v33  ;;  %v602_v38 = vadd.f32 %v8375_v52, %v6809_v54 }
0x15cb   :  { %v4888_v3 = vsub.f32 1.0, %v4887_v63 }
0x15cc   :  { %v4874_v23 = vmul.f32 %v6056_v45, %v4873_v58  ;;  %vm4911_vm4 = vcmp.eq.f32.partialorder %v4910_v43, 8.507059e+37 }
0x15cd   :  { %v4889_v14 = vmul.f32 %v6058_v53, %v4888_v3 }
0x15ce   :  { %v6060_v27 = vpop.eup %6059  ;;  %v4875_v25 = vadd.f32 %v6056_v45, %v4874_v23 }
0x15cf   :  { %v4902_v34 = vmul.f32 %v6060_v27, %v4870_v12  ;;  %v4890_v13 = vadd.f32 %v6058_v53, %v4889_v14  ;;  %v6062_v10 = vpop.eup %6061  ;;  %vm4907_vm1 = vweird.f32 %v6060_v27 }
0x15d0   :  { %v4879_v62 = vsel %vm4878_vm13, %v6056_v45, %v4875_v25  ;;  %vm4908_vm3 = vmor %vm4906_vm2, %vm4907_vm1 }
0x15d1   :  { %v4903_v18 = vsub.f32 1.0, %v4902_v34  ;;  %v4884_v19 = vsel %vm4881_vm15, %v4883_v55, %v4879_v62  ;;  %v4894_v31 = vsel %vm4893_vm14, %v6058_v53, %v4890_v13 }
0x15d2   :  { %v4899_v16 = vsel %vm4896_vm0, %v4898_v35, %v4894_v31  ;;  %v4918_v20 = vmul.f32 %v6062_v10, %v4884_v19 }
0x15d3   :  { %v4904_v21 = vmul.f32 %v6060_v27, %v4903_v18  ;;  %v4917_v24 = vmul.f32 %v4899_v16, %v8092_v7  ;;  %v8372_v7 = vld [vmem:[#allocation132_spill] sm:$0xff] }
0x15d4   :  { %v335_v60 = vadd.f32 %v8372_v7, %v6793_v37 }
0x15d5   :  { %v8104_v28 = vadd.f32 %v4918_v20, %v4917_v24  ;;  %v4905_v32 = vadd.f32 %v6060_v27, %v4904_v21 }
0x15d7   :  { %6063 = vtanh.f32 %v8104_v28  ;;  %v4909_v36 = vsel %vm4908_vm3, %v6060_v27, %v4905_v32 }
0x15d8   :  { %v4914_v47 = vsel %vm4911_vm4, %v4913_v42, %v4909_v36 }
0x15dd   :  { %v6064_v46 = vpop.eup %6063 }
0x15de   :  { %v4921_v50 = vmul.f32 %v6064_v46, %v4914_v47 }
0x15e0   :  { %4923 = vst [vmem:[#allocation8 + $0xf0] sm:$0xff] %v4921_v50  ;;  %v4931_v56 = vpack.c.bf16 %v4921_v50, %v4921_v50 }
0x15e2   :  { %4940 = vmatmul.bf16.vlgmr.msra.gmra.mxu0 %v4931_v56  ;;  %4953 = vmatmul.bf16.vlgmr.msra.gmra.mxu1 %v4931_v56 }
0x15e3   :  { %4966 = vmatmul.bf16.vlgmr.msra.gmra.mxu2 %v4931_v56  ;;  %4979 = vmatmul.bf16.vlgmr.msra.gmra.mxu3 %v4931_v56 }
0x165f   :  { %v4941_v6 = vpop.f32.mrf.mxu0  ;;  %v4954_v8 = vpop.f32.mrf.mxu1 }
0x1660   :  { %v4984_v11 = vadd.f32 %v4941_v6, %v335_v60  ;;  %v4985_v15 = vadd.f32 %v4954_v8, %v424_v0 }
0x1662   :  { %v5506_v26 = vmul.f32 -1.442695, %v4984_v11  ;;  %v5507_v30 = vmul.f32 -1.442695, %v4985_v15 }
0x1664   :  { %6065 = vpow2.f32 %v5506_v26 }
0x1665   :  { %6067 = vpow2.f32 %v5507_v30 }
0x1666   :  { %v4967_v4 = vpop.f32.mrf.mxu2  ;;  %v4980_v9 = vpop.f32.mrf.mxu3 }
0x1667   :  { %v4986_v22 = vadd.f32 %v4967_v4, %v513_v51  ;;  %v4943_v49 = vpop.f32.mrf.mxu0  ;;  %v4956_v2 = vpop.f32.mrf.mxu1  ;;  %v4987_v63 = vadd.f32 %v4980_v9, %v602_v38 }
0x1669   :  { %v5508_v37 = vmul.f32 -1.442695, %v4986_v22 }
0x166a   :  { %v6066_v17 = vpop.eup %6065 }
0x166b   :  { %v6068_v48 = vpop.eup %6067  ;;  %v4997_v41 = vadd.f32 1.0, %v6066_v17  ;;  %6069 = vpow2.f32 %v5508_v37 }
0x166c   :  { %v4998_v1 = vadd.f32 1.0, %v6068_v48 }
0x166d   :  { %6071 = vrcp.f32 %v4997_v41  ;;  %v5011_v59 = vand.u32 2147483648, %v4997_v41  ;;  %v5009_v27 = vand.u32 2147483647, %v4997_v41  ;;  %vm5005_vm7 = vweird.f32 %v4997_v41 }
0x166e   :  { %6073 = vrcp.f32 %v4998_v1  ;;  %v4969_v5 = vpop.f32.mrf.mxu2  ;;  %v4982_v12 = vpop.f32.mrf.mxu3  ;;  %v5026_v14 = vand.u32 2147483648, %v4998_v1  ;;  %v5024_v34 = vand.u32 2147483647, %v4998_v1  ;;  %vm5020_vm8 = vweird.f32 %v4998_v1 }
0x166f   :  { %v5012_v35 = vor.u32 1.1754944e-38, %v5011_v59  ;;  %vm5010_vm11 = vcmp.eq.f32.partialorder %v5009_v27, 8.507059e+37 }
0x1670   :  { %v5027_v10 = vor.u32 1.1754944e-38, %v5026_v14  ;;  %vm5025_vm12 = vcmp.eq.f32.partialorder %v5024_v34, 8.507059e+37 }
0x1671   :  { %v6070_v45 = vpop.eup %6069 }
0x1672   :  { %v4999_v53 = vadd.f32 1.0, %v6070_v45 }
0x1673   :  { %v6072_v40 = vpop.eup %6071 }
0x1674   :  { %v6074_v58 = vpop.eup %6073  ;;  %v5001_v3 = vmul.f32 %v6072_v40, %v4997_v41  ;;  %6075 = vrcp.f32 %v4999_v53  ;;  %vm5006_vm5 = vweird.f32 %v6072_v40  ;;  %v5041_v42 = vand.u32 2147483648, %v4999_v53 }
0x1675   :  { %v5016_v29 = vmul.f32 %v6074_v58, %v4998_v1  ;;  %6077 = vtanh.f32 %v4987_v63  ;;  %vm5021_vm6 = vweird.f32 %v6074_v58  ;;  %vm5007_vm9 = vmor %vm5005_vm7, %vm5006_vm5  ;;  %vm5035_vm14 = vweird.f32 %v4999_v53 }
0x1676   :  { %v5002_v44 = vsub.f32 1.0, %v5001_v3  ;;  %vm5022_vm10 = vmor %vm5020_vm8, %vm5021_vm6  ;;  %v5039_v46 = vand.u32 2147483647, %v4999_v53  ;;  %v5042_v50 = vor.u32 1.1754944e-38, %v5041_v42 }
0x1677   :  { %v5017_v23 = vsub.f32 1.0, %v5016_v29 }
0x1678   :  { %v5003_v57 = vmul.f32 %v6072_v40, %v5002_v44  ;;  %vm5040_vm0 = vcmp.eq.f32.partialorder %v5039_v46, 8.507059e+37 }
0x1679   :  { %v5018_v25 = vmul.f32 %v6074_v58, %v5017_v23 }
0x167a   :  { %v6076_v55 = vpop.eup %6075  ;;  %v5004_v54 = vadd.f32 %v6072_v40, %v5003_v57 }
0x167b   :  { %v5031_v13 = vmul.f32 %v6076_v55, %v4999_v53  ;;  %v5019_v62 = vadd.f32 %v6074_v58, %v5018_v25  ;;  %v6078_v19 = vpop.eup %6077  ;;  %vm5036_vm13 = vweird.f32 %v6076_v55 }
0x167c   :  { %v5008_v18 = vsel %vm5007_vm9, %v6072_v40, %v5004_v54  ;;  %vm5037_vm15 = vmor %vm5035_vm14, %vm5036_vm13 }
0x167d   :  { %v5032_v31 = vsub.f32 1.0, %v5031_v13  ;;  %v5013_v16 = vsel %vm5010_vm11, %v5012_v35, %v5008_v18  ;;  %v5023_v20 = vsel %vm5022_vm10, %v6074_v58, %v5019_v62 }
0x167e   :  { %v5028_v21 = vsel %vm5025_vm12, %v5027_v10, %v5023_v20  ;;  %v5047_v24 = vmul.f32 %v6078_v19, %v5013_v16 }
0x167f   :  { %v5046_v32 = vmul.f32 %v5028_v21, %v8104_v28  ;;  %v5033_v33 = vmul.f32 %v6076_v55, %v5032_v31 }
0x1681   :  { %v5048_v43 = vadd.f32 %v5047_v24, %v5046_v32  ;;  %v5034_v36 = vadd.f32 %v6076_v55, %v5033_v33 }
0x1683   :  { %6079 = vtanh.f32 %v5048_v43  ;;  %5059 = vst [vmem:[#allocation11] sm:$0xff] %v5048_v43  ;;  %v5038_v47 = vsel %vm5037_vm15, %v6076_v55, %v5034_v36 }
0x1684   :  { %v5043_v56 = vsel %vm5040_vm0, %v5042_v50, %v5038_v47 }
0x1689   :  { %v6080_v28 = vpop.eup %6079 }
0x168a   :  { %v5050_v7 = vmul.f32 %v6080_v28, %v5043_v56 }
0x168c   :  { %5052 = vst [vmem:[#allocation8 + $0xf8] sm:$0xff] %v5050_v7 }
0x168d   :  { %5058 = vst [vmem:[#allocation9] sm:$0xff] %v5050_v7  ;;  %5072 = dma.vmem_to_hbm [thread:$0]  %s5065_s15, 4096, %s5067_s2, [#allocation7], %s6189_s6, %s6189_s6, %s6190_s7  }
0x168e   :  { %5083 = dma.vmem_to_hbm [thread:$0]  %s5079_s19, 128, %s5081_s22, [#allocation10]  }
0x168f   :  { %5094 = dma.vmem_to_hbm [thread:$0]  %s5090_s24, 128, %s5092_s27, [#allocation10]  }
0x1690   :  { %6179 = dma.done.wait [#allocation7], 4096  }
0x1691   :  { %6180 = vsyncadd [#allocation7], 4294963200 }
0x1692   :  { %6181 = dma.done.wait [#allocation10], 256  }
0x1693   :  { %6182 = vsyncadd [#allocation10], 4294967040 }
0x1694   :  { %5107 = vsyncpa [#allocation6], 1 }
0x1695   :  { %5108 = vsyncpa [#allocation7], 1 }
0x1696   :  { %5109 = vsyncpa [#allocation10], 1 }

</bundles_post_ra>
